<compile_context>
chip_gen: v5e
topology: v5e:2x2
jax: 0.10.0
libtpu: 0.0.40
codegen_flags: <defaults>
</compile_context>

<pallas_src>
import functools

import numpy as np
import jax
import jax.numpy as jnp
from jax import lax
from jax.experimental import pallas as pl
from jax.experimental.pallas import tpu as pltpu

EPS = 1e-5


def _round_up(x, m):
    return (x + m - 1) // m * m


def _basic_block_kernel(x_ref, w1_ref, b1_ref, w2_ref, b2_ref, ws_ref, bs_ref,
                        out_ref, mid_ref, *, H, W, BH, Wp):
    """One (image, row-band) pair per grid step.

    x_ref  : ((BH+5)*Wp, Cin) bf16  flattened, zero-padded band slab
                                    (slab row s <-> image row band*BH + s - 2)
    w1_ref : (9, Cin, C1)     bf16  conv1 taps (t = dy*3+dx), BN1 folded
    b1_ref : (1, C1)          f32   BN1 bias
    w2_ref : (9, C1, C2)      bf16  conv2 taps, BN2 folded
    b2_ref : (1, C2)          f32   BN2 bias
    ws_ref : (Cin, C2)        bf16  1x1 shortcut conv, BN_s folded
    bs_ref : (1, C2)          f32   BN_s bias
    out_ref: (BH*Wp, C2)      bf16  padded-width output slab for this band
    mid_ref: ((BH+4)*Wp, C1)  bf16  scratch: conv1 output (band + halo rows)
    """
    band = pl.program_id(1)
    C1 = w1_ref.shape[2]
    Lb = BH * Wp               # flattened output rows of this band
    L1 = (BH + 2) * Wp         # conv1 rows: band rows + 1 recomputed halo row each side

    # ---- conv1 (3x3, pad=1): 9 per-tap MXU matmuls, bias in the first -----
    # conv1 output flat i1 = j*Wp + w reads slab flat dy*Wp + dx + i1.
    acc1 = None
    sc_patch = None
    for dy in range(3):
        for dx in range(3):
            off = dy * Wp + dx
            patch = x_ref[off:off + L1, :]
            if (dy, dx) == (2, 1):
                sc_patch = patch                      # first Lb rows == x[h, w, :]
            t = jnp.dot(patch, w1_ref[dy * 3 + dx],
                        preferred_element_type=jnp.float32)
            acc1 = t + b1_ref[...] if acc1 is None else acc1 + t

    # ---- ReLU + validity mask (in-kernel iota; no mask input) -------------
    # Valid conv1 rows are image rows [0, H); valid cols are [0, W).  The
    # zeroed entries are exactly what conv2 reads as its zero padding through
    # the flattened layout.
    idx = lax.broadcasted_iota(jnp.int32, (L1, C1), 0)      # flat row-major index
    lo = (1 - band * BH) * Wp                               # image_row >= 0
    hi = (H + 1 - band * BH) * Wp                           # image_row <  H
    valid = (idx >= lo) & (idx < hi) & (idx % Wp < W)
    out1 = jnp.where(valid, jnp.maximum(acc1, 0.0), 0.0).astype(mid_ref.dtype)

    # ---- stash conv1 output: one sublane-ALIGNED big store ----------------
    zrow = jnp.zeros((Wp, C1), mid_ref.dtype)
    mid_ref[0:Wp, :] = zrow                                  # top border row
    mid_ref[(BH + 3) * Wp:(BH + 4) * Wp, :] = zrow           # bottom border row
    mid_ref[Wp:Wp + L1, :] = out1                            # offset Wp (Wp % 16 == 0)

    # ---- conv2 (3x3, pad=1): 9 per-tap matmuls on the mid scratch ---------
    # conv2 output flat i2 = hb*Wp + w reads mid flat (Wp-1) + dy*Wp + dx + i2.
    acc2 = None
    for dy in range(3):
        for dx in range(3):
            off = Wp - 1 + dy * Wp + dx
            patch = mid_ref[off:off + Lb, :]
            t = jnp.dot(patch, w2_ref[dy * 3 + dx],
                        preferred_element_type=jnp.float32)
            acc2 = t + b2_ref[...] if acc2 is None else acc2 + t

    # ---- shortcut: 1x1 conv + BN bias (reuses the conv1 (2,1) tap patch) ---
    sc = jnp.dot(sc_patch[:Lb, :], ws_ref[...],
                 preferred_element_type=jnp.float32) + bs_ref[...]

    # ---- residual add + ReLU, bf16 writeback -------------------------------
    out_ref[...] = jnp.maximum(acc2 + sc, 0.0).astype(out_ref.dtype)


def _fold_bn(w, gamma, beta, mean, var):
    """Fold inference-mode BN into the preceding conv: returns (w*s, bias)."""
    s = gamma / jnp.sqrt(var + EPS)
    b = beta - mean * s
    return w * s[:, None, None, None], b


def _vmem_estimate(bh, Wp, Cin, C1, C2):
    """Rough per-step VMEM footprint (bytes) for band height `bh`."""
    s = (bh + 5) * Wp
    l1 = (bh + 2) * Wp
    lb = bh * Wp
    cmax = max(C1, C2)
    est = 0
    est += 2 * s * Cin * 2              # input band slab, double-buffered (bf16)
    est += 2 * lb * C2 * 2              # output band slab, double-buffered (bf16)
    est += (bh + 4) * Wp * C1 * 2       # mid scratch (bf16)
    est += 2 * l1 * C1 * 4              # conv1 f32 accumulator + iota/mask temp
    est += l1 * C1 * 2                  # out1 bf16 temp
    est += 2 * lb * cmax * 4            # conv2 accumulator + shortcut temp
    est += 2 * l1 * Cin * 2             # tap-patch copies in flight
    return est


def _choose_band_height(H, Wp, Cin, C1, C2, budget_bytes=24 * 2**20):
    bh = min(H, 512)
    while bh > 8 and _vmem_estimate(bh, Wp, Cin, C1, C2) > budget_bytes:
        bh = (bh + 1) // 2
    return max(1, min(bh, H))


def basic_block_forward(x_nchw, params, band_rows=None):
    # TODO(synk): only the module defaults (stride=1, act='relu', inference BN)
    # are implemented here.
    (w1, g1, be1, m1, v1,
     w2, g2, be2, m2, v2,
     ws, gs, bes, ms, vs) = params

    N, Cin, H, W = x_nchw.shape
    C1, C2 = w1.shape[0], w2.shape[0]

    # Padded width: multiple of 16 keeps the flattened layout tile-aligned for
    # bf16; >= W+2 guarantees the dx overshoot only ever reads zero padding.
    Wp = _round_up(W + 2, 16)
    assert Wp >= W + 2, (Wp, W)

    BH = band_rows if band_rows is not None else _choose_band_height(H, Wp, Cin, C1, C2)
    BH = max(1, min(int(BH), H))
    num_bands = -(-H // BH)
    H_pad = num_bands * BH
    S = BH + 5                           # padded input rows shipped per band

    w1f, b1 = _fold_bn(w1, g1, be1, m1, v1)
    w2f, b2 = _fold_bn(w2, g2, be2, m2, v2)
    wsf, bs = _fold_bn(ws, gs, bes, ms, vs)

    # (Cout, Cin, ky, kx) -> (ky*3+kx, Cin, Cout): one weight slab per tap.
    w1_k = jnp.transpose(w1f, (2, 3, 1, 0)).reshape(9, Cin, C1).astype(jnp.bfloat16)
    w2_k = jnp.transpose(w2f, (2, 3, 1, 0)).reshape(9, C1, C2).astype(jnp.bfloat16)
    ws_k = jnp.transpose(wsf, (2, 3, 1, 0)).reshape(Cin, C2).astype(jnp.bfloat16)
    b1_k = b1.reshape(1, C1).astype(jnp.float32)
    b2_k = b2.reshape(1, C2).astype(jnp.float32)
    bs_k = bs.reshape(1, C2).astype(jnp.float32)

    # NCHW -> NHWC, zero-pad (2 top rows, H_pad-H+3 bottom rows, 1 left col,
    # Wp-W-1 right cols), gather each band's slab (rows overlap by the conv
    # halo), flatten rows, cast to bf16 for the MXU.
    x_nhwc = jnp.transpose(x_nchw, (0, 2, 3, 1))
    x_p = jnp.pad(x_nhwc, ((0, 0), (2, H_pad - H + 3), (1, Wp - W - 1), (0, 0)))
    band_idx = np.arange(num_bands)[:, None] * BH + np.arange(S)[None, :]
    x_bands = x_p[:, band_idx]                                # (N, nb, S, Wp, Cin)
    x_bands = x_bands.reshape(N, num_bands, S * Wp, Cin).astype(jnp.bfloat16)

    # VMEM limit derived from the actual band footprint and chip capacity.
    est = _vmem_estimate(BH, Wp, Cin, C1, C2)
    try:
        cap = int(getattr(pltpu.get_tpu_info(), "vmem_capacity_bytes", 0))
    except Exception:
        cap = 0
    if cap <= 0:
        cap = 64 * 2**20                 # conservative (v7x-sized) fallback
    vmem_limit = int(min(cap * 7 // 8, max(32 * 2**20, 3 * est)))

    kernel = functools.partial(_basic_block_kernel, H=H, W=W, BH=BH, Wp=Wp)

    out_bands = pl.pallas_call(
        kernel,
        out_shape=jax.ShapeDtypeStruct((N, num_bands, BH * Wp, C2), jnp.bfloat16),
        grid_spec=pltpu.PrefetchScalarGridSpec(
            num_scalar_prefetch=0,
            grid=(N, num_bands),
            in_specs=[
                pl.BlockSpec((None, None, S * Wp, Cin), lambda n, b: (n, b, 0, 0)),
                pl.BlockSpec((9, Cin, C1), lambda n, b: (0, 0, 0)),
                pl.BlockSpec((1, C1), lambda n, b: (0, 0)),
                pl.BlockSpec((9, C1, C2), lambda n, b: (0, 0, 0)),
                pl.BlockSpec((1, C2), lambda n, b: (0, 0)),
                pl.BlockSpec((Cin, C2), lambda n, b: (0, 0)),
                pl.BlockSpec((1, C2), lambda n, b: (0, 0)),
            ],
            out_specs=pl.BlockSpec((None, None, BH * Wp, C2),
                                   lambda n, b: (n, b, 0, 0)),
            scratch_shapes=[pltpu.VMEM(((BH + 4) * Wp, C1), jnp.bfloat16)],
        ),
        compiler_params=pltpu.CompilerParams(
            dimension_semantics=("parallel", "parallel"),
            vmem_limit_bytes=vmem_limit,
        ),
    )(x_bands, w1_k, b1_k, w2_k, b2_k, ws_k, bs_k)

    # A following block would consume the padded-width NHWC bf16 slab directly;
    # crop + NCHW transpose here only to honour the module's contract.
    out = out_bands.reshape(N, H_pad, Wp, C2)[:, :H, :W, :]
    return jnp.transpose(out, (0, 3, 1, 2))


def _ref_basic_block(x, params, bf16_operands):
    """Pure-JAX reference (NCHW). bf16_operands=True mirrors the kernel's
    numerics (bf16 MXU operands, f32 accumulation, bf16 intermediate)."""
    (w1, g1, be1, m1, v1,
     w2, g2, be2, m2, v2,
     ws, gs, bes, ms, vs) = params
    w1f, b1 = _fold_bn(w1, g1, be1, m1, v1)
    w2f, b2 = _fold_bn(w2, g2, be2, m2, v2)
    wsf, bs = _fold_bn(ws, gs, bes, ms, vs)
    cdt = jnp.bfloat16 if bf16_operands else jnp.float32

    def conv(x, w, pad):
        return jax.lax.conv_general_dilated(
            x.astype(cdt), w.astype(cdt),
            window_strides=(1, 1), padding=[(pad, pad), (pad, pad)],
            dimension_numbers=('NCHW', 'OIHW', 'NCHW'),
            preferred_element_type=jnp.float32,
            precision=jax.lax.Precision.HIGHEST)

    out1 = jax.nn.relu(conv(x, w1f, 1) + b1[None, :, None, None])
    if bf16_operands:
        out1 = out1.astype(jnp.bfloat16)
    main = conv(out1, w2f, 1) + b2[None, :, None, None]
    sc = conv(x, wsf, 0) + bs[None, :, None, None]
    return jax.nn.relu(main + sc)


if __name__ == "__main__":
    key = jax.random.PRNGKey(0)
    N, Cin, H, W = 2, 4, 16, 16
    C1, C2 = 4, 4              # cfg = (Cin, C1, C2), stride=1, first=True, relu

    ks = jax.random.split(key, 8)
    x = jax.random.normal(ks[0], (N, Cin, H, W), jnp.float32)
    w1 = jax.random.normal(ks[1], (C1, Cin, 3, 3), jnp.float32) * 0.2
    w2 = jax.random.normal(ks[2], (C2, C1, 3, 3), jnp.float32) * 0.2
    ws = jax.random.normal(ks[3], (C2, Cin, 1, 1), jnp.float32) * 0.2

    def bn_params(k, c):
        k1, k2, k3, k4 = jax.random.split(k, 4)
        return (jax.random.uniform(k1, (c,), jnp.float32, 0.5, 1.5),
                jax.random.normal(k2, (c,), jnp.float32) * 0.1,
                jax.random.normal(k3, (c,), jnp.float32) * 0.1,
                jax.random.uniform(k4, (c,), jnp.float32, 0.5, 1.5))

    g1, be1, m1, v1 = bn_params(ks[4], C1)
    g2, be2, m2, v2 = bn_params(ks[5], C2)
    gs, bes, ms, vs = bn_params(ks[6], C2)

    params = (w1, g1, be1, m1, v1,
              w2, g2, be2, m2, v2,
              ws, gs, bes, ms, vs)

    # Default (single band for this small image).
    out = jax.block_until_ready(basic_block_forward(x, params))
    assert out.shape == (N, C2, H, W), out.shape
    out_f = out.astype(jnp.float32)

    # Multi-band path: 16 rows in bands of 6 exercises the inter-band halo
    # recompute AND the ragged last band; must match the single-band result.
    out_banded = jax.block_until_ready(
        basic_block_forward(x, params, band_rows=6)).astype(jnp.float32)
    err_b = float(jnp.max(jnp.abs(out_f - out_banded)))
    assert err_b < 1e-3, f"banded vs single-band max abs error {err_b}"

    # Matched-precision reference (bf16 operands, f32 accumulation): tight
    # structural check of the kernel (output is bf16, hence the tolerance).
    ref_m = _ref_basic_block(x, params, bf16_operands=True)
    err_m = float(jnp.max(jnp.abs(out_f - ref_m)))
    assert err_m < 1e-1, f"bf16-matched max abs error {err_m}"

    # Full-f32 reference (the PyTorch module's math): loose sanity bound
    # covering bf16 quantization of MXU operands and the bf16 output.
    ref_f = _ref_basic_block(x, params, bf16_operands=False)
    err_f = float(jnp.max(jnp.abs(out_f - ref_f)))
    assert err_f < 0.5, f"f32 max abs error {err_f}"

    print("KERNEL_OK")
</pallas_src>

<mosaic_0001>
module attributes {stable_mosaic.version = 11 : i64} {
  func.func @_basic_block_kernel(%arg0: i32, %arg1: i32, %arg2: memref<1x1x672x4xbf16, #tpu.memory_space<vmem>>, %arg3: memref<9x4x4xbf16, #tpu.memory_space<vmem>>, %arg4: memref<1x4xf32, #tpu.memory_space<vmem>>, %arg5: memref<9x4x4xbf16, #tpu.memory_space<vmem>>, %arg6: memref<1x4xf32, #tpu.memory_space<vmem>>, %arg7: memref<4x4xbf16, #tpu.memory_space<vmem>>, %arg8: memref<1x4xf32, #tpu.memory_space<vmem>>, %arg9: memref<1x1x512x4xbf16, #tpu.memory_space<vmem>>, %arg10: memref<640x4xbf16, #tpu.memory_space<vmem>>) attributes {dimension_semantics = [#tpu.dimension_semantics<parallel>, #tpu.dimension_semantics<parallel>], iteration_bounds = array<i64: 2, 1>, scalar_prefetch = 0 : i64, scratch_operands = 1 : i64, tpu.core_type = #tpu.core_type<tc>, window_params = [{transform_indices = @transform_0, window_bounds = array<i64: 1, 1, 672, 4>}, {pipeline_mode = #tpu.pipeline_mode<synchronous>, transform_indices = @transform_1, window_bounds = array<i64: 9, 4, 4>}, {pipeline_mode = #tpu.pipeline_mode<synchronous>, transform_indices = @transform_2, window_bounds = array<i64: 1, 4>}, {pipeline_mode = #tpu.pipeline_mode<synchronous>, transform_indices = @transform_3, window_bounds = array<i64: 9, 4, 4>}, {pipeline_mode = #tpu.pipeline_mode<synchronous>, transform_indices = @transform_4, window_bounds = array<i64: 1, 4>}, {pipeline_mode = #tpu.pipeline_mode<synchronous>, transform_indices = @transform_5, window_bounds = array<i64: 4, 4>}, {pipeline_mode = #tpu.pipeline_mode<synchronous>, transform_indices = @transform_6, window_bounds = array<i64: 1, 4>}, {transform_indices = @transform_7, window_bounds = array<i64: 1, 1, 512, 4>}]} {
    %c0 = arith.constant 0 : index
    %c0_0 = arith.constant 0 : index
    %c0_1 = arith.constant 0 : index
    %c0_2 = arith.constant 0 : index
    %0 = vector.load %arg2[%c0, %c0_0, %c0_1, %c0_2] : memref<1x1x672x4xbf16, #tpu.memory_space<vmem>>, vector<1x1x576x4xbf16>
    %1 = vector.shape_cast %0 : vector<1x1x576x4xbf16> to vector<576x4xbf16>
    %c0_3 = arith.constant 0 : index
    %c0_4 = arith.constant 0 : index
    %c0_5 = arith.constant 0 : index
    %2 = vector.load %arg3[%c0_3, %c0_4, %c0_5] : memref<9x4x4xbf16, #tpu.memory_space<vmem>>, vector<1x4x4xbf16>
    %3 = vector.shape_cast %2 : vector<1x4x4xbf16> to vector<4x4xbf16>
    %cst = arith.constant dense<0.000000e+00> : vector<576x4xf32>
    %4 = tpu.matmul %1, %3, %cst {dimension_numbers = #tpu.dot_dimension_numbers<[1], [0], [0], [1], [0, 0, 1, 1], [], []>} : vector<576x4xbf16>, vector<4x4xbf16>, vector<576x4xf32> -> vector<576x4xf32>
    %c0_6 = arith.constant 0 : index
    %c0_7 = arith.constant 0 : index
    %5 = vector.load %arg4[%c0_6, %c0_7] : memref<1x4xf32, #tpu.memory_space<vmem>>, vector<1x4xf32>
    %6 = vector.broadcast %5 : vector<1x4xf32> to vector<576x4xf32>
    %7 = arith.addf %4, %6 : vector<576x4xf32>
    %c0_8 = arith.constant 0 : index
    %c0_9 = arith.constant 0 : index
    %c1 = arith.constant 1 : index
    %c0_10 = arith.constant 0 : index
    %8 = vector.load %arg2[%c0_8, %c0_9, %c1, %c0_10] : memref<1x1x672x4xbf16, #tpu.memory_space<vmem>>, vector<1x1x576x4xbf16>
    %9 = vector.shape_cast %8 : vector<1x1x576x4xbf16> to vector<576x4xbf16>
    %c1_11 = arith.constant 1 : index
    %c0_12 = arith.constant 0 : index
    %c0_13 = arith.constant 0 : index
    %10 = vector.load %arg3[%c1_11, %c0_12, %c0_13] : memref<9x4x4xbf16, #tpu.memory_space<vmem>>, vector<1x4x4xbf16>
    %11 = vector.shape_cast %10 : vector<1x4x4xbf16> to vector<4x4xbf16>
    %cst_14 = arith.constant dense<0.000000e+00> : vector<576x4xf32>
    %12 = tpu.matmul %9, %11, %cst_14 {dimension_numbers = #tpu.dot_dimension_numbers<[1], [0], [0], [1], [0, 0, 1, 1], [], []>} : vector<576x4xbf16>, vector<4x4xbf16>, vector<576x4xf32> -> vector<576x4xf32>
    %13 = arith.addf %7, %12 : vector<576x4xf32>
    %c0_15 = arith.constant 0 : index
    %c0_16 = arith.constant 0 : index
    %c2 = arith.constant 2 : index
    %c0_17 = arith.constant 0 : index
    %14 = vector.load %arg2[%c0_15, %c0_16, %c2, %c0_17] : memref<1x1x672x4xbf16, #tpu.memory_space<vmem>>, vector<1x1x576x4xbf16>
    %15 = vector.shape_cast %14 : vector<1x1x576x4xbf16> to vector<576x4xbf16>
    %c2_18 = arith.constant 2 : index
    %c0_19 = arith.constant 0 : index
    %c0_20 = arith.constant 0 : index
    %16 = vector.load %arg3[%c2_18, %c0_19, %c0_20] : memref<9x4x4xbf16, #tpu.memory_space<vmem>>, vector<1x4x4xbf16>
    %17 = vector.shape_cast %16 : vector<1x4x4xbf16> to vector<4x4xbf16>
    %cst_21 = arith.constant dense<0.000000e+00> : vector<576x4xf32>
    %18 = tpu.matmul %15, %17, %cst_21 {dimension_numbers = #tpu.dot_dimension_numbers<[1], [0], [0], [1], [0, 0, 1, 1], [], []>} : vector<576x4xbf16>, vector<4x4xbf16>, vector<576x4xf32> -> vector<576x4xf32>
    %19 = arith.addf %13, %18 : vector<576x4xf32>
    %c0_22 = arith.constant 0 : index
    %c0_23 = arith.constant 0 : index
    %c32 = arith.constant 32 : index
    %c0_24 = arith.constant 0 : index
    %20 = vector.load %arg2[%c0_22, %c0_23, %c32, %c0_24] : memref<1x1x672x4xbf16, #tpu.memory_space<vmem>>, vector<1x1x576x4xbf16>
    %21 = vector.shape_cast %20 : vector<1x1x576x4xbf16> to vector<576x4xbf16>
    %c3 = arith.constant 3 : index
    %c0_25 = arith.constant 0 : index
    %c0_26 = arith.constant 0 : index
    %22 = vector.load %arg3[%c3, %c0_25, %c0_26] : memref<9x4x4xbf16, #tpu.memory_space<vmem>>, vector<1x4x4xbf16>
    %23 = vector.shape_cast %22 : vector<1x4x4xbf16> to vector<4x4xbf16>
    %cst_27 = arith.constant dense<0.000000e+00> : vector<576x4xf32>
    %24 = tpu.matmul %21, %23, %cst_27 {dimension_numbers = #tpu.dot_dimension_numbers<[1], [0], [0], [1], [0, 0, 1, 1], [], []>} : vector<576x4xbf16>, vector<4x4xbf16>, vector<576x4xf32> -> vector<576x4xf32>
    %25 = arith.addf %19, %24 : vector<576x4xf32>
    %c0_28 = arith.constant 0 : index
    %c0_29 = arith.constant 0 : index
    %c33 = arith.constant 33 : index
    %c0_30 = arith.constant 0 : index
    %26 = vector.load %arg2[%c0_28, %c0_29, %c33, %c0_30] : memref<1x1x672x4xbf16, #tpu.memory_space<vmem>>, vector<1x1x576x4xbf16>
    %27 = vector.shape_cast %26 : vector<1x1x576x4xbf16> to vector<576x4xbf16>
    %c4 = arith.constant 4 : index
    %c0_31 = arith.constant 0 : index
    %c0_32 = arith.constant 0 : index
    %28 = vector.load %arg3[%c4, %c0_31, %c0_32] : memref<9x4x4xbf16, #tpu.memory_space<vmem>>, vector<1x4x4xbf16>
    %29 = vector.shape_cast %28 : vector<1x4x4xbf16> to vector<4x4xbf16>
    %cst_33 = arith.constant dense<0.000000e+00> : vector<576x4xf32>
    %30 = tpu.matmul %27, %29, %cst_33 {dimension_numbers = #tpu.dot_dimension_numbers<[1], [0], [0], [1], [0, 0, 1, 1], [], []>} : vector<576x4xbf16>, vector<4x4xbf16>, vector<576x4xf32> -> vector<576x4xf32>
    %31 = arith.addf %25, %30 : vector<576x4xf32>
    %c0_34 = arith.constant 0 : index
    %c0_35 = arith.constant 0 : index
    %c34 = arith.constant 34 : index
    %c0_36 = arith.constant 0 : index
    %32 = vector.load %arg2[%c0_34, %c0_35, %c34, %c0_36] : memref<1x1x672x4xbf16, #tpu.memory_space<vmem>>, vector<1x1x576x4xbf16>
    %33 = vector.shape_cast %32 : vector<1x1x576x4xbf16> to vector<576x4xbf16>
    %c5 = arith.constant 5 : index
    %c0_37 = arith.constant 0 : index
    %c0_38 = arith.constant 0 : index
    %34 = vector.load %arg3[%c5, %c0_37, %c0_38] : memref<9x4x4xbf16, #tpu.memory_space<vmem>>, vector<1x4x4xbf16>
    %35 = vector.shape_cast %34 : vector<1x4x4xbf16> to vector<4x4xbf16>
    %cst_39 = arith.constant dense<0.000000e+00> : vector<576x4xf32>
    %36 = tpu.matmul %33, %35, %cst_39 {dimension_numbers = #tpu.dot_dimension_numbers<[1], [0], [0], [1], [0, 0, 1, 1], [], []>} : vector<576x4xbf16>, vector<4x4xbf16>, vector<576x4xf32> -> vector<576x4xf32>
    %37 = arith.addf %31, %36 : vector<576x4xf32>
    %c0_40 = arith.constant 0 : index
    %c0_41 = arith.constant 0 : index
    %c64 = arith.constant 64 : index
    %c0_42 = arith.constant 0 : index
    %38 = vector.load %arg2[%c0_40, %c0_41, %c64, %c0_42] : memref<1x1x672x4xbf16, #tpu.memory_space<vmem>>, vector<1x1x576x4xbf16>
    %39 = vector.shape_cast %38 : vector<1x1x576x4xbf16> to vector<576x4xbf16>
    %c6 = arith.constant 6 : index
    %c0_43 = arith.constant 0 : index
    %c0_44 = arith.constant 0 : index
    %40 = vector.load %arg3[%c6, %c0_43, %c0_44] : memref<9x4x4xbf16, #tpu.memory_space<vmem>>, vector<1x4x4xbf16>
    %41 = vector.shape_cast %40 : vector<1x4x4xbf16> to vector<4x4xbf16>
    %cst_45 = arith.constant dense<0.000000e+00> : vector<576x4xf32>
    %42 = tpu.matmul %39, %41, %cst_45 {dimension_numbers = #tpu.dot_dimension_numbers<[1], [0], [0], [1], [0, 0, 1, 1], [], []>} : vector<576x4xbf16>, vector<4x4xbf16>, vector<576x4xf32> -> vector<576x4xf32>
    %43 = arith.addf %37, %42 : vector<576x4xf32>
    %c0_46 = arith.constant 0 : index
    %c0_47 = arith.constant 0 : index
    %c65 = arith.constant 65 : index
    %c0_48 = arith.constant 0 : index
    %44 = vector.load %arg2[%c0_46, %c0_47, %c65, %c0_48] : memref<1x1x672x4xbf16, #tpu.memory_space<vmem>>, vector<1x1x576x4xbf16>
    %45 = vector.shape_cast %44 : vector<1x1x576x4xbf16> to vector<576x4xbf16>
    %c7 = arith.constant 7 : index
    %c0_49 = arith.constant 0 : index
    %c0_50 = arith.constant 0 : index
    %46 = vector.load %arg3[%c7, %c0_49, %c0_50] : memref<9x4x4xbf16, #tpu.memory_space<vmem>>, vector<1x4x4xbf16>
    %47 = vector.shape_cast %46 : vector<1x4x4xbf16> to vector<4x4xbf16>
    %cst_51 = arith.constant dense<0.000000e+00> : vector<576x4xf32>
    %48 = tpu.matmul %45, %47, %cst_51 {dimension_numbers = #tpu.dot_dimension_numbers<[1], [0], [0], [1], [0, 0, 1, 1], [], []>} : vector<576x4xbf16>, vector<4x4xbf16>, vector<576x4xf32> -> vector<576x4xf32>
    %49 = arith.addf %43, %48 : vector<576x4xf32>
    %c0_52 = arith.constant 0 : index
    %c0_53 = arith.constant 0 : index
    %c66 = arith.constant 66 : index
    %c0_54 = arith.constant 0 : index
    %50 = vector.load %arg2[%c0_52, %c0_53, %c66, %c0_54] : memref<1x1x672x4xbf16, #tpu.memory_space<vmem>>, vector<1x1x576x4xbf16>
    %51 = vector.shape_cast %50 : vector<1x1x576x4xbf16> to vector<576x4xbf16>
    %c8 = arith.constant 8 : index
    %c0_55 = arith.constant 0 : index
    %c0_56 = arith.constant 0 : index
    %52 = vector.load %arg3[%c8, %c0_55, %c0_56] : memref<9x4x4xbf16, #tpu.memory_space<vmem>>, vector<1x4x4xbf16>
    %53 = vector.shape_cast %52 : vector<1x4x4xbf16> to vector<4x4xbf16>
    %cst_57 = arith.constant dense<0.000000e+00> : vector<576x4xf32>
    %54 = tpu.matmul %51, %53, %cst_57 {dimension_numbers = #tpu.dot_dimension_numbers<[1], [0], [0], [1], [0, 0, 1, 1], [], []>} : vector<576x4xbf16>, vector<4x4xbf16>, vector<576x4xf32> -> vector<576x4xf32>
    %55 = arith.addf %49, %54 : vector<576x4xf32>
    %56 = tpu.iota {dimensions = array<i32: 0>} : vector<576x4xi32>
    %c16_i32 = arith.constant 16 : i32
    %57 = arith.muli %arg1, %c16_i32 : i32
    %c1_i32 = arith.constant 1 : i32
    %58 = arith.subi %c1_i32, %57 : i32
    %c32_i32 = arith.constant 32 : i32
    %59 = arith.muli %58, %c32_i32 : i32
    %c16_i32_58 = arith.constant 16 : i32
    %60 = arith.muli %arg1, %c16_i32_58 : i32
    %c17_i32 = arith.constant 17 : i32
    %61 = arith.subi %c17_i32, %60 : i32
    %c32_i32_59 = arith.constant 32 : i32
    %62 = arith.muli %61, %c32_i32_59 : i32
    %63 = vector.broadcast %59 : i32 to vector<576x4xi32>
    %64 = arith.cmpi sge, %56, %63 : vector<576x4xi32>
    %65 = vector.broadcast %62 : i32 to vector<576x4xi32>
    %66 = arith.cmpi slt, %56, %65 : vector<576x4xi32>
    %67 = arith.andi %64, %66 : vector<576x4xi1>
    %c32_i32_60 = arith.constant 32 : i32
    %c0_i32 = arith.constant 0 : i32
    %68 = arith.cmpi eq, %c32_i32_60, %c0_i32 : i32
    %c1_i32_61 = arith.constant 1 : i32
    %69 = arith.select %68, %c1_i32_61, %c32_i32_60 : i32
    %70 = vector.broadcast %69 : i32 to vector<576x4xi32>
    %71 = arith.remsi %56, %70 : vector<576x4xi32>
    %c0_i32_62 = arith.constant 0 : i32
    %72 = vector.broadcast %c0_i32_62 : i32 to vector<576x4xi32>
    %73 = arith.cmpi ne, %71, %72 : vector<576x4xi32>
    %c0_i32_63 = arith.constant 0 : i32
    %74 = vector.broadcast %c0_i32_63 : i32 to vector<576x4xi32>
    %75 = arith.cmpi slt, %71, %74 : vector<576x4xi32>
    %c0_i32_64 = arith.constant 0 : i32
    %76 = arith.cmpi slt, %69, %c0_i32_64 : i32
    %77 = vector.broadcast %76 : i1 to vector<576x4xi1>
    %78 = vector.broadcast %77 : vector<576x4xi1> to vector<576x4xi1>
    %79 = arith.xori %75, %78 : vector<576x4xi1>
    %80 = arith.andi %79, %73 : vector<576x4xi1>
    %81 = vector.broadcast %69 : i32 to vector<576x4xi32>
    %82 = arith.addi %71, %81 : vector<576x4xi32>
    %83 = arith.select %80, %82, %71 : vector<576x4xi1>, vector<576x4xi32>
    %c16_i32_65 = arith.constant 16 : i32
    %84 = vector.broadcast %c16_i32_65 : i32 to vector<576x4xi32>
    %85 = arith.cmpi slt, %83, %84 : vector<576x4xi32>
    %86 = arith.andi %67, %85 : vector<576x4xi1>
    %cst_66 = arith.constant 0.000000e+00 : f32
    %87 = vector.broadcast %cst_66 : f32 to vector<576x4xf32>
    %88 = arith.maximumf %55, %87 : vector<576x4xf32>
    %cst_67 = arith.constant 0.000000e+00 : f32
    %89 = vector.broadcast %cst_67 : f32 to vector<576x4xf32>
    %90 = arith.select %86, %88, %89 : vector<576x4xi1>, vector<576x4xf32>
    %91 = arith.truncf %90 : vector<576x4xf32> to vector<576x4xbf16>
    %cst_68 = arith.constant 0.000000e+00 : bf16
    %92 = vector.broadcast %cst_68 : bf16 to vector<32x4xbf16>
    %c0_69 = arith.constant 0 : index
    %c0_70 = arith.constant 0 : index
    %93 = vector.load %arg10[%c0_69, %c0_70] : memref<640x4xbf16, #tpu.memory_space<vmem>>, vector<32x4xbf16>
    tpu.vector_store %arg10[%c0_69, %c0_70], %92 {strides = array<i32>} : memref<640x4xbf16, #tpu.memory_space<vmem>>, vector<32x4xbf16>,
    %c608 = arith.constant 608 : index
    %c0_71 = arith.constant 0 : index
    %94 = vector.load %arg10[%c608, %c0_71] : memref<640x4xbf16, #tpu.memory_space<vmem>>, vector<32x4xbf16>
    tpu.vector_store %arg10[%c608, %c0_71], %92 {strides = array<i32>} : memref<640x4xbf16, #tpu.memory_space<vmem>>, vector<32x4xbf16>,
    %c32_72 = arith.constant 32 : index
    %c0_73 = arith.constant 0 : index
    %95 = vector.load %arg10[%c32_72, %c0_73] : memref<640x4xbf16, #tpu.memory_space<vmem>>, vector<576x4xbf16>
    tpu.vector_store %arg10[%c32_72, %c0_73], %91 {strides = array<i32>} : memref<640x4xbf16, #tpu.memory_space<vmem>>, vector<576x4xbf16>,
    %c31 = arith.constant 31 : index
    %c0_74 = arith.constant 0 : index
    %96 = vector.load %arg10[%c31, %c0_74] : memref<640x4xbf16, #tpu.memory_space<vmem>>, vector<512x4xbf16>
    %c0_75 = arith.constant 0 : index
    %c0_76 = arith.constant 0 : index
    %c0_77 = arith.constant 0 : index
    %97 = vector.load %arg5[%c0_75, %c0_76, %c0_77] : memref<9x4x4xbf16, #tpu.memory_space<vmem>>, vector<1x4x4xbf16>
    %98 = vector.shape_cast %97 : vector<1x4x4xbf16> to vector<4x4xbf16>
    %cst_78 = arith.constant dense<0.000000e+00> : vector<512x4xf32>
    %99 = tpu.matmul %96, %98, %cst_78 {dimension_numbers = #tpu.dot_dimension_numbers<[1], [0], [0], [1], [0, 0, 1, 1], [], []>} : vector<512x4xbf16>, vector<4x4xbf16>, vector<512x4xf32> -> vector<512x4xf32>
    %c0_79 = arith.constant 0 : index
    %c0_80 = arith.constant 0 : index
    %100 = vector.load %arg6[%c0_79, %c0_80] : memref<1x4xf32, #tpu.memory_space<vmem>>, vector<1x4xf32>
    %101 = vector.broadcast %100 : vector<1x4xf32> to vector<512x4xf32>
    %102 = arith.addf %99, %101 : vector<512x4xf32>
    %c32_81 = arith.constant 32 : index
    %c0_82 = arith.constant 0 : index
    %103 = vector.load %arg10[%c32_81, %c0_82] : memref<640x4xbf16, #tpu.memory_space<vmem>>, vector<512x4xbf16>
    %c1_83 = arith.constant 1 : index
    %c0_84 = arith.constant 0 : index
    %c0_85 = arith.constant 0 : index
    %104 = vector.load %arg5[%c1_83, %c0_84, %c0_85] : memref<9x4x4xbf16, #tpu.memory_space<vmem>>, vector<1x4x4xbf16>
    %105 = vector.shape_cast %104 : vector<1x4x4xbf16> to vector<4x4xbf16>
    %cst_86 = arith.constant dense<0.000000e+00> : vector<512x4xf32>
    %106 = tpu.matmul %103, %105, %cst_86 {dimension_numbers = #tpu.dot_dimension_numbers<[1], [0], [0], [1], [0, 0, 1, 1], [], []>} : vector<512x4xbf16>, vector<4x4xbf16>, vector<512x4xf32> -> vector<512x4xf32>
    %107 = arith.addf %102, %106 : vector<512x4xf32>
    %c33_87 = arith.constant 33 : index
    %c0_88 = arith.constant 0 : index
    %108 = vector.load %arg10[%c33_87, %c0_88] : memref<640x4xbf16, #tpu.memory_space<vmem>>, vector<512x4xbf16>
    %c2_89 = arith.constant 2 : index
    %c0_90 = arith.constant 0 : index
    %c0_91 = arith.constant 0 : index
    %109 = vector.load %arg5[%c2_89, %c0_90, %c0_91] : memref<9x4x4xbf16, #tpu.memory_space<vmem>>, vector<1x4x4xbf16>
    %110 = vector.shape_cast %109 : vector<1x4x4xbf16> to vector<4x4xbf16>
    %cst_92 = arith.constant dense<0.000000e+00> : vector<512x4xf32>
    %111 = tpu.matmul %108, %110, %cst_92 {dimension_numbers = #tpu.dot_dimension_numbers<[1], [0], [0], [1], [0, 0, 1, 1], [], []>} : vector<512x4xbf16>, vector<4x4xbf16>, vector<512x4xf32> -> vector<512x4xf32>
    %112 = arith.addf %107, %111 : vector<512x4xf32>
    %c63 = arith.constant 63 : index
    %c0_93 = arith.constant 0 : index
    %113 = vector.load %arg10[%c63, %c0_93] : memref<640x4xbf16, #tpu.memory_space<vmem>>, vector<512x4xbf16>
    %c3_94 = arith.constant 3 : index
    %c0_95 = arith.constant 0 : index
    %c0_96 = arith.constant 0 : index
    %114 = vector.load %arg5[%c3_94, %c0_95, %c0_96] : memref<9x4x4xbf16, #tpu.memory_space<vmem>>, vector<1x4x4xbf16>
    %115 = vector.shape_cast %114 : vector<1x4x4xbf16> to vector<4x4xbf16>
    %cst_97 = arith.constant dense<0.000000e+00> : vector<512x4xf32>
    %116 = tpu.matmul %113, %115, %cst_97 {dimension_numbers = #tpu.dot_dimension_numbers<[1], [0], [0], [1], [0, 0, 1, 1], [], []>} : vector<512x4xbf16>, vector<4x4xbf16>, vector<512x4xf32> -> vector<512x4xf32>
    %117 = arith.addf %112, %116 : vector<512x4xf32>
    %c64_98 = arith.constant 64 : index
    %c0_99 = arith.constant 0 : index
    %118 = vector.load %arg10[%c64_98, %c0_99] : memref<640x4xbf16, #tpu.memory_space<vmem>>, vector<512x4xbf16>
    %c4_100 = arith.constant 4 : index
    %c0_101 = arith.constant 0 : index
    %c0_102 = arith.constant 0 : index
    %119 = vector.load %arg5[%c4_100, %c0_101, %c0_102] : memref<9x4x4xbf16, #tpu.memory_space<vmem>>, vector<1x4x4xbf16>
    %120 = vector.shape_cast %119 : vector<1x4x4xbf16> to vector<4x4xbf16>
    %cst_103 = arith.constant dense<0.000000e+00> : vector<512x4xf32>
    %121 = tpu.matmul %118, %120, %cst_103 {dimension_numbers = #tpu.dot_dimension_numbers<[1], [0], [0], [1], [0, 0, 1, 1], [], []>} : vector<512x4xbf16>, vector<4x4xbf16>, vector<512x4xf32> -> vector<512x4xf32>
    %122 = arith.addf %117, %121 : vector<512x4xf32>
    %c65_104 = arith.constant 65 : index
    %c0_105 = arith.constant 0 : index
    %123 = vector.load %arg10[%c65_104, %c0_105] : memref<640x4xbf16, #tpu.memory_space<vmem>>, vector<512x4xbf16>
    %c5_106 = arith.constant 5 : index
    %c0_107 = arith.constant 0 : index
    %c0_108 = arith.constant 0 : index
    %124 = vector.load %arg5[%c5_106, %c0_107, %c0_108] : memref<9x4x4xbf16, #tpu.memory_space<vmem>>, vector<1x4x4xbf16>
    %125 = vector.shape_cast %124 : vector<1x4x4xbf16> to vector<4x4xbf16>
    %cst_109 = arith.constant dense<0.000000e+00> : vector<512x4xf32>
    %126 = tpu.matmul %123, %125, %cst_109 {dimension_numbers = #tpu.dot_dimension_numbers<[1], [0], [0], [1], [0, 0, 1, 1], [], []>} : vector<512x4xbf16>, vector<4x4xbf16>, vector<512x4xf32> -> vector<512x4xf32>
    %127 = arith.addf %122, %126 : vector<512x4xf32>
    %c95 = arith.constant 95 : index
    %c0_110 = arith.constant 0 : index
    %128 = vector.load %arg10[%c95, %c0_110] : memref<640x4xbf16, #tpu.memory_space<vmem>>, vector<512x4xbf16>
    %c6_111 = arith.constant 6 : index
    %c0_112 = arith.constant 0 : index
    %c0_113 = arith.constant 0 : index
    %129 = vector.load %arg5[%c6_111, %c0_112, %c0_113] : memref<9x4x4xbf16, #tpu.memory_space<vmem>>, vector<1x4x4xbf16>
    %130 = vector.shape_cast %129 : vector<1x4x4xbf16> to vector<4x4xbf16>
    %cst_114 = arith.constant dense<0.000000e+00> : vector<512x4xf32>
    %131 = tpu.matmul %128, %130, %cst_114 {dimension_numbers = #tpu.dot_dimension_numbers<[1], [0], [0], [1], [0, 0, 1, 1], [], []>} : vector<512x4xbf16>, vector<4x4xbf16>, vector<512x4xf32> -> vector<512x4xf32>
    %132 = arith.addf %127, %131 : vector<512x4xf32>
    %c96 = arith.constant 96 : index
    %c0_115 = arith.constant 0 : index
    %133 = vector.load %arg10[%c96, %c0_115] : memref<640x4xbf16, #tpu.memory_space<vmem>>, vector<512x4xbf16>
    %c7_116 = arith.constant 7 : index
    %c0_117 = arith.constant 0 : index
    %c0_118 = arith.constant 0 : index
    %134 = vector.load %arg5[%c7_116, %c0_117, %c0_118] : memref<9x4x4xbf16, #tpu.memory_space<vmem>>, vector<1x4x4xbf16>
    %135 = vector.shape_cast %134 : vector<1x4x4xbf16> to vector<4x4xbf16>
    %cst_119 = arith.constant dense<0.000000e+00> : vector<512x4xf32>
    %136 = tpu.matmul %133, %135, %cst_119 {dimension_numbers = #tpu.dot_dimension_numbers<[1], [0], [0], [1], [0, 0, 1, 1], [], []>} : vector<512x4xbf16>, vector<4x4xbf16>, vector<512x4xf32> -> vector<512x4xf32>
    %137 = arith.addf %132, %136 : vector<512x4xf32>
    %c97 = arith.constant 97 : index
    %c0_120 = arith.constant 0 : index
    %138 = vector.load %arg10[%c97, %c0_120] : memref<640x4xbf16, #tpu.memory_space<vmem>>, vector<512x4xbf16>
    %c8_121 = arith.constant 8 : index
    %c0_122 = arith.constant 0 : index
    %c0_123 = arith.constant 0 : index
    %139 = vector.load %arg5[%c8_121, %c0_122, %c0_123] : memref<9x4x4xbf16, #tpu.memory_space<vmem>>, vector<1x4x4xbf16>
    %140 = vector.shape_cast %139 : vector<1x4x4xbf16> to vector<4x4xbf16>
    %cst_124 = arith.constant dense<0.000000e+00> : vector<512x4xf32>
    %141 = tpu.matmul %138, %140, %cst_124 {dimension_numbers = #tpu.dot_dimension_numbers<[1], [0], [0], [1], [0, 0, 1, 1], [], []>} : vector<512x4xbf16>, vector<4x4xbf16>, vector<512x4xf32> -> vector<512x4xf32>
    %142 = arith.addf %137, %141 : vector<512x4xf32>
    %143 = vector.extract_strided_slice %45 {offsets = [0, 0], sizes = [512, 4], strides = [1, 1]} : vector<576x4xbf16> to vector<512x4xbf16>
    %c0_125 = arith.constant 0 : index
    %c0_126 = arith.constant 0 : index
    %144 = vector.load %arg7[%c0_125, %c0_126] : memref<4x4xbf16, #tpu.memory_space<vmem>>, vector<4x4xbf16>
    %cst_127 = arith.constant dense<0.000000e+00> : vector<512x4xf32>
    %145 = tpu.matmul %143, %144, %cst_127 {dimension_numbers = #tpu.dot_dimension_numbers<[1], [0], [0], [1], [0, 0, 1, 1], [], []>} : vector<512x4xbf16>, vector<4x4xbf16>, vector<512x4xf32> -> vector<512x4xf32>
    %c0_128 = arith.constant 0 : index
    %c0_129 = arith.constant 0 : index
    %146 = vector.load %arg8[%c0_128, %c0_129] : memref<1x4xf32, #tpu.memory_space<vmem>>, vector<1x4xf32>
    %147 = vector.broadcast %146 : vector<1x4xf32> to vector<512x4xf32>
    %148 = arith.addf %145, %147 : vector<512x4xf32>
    %149 = arith.addf %142, %148 : vector<512x4xf32>
    %cst_130 = arith.constant 0.000000e+00 : f32
    %150 = vector.broadcast %cst_130 : f32 to vector<512x4xf32>
    %151 = arith.maximumf %149, %150 : vector<512x4xf32>
    %152 = arith.truncf %151 : vector<512x4xf32> to vector<512x4xbf16>
    %c0_131 = arith.constant 0 : index
    %c0_132 = arith.constant 0 : index
    %c0_133 = arith.constant 0 : index
    %c0_134 = arith.constant 0 : index
    %153 = vector.load %arg9[%c0_131, %c0_132, %c0_133, %c0_134] : memref<1x1x512x4xbf16, #tpu.memory_space<vmem>>, vector<1x1x512x4xbf16>
    %154 = vector.shape_cast %153 : vector<1x1x512x4xbf16> to vector<512x4xbf16>
    %155 = vector.shape_cast %152 : vector<512x4xbf16> to vector<1x1x512x4xbf16>
    tpu.vector_store %arg9[%c0_131, %c0_132, %c0_133, %c0_134], %155 {strides = array<i32>} : memref<1x1x512x4xbf16, #tpu.memory_space<vmem>>, vector<1x1x512x4xbf16>,
    return
  }
  func.func @transform_0(%arg0: i32, %arg1: i32) -> (i32, i32, i32, i32) {
    %c0_i32 = arith.constant 0 : i32
    %c0_i32_0 = arith.constant 0 : i32
    %c0_i32_1 = arith.constant 0 : i32
    return %arg0, %arg1, %c0_i32, %c0_i32_0 : i32, i32, i32, i32
  }
  func.func @transform_1(%arg0: i32, %arg1: i32) -> (i32, i32, i32) {
    %c0_i32 = arith.constant 0 : i32
    %c0_i32_0 = arith.constant 0 : i32
    %c0_i32_1 = arith.constant 0 : i32
    %c0_i32_2 = arith.constant 0 : i32
    return %c0_i32, %c0_i32_0, %c0_i32_1 : i32, i32, i32
  }
  func.func @transform_2(%arg0: i32, %arg1: i32) -> (i32, i32) {
    %c0_i32 = arith.constant 0 : i32
    %c0_i32_0 = arith.constant 0 : i32
    %c0_i32_1 = arith.constant 0 : i32
    return %c0_i32, %c0_i32_0 : i32, i32
  }
  func.func @transform_3(%arg0: i32, %arg1: i32) -> (i32, i32, i32) {
    %c0_i32 = arith.constant 0 : i32
    %c0_i32_0 = arith.constant 0 : i32
    %c0_i32_1 = arith.constant 0 : i32
    %c0_i32_2 = arith.constant 0 : i32
    return %c0_i32, %c0_i32_0, %c0_i32_1 : i32, i32, i32
  }
  func.func @transform_4(%arg0: i32, %arg1: i32) -> (i32, i32) {
    %c0_i32 = arith.constant 0 : i32
    %c0_i32_0 = arith.constant 0 : i32
    %c0_i32_1 = arith.constant 0 : i32
    return %c0_i32, %c0_i32_0 : i32, i32
  }
  func.func @transform_5(%arg0: i32, %arg1: i32) -> (i32, i32) {
    %c0_i32 = arith.constant 0 : i32
    %c0_i32_0 = arith.constant 0 : i32
    %c0_i32_1 = arith.constant 0 : i32
    return %c0_i32, %c0_i32_0 : i32, i32
  }
  func.func @transform_6(%arg0: i32, %arg1: i32) -> (i32, i32) {
    %c0_i32 = arith.constant 0 : i32
    %c0_i32_0 = arith.constant 0 : i32
    %c0_i32_1 = arith.constant 0 : i32
    return %c0_i32, %c0_i32_0 : i32, i32
  }
  func.func @transform_7(%arg0: i32, %arg1: i32) -> (i32, i32, i32, i32) {
    %c0_i32 = arith.constant 0 : i32
    %c0_i32_0 = arith.constant 0 : i32
    %c0_i32_1 = arith.constant 0 : i32
    return %arg0, %arg1, %c0_i32, %c0_i32_0 : i32, i32, i32, i32
  }
}

</mosaic_0001>

<bundles_post_ra>
// kernel: tpu_custom_call.1
= control target key start
LH: loop header
LB: loop body
LE: loop exit
PB: predicated region body
PF: predicated region fallthrough
CT: control target
= control target key end

     0   :  { %s17987_s24 = smov 0   ;;  %s17989_s25 = smov 0   ;;  %s21216_s0 = inlined_call_operand.vmem [shape: bf16[2,1,672,4], index: 0, kind: input, shape index: {}]   ;;  %s21217_s1 = inlined_call_operand.vmem [shape: bf16[9,4,4], index: 1, kind: input, shape index: {}]   ;;  %s21218_s2 = inlined_call_operand.vmem [shape: f32[1,4], index: 2, kind: input, shape index: {}]   ;;  %s21219_s3 = inlined_call_operand.vmem [shape: bf16[9,4,4], index: 3, kind: input, shape index: {}]   ;;  %s21220_s4 = inlined_call_operand.vmem [shape: f32[1,4], index: 4, kind: input, shape index: {}]   ;;  %s21221_s5 = inlined_call_operand.vmem [shape: bf16[4,4], index: 5, kind: input, shape index: {}]   ;;  %s21222_s6 = inlined_call_operand.vmem [shape: f32[1,4], index: 6, kind: input, shape index: {}]   ;;  %s21223_s7 = inlined_call_operand.vmem [shape: bf16[2,1,512,4], index: 7, kind: output, shape index: {}]  }
   0x1   :  { %s17991_s26 = smov 0  }
   0x2 LB: > { %s29_s27 = sadd.s32 1, %s17939_s25  ;;  %p14465_p0 = scmp.ge.s32.totalorder %s17943_s26, 1  ;;  %s17943_s26 = sphi %s17991_s26, %s17_s26   ;;  %s17939_s25 = sphi %s17989_s25, %s21559_s25   ;;  %s17935_s24 = sphi %s17987_s24, %s21558_s24  }
   0x3   : > { %p31_p1 = scmp.ge.s32.totalorder %s29_s27, 2  ;;  %p257_p2 = scmp.lt.s32.totalorder %s17943_s26, 3 }
   0x5   : > { %s21561_s27 = smov (%p31_p1, %s29_s27), 0  ;;  %p258_p3 = pnand %p14465_p0, %p257_p2 }
   0x7   : > { %261 = sbr.rel (%p258_p3) target bundleno = 3346 (0xd12), region = 48 }
   0xc   : > { %v388_v0 = vld [vmem:[%s21217_s1] sm:$0x3]  ;;  %vm682_vm0 = vcmask 1041408   ;;  %p297_p4 = scmp.lt.s32.totalorder %s17935_s24, 1  ;;  %v14649_v2 = vld [vmem:[%s21217_s1 + $0x2] sm:$0x3] }
   0xd   : > { %v684_v1 = vsel %vm682_vm0, %v388_v0, 0  ;;  %v1535_v3 = vsel %vm682_vm0, %v14649_v2, 0  ;;  %vm573_vm1 = vcmask 31744   ;;  %v14826_v9 = vld [vmem:[%s21217_s1 + $0x4] sm:$0x3]  ;;  %vm1804_vm2 = vcmask 1046528  }
   0xe   : > { %693 = vmatpush.bf16.msra.mxu0 %v684_v1  ;;  %s21563_s24 = smov (!%p297_p4, %s17935_s24), 1  ;;  %17657 = vmatpush.bf16.msra.mxu1 %v1535_v3  ;;  %v14863_v10 = vld [vmem:[%s21217_s1 + $0x6] sm:$0x3]  ;;  %v1987_v12 = vsel %vm682_vm0, %v14826_v9, 0  ;;  %vm1133_vm3 = vsmask.f32 7424 }
   0xf   : > { %s17849_s9 = smul.u32 336, %s21563_s24  ;;  %v18042_v13 = vsel %vm682_vm0, %v14863_v10, 0  ;;  %17658 = vmatpush.bf16.msra.mxu2 %v1987_v12  ;;  %vm7768_vm4 = vcmask 27648   ;;  %vm8082_vm5 = vsmask.f32 4352  ;;  %s16363_s29 = sshll.u32 %s21563_s24, 8 }
  0x10   : > { %17659 = vmatpush.bf16.msra.mxu3 %v18042_v13 }
  0x11   : > { %s18019_s12 = scalar_lea.vmem %s21216_s0, %s17849_s9  ;;  %s20774_s9 = scalar_lea.vmem %s21223_s7, %s16363_s29 }
  0x12   : > { %1544 = vmatpush.bf16.msrb.mxu0 %v1535_v3  ;;  %v16364_v4 = vld [vmem:[%s18019_s12] sm:$0xff]  ;;  %v16365_v5 = vld [vmem:[%s18019_s12 + $0x8] sm:$0xff]  ;;  %v16366_v6 = vld [vmem:[%s18019_s12 + $0x10] sm:$0xff] }
  0x13   : > { %14613 = vmatmul.msk.bf16.vlgmr.msra.gmra.mxu0 %vm573_vm1, %v16364_v4  ;;  %v16367_v7 = vld [vmem:[%s18019_s12 + $0x18] sm:$0xff]  ;;  %v16368_v8 = vld [vmem:[%s18019_s12 + $0x20] sm:$0xff]  ;;  %v16369_v19 = vld [vmem:[%s18019_s12 + $0x28] sm:$0xff] }
  0x14   : > { %v18038_v11 = vld [vmem:[%s18019_s12 + $0x38] sm:$0xff]  ;;  %v16407_v14 = vld [vmem:[%s18019_s12 + $0x40] sm:$0xff]  ;;  %v16442_v23 = vld [vmem:[%s18019_s12 + $0x48] sm:$0xff] }
  0x15   : > { %v21225_v15 = vrot.slane %v18038_v11, 1  ;;  %v1820_v16 = vrot.slane %v16407_v14, 1  ;;  %v1190_v18 = vshll.u32 %v18038_v11, 16  ;;  %v1194_v21 = vshrl.u32 %v18038_v11, 16  ;;  %15015 = vmatmul.msk.bf16.vlgmr.msra.gmra.mxu3 %vm573_vm1, %v16442_v23  ;;  %v16408_v27 = vld [vmem:[%s18019_s12 + $0x48] sm:$0xff]  ;;  %v16370_v29 = vld [vmem:[%s18019_s12 + $0x30] sm:$0xff] }
  0x16   : > { %1996 = vmatpush.bf16.msra.mxu0 %v1987_v12  ;;  %v1198_v22 = vshll.u32 %v16407_v14, 16  ;;  %v1822_v28 = vrot.slane %v16408_v27, 1  ;;  %v1202_v31 = vshrl.u32 %v16407_v14, 16  ;;  %v1206_v32 = vshll.u32 %v16408_v27, 16  ;;  %v16443_v33 = vld [vmem:[%s18019_s12 + $0x50] sm:$0xff]  ;;  %v16371_v39 = vld [vmem:[%s18019_s12 + $0x38] sm:$0xff] }
  0x17   : > { %v1821_v17 = vsel %vm1804_vm2, %v21225_v15, %v1820_v16  ;;  %v18053_v20 = vrot.slane %v1190_v18, 1  ;;  %v16409_v37 = vld [vmem:[%s18019_s12 + $0x50] sm:$0xff]  ;;  %v1210_v41 = vshrl.u32 %v16408_v27, 16  ;;  %v16444_v43 = vld [vmem:[%s18019_s12 + $0x58] sm:$0xff]  ;;  %v16372_v49 = vld [vmem:[%s18019_s12 + $0x40] sm:$0xff] }
  0x18   : > { %14834 = vmatmul.msk.bf16.vlgmr.msra.gmra.mxu2 %vm573_vm1, %v1821_v17  ;;  %v1200_v25 = vrot.slane %v1198_v22, 1  ;;  %v1823_v30 = vsel %vm1804_vm2, %v1820_v16, %v1822_v28  ;;  %v1208_v35 = vrot.slane %v1206_v32, 1  ;;  %v1824_v38 = vrot.slane %v16409_v37, 1  ;;  %v16410_v47 = vld [vmem:[%s18019_s12 + $0x58] sm:$0xff]  ;;  %v16445_v54 = vld [vmem:[%s18019_s12 + $0x60] sm:$0xff]  ;;  %v16373_v61 = vld [vmem:[%s18019_s12 + $0x48] sm:$0xff] }
  0x19   : > { %v1196_v24 = vor.u32 %v1194_v21, %v18053_v20  ;;  %v1214_v42 = vshll.u32 %v16409_v37, 16  ;;  %v1826_v48 = vrot.slane %v16410_v47, 1  ;;  %v1218_v52 = vshrl.u32 %v16409_v37, 16  ;;  %v16411_v59 = vld [vmem:[%s18019_s12 + $0x60] sm:$0xff]  ;;  %v16446_v2 = vld [vmem:[%s18019_s12 + $0x68] sm:$0xff]  ;;  %v16374_v9 = vld [vmem:[%s18019_s12 + $0x50] sm:$0xff] }
  0x1a   : > { %v1204_v34 = vor.u32 %v1202_v31, %v1200_v25  ;;  %v1825_v40 = vsel %vm1804_vm2, %v1822_v28, %v1824_v38  ;;  %v1212_v44 = vor.u32 %v1210_v41, %v1208_v35  ;;  %v1222_v53 = vshll.u32 %v16410_v47, 16  ;;  %v16447_v17 = vld [vmem:[%s18019_s12 + $0x70] sm:$0xff]  ;;  %v16376_v37 = vld [vmem:[%s18019_s12 + $0x60] sm:$0xff] }
  0x1b   : > { %v1201_v26 = vsel %vm1133_vm3, %v1196_v24, %v1200_v25  ;;  %v1216_v45 = vrot.slane %v1214_v42, 1  ;;  %v1827_v51 = vsel %vm1804_vm2, %v1824_v38, %v1826_v48  ;;  %v1828_v60 = vrot.slane %v16411_v59, 1  ;;  %v16413_v23 = vld [vmem:[%s18019_s12 + $0x70] sm:$0xff]  ;;  %v16375_v25 = vld [vmem:[%s18019_s12 + $0x58] sm:$0xff]  ;;  %v16449_v42 = vld [vmem:[%s18019_s12 + $0x80] sm:$0xff] }
  0x1c   : > { %14797 = vmatmul.msk.bf16.vlgmr.msra.gmra.mxu1 %vm573_vm1, %v1201_v26  ;;  %v1209_v36 = vsel %vm1133_vm3, %v1204_v34, %v1208_v35  ;;  %v1224_v56 = vrot.slane %v1222_v53, 1  ;;  %v1226_v0 = vshrl.u32 %v16410_v47, 16  ;;  %v1230_v1 = vshll.u32 %v16411_v59, 16  ;;  %v16414_v35 = vld [vmem:[%s18019_s12 + $0x78] sm:$0xff]  ;;  %v16415_v47 = vld [vmem:[%s18019_s12 + $0x80] sm:$0xff] }
  0x1d   : > { %v1217_v46 = vsel %vm1133_vm3, %v1212_v44, %v1216_v45  ;;  %v1220_v55 = vor.u32 %v1218_v52, %v1216_v45  ;;  %v1829_v63 = vsel %vm1804_vm2, %v1826_v48, %v1828_v60  ;;  %v1234_v14 = vshrl.u32 %v16411_v59, 16 }
  0x1e   : > { %v1228_v3 = vor.u32 %v1226_v0, %v1224_v56  ;;  %v1232_v4 = vrot.slane %v1230_v1, 1  ;;  %v1832_v24 = vrot.slane %v16413_v23, 1  ;;  %v1254_v41 = vshll.u32 %v16414_v35, 16  ;;  %v16416_v0 = vld [vmem:[%s18019_s12 + $0x88] sm:$0xff] }
  0x1f   : > { %v1225_v57 = vsel %vm1133_vm3, %v1220_v55, %v1224_v56  ;;  %v1258_v53 = vshrl.u32 %v16414_v35, 16  ;;  %v16450_v55 = vld [vmem:[%s18019_s12 + $0x88] sm:$0xff] }
  0x20   : > { %v1236_v18 = vor.u32 %v1234_v14, %v1232_v4  ;;  %v1256_v44 = vrot.slane %v1254_v41, 1 }
  0x23   : > { %14614 = vmatmul.msk.bf16.gmra.mxu0 %vm573_vm1, %v16365_v5  ;;  %v1233_v5 = vsel %vm1133_vm3, %v1228_v3, %v1232_v4  ;;  %v16378_v3 = vld [vmem:[%s18019_s12 + $0x70] sm:$0xff] }
  0x25   : > { %15016 = vmatmul.msk.bf16.gmra.mxu3 %vm573_vm1, %v16443_v33 }
  0x28   : > { %14835 = vmatmul.msk.bf16.gmra.mxu2 %vm573_vm1, %v1823_v30  ;;  %v16448_v30 = vld [vmem:[%s18019_s12 + $0x78] sm:$0xff] }
  0x2c   : > { %14798 = vmatmul.msk.bf16.gmra.mxu1 %vm573_vm1, %v1209_v36  ;;  %v1834_v36 = vrot.slane %v16414_v35, 1 }
  0x33   : > { %14615 = vmatmul.msk.bf16.gmra.mxu0 %vm573_vm1, %v16366_v6 }
  0x35   : > { %15017 = vmatmul.msk.bf16.gmra.mxu3 %vm573_vm1, %v16444_v43 }
  0x38   : > { %14836 = vmatmul.msk.bf16.gmra.mxu2 %vm573_vm1, %v1825_v40  ;;  %v1250_v40 = vshrl.u32 %v16413_v23, 16 }
  0x3c   : > { %14799 = vmatmul.msk.bf16.gmra.mxu1 %vm573_vm1, %v1217_v46 }
  0x43   : > { %14616 = vmatmul.msk.bf16.gmra.mxu0 %vm573_vm1, %v16367_v7  ;;  %v16412_v7 = vld [vmem:[%s18019_s12 + $0x68] sm:$0xff] }
  0x44   : > { %v1238_v16 = vshll.u32 %v16412_v7, 16  ;;  %v1242_v28 = vshrl.u32 %v16412_v7, 16 }
  0x45   : > { %15018 = vmatmul.msk.bf16.gmra.mxu3 %vm573_vm1, %v16445_v54  ;;  %v1262_v54 = vshll.u32 %v16415_v47, 16 }
  0x48   : > { %14837 = vmatmul.msk.bf16.gmra.mxu2 %vm573_vm1, %v1827_v51 }
  0x4c   : > { %14800 = vmatmul.msk.bf16.gmra.mxu1 %vm573_vm1, %v1225_v57  ;;  %v1260_v57 = vor.u32 %v1258_v53, %v1256_v44 }
  0x53   : > { %14617 = vmatmul.msk.bf16.gmra.mxu0 %vm573_vm1, %v16368_v8  ;;  %v1830_v8 = vrot.slane %v16412_v7, 1  ;;  %v1270_v7 = vshll.u32 %v16416_v0, 16 }
  0x55   : > { %15019 = vmatmul.msk.bf16.gmra.mxu3 %vm573_vm1, %v16446_v2  ;;  %v1831_v12 = vsel %vm1804_vm2, %v1828_v60, %v1830_v8  ;;  %v1833_v27 = vsel %vm1804_vm2, %v1830_v8, %v1832_v24  ;;  %v1838_v2 = vrot.slane %v16416_v0, 1  ;;  %v16451_v8 = vld [vmem:[%s18019_s12 + $0x90] sm:$0xff]  ;;  %v1272_v14 = vrot.slane %v1270_v7, 1 }
  0x58   : > { %14838 = vmatmul.msk.bf16.gmra.mxu2 %vm573_vm1, %v1829_v63 }
  0x5c   : > { %14801 = vmatmul.msk.bf16.gmra.mxu1 %vm573_vm1, %v1233_v5 }
  0x63   : > { %14618 = vmatmul.msk.bf16.gmra.mxu0 %vm573_vm1, %v16369_v19  ;;  %v1240_v19 = vrot.slane %v1238_v16, 1 }
  0x65   : > { %15020 = vmatmul.msk.bf16.gmra.mxu3 %vm573_vm1, %v16447_v17  ;;  %v1241_v21 = vsel %vm1133_vm3, %v1236_v18, %v1240_v19  ;;  %v1244_v31 = vor.u32 %v1242_v28, %v1240_v19 }
  0x68   : > { %14839 = vmatmul.msk.bf16.gmra.mxu2 %vm573_vm1, %v1831_v12 }
  0x6c   : > { %14802 = vmatmul.msk.bf16.gmra.mxu1 %vm573_vm1, %v1241_v21 }
  0x73   : > { %14619 = vmatmul.msk.bf16.gmra.mxu0 %vm573_vm1, %v16370_v29  ;;  %v1246_v29 = vshll.u32 %v16413_v23, 16 }
  0x75   : > { %v1248_v32 = vrot.slane %v1246_v29, 1  ;;  %15021 = vmatmul.msk.bf16.gmra.mxu3 %vm573_vm1, %v16448_v30  ;;  %v1274_v30 = vshrl.u32 %v16416_v0, 16 }
  0x77   : > { %v1249_v33 = vsel %vm1133_vm3, %v1244_v31, %v1248_v32  ;;  %v1252_v43 = vor.u32 %v1250_v40, %v1248_v32  ;;  %v16452_v32 = vld [vmem:[%s18019_s12 + $0x98] sm:$0xff] }
  0x78   : > { %14840 = vmatmul.msk.bf16.gmra.mxu2 %vm573_vm1, %v1833_v27  ;;  %v16379_v27 = vld [vmem:[%s18019_s12 + $0x78] sm:$0xff] }
  0x79   : > { %v1257_v45 = vsel %vm1133_vm3, %v1252_v43, %v1256_v44  ;;  %v16418_v43 = vld [vmem:[%s18019_s12 + $0x98] sm:$0xff] }
  0x7c   : > { %14803 = vmatmul.msk.bf16.gmra.mxu1 %vm573_vm1, %v1249_v33 }
  0x83   : > { %14620 = vmatmul.msk.bf16.gmra.mxu0 %vm573_vm1, %v16371_v39  ;;  %v1835_v39 = vsel %vm1804_vm2, %v1832_v24, %v1834_v36  ;;  %v16417_v24 = vld [vmem:[%s18019_s12 + $0x90] sm:$0xff] }
  0x84   : > { %v1278_v31 = vshll.u32 %v16417_v24, 16 }
  0x85   : > { %15022 = vmatmul.msk.bf16.gmra.mxu3 %vm573_vm1, %v16449_v42 }
  0x86   : > { %v1280_v35 = vrot.slane %v1278_v31, 1 }
  0x88   : > { %14841 = vmatmul.msk.bf16.gmra.mxu2 %vm573_vm1, %v1835_v39 }
  0x8c   : > { %14804 = vmatmul.msk.bf16.gmra.mxu1 %vm573_vm1, %v1257_v45  ;;  %v1842_v45 = vrot.slane %v16418_v43, 1 }
  0x90   : > { %v695_v50 = vpop.f32.mrf.mxu0 }
  0x91   : > { %v16377_v50 = vld [vmem:[%s18019_s12 + $0x68] sm:$0xff] }
  0x93   : > { %14621 = vmatmul.msk.bf16.gmra.mxu0 %vm573_vm1, %v16372_v49  ;;  %v1836_v49 = vrot.slane %v16415_v47, 1 }
  0x95   : > { %v1837_v52 = vsel %vm1804_vm2, %v1834_v36, %v1836_v49  ;;  %15023 = vmatmul.msk.bf16.gmra.mxu3 %vm573_vm1, %v16450_v55  ;;  %v1839_v5 = vsel %vm1804_vm2, %v1836_v49, %v1838_v2 }
  0x98   : > { %v697_v58 = vpop.f32.mrf.mxu0  ;;  %14842 = vmatmul.msk.bf16.gmra.mxu2 %vm573_vm1, %v1837_v52  ;;  %v1286_v52 = vshll.u32 %v16418_v43, 16 }
  0x99   : > { %v1581_v56 = vpop.f32.mrf.mxu1  ;;  %v1264_v58 = vrot.slane %v1262_v54, 1  ;;  %v16453_v54 = vld [vmem:[%s18019_s12 + $0xa0] sm:$0xff] }
  0x9b   : > { %v2033_v48 = vpop.f32.mrf.mxu2  ;;  %v1265_v59 = vsel %vm1133_vm3, %v1260_v57, %v1264_v58  ;;  %v1288_v57 = vrot.slane %v1286_v52, 1 }
  0x9c   : > { %14805 = vmatmul.msk.bf16.gmra.mxu1 %vm573_vm1, %v1265_v59  ;;  %v16380_v48 = vld [vmem:[%s18019_s12 + $0x80] sm:$0xff] }
  0xa0   : > { %v700_v62 = vpop.f32.mrf.mxu0 }
  0xa1   : > { %v1583_v63 = vpop.f32.mrf.mxu1 }
  0xa3   : > { %14622 = vmatmul.msk.bf16.gmra.mxu0 %vm573_vm1, %v16373_v61  ;;  %v2035_v60 = vpop.f32.mrf.mxu2  ;;  %v2659_v61 = vpop.f32.mrf.mxu3 }
  0xa5   : > { %15024 = vmatmul.msk.bf16.gmra.mxu3 %vm573_vm1, %v16451_v8 }
  0xa8   : > { %v702_v6 = vpop.f32.mrf.mxu0  ;;  %14843 = vmatmul.msk.bf16.gmra.mxu2 %vm573_vm1, %v1839_v5 }
  0xa9   : > { %v1266_v6 = vshrl.u32 %v16415_v47, 16  ;;  %v18168_v47 = vld [vmem:[%s21218_s2] ss:$0 sm:$0xff] }
  0xab   : > { %v2661_v1 = vpop.f32.mrf.mxu3  ;;  %v1268_v12 = vor.u32 %v1266_v6, %v1264_v58  ;;  %v2038_v16 = vpop.f32.mrf.mxu2  ;;  %v16419_v6 = vld [vmem:[%s18019_s12 + $0xa0] sm:$0xff] }
  0xad   : > { %v1273_v17 = vsel %vm1133_vm3, %v1268_v12, %v1272_v14 }
  0xae   : > { %14806 = vmatmul.msk.bf16.gmra.mxu1 %vm573_vm1, %v1273_v17 }
  0xb0   : > { %v18100_v10 = vpop.f32.mrf.mxu0 }
  0xb3   : > { %14623 = vmatmul.msk.bf16.gmra.mxu0 %vm573_vm1, %v16374_v9  ;;  %v1586_v9 = vpop.f32.mrf.mxu1  ;;  %v2664_v18 = vpop.f32.mrf.mxu3 }
  0xb4   : > { %v2040_v23 = vpop.f32.mrf.mxu2 }
  0xb5   : > { %15025 = vmatmul.msk.bf16.gmra.mxu3 %vm573_vm1, %v16452_v32 }
  0xb8   : > { %v18109_v22 = vpop.f32.mrf.mxu0 }
  0xbb   : > { %v1588_v21 = vpop.f32.mrf.mxu1 }
  0xbc   : > { %v2043_v36 = vpop.f32.mrf.mxu2 }
  0xbd   : > { %v16382_v36 = vld [vmem:[%s18019_s12 + $0x90] sm:$0xff] }
  0xc0   : > { %v710_v26 = vpop.f32.mrf.mxu0 }
  0xc1   : > { %v1840_v26 = vrot.slane %v16417_v24, 1 }
  0xc3   : > { %14624 = vmatmul.msk.bf16.gmra.mxu0 %vm573_vm1, %v16375_v25  ;;  %v2666_v25 = vpop.f32.mrf.mxu3  ;;  %v1841_v29 = vsel %vm1804_vm2, %v1838_v2, %v1840_v26  ;;  %v1591_v33 = vpop.f32.mrf.mxu1 }
  0xc4   : > { %14844 = vmatmul.msk.bf16.gmra.mxu2 %vm573_vm1, %v1841_v29  ;;  %v2045_v42 = vpop.f32.mrf.mxu2  ;;  %v16420_v33 = vld [vmem:[%s18019_s12 + $0xa8] sm:$0xff] }
  0xc5   : > { %15026 = vmatmul.msk.bf16.gmra.mxu3 %vm573_vm1, %v16453_v54 }
  0xc8   : > { %v712_v34 = vpop.f32.mrf.mxu0 }
  0xc9   : > { %v1276_v34 = vor.u32 %v1274_v30, %v1272_v14  ;;  %v16381_v14 = vld [vmem:[%s18019_s12 + $0x88] sm:$0xff] }
  0xcb   : > { %v2669_v39 = vpop.f32.mrf.mxu3  ;;  %v1593_v41 = vpop.f32.mrf.mxu1 }
  0xcc   : > { %v2048_v59 = vpop.f32.mrf.mxu2  ;;  %v1302_v41 = vshll.u32 %v16420_v33, 16 }
  0xd0   : > { %v18122_v38 = vpop.f32.mrf.mxu0 }
  0xd3   : > { %14625 = vmatmul.msk.bf16.gmra.mxu0 %vm573_vm1, %v16376_v37  ;;  %v1281_v37 = vsel %vm1133_vm3, %v1276_v34, %v1280_v35  ;;  %v2671_v44 = vpop.f32.mrf.mxu3  ;;  %v1596_v55 = vpop.f32.mrf.mxu1 }
  0xd4   : > { %14807 = vmatmul.msk.bf16.gmra.mxu1 %vm573_vm1, %v1281_v37  ;;  %v2050_v5 = vpop.f32.mrf.mxu2 }
  0xd8   : > { %v18131_v46 = vpop.f32.mrf.mxu0 }
  0xdb   : > { %v1598_v2 = vpop.f32.mrf.mxu1 }
  0xe0   : > { %v720_v51 = vpop.f32.mrf.mxu0 }
  0xe1   : > { %v1282_v51 = vshrl.u32 %v16417_v24, 16  ;;  %v1290_v24 = vshrl.u32 %v16418_v43, 16  ;;  %v16455_v43 = vld [vmem:[%s18019_s12 + $0xb0] sm:$0xff] }
  0xe3   : > { %14626 = vmatmul.msk.bf16.gmra.mxu0 %vm573_vm1, %v16377_v50  ;;  %v1843_v50 = vsel %vm1804_vm2, %v1840_v26, %v1842_v45  ;;  %v1284_v56 = vor.u32 %v1282_v51, %v1280_v35  ;;  %v16454_v26 = vld [vmem:[%s18019_s12 + $0xa8] sm:$0xff]  ;;  %v1846_v35 = vrot.slane %v16420_v33, 1 }
  0xe4   : > { %14845 = vmatmul.msk.bf16.gmra.mxu2 %vm573_vm1, %v1843_v50  ;;  %15027 = vmatmul.msk.bf16.gmra.mxu3 %vm573_vm1, %v16454_v26 }
  0xe5   : > { %v1289_v60 = vsel %vm1133_vm3, %v1284_v56, %v1288_v57 }
  0xe6   : > { %14808 = vmatmul.msk.bf16.gmra.mxu1 %vm573_vm1, %v1289_v60 }
  0xe8   : > { %v722_v62 = vpop.f32.mrf.mxu0 }
  0xe9   : > { %v2674_v62 = vpop.f32.mrf.mxu3 }
  0xf0   : > { %v18144_v4 = vpop.f32.mrf.mxu0 }
  0xf1   : > { %v2676_v8 = vpop.f32.mrf.mxu3 }
  0xf3   : > { %14627 = vmatmul.msk.bf16.gmra.mxu0 %vm573_vm1, %v16378_v3 }
  0xf4   : > { %15028 = vmatmul.msk.bf16.gmra.mxu3 %vm573_vm1, %v16455_v43 }
  0xf8   : > { %v18153_v19 = vpop.f32.mrf.mxu0 }
  0xf9   : > { %v2679_v29 = vpop.f32.mrf.mxu3 }
  0xfa   : > { %v16384_v29 = vld [vmem:[%s18019_s12 + $0xa0] sm:$0xff] }
 0x100   : > { %v730_v28 = vpop.f32.mrf.mxu0 }
 0x101   : > { %v2681_v34 = vpop.f32.mrf.mxu3 }
 0x103   : > { %14628 = vmatmul.msk.bf16.gmra.mxu0 %vm573_vm1, %v16379_v27  ;;  %v1601_v27 = vpop.f32.mrf.mxu1 }
 0x108   : > { %v732_v40 = vpop.f32.mrf.mxu0 }
 0x109   : > { %v1298_v40 = vshrl.u32 %v16419_v6, 16 }
 0x10b   : > { %v1603_v31 = vpop.f32.mrf.mxu1 }
 0x110   : > { %v735_v49 = vpop.f32.mrf.mxu0 }
 0x111   : > { %v736_v53 = vadd.f32 %v18168_v47, %v735_v49 }
 0x113   : > { %v1742_v58 = vadd.f32 %v1586_v9, %v736_v53  ;;  %14629 = vmatmul.msk.bf16.gmra.mxu0 %vm573_vm1, %v16380_v48  ;;  %v1844_v9 = vrot.slane %v16419_v6, 1  ;;  %v1606_v44 = vpop.f32.mrf.mxu1  ;;  %v1304_v48 = vrot.slane %v1302_v41, 1  ;;  %v2684_v53 = vpop.f32.mrf.mxu3 }
 0x115   : > { %v2194_v61 = vadd.f32 %v2038_v16, %v1742_v58  ;;  %v1845_v17 = vsel %vm1804_vm2, %v1842_v45, %v1844_v9  ;;  %v1847_v39 = vsel %vm1804_vm2, %v1844_v9, %v1846_v35 }
 0x116   : > { %14846 = vmatmul.msk.bf16.gmra.mxu2 %vm573_vm1, %v1845_v17 }
 0x117   : > { %v18179_v63 = vadd.f32 %v2664_v18, %v2194_v61  ;;  %v1294_v18 = vshll.u32 %v16419_v6, 16  ;;  %v16421_v61 = vld [vmem:[%s18019_s12 + $0xb0] sm:$0xff] }
 0x118   : > { %v737_v0 = vpop.f32.mrf.mxu0 }
 0x119   : > { %v738_v1 = vadd.f32 %v18168_v47, %v737_v0  ;;  %v1296_v28 = vrot.slane %v1294_v18, 1 }
 0x11b   : > { %v1743_v3 = vadd.f32 %v1588_v21, %v738_v1  ;;  %v1292_v21 = vor.u32 %v1290_v24, %v1288_v57  ;;  %v1300_v45 = vor.u32 %v1298_v40, %v1296_v28  ;;  %v1608_v58 = vpop.f32.mrf.mxu1  ;;  %v2686_v1 = vpop.f32.mrf.mxu3 }
 0x11d   : > { %v2195_v7 = vadd.f32 %v2040_v23, %v1743_v3  ;;  %v2053_v23 = vpop.f32.mrf.mxu2  ;;  %v1305_v51 = vsel %vm1133_vm3, %v1300_v45, %v1304_v48  ;;  %v1848_v3 = vrot.slane %v16421_v61, 1 }
 0x11f   : > { %v18183_v12 = vadd.f32 %v2666_v25, %v2195_v7  ;;  %v1297_v25 = vsel %vm1133_vm3, %v1292_v21, %v1296_v28  ;;  %v16383_v7 = vld [vmem:[%s18019_s12 + $0x98] sm:$0xff]  ;;  %v1849_v9 = vsel %vm1804_vm2, %v1846_v35, %v1848_v3  ;;  %v16457_v35 = vld [vmem:[%s18019_s12 + $0xc0] sm:$0xff] }
 0x120   : > { %v740_v16 = vpop.f32.mrf.mxu0  ;;  %14809 = vmatmul.msk.bf16.gmra.mxu1 %vm573_vm1, %v1297_v25  ;;  %v16422_v28 = vld [vmem:[%s18019_s12 + $0xb8] sm:$0xff] }
 0x121   : > { %v16456_v16 = vld [vmem:[%s18019_s12 + $0xb8] sm:$0xff]  ;;  %v1850_v25 = vrot.slane %v16422_v28, 1 }
 0x122   : > { %15029 = vmatmul.msk.bf16.gmra.mxu3 %vm573_vm1, %v16456_v16 }
 0x123   : > { %14630 = vmatmul.msk.bf16.gmra.mxu0 %vm573_vm1, %v16381_v14  ;;  %v1306_v14 = vshrl.u32 %v16420_v33, 16  ;;  %v1611_v17 = vpop.f32.mrf.mxu1  ;;  %v2689_v18 = vpop.f32.mrf.mxu3  ;;  %v1851_v31 = vsel %vm1804_vm2, %v1848_v3, %v1850_v25  ;;  %v1318_v33 = vshll.u32 %v16422_v28, 16 }
 0x125   : > { %v2055_v32 = vpop.f32.mrf.mxu2 }
 0x126   : > { %14847 = vmatmul.msk.bf16.gmra.mxu2 %vm573_vm1, %v1847_v39  ;;  %v1314_v32 = vshrl.u32 %v16421_v61, 16  ;;  %v1320_v39 = vrot.slane %v1318_v33, 1 }
 0x128   : > { %v742_v30 = vpop.f32.mrf.mxu0 }
 0x12b   : > { %v1613_v27 = vpop.f32.mrf.mxu1  ;;  %v2691_v23 = vpop.f32.mrf.mxu3 }
 0x12c   : > { %v16386_v27 = vld [vmem:[%s18019_s12 + $0xb0] sm:$0xff] }
 0x12d   : > { %v2058_v50 = vpop.f32.mrf.mxu2 }
 0x130   : > { %v745_v37 = vpop.f32.mrf.mxu0  ;;  %14810 = vmatmul.msk.bf16.gmra.mxu1 %vm573_vm1, %v1305_v51 }
 0x131   : > { %v746_v42 = vadd.f32 %v18168_v47, %v745_v37 }
 0x132   : > { %15030 = vmatmul.msk.bf16.gmra.mxu3 %vm573_vm1, %v16457_v35 }
 0x133   : > { %v1746_v49 = vadd.f32 %v1596_v55, %v746_v42  ;;  %14631 = vmatmul.msk.bf16.gmra.mxu0 %vm573_vm1, %v16382_v36  ;;  %v1616_v36 = vpop.f32.mrf.mxu1  ;;  %v2694_v45 = vpop.f32.mrf.mxu3 }
 0x135   : > { %v2198_v52 = vadd.f32 %v2048_v59, %v1746_v49  ;;  %v2060_v60 = vpop.f32.mrf.mxu2 }
 0x136   : > { %14848 = vmatmul.msk.bf16.gmra.mxu2 %vm573_vm1, %v1849_v9  ;;  %v1322_v9 = vshrl.u32 %v16422_v28, 16 }
 0x137   : > { %v18203_v54 = vadd.f32 %v2674_v62, %v2198_v52  ;;  %v1310_v62 = vshll.u32 %v16421_v61, 16 }
 0x138   : > { %v747_v56 = vpop.f32.mrf.mxu0 }
 0x139   : > { %v748_v57 = vadd.f32 %v18168_v47, %v747_v56  ;;  %v1312_v24 = vrot.slane %v1310_v62, 1 }
 0x13b   : > { %v1747_v55 = vadd.f32 %v1598_v2, %v748_v57  ;;  %v1308_v2 = vor.u32 %v1306_v14, %v1304_v48  ;;  %v1316_v37 = vor.u32 %v1314_v32, %v1312_v24  ;;  %v1618_v52 = vpop.f32.mrf.mxu1  ;;  %v16423_v57 = vld [vmem:[%s18019_s12 + $0xc0] sm:$0xff]  ;;  %v2696_v61 = vpop.f32.mrf.mxu3  ;;  %v16458_v14 = vld [vmem:[%s18019_s12 + $0xc8] sm:$0xff] }
 0x13c   : > { %v1330_v23 = vshrl.u32 %v16423_v57, 16 }
 0x13d   : > { %v2199_v0 = vadd.f32 %v2050_v5, %v1747_v55  ;;  %v2063_v5 = vpop.f32.mrf.mxu2  ;;  %v1321_v42 = vsel %vm1133_vm3, %v1316_v37, %v1320_v39 }
 0x13f   : > { %v18207_v6 = vadd.f32 %v2676_v8, %v2199_v0  ;;  %v1313_v8 = vsel %vm1133_vm3, %v1308_v2, %v1312_v24  ;;  %v1852_v0 = vrot.slane %v16423_v57, 1 }
 0x140   : > { %v750_v59 = vpop.f32.mrf.mxu0  ;;  %14811 = vmatmul.msk.bf16.gmra.mxu1 %vm573_vm1, %v1313_v8  ;;  %v16424_v8 = vld [vmem:[%s18019_s12 + $0xc8] sm:$0xff] }
 0x141   : > { %v1853_v59 = vsel %vm1804_vm2, %v1850_v25, %v1852_v0  ;;  %v1334_v25 = vshll.u32 %v16424_v8, 16 }
 0x142   : > { %15031 = vmatmul.msk.bf16.gmra.mxu3 %vm573_vm1, %v16458_v14  ;;  %v16460_v14 = vld [vmem:[%s18019_s12 + $0xd8] sm:$0xff] }
 0x143   : > { %14632 = vmatmul.msk.bf16.gmra.mxu0 %vm573_vm1, %v16383_v7  ;;  %v16385_v7 = vld [vmem:[%s18019_s12 + $0xa8] sm:$0xff]  ;;  %v1621_v62 = vpop.f32.mrf.mxu1  ;;  %v2699_v17 = vpop.f32.mrf.mxu3  ;;  %v1336_v33 = vrot.slane %v1334_v25, 1 }
 0x145   : > { %v2065_v21 = vpop.f32.mrf.mxu2 }
 0x146   : > { %14849 = vmatmul.msk.bf16.gmra.mxu2 %vm573_vm1, %v1851_v31 }
 0x148   : > { %v752_v26 = vpop.f32.mrf.mxu0 }
 0x149   : > { %v1854_v26 = vrot.slane %v16424_v8, 1 }
 0x14b   : > { %v1623_v24 = vpop.f32.mrf.mxu1  ;;  %v2701_v18 = vpop.f32.mrf.mxu3  ;;  %v1855_v28 = vsel %vm1804_vm2, %v1852_v0, %v1854_v26 }
 0x14d   : > { %v2068_v41 = vpop.f32.mrf.mxu2 }
 0x150   : > { %v755_v30 = vpop.f32.mrf.mxu0  ;;  %14812 = vmatmul.msk.bf16.gmra.mxu1 %vm573_vm1, %v1321_v42 }
 0x151   : > { %v756_v34 = vadd.f32 %v18168_v47, %v755_v30  ;;  %v16459_v30 = vld [vmem:[%s18019_s12 + $0xd0] sm:$0xff] }
 0x152   : > { %15032 = vmatmul.msk.bf16.gmra.mxu3 %vm573_vm1, %v16459_v30 }
 0x153   : > { %v1750_v40 = vadd.f32 %v1606_v44, %v756_v34  ;;  %14633 = vmatmul.msk.bf16.gmra.mxu0 %vm573_vm1, %v16384_v29  ;;  %v1626_v31 = vpop.f32.mrf.mxu1 }
 0x155   : > { %v2202_v43 = vadd.f32 %v2058_v50, %v1750_v40  ;;  %v2070_v56 = vpop.f32.mrf.mxu2  ;;  %v2704_v40 = vpop.f32.mrf.mxu3 }
 0x156   : > { %14850 = vmatmul.msk.bf16.gmra.mxu2 %vm573_vm1, %v1853_v59  ;;  %v16387_v59 = vld [vmem:[%s18019_s12 + $0xb8] sm:$0xff] }
 0x157   : > { %v18227_v48 = vadd.f32 %v2684_v53, %v2202_v43  ;;  %v1326_v53 = vshll.u32 %v16423_v57, 16  ;;  %v16425_v57 = vld [vmem:[%s18019_s12 + $0xd0] sm:$0xff] }
 0x158   : > { %v757_v49 = vpop.f32.mrf.mxu0 }
 0x159   : > { %v758_v51 = vadd.f32 %v18168_v47, %v757_v49  ;;  %v1328_v16 = vrot.slane %v1326_v53, 1  ;;  %v1338_v53 = vshrl.u32 %v16424_v8, 16  ;;  %v16388_v8 = vld [vmem:[%s18019_s12 + $0xc0] sm:$0xff] }
 0x15b   : > { %v1751_v44 = vadd.f32 %v1608_v58, %v758_v51  ;;  %v1324_v58 = vor.u32 %v1322_v9, %v1320_v39  ;;  %v1332_v32 = vor.u32 %v1330_v23, %v1328_v16  ;;  %v1628_v51 = vpop.f32.mrf.mxu1  ;;  %v16461_v23 = vld [vmem:[%s18019_s12 + $0xe0] sm:$0xff] }
 0x15d   : > { %v2203_v55 = vadd.f32 %v2060_v60, %v1751_v44  ;;  %v2073_v60 = vpop.f32.mrf.mxu2  ;;  %v1337_v37 = vsel %vm1133_vm3, %v1332_v32, %v1336_v33  ;;  %v2706_v0 = vpop.f32.mrf.mxu3 }
 0x15f   : > { %v18231_v3 = vadd.f32 %v2686_v1, %v2203_v55  ;;  %v1329_v1 = vsel %vm1133_vm3, %v1324_v58, %v1328_v16 }
 0x160   : > { %v760_v50 = vpop.f32.mrf.mxu0  ;;  %14813 = vmatmul.msk.bf16.gmra.mxu1 %vm573_vm1, %v1329_v1 }
 0x162   : > { %15033 = vmatmul.msk.bf16.gmra.mxu3 %vm573_vm1, %v16460_v14 }
 0x163   : > { %14634 = vmatmul.msk.bf16.gmra.mxu0 %vm573_vm1, %v16385_v7  ;;  %v1856_v7 = vrot.slane %v16425_v57, 1  ;;  %v1631_v62 = vpop.f32.mrf.mxu1 }
 0x165   : > { %v2075_v5 = vpop.f32.mrf.mxu2  ;;  %v1857_v9 = vsel %vm1804_vm2, %v1854_v26, %v1856_v7  ;;  %v2709_v16 = vpop.f32.mrf.mxu3 }
 0x166   : > { %14851 = vmatmul.msk.bf16.gmra.mxu2 %vm573_vm1, %v1855_v28 }
 0x168   : > { %v762_v2 = vpop.f32.mrf.mxu0 }
 0x169   : > { %v16426_v2 = vld [vmem:[%s18019_s12 + $0xd8] sm:$0xff] }
 0x16a   : > { %v1858_v5 = vrot.slane %v16426_v2, 1  ;;  %v1354_v62 = vshrl.u32 %v16426_v2, 16 }
 0x16b   : > { %v1633_v1 = vpop.f32.mrf.mxu1 }
 0x16c   : > { %v1859_v26 = vsel %vm1804_vm2, %v1856_v7, %v1858_v5  ;;  %v16427_v7 = vld [vmem:[%s18019_s12 + $0xe0] sm:$0xff] }
 0x16d   : > { %v2078_v35 = vpop.f32.mrf.mxu2  ;;  %v2711_v24 = vpop.f32.mrf.mxu3 }
 0x170   : > { %v765_v21 = vpop.f32.mrf.mxu0  ;;  %14814 = vmatmul.msk.bf16.gmra.mxu1 %vm573_vm1, %v1337_v37 }
 0x171   : > { %v766_v29 = vadd.f32 %v18168_v47, %v765_v21  ;;  %v1350_v21 = vshll.u32 %v16426_v2, 16 }
 0x172   : > { %15034 = vmatmul.msk.bf16.gmra.mxu3 %vm573_vm1, %v16461_v23 }
 0x173   : > { %v1754_v34 = vadd.f32 %v1616_v36, %v766_v29  ;;  %14635 = vmatmul.msk.bf16.gmra.mxu0 %vm573_vm1, %v16386_v27  ;;  %v1346_v27 = vshrl.u32 %v16425_v57, 16  ;;  %v1636_v25 = vpop.f32.mrf.mxu1  ;;  %v1352_v30 = vrot.slane %v1350_v21, 1 }
 0x175   : > { %v2206_v39 = vadd.f32 %v2068_v41, %v1754_v34  ;;  %v2080_v44 = vpop.f32.mrf.mxu2 }
 0x176   : > { %14852 = vmatmul.msk.bf16.gmra.mxu2 %vm573_vm1, %v1857_v9  ;;  %v1860_v9 = vrot.slane %v16427_v7, 1 }
 0x177   : > { %v18251_v42 = vadd.f32 %v2694_v45, %v2206_v39  ;;  %v1342_v45 = vshll.u32 %v16425_v57, 16  ;;  %v2714_v39 = vpop.f32.mrf.mxu3 }
 0x178   : > { %v767_v43 = vpop.f32.mrf.mxu0  ;;  %v1861_v14 = vsel %vm1804_vm2, %v1858_v5, %v1860_v9  ;;  %v16390_v5 = vld [vmem:[%s18019_s12 + $0xd0] sm:$0xff] }
 0x179   : > { %v768_v49 = vadd.f32 %v18168_v47, %v767_v43  ;;  %v1344_v58 = vrot.slane %v1342_v45, 1  ;;  %v16389_v45 = vld [vmem:[%s18019_s12 + $0xc8] sm:$0xff] }
 0x17b   : > { %v1755_v36 = vadd.f32 %v1618_v52, %v768_v49  ;;  %v1340_v52 = vor.u32 %v1338_v53, %v1336_v33  ;;  %v1348_v29 = vor.u32 %v1346_v27, %v1344_v58  ;;  %v1638_v57 = vpop.f32.mrf.mxu1 }
 0x17d   : > { %v2207_v55 = vadd.f32 %v2070_v56, %v1755_v36  ;;  %v2083_v56 = vpop.f32.mrf.mxu2  ;;  %v1353_v34 = vsel %vm1133_vm3, %v1348_v29, %v1352_v30 }
 0x17f   : > { %v18255_v50 = vadd.f32 %v2696_v61, %v2207_v55  ;;  %v1345_v61 = vsel %vm1133_vm3, %v1340_v52, %v1344_v58  ;;  %v16462_v52 = vld [vmem:[%s18019_s12 + $0xe8] sm:$0xff] }
 0x180   : > { %v770_v41 = vpop.f32.mrf.mxu0  ;;  %14815 = vmatmul.msk.bf16.gmra.mxu1 %vm573_vm1, %v1345_v61 }
 0x181   : > { %v2716_v41 = vpop.f32.mrf.mxu3 }
 0x182   : > { %15035 = vmatmul.msk.bf16.gmra.mxu3 %vm573_vm1, %v16462_v52 }
 0x183   : > { %14636 = vmatmul.msk.bf16.gmra.mxu0 %vm573_vm1, %v16387_v59 }
 0x185   : > { %v2085_v17 = vpop.f32.mrf.mxu2 }
 0x186   : > { %14853 = vmatmul.msk.bf16.gmra.mxu2 %vm573_vm1, %v1859_v26  ;;  %v16428_v17 = vld [vmem:[%s18019_s12 + $0xe8] sm:$0xff]  ;;  %v1362_v26 = vshrl.u32 %v16427_v7, 16 }
 0x187   : > { %v1862_v24 = vrot.slane %v16428_v17, 1  ;;  %v1366_v27 = vshll.u32 %v16428_v17, 16 }
 0x188   : > { %v772_v60 = vpop.f32.mrf.mxu0 }
 0x189   : > { %v2719_v61 = vpop.f32.mrf.mxu3 }
 0x18d   : > { %v2088_v33 = vpop.f32.mrf.mxu2 }
 0x190   : > { %v775_v18 = vpop.f32.mrf.mxu0  ;;  %14816 = vmatmul.msk.bf16.gmra.mxu1 %vm573_vm1, %v1353_v34 }
 0x191   : > { %v776_v28 = vadd.f32 %v18168_v47, %v775_v18  ;;  %v2721_v2 = vpop.f32.mrf.mxu3  ;;  %v1863_v18 = vsel %vm1804_vm2, %v1860_v9, %v1862_v24 }
 0x192   : > { %v16430_v2 = vld [vmem:[%s18019_s12 + $0xf8] sm:$0xff] }
 0x193   : > { %v1758_v32 = vadd.f32 %v1626_v31, %v776_v28  ;;  %14637 = vmatmul.msk.bf16.gmra.mxu0 %vm573_vm1, %v16388_v8  ;;  %v16463_v28 = vld [vmem:[%s18019_s12 + $0xf0] sm:$0xff] }
 0x194   : > { %15036 = vmatmul.msk.bf16.gmra.mxu3 %vm573_vm1, %v16463_v28 }
 0x195   : > { %v2210_v37 = vadd.f32 %v2078_v35, %v1758_v32  ;;  %v2090_v55 = vpop.f32.mrf.mxu2 }
 0x196   : > { %14854 = vmatmul.msk.bf16.gmra.mxu2 %vm573_vm1, %v1861_v14 }
 0x197   : > { %v18275_v43 = vadd.f32 %v2704_v40, %v2210_v37  ;;  %v1358_v40 = vshll.u32 %v16427_v7, 16 }
 0x198   : > { %v777_v49 = vpop.f32.mrf.mxu0 }
 0x199   : > { %v778_v36 = vadd.f32 %v18168_v47, %v777_v49  ;;  %v1360_v56 = vrot.slane %v1358_v40, 1 }
 0x19b   : > { %v1759_v31 = vadd.f32 %v1628_v51, %v778_v36  ;;  %v1356_v51 = vor.u32 %v1354_v62, %v1352_v30  ;;  %v1364_v29 = vor.u32 %v1362_v26, %v1360_v56  ;;  %v1368_v30 = vrot.slane %v1366_v27, 1  ;;  %v2724_v36 = vpop.f32.mrf.mxu3 }
 0x19d   : > { %v2211_v59 = vadd.f32 %v2080_v44, %v1759_v31  ;;  %v1641_v58 = vpop.f32.mrf.mxu1  ;;  %v2093_v44 = vpop.f32.mrf.mxu2  ;;  %v1369_v37 = vsel %vm1133_vm3, %v1364_v29, %v1368_v30  ;;  %v16465_v29 = vld [vmem:[%s18019_s12 + $0x100] sm:$0xff] }
 0x19e   : > { %v16391_v58 = vld [vmem:[%s18019_s12 + $0xd8] sm:$0xff] }
 0x19f   : > { %v18279_v53 = vadd.f32 %v2706_v0, %v2211_v59  ;;  %v1361_v0 = vsel %vm1133_vm3, %v1356_v51, %v1360_v56  ;;  %v1370_v56 = vshrl.u32 %v16428_v17, 16  ;;  %v16464_v44 = vld [vmem:[%s18019_s12 + $0xf8] sm:$0xff] }
 0x1a0   : > { %v780_v35 = vpop.f32.mrf.mxu0  ;;  %14817 = vmatmul.msk.bf16.gmra.mxu1 %vm573_vm1, %v1361_v0 }
 0x1a1   : > { %v16429_v35 = vld [vmem:[%s18019_s12 + $0xf0] sm:$0xff] }
 0x1a2   : > { %v1864_v40 = vrot.slane %v16429_v35, 1  ;;  %v1378_v27 = vshrl.u32 %v16429_v35, 16 }
 0x1a3   : > { %14638 = vmatmul.msk.bf16.gmra.mxu0 %vm573_vm1, %v16389_v45  ;;  %v2726_v62 = vpop.f32.mrf.mxu3 }
 0x1a4   : > { %v1865_v51 = vsel %vm1804_vm2, %v1862_v24, %v1864_v40  ;;  %15037 = vmatmul.msk.bf16.gmra.mxu3 %vm573_vm1, %v16464_v44 }
 0x1a5   : > { %v1643_v60 = vpop.f32.mrf.mxu1  ;;  %v2095_v1 = vpop.f32.mrf.mxu2 }
 0x1a6   : > { %14855 = vmatmul.msk.bf16.gmra.mxu2 %vm573_vm1, %v1863_v18 }
 0x1a8   : > { %v782_v16 = vpop.f32.mrf.mxu0 }
 0x1ab   : > { %v2729_v16 = vpop.f32.mrf.mxu3 }
 0x1ac   : > { %v16466_v16 = vld [vmem:[%s18019_s12 + $0x108] sm:$0xff] }
 0x1ad   : > { %v1646_v23 = vpop.f32.mrf.mxu1  ;;  %v2098_v34 = vpop.f32.mrf.mxu2 }
 0x1b0   : > { %v785_v8 = vpop.f32.mrf.mxu0  ;;  %14818 = vmatmul.msk.bf16.gmra.mxu1 %vm573_vm1, %v1369_v37 }
 0x1b1   : > { %v786_v21 = vadd.f32 %v18168_v47, %v785_v8  ;;  %v16392_v8 = vld [vmem:[%s18019_s12 + $0xe0] sm:$0xff] }
 0x1b3   : > { %v1762_v32 = vadd.f32 %v1636_v25, %v786_v21  ;;  %14639 = vmatmul.msk.bf16.gmra.mxu0 %vm573_vm1, %v16390_v5  ;;  %v2731_v24 = vpop.f32.mrf.mxu3  ;;  %v1866_v5 = vrot.slane %v16430_v2, 1  ;;  %v1382_v21 = vshll.u32 %v16430_v2, 16 }
 0x1b4   : > { %15038 = vmatmul.msk.bf16.gmra.mxu3 %vm573_vm1, %v16465_v29 }
 0x1b5   : > { %v2214_v49 = vadd.f32 %v2088_v33, %v1762_v32  ;;  %v1648_v9 = vpop.f32.mrf.mxu1  ;;  %v2100_v45 = vpop.f32.mrf.mxu2  ;;  %v1867_v26 = vsel %vm1804_vm2, %v1864_v40, %v1866_v5  ;;  %v1384_v37 = vrot.slane %v1382_v21, 1 }
 0x1b6   : > { %14856 = vmatmul.msk.bf16.gmra.mxu2 %vm573_vm1, %v1865_v51 }
 0x1b7   : > { %v18299_v31 = vadd.f32 %v2714_v39, %v2214_v49  ;;  %v1374_v39 = vshll.u32 %v16429_v35, 16 }
 0x1b8   : > { %v787_v7 = vpop.f32.mrf.mxu0 }
 0x1b9   : > { %v788_v59 = vadd.f32 %v18168_v47, %v787_v7  ;;  %v1376_v61 = vrot.slane %v1374_v39, 1 }
 0x1bb   : > { %v1763_v25 = vadd.f32 %v1638_v57, %v788_v59  ;;  %v1372_v57 = vor.u32 %v1370_v56, %v1368_v30  ;;  %v1380_v32 = vor.u32 %v1378_v27, %v1376_v61  ;;  %v2734_v35 = vpop.f32.mrf.mxu3  ;;  %v16431_v56 = vld [vmem:[%s18019_s12 + $0x100] sm:$0xff]  ;;  %v16394_v27 = vld [vmem:[%s18019_s12 + $0xf0] sm:$0xff] }
 0x1bc   : > { %v1394_v29 = vshrl.u32 %v16431_v56, 16 }
 0x1bd   : > { %v2215_v14 = vadd.f32 %v2090_v55, %v1763_v25  ;;  %v1651_v0 = vpop.f32.mrf.mxu1  ;;  %v2103_v55 = vpop.f32.mrf.mxu2  ;;  %v1385_v59 = vsel %vm1133_vm3, %v1380_v32, %v1384_v37 }
 0x1be   : > { %v1868_v0 = vrot.slane %v16431_v56, 1  ;;  %v1386_v55 = vshrl.u32 %v16430_v2, 16 }
 0x1bf   : > { %v18303_v52 = vadd.f32 %v2716_v41, %v2215_v14  ;;  %v1377_v41 = vsel %vm1133_vm3, %v1372_v57, %v1376_v61  ;;  %v16393_v57 = vld [vmem:[%s18019_s12 + $0xe8] sm:$0xff] }
 0x1c0   : > { %v790_v33 = vpop.f32.mrf.mxu0  ;;  %14819 = vmatmul.msk.bf16.gmra.mxu1 %vm573_vm1, %v1377_v41  ;;  %v1390_v41 = vshll.u32 %v16431_v56, 16 }
 0x1c3   : > { %14640 = vmatmul.msk.bf16.gmra.mxu0 %vm573_vm1, %v16391_v58  ;;  %v18331_v44 = vpop.f32.mrf.mxu3 }
 0x1c4   : > { %15039 = vmatmul.msk.bf16.gmra.mxu3 %vm573_vm1, %v16466_v16 }
 0x1c5   : > { %v1653_v1 = vpop.f32.mrf.mxu1  ;;  %v2105_v17 = vpop.f32.mrf.mxu2 }
 0x1c6   : > { %14857 = vmatmul.msk.bf16.gmra.mxu2 %vm573_vm1, %v1867_v26  ;;  %v1392_v1 = vrot.slane %v1390_v41, 1  ;;  %v16395_v41 = vld [vmem:[%s18019_s12 + $0xf8] sm:$0xff] }
 0x1c8   : > { %v792_v60 = vpop.f32.mrf.mxu0 }
 0x1c9   : > { %v1388_v60 = vor.u32 %v1386_v55, %v1384_v37 }
 0x1cb   : > { %v2739_v17 = vpop.f32.mrf.mxu3 }
 0x1cc   : > { %v16396_v17 = vld [vmem:[%s18019_s12 + $0x100] sm:$0xff] }
 0x1cd   : > { %v1656_v30 = vpop.f32.mrf.mxu1  ;;  %v2108_v7 = vpop.f32.mrf.mxu2 }
 0x1d0   : > { %v795_v18 = vpop.f32.mrf.mxu0  ;;  %14820 = vmatmul.msk.bf16.gmra.mxu1 %vm573_vm1, %v1385_v59 }
 0x1d1   : > { %v796_v28 = vadd.f32 %v18168_v47, %v795_v18 }
 0x1d3   : > { %v1766_v49 = vadd.f32 %v1646_v23, %v796_v28  ;;  %14641 = vmatmul.msk.bf16.gmra.mxu0 %vm573_vm1, %v16392_v8  ;;  %v18344_v8 = vld [vmem:[%s18019_s12 + $0x108] sm:$0xff]  ;;  %v2741_v18 = vpop.f32.mrf.mxu3 }
 0x1d4   : > { %v21224_v26 = vrot.slane %v18344_v8, 1  ;;  %v1398_v32 = vshll.u32 %v18344_v8, 16 }
 0x1d5   : > { %v2218_v25 = vadd.f32 %v2098_v34, %v1766_v49  ;;  %v18326_v33 = vpop.f32.mrf.mxu1  ;;  %v18328_v51 = vpop.f32.mrf.mxu2  ;;  %v16467_v49 = vld [vmem:[%s18019_s12 + $0x110] sm:$0xff] }
 0x1d6   : > { %v1871_v28 = vsel %vm1804_vm2, %v1868_v0, %v21224_v26  ;;  %15040 = vmatmul.msk.bf16.gmra.mxu3 %vm573_vm1, %v16467_v49 }
 0x1d7   : > { %v18323_v14 = vadd.f32 %v2724_v36, %v2218_v25  ;;  %v1869_v36 = vsel %vm1804_vm2, %v1866_v5, %v1868_v0  ;;  %v1396_v25 = vor.u32 %v1394_v29, %v1392_v1 }
 0x1d8   : > { %v797_v40 = vpop.f32.mrf.mxu0  ;;  %14858 = vmatmul.msk.bf16.gmra.mxu2 %vm573_vm1, %v1869_v36 }
 0x1d9   : > { %v798_v58 = vadd.f32 %v18168_v47, %v797_v40  ;;  %v18355_v40 = vrot.slane %v1398_v32, 1 }
 0x1db   : > { %v1767_v23 = vadd.f32 %v1648_v9, %v798_v58  ;;  %v1401_v56 = vsel %vm1133_vm3, %v1396_v25, %v18355_v40  ;;  %v2744_v0 = vpop.f32.mrf.mxu3 }
 0x1dd   : > { %v2219_v39 = vadd.f32 %v2100_v45, %v1767_v23  ;;  %v1661_v9 = vpop.f32.mrf.mxu1  ;;  %v2113_v45 = vpop.f32.mrf.mxu2 }
 0x1df   : > { %v18333_v34 = vadd.f32 %v2726_v62, %v2219_v39  ;;  %v1393_v62 = vsel %vm1133_vm3, %v1388_v60, %v1392_v1 }
 0x1e0   : > { %v800_v61 = vpop.f32.mrf.mxu0  ;;  %14821 = vmatmul.msk.bf16.gmra.mxu1 %vm573_vm1, %v1393_v62 }
 0x1e3   : > { %14642 = vmatmul.msk.bf16.gmra.mxu0 %vm573_vm1, %v16393_v57  ;;  %v18370_v55 = vpop.f32.mrf.mxu3 }
 0x1e5   : > { %v1663_v24 = vpop.f32.mrf.mxu1  ;;  %v2115_v5 = vpop.f32.mrf.mxu2 }
 0x1e8   : > { %v802_v2 = vpop.f32.mrf.mxu0  ;;  %14859 = vmatmul.msk.bf16.gmra.mxu2 %vm573_vm1, %v1871_v28 }
 0x1eb   : > { %v2749_v60 = vpop.f32.mrf.mxu3 }
 0x1ed   : > { %v1666_v59 = vpop.f32.mrf.mxu1  ;;  %v2118_v23 = vpop.f32.mrf.mxu2 }
 0x1f0   : > { %v805_v21 = vpop.f32.mrf.mxu0  ;;  %14822 = vmatmul.msk.bf16.gmra.mxu1 %vm573_vm1, %v1401_v56 }
 0x1f1   : > { %v806_v37 = vadd.f32 %v18168_v47, %v805_v21 }
 0x1f3   : > { %v1770_v58 = vadd.f32 %v1656_v30, %v806_v37  ;;  %14643 = vmatmul.msk.bf16.gmra.mxu0 %vm573_vm1, %v16394_v27 }
 0x1f5   : > { %v2222_v39 = vadd.f32 %v2108_v7, %v1770_v58  ;;  %v18366_v36 = vpop.f32.mrf.mxu1  ;;  %v18368_v30 = vpop.f32.mrf.mxu2  ;;  %v16397_v58 = vld [vmem:[%s18019_s12 + $0x108] sm:$0xff] }
 0x1f7   : > { %v18362_v57 = vadd.f32 %v2734_v35, %v2222_v39  ;;  %v2751_v35 = vpop.f32.mrf.mxu3 }
 0x1f8   : > { %v18364_v61 = vpop.f32.mrf.mxu0 }
 0x1fd   : > { %v1671_v9 = vpop.f32.mrf.mxu1  ;;  %v2123_v7 = vpop.f32.mrf.mxu2 }
 0x1fe   : > { %v16398_v7 = vld [vmem:[%s18019_s12 + $0x110] sm:$0xff] }
 0x1ff   : > { %v2754_v28 = vpop.f32.mrf.mxu3 }
 0x200   : > { %v810_v16 = vpop.f32.mrf.mxu0 }
 0x203   : > { %14644 = vmatmul.msk.bf16.gmra.mxu0 %vm573_vm1, %v16395_v41 }
 0x205   : > { %v1673_v45 = vpop.f32.mrf.mxu1  ;;  %v2125_v62 = vpop.f32.mrf.mxu2 }
 0x207   : > { %v18385_v25 = vpop.f32.mrf.mxu3 }
 0x208   : > { %v812_v1 = vpop.f32.mrf.mxu0 }
 0x20d   : > { %v1676_v5 = vpop.f32.mrf.mxu1  ;;  %v2128_v27 = vpop.f32.mrf.mxu2 }
 0x20f   : > { %v2759_v41 = vpop.f32.mrf.mxu3 }
 0x210   : > { %v815_v2 = vpop.f32.mrf.mxu0  ;;  %v16673_v41 = vld [vmem:[%s18019_s12] sm:$0xff]  }
 0x211   : > { %v816_v24 = vadd.f32 %v18168_v47, %v815_v2 }
 0x213   : > { %v1774_v18 = vadd.f32 %v1666_v59, %v816_v24  ;;  %14645 = vmatmul.msk.bf16.gmra.mxu0 %vm573_vm1, %v16396_v17 }
 0x215   : > { %v2226_v21 = vadd.f32 %v2118_v23, %v1774_v18  ;;  %v18381_v37 = vpop.f32.mrf.mxu1  ;;  %v18383_v49 = vpop.f32.mrf.mxu2 }
 0x217   : > { %v18377_v29 = vadd.f32 %v2744_v0, %v2226_v21  ;;  %v2761_v0 = vpop.f32.mrf.mxu3 }
 0x218   : > { %v18379_v32 = vpop.f32.mrf.mxu0  ;;  %v1135_v0 = vshrl.u32 %v16673_v41, 16 }
 0x21d   : > { %v1681_v39 = vpop.f32.mrf.mxu1  ;;  %v2133_v59 = vpop.f32.mrf.mxu2 }
 0x21e   : > { %v16399_v39 = vld [vmem:[%s18019_s12 + $0x118] sm:$0xff] }
 0x21f   : > { %v2764_v2 = vpop.f32.mrf.mxu3 }
 0x220   : > { %v820_v56 = vpop.f32.mrf.mxu0 }
 0x223   : > { %14646 = vmatmul.msk.bf16.gmra.mxu0 %vm573_vm1, %v16397_v58 }
 0x225   : > { %v1683_v16 = vpop.f32.mrf.mxu1  ;;  %v2135_v9 = vpop.f32.mrf.mxu2 }
 0x227   : > { %v18400_v56 = vpop.f32.mrf.mxu3 }
 0x228   : > { %v822_v23 = vpop.f32.mrf.mxu0  ;;  %21261 = vst [vmem:[#allocation5_spill] sm:$0xff] %v18400_v56 }
 0x22d   : > { %v1686_v45 = vpop.f32.mrf.mxu1  ;;  %v2138_v35 = vpop.f32.mrf.mxu2 }
 0x230   : > { %v825_v60 = vpop.f32.mrf.mxu0 }
 0x231   : > { %v826_v1 = vadd.f32 %v18168_v47, %v825_v60 }
 0x233   : > { %v1778_v62 = vadd.f32 %v1676_v5, %v826_v1  ;;  %14647 = vmatmul.msk.bf16.gmra.mxu0 %vm573_vm1, %v16398_v7  ;;  %v18406_v5 = vld [vmem:[%s18019_s12 + $0x8] sm:$0xff] }
 0x234   : > { %v1142_v60 = vshll.u32 %v18406_v5, 16 }
 0x235   : > { %v2230_v17 = vadd.f32 %v2128_v27, %v1778_v62  ;;  %v18396_v21 = vpop.f32.mrf.mxu1  ;;  %v18398_v58 = vpop.f32.mrf.mxu2  ;;  %v1137_v27 = vshll.u32 %v16673_v41, 16 }
 0x236   : > { %21259 = vst [vmem:[#allocation3_spill] sm:$0xff] %v18396_v21 }
 0x237   : > { %v18392_v24 = vadd.f32 %v2754_v28, %v2230_v17  ;;  %21260 = vst [vmem:[#allocation4_spill] sm:$0xff] %v18398_v58  ;;  %v2769_v28 = vpop.f32.mrf.mxu3  ;;  %v1139_v7 = vrot.slane %v1137_v27, 1  ;;  %v1144_v17 = vrot.slane %v1142_v60, 1 }
 0x238   : > { %v18394_v18 = vpop.f32.mrf.mxu0 }
 0x239   : > { %v1140_v62 = vor.u32 %v1139_v7, %v1135_v0  ;;  %v1146_v0 = vshrl.u32 %v18406_v5, 16 }
 0x23d   : > { %v1691_v23 = vpop.f32.mrf.mxu1  ;;  %v2143_v16 = vpop.f32.mrf.mxu2 }
 0x23e   : > { %v1145_v23 = vsel %vm1133_vm3, %v1140_v62, %v1144_v17  ;;  %v18413_v16 = vld [vmem:[%s18019_s12 + $0x10] sm:$0xff] }
 0x23f   : > { %v1150_v7 = vshll.u32 %v18413_v16, 16 }
 0x240   : > { %v830_v59 = vpop.f32.mrf.mxu0 }
 0x241   : > { %v2771_v59 = vpop.f32.mrf.mxu3  ;;  %v1152_v60 = vrot.slane %v1150_v7, 1 }
 0x243   : > { %14648 = vmatmul.msk.bf16.gmra.mxu0 %vm573_vm1, %v16399_v39 }
 0x245   : > { %v1693_v1 = vpop.f32.mrf.mxu1  ;;  %v2145_v26 = vpop.f32.mrf.mxu2 }
 0x248   : > { %v832_v9 = vpop.f32.mrf.mxu0 }
 0x249   : > { %v2774_v28 = vpop.f32.mrf.mxu3 }
 0x24d   : > { %v1696_v56 = vpop.f32.mrf.mxu1  ;;  %v2148_v41 = vpop.f32.mrf.mxu2 }
 0x250   : > { %v835_v15 = vpop.f32.mrf.mxu0 }
 0x251   : > { %v836_v39 = vadd.f32 %v18168_v47, %v835_v15  ;;  %v18426_v62 = vpop.f32.mrf.mxu3 }
 0x252   : > { %21266 = vst [vmem:[#allocation10_spill] sm:$0xff] %v18426_v62 }
 0x253   : > { %v1782_v58 = vadd.f32 %v1686_v45, %v836_v39  ;;  %14790 = vmatmul.msk.bf16.vlgmr.msrb.gmra.mxu0 %vm573_vm1, %v1145_v23  ;;  %v1148_v45 = vor.u32 %v1146_v0, %v1144_v17  ;;  %v15221_v23 = vld [vmem:[%s21217_s1 + $0xa] sm:$0x3]  ;;  %v18443_v0 = vld [vmem:[%s18019_s12 + $0x18] sm:$0xff] }
 0x254   : > { %2622 = vmatpush.bf16.msrb.mxu0 %v18042_v13  ;;  %v15258_v13 = vld [vmem:[%s21217_s1 + $0xc] sm:$0x3]  ;;  %v3986_v39 = vsel %vm682_vm0, %v15221_v23, 0 }
 0x255   : > { %v2234_v27 = vadd.f32 %v2138_v35, %v1782_v58  ;;  %v18422_v15 = vpop.f32.mrf.mxu1  ;;  %v18424_v1 = vpop.f32.mrf.mxu2  ;;  %v15439_v35 = vld [vmem:[%s21217_s1 + $0xe] sm:$0x3]  ;;  %v1153_v58 = vsel %vm1133_vm3, %v1148_v45, %v1152_v60  ;;  %v4612_v59 = vsel %vm682_vm0, %v15258_v13, 0  ;;  %3995 = vmatpush.bf16.msrb.mxu1 %v3986_v39 }
 0x256   : > { %21264 = vst [vmem:[#allocation8_spill] sm:$0xff] %v18422_v15  ;;  %v5534_v17 = vsel %vm682_vm0, %v15439_v35, 0  ;;  %4621 = vmatpush.bf16.msrb.mxu2 %v4612_v59  ;;  %v1154_v35 = vshrl.u32 %v18413_v16, 16 }
 0x257   : > { %v18416_v9 = vadd.f32 %v2764_v2, %v2234_v27  ;;  %21265 = vst [vmem:[#allocation9_spill] sm:$0xff] %v18424_v1  ;;  %5543 = vmatpush.bf16.msrb.mxu3 %v5534_v17 }
 0x258   : > { %v18418_v26 = vpop.f32.mrf.mxu0  ;;  %v1156_v1 = vor.u32 %v1154_v35, %v1152_v60  ;;  %v1162_v60 = vshrl.u32 %v18443_v0, 16 }
 0x259   : > { %21262 = vst [vmem:[#allocation6_spill] sm:$0xff] %v18416_v9  ;;  %v2779_v45 = vpop.f32.mrf.mxu3 }
 0x25a   : > { %21263 = vst [vmem:[#allocation7_spill] sm:$0xff] %v18418_v26 }
 0x25d   : > { %v1701_v27 = vpop.f32.mrf.mxu1  ;;  %v2153_v7 = vpop.f32.mrf.mxu2 }
 0x25e   : > { %v18451_v7 = vld [vmem:[%s18019_s12 + $0x20] sm:$0xff] }
 0x260   : > { %v840_v2 = vpop.f32.mrf.mxu0 }
 0x261   : > { %v1158_v2 = vshll.u32 %v18443_v0, 16  ;;  %v2781_v15 = vpop.f32.mrf.mxu3 }
 0x262   : > { %v1166_v15 = vshll.u32 %v18451_v7, 16 }
 0x263   : > { %14791 = vmatmul.msk.bf16.gmra.mxu0 %vm573_vm1, %v1153_v58  ;;  %v1160_v59 = vrot.slane %v1158_v2, 1 }
 0x264   : > { %v1168_v35 = vrot.slane %v1166_v15, 1 }
 0x265   : > { %v1703_v62 = vpop.f32.mrf.mxu1  ;;  %v2155_v17 = vpop.f32.mrf.mxu2  ;;  %v1161_v39 = vsel %vm1133_vm3, %v1156_v1, %v1160_v59 }
 0x266   : > { %v1164_v62 = vor.u32 %v1162_v60, %v1160_v59 }
 0x268   : > { %v842_v13 = vpop.f32.mrf.mxu0  ;;  %v1169_v1 = vsel %vm1133_vm3, %v1164_v62, %v1168_v35 }
 0x269   : > { %v2784_v62 = vpop.f32.mrf.mxu3 }
 0x26d   : > { %v2158_v60 = vpop.f32.mrf.mxu2 }
 0x270   : > { %v845_v23 = vpop.f32.mrf.mxu0 }
 0x271   : > { %v846_v58 = vadd.f32 %v18168_v47, %v845_v23  ;;  %v18462_v47 = vld [vmem:[%s18019_s12 + $0x28] sm:$0xff] }
 0x273   : > { %v1786_v27 = vadd.f32 %v1696_v56, %v846_v58  ;;  %14792 = vmatmul.msk.bf16.gmra.mxu0 %vm573_vm1, %v1161_v39  ;;  %v1706_v58 = vpop.f32.mrf.mxu1 }
 0x275   : > { %v2238_v45 = vadd.f32 %v2148_v41, %v1786_v27  ;;  %v1170_v41 = vshrl.u32 %v18451_v7, 16  ;;  %v18470_v27 = vld [vmem:[%s21218_s2] ss:$0 sm:$0xff] }
 0x277   : > { %v18453_v13 = vadd.f32 %v2774_v28, %v2238_v45  ;;  %v1174_v28 = vshll.u32 %v18462_v47, 16  ;;  %v1172_v17 = vor.u32 %v1170_v41, %v1168_v35  ;;  %v1178_v41 = vshrl.u32 %v18462_v47, 16 }
 0x278   : > { %v18455_v9 = vpop.f32.mrf.mxu0 }
 0x279   : > { %21267 = vst [vmem:[#allocation11_spill] sm:$0xff] %v18453_v13  ;;  %v1176_v23 = vrot.slane %v1174_v28, 1 }
 0x27a   : > { %21268 = vst [vmem:[#allocation12_spill] sm:$0xff] %v18455_v9 }
 0x27b   : > { %v1177_v59 = vsel %vm1133_vm3, %v1172_v17, %v1176_v23  ;;  %v1180_v17 = vor.u32 %v1178_v41, %v1176_v23 }
 0x280   : > { %v850_v2 = vpop.f32.mrf.mxu0 }
 0x281   : > { %v18475_v2 = vld [vmem:[%s18019_s12 + $0x30] sm:$0xff] }
 0x282   : > { %v1182_v28 = vshll.u32 %v18475_v2, 16 }
 0x283   : > { %14793 = vmatmul.msk.bf16.gmra.mxu0 %vm573_vm1, %v1169_v1 }
 0x288   : > { %v852_v56 = vpop.f32.mrf.mxu0 }
 0x290   : > { %v855_v39 = vpop.f32.mrf.mxu0 }
 0x291   : > { %v856_v45 = vadd.f32 %v18470_v27, %v855_v39  ;;  %v1184_v39 = vrot.slane %v1182_v28, 1 }
 0x293   : > { %v1790_v15 = vadd.f32 %v1706_v58, %v856_v45  ;;  %14794 = vmatmul.msk.bf16.gmra.mxu0 %vm573_vm1, %v1177_v59  ;;  %v1185_v58 = vsel %vm1133_vm3, %v1180_v17, %v1184_v39  ;;  %v1186_v45 = vshrl.u32 %v18475_v2, 16 }
 0x295   : > { %v2242_v35 = vadd.f32 %v2158_v60, %v1790_v15  ;;  %v1188_v60 = vor.u32 %v1186_v45, %v1184_v39  ;;  %v1808_v39 = vrot.slane %v18413_v16, 1 }
 0x297   : > { %v18477_v1 = vadd.f32 %v2784_v62, %v2242_v35  ;;  %v1193_v62 = vsel %vm1133_vm3, %v1188_v60, %v18053_v20  ;;  %v17072_v35 = vld [vmem:[%s18019_s12] sm:$0xf0] }
 0x298   : > { %v18479_v56 = vpop.f32.mrf.mxu0 }
 0x299   : > { %21269 = vst [vmem:[#allocation13_spill] sm:$0xff] %v18477_v1  ;;  %v17073_v1 = vld [vmem:[%s18019_s12] sm:$0xe] }
 0x29a   : > { %21270 = vst [vmem:[#allocation14_spill] sm:$0xff] %v18479_v56  ;;  %v17074_v23 = vor.u32 %v17073_v1, %v17072_v35 }
 0x29c   : > { %v1805_v41 = vrot.slane %v17074_v23, 1 }
 0x2a0   : > { %v860_v13 = vpop.f32.mrf.mxu0 }
 0x2a1   : > { %v1806_v13 = vrot.slane %v18406_v5, 1 }
 0x2a3   : > { %14795 = vmatmul.msk.bf16.gmra.mxu0 %vm573_vm1, %v1185_v58  ;;  %v1807_v17 = vsel %vm1804_vm2, %v1805_v41, %v1806_v13  ;;  %v1809_v20 = vsel %vm1804_vm2, %v1806_v13, %v1808_v39 }
 0x2a8   : > { %v862_v59 = vpop.f32.mrf.mxu0 }
 0x2b0   : > { %v865_v15 = vpop.f32.mrf.mxu0 }
 0x2b1   : > { %v1812_v15 = vrot.slane %v18451_v7, 1 }
 0x2b3   : > { %14796 = vmatmul.msk.bf16.gmra.mxu0 %vm573_vm1, %v1193_v62  ;;  %v706_v62 = vadd.f32 %v18470_v27, %v18100_v10 }
 0x2b8   : > { %v867_v56 = vpop.f32.mrf.mxu0 }
 0x2b9   : > { %v1810_v56 = vrot.slane %v18443_v0, 1  ;;  %v708_v0 = vadd.f32 %v18470_v27, %v18109_v22 }
 0x2bb   : > { %v1811_v60 = vsel %vm1804_vm2, %v1808_v39, %v1810_v56  ;;  %v1813_v35 = vsel %vm1804_vm2, %v1810_v56, %v1812_v15  ;;  %v716_v39 = vadd.f32 %v18470_v27, %v18122_v38 }
 0x2c0   : > { %v870_v28 = vpop.f32.mrf.mxu0 }
 0x2c1   : > { %v1814_v28 = vrot.slane %v18462_v47, 1  ;;  %v15044_v47 = vld [vmem:[%s21217_s1 + $0x8] sm:$0x3] }
 0x2c3   : > { %14827 = vmatmul.msk.bf16.vlgmr.msra.gmra.mxu0 %vm573_vm1, %v1807_v17  ;;  %v1815_v7 = vsel %vm1804_vm2, %v1812_v15, %v1814_v28 }
 0x2c8   : > { %v872_v58 = vpop.f32.mrf.mxu0 }
 0x2c9   : > { %v1816_v58 = vrot.slane %v18475_v2, 1  ;;  %v718_v2 = vadd.f32 %v18470_v27, %v18131_v46 }
 0x2cb   : > { %v1817_v22 = vsel %vm1804_vm2, %v1814_v28, %v1816_v58  ;;  %v16436_v28 = vld [vmem:[%s18019_s12 + $0x18] sm:$0xff] }
 0x2d0   : > { %v1546_v59 = vpop.f32.mrf.mxu0 }
 0x2d3   : > { %14828 = vmatmul.msk.bf16.gmra.mxu0 %vm573_vm1, %v1809_v20 }
 0x2d8   : > { %v1548_v45 = vpop.f32.mrf.mxu0 }
 0x2d9   : > { %v3535_v45 = vsel %vm682_vm0, %v15044_v47, 0  ;;  %v16468_v47 = vld [vmem:[%s18019_s12 + $0x118] sm:$0xff] }
 0x2da   : > { %3544 = vmatpush.bf16.msra.mxu0 %v3535_v45  ;;  %15041 = vmatmul.msk.bf16.gmra.mxu3 %vm573_vm1, %v16468_v47 }
 0x2e0   : > { %v1551_v1 = vpop.f32.mrf.mxu0 }
 0x2e3   : > { %14829 = vmatmul.msk.bf16.gmra.mxu0 %vm573_vm1, %v1811_v60  ;;  %v21271_v60 = vrot.slane %v18038_v11, 1  ;;  %v728_v11 = vadd.f32 %v18470_v27, %v18153_v19  ;;  %v1402_v19 = vshrl.u32 %v18344_v8, 16 }
 0x2e5   : > { %v1404_v45 = vor.u32 %v1402_v19, %v18355_v40 }
 0x2e8   : > { %v1553_v5 = vpop.f32.mrf.mxu0 }
 0x2e9   : > { %v1819_v5 = vsel %vm1804_vm2, %v1816_v58, %v21271_v60  ;;  %v16437_v58 = vld [vmem:[%s18019_s12 + $0x20] sm:$0xff]  ;;  %v16434_v60 = vld [vmem:[%s18019_s12 + $0x118] sm:$0xff] }
 0x2ea   : > { %v1414_v40 = vshll.u32 %v16434_v60, 16 }
 0x2f0   : > { %v1556_v16 = vpop.f32.mrf.mxu0 }
 0x2f1   : > { %v1730_v23 = vadd.f32 %v1556_v16, %v706_v62  ;;  %v726_v62 = vadd.f32 %v18470_v27, %v18144_v4  ;;  %v16435_v16 = vld [vmem:[%s18019_s12 + $0x10] sm:$0xff] }
 0x2f3   : > { %14830 = vmatmul.msk.bf16.gmra.mxu0 %vm573_vm1, %v1813_v35 }
 0x2f8   : > { %v1558_v41 = vpop.f32.mrf.mxu0 }
 0x2f9   : > { %v18507_v13 = vadd.f32 %v1558_v41, %v708_v0 }
 0x300   : > { %v1561_v17 = vpop.f32.mrf.mxu0 }
 0x303   : > { %14831 = vmatmul.msk.bf16.gmra.mxu0 %vm573_vm1, %v1815_v7 }
 0x308   : > { %v1563_v10 = vpop.f32.mrf.mxu0 }
 0x309   : > { %v16433_v10 = vld [vmem:[%s18019_s12 + $0x110] sm:$0xff] }
 0x30a   : > { %v1872_v4 = vrot.slane %v16433_v10, 1  ;;  %v1406_v27 = vshll.u32 %v16433_v10, 16 }
 0x310   : > { %v1566_v59 = vpop.f32.mrf.mxu0 }
 0x311   : > { %v18516_v20 = vadd.f32 %v1566_v59, %v716_v39  ;;  %v21272_v59 = vrot.slane %v18344_v8, 1  ;;  %v16438_v8 = vld [vmem:[%s18019_s12 + $0x28] sm:$0xff] }
 0x313   : > { %14832 = vmatmul.msk.bf16.gmra.mxu0 %vm573_vm1, %v1817_v22  ;;  %v1873_v22 = vsel %vm1804_vm2, %v21272_v59, %v1872_v4  ;;  %v16439_v59 = vld [vmem:[%s18019_s12 + $0x30] sm:$0xff] }
 0x314   : > { %14860 = vmatmul.msk.bf16.gmra.mxu2 %vm573_vm1, %v1873_v22 }
 0x318   : > { %v1568_v38 = vpop.f32.mrf.mxu0 }
 0x319   : > { %v18525_v56 = vadd.f32 %v1568_v38, %v718_v2  ;;  %v1408_v2 = vrot.slane %v1406_v27, 1  ;;  %v1418_v27 = vshrl.u32 %v16434_v60, 16 }
 0x31b   : > { %v1409_v38 = vsel %vm1133_vm3, %v1404_v45, %v1408_v2  ;;  %v16470_v45 = vld [vmem:[%s18019_s12 + $0x128] sm:$0xff] }
 0x31c   : > { %14823 = vmatmul.msk.bf16.gmra.mxu1 %vm573_vm1, %v1409_v38 }
 0x320   : > { %v1571_v1 = vpop.f32.mrf.mxu0 }
 0x323   : > { %14833 = vmatmul.msk.bf16.gmra.mxu0 %vm573_vm1, %v1819_v5  ;;  %v1874_v5 = vrot.slane %v16434_v60, 1  ;;  %v17079_v60 = vld [vmem:[%s18019_s12 + $0x20] sm:$0xff]  }
 0x328   : > { %v1573_v15 = vpop.f32.mrf.mxu0 }
 0x330   : > { %v1576_v35 = vpop.f32.mrf.mxu0 }
 0x331   : > { %v18534_v0 = vadd.f32 %v1576_v35, %v726_v62  ;;  %v1875_v62 = vsel %vm1804_vm2, %v1872_v4, %v1874_v5 }
 0x332   : > { %14861 = vmatmul.msk.bf16.gmra.mxu2 %vm573_vm1, %v1875_v62  ;;  %v16440_v62 = vld [vmem:[%s18019_s12 + $0x38] sm:$0xff] }
 0x333   : > { %15008 = vmatmul.msk.bf16.vlgmr.msrb.gmra.mxu0 %vm573_vm1, %v16435_v16  ;;  %v1410_v16 = vshrl.u32 %v16433_v10, 16 }
 0x338   : > { %v1578_v46 = vpop.f32.mrf.mxu0 }
 0x339   : > { %v18539_v41 = vadd.f32 %v1578_v46, %v728_v11  ;;  %v16469_v11 = vld [vmem:[%s18019_s12 + $0x120] sm:$0xff]  ;;  %v1412_v46 = vor.u32 %v1410_v16, %v1408_v2 }
 0x33a   : > { %15042 = vmatmul.msk.bf16.gmra.mxu3 %vm573_vm1, %v16469_v11  ;;  %v16506_v16 = vld [vmem:[%s18019_s12 + $0x20] sm:$0xff] }
 0x340   : > { %v1998_v17 = vpop.f32.mrf.mxu0 }
 0x343   : > { %15009 = vmatmul.msk.bf16.gmra.mxu0 %vm573_vm1, %v16436_v28  ;;  %v1416_v28 = vrot.slane %v1414_v40, 1 }
 0x345   : > { %v1417_v17 = vsel %vm1133_vm3, %v1412_v46, %v1416_v28  ;;  %v17076_v46 = vld [vmem:[%s18019_s12 + $0x10] sm:$0xf0] }
 0x346   : > { %14824 = vmatmul.msk.bf16.gmra.mxu1 %vm573_vm1, %v1417_v17  ;;  %v18585_v17 = vld [vmem:[%s18019_s12 + $0x18] sm:$0xff] }
 0x348   : > { %v2000_v7 = vpop.f32.mrf.mxu0 }
 0x34a   : > { %15043 = vmatmul.msk.bf16.gmra.mxu3 %vm573_vm1, %v16470_v45 }
 0x350   : > { %v2003_v39 = vpop.f32.mrf.mxu0 }
 0x353   : > { %15010 = vmatmul.msk.bf16.gmra.mxu0 %vm573_vm1, %v16437_v58 }
 0x358   : > { %v2005_v1 = vpop.f32.mrf.mxu0 }
 0x360   : > { %v2008_v15 = vpop.f32.mrf.mxu0 }
 0x361   : > { %v18559_v35 = vadd.f32 %v2008_v15, %v1730_v23  ;;  %v947_v23 = vld [vmem:[%s18019_s12 + $0x120] sm:$0x1]  ;;  %v5134_v15 = vshrl.u32 %v17079_v60, 16 }
 0x362   : > { %v1095_v4 = vunpack.c.l.b16 %v947_v23 }
 0x363   : > { %15011 = vmatmul.msk.bf16.gmra.mxu0 %vm573_vm1, %v16438_v8  ;;  %v5136_v8 = vshll.u32 %v17079_v60, 16  ;;  %v16441_v60 = vld [vmem:[%s18019_s12 + $0x40] sm:$0xff] }
 0x364   : > { %v1132_v58 = vpack.c.b16 %v1095_v4, %v1095_v4 }
 0x365   : > { %v5138_v40 = vrot.slane %v5136_v8, 1  ;;  %v16507_v8 = vld [vmem:[%s18019_s12 + $0x28] sm:$0xff] }
 0x366   : > { %v1876_v39 = vrot.slane %v1132_v58, 1  ;;  %v1422_v47 = vshll.u32 %v1132_v58, 16 }
 0x367   : > { %v5139_v4 = vor.u32 %v5138_v40, %v5134_v15 }
 0x368   : > { %v2010_v7 = vpop.f32.mrf.mxu0  ;;  %v1877_v19 = vsel %vm1804_vm2, %v1874_v5, %v1876_v39  ;;  %v1424_v2 = vrot.slane %v1422_v47, 1  ;;  %v16542_v5 = vld [vmem:[%s18019_s12 + $0x28] sm:$0xff] }
 0x369   : > { %v18568_v10 = vadd.f32 %v2010_v7, %v18507_v13  ;;  %14862 = vmatmul.msk.bf16.gmra.mxu2 %vm573_vm1, %v1877_v19  ;;  %v1420_v13 = vor.u32 %v1418_v27, %v1416_v28  ;;  %v5141_v11 = vshll.u32 %v16542_v5, 16  ;;  %v17077_v7 = vld [vmem:[%s18019_s12 + $0x10] sm:$0xe] }
 0x36a   : > { %v17078_v39 = vor.u32 %v17077_v7, %v17076_v46 }
 0x36b   : > { %v1425_v38 = vsel %vm1133_vm3, %v1420_v13, %v1424_v2  ;;  %v5143_v58 = vrot.slane %v5141_v11, 1  ;;  %v16543_v2 = vld [vmem:[%s18019_s12 + $0x30] sm:$0xff] }
 0x36c   : > { %14825 = vmatmul.msk.bf16.gmra.mxu1 %vm573_vm1, %v1425_v38  ;;  %v3804_v19 = vrot.slane %v17078_v39, 1  ;;  %v5145_v38 = vshrl.u32 %v16542_v5, 16  ;;  %v17075_v11 = vld [vmem:[%s18019_s12 + $0x10] sm:$0xff]   ;;  %v3142_v39 = vshll.u32 %v18585_v17, 16 }
 0x370   : > { %v2013_v22 = vpop.f32.mrf.mxu0 }
 0x371   : > { %v18595_v22 = vsel %vm1133_vm3, %v5139_v4, %v5143_v58  ;;  %v3135_v4 = vshrl.u32 %v17075_v11, 16 }
 0x372   : > { %21273 = vst [vmem:[#allocation15_spill] sm:$0xff] %v18595_v22  ;;  %15576 = vmatmul.msk.bf16.vlgmr.msrb.gmra.mxu3 %vm573_vm1, %v18595_v22  ;;  %v18710_v22 = vld [vmem:[%s18019_s12 + $0x48] sm:$0xff] }
 0x373   : > { %15012 = vmatmul.msk.bf16.gmra.mxu0 %vm573_vm1, %v16439_v59  ;;  %v3805_v59 = vrot.slane %v18585_v17, 1 }
 0x375   : > { %v3806_v47 = vsel %vm1804_vm2, %v3804_v19, %v3805_v59  ;;  %v3144_v19 = vrot.slane %v3142_v39, 1  ;;  %v16545_v39 = vld [vmem:[%s18019_s12 + $0x40] sm:$0xff] }
 0x378   : > { %v2015_v1 = vpop.f32.mrf.mxu0 }
 0x379   : > { %15403 = vmatmul.msk.bf16.vlgmr.msrb.gmra.mxu2 %vm573_vm1, %v16506_v16  ;;  %v5149_v1 = vshll.u32 %v16543_v2, 16  ;;  %v5147_v16 = vor.u32 %v5145_v38, %v5143_v58  ;;  %v16508_v38 = vld [vmem:[%s18019_s12 + $0x30] sm:$0xff] }
 0x37b   : > { %v5151_v40 = vrot.slane %v5149_v1, 1 }
 0x37c   : > { %15222 = vmatmul.msk.bf16.vlgmr.msrb.gmra.mxu1 %vm573_vm1, %v3806_v47  ;;  %v5153_v47 = vshrl.u32 %v16543_v2, 16 }
 0x37d   : > { %v18615_v46 = vsel %vm1133_vm3, %v5147_v16, %v5151_v40 }
 0x37e   : > { %21274 = vst [vmem:[#allocation16_spill] sm:$0xff] %v18615_v46 }
 0x380   : > { %v2018_v28 = vpop.f32.mrf.mxu0 }
 0x381   : > { %v18589_v23 = vadd.f32 %v2018_v28, %v18516_v20  ;;  %v15612_v20 = vld [vmem:[%s21217_s1 + $0x10] sm:$0x3] }
 0x382   : > { %v5985_v27 = vsel %vm682_vm0, %v15612_v20, 0  ;;  %15577 = vmatmul.msk.bf16.gmra.mxu3 %vm573_vm1, %v18615_v46  ;;  %v16512_v46 = vld [vmem:[%s18019_s12 + $0x50] sm:$0xff] }
 0x383   : > { %15013 = vmatmul.msk.bf16.gmra.mxu0 %vm573_vm1, %v16440_v62  ;;  %v16472_v62 = vld [vmem:[%s18019_s12 + $0x20] sm:$0xff] }
 0x384   : > { %5994 = vmatpush.bf16.msrb.mxu0 %v5985_v27  ;;  %v3807_v28 = vrot.slane %v16472_v62, 1  ;;  %v16544_v27 = vld [vmem:[%s18019_s12 + $0x38] sm:$0xff] }
 0x386   : > { %v3808_v5 = vsel %vm1804_vm2, %v3805_v59, %v3807_v28 }
 0x388   : > { %v2020_v45 = vpop.f32.mrf.mxu0 }
 0x389   : > { %v18606_v13 = vadd.f32 %v2020_v45, %v18525_v56  ;;  %15404 = vmatmul.msk.bf16.gmra.mxu2 %vm573_vm1, %v16507_v8  ;;  %v3137_v56 = vshll.u32 %v17075_v11, 16  ;;  %v5157_v45 = vshll.u32 %v16544_v27, 16  ;;  %v16473_v8 = vld [vmem:[%s18019_s12 + $0x28] sm:$0xff] }
 0x38b   : > { %v3139_v58 = vrot.slane %v3137_v56, 1  ;;  %v5159_v59 = vrot.slane %v5157_v45, 1  ;;  %v3809_v56 = vrot.slane %v16473_v8, 1  ;;  %v16509_v45 = vld [vmem:[%s18019_s12 + $0x38] sm:$0xff] }
 0x38c   : > { %15223 = vmatmul.msk.bf16.gmra.mxu1 %vm573_vm1, %v3808_v5  ;;  %v3150_v5 = vshll.u32 %v16472_v62, 16 }
 0x38d   : > { %v3140_v20 = vor.u32 %v3139_v58, %v3135_v4  ;;  %v3810_v2 = vsel %vm1804_vm2, %v3807_v28, %v3809_v56  ;;  %v18647_v28 = vld [vmem:[%s18019_s12 + $0x30] sm:$0xff] }
 0x38e   : > { %v3152_v58 = vrot.slane %v3150_v5, 1  ;;  %v16546_v5 = vld [vmem:[%s18019_s12 + $0x48] sm:$0xff] }
 0x390   : > { %v2023_v15 = vpop.f32.mrf.mxu0 }
 0x391   : > { %v5155_v15 = vor.u32 %v5153_v47, %v5151_v40  ;;  %v5165_v47 = vshll.u32 %v16545_v39, 16 }
 0x393   : > { %15014 = vmatmul.msk.bf16.gmra.mxu0 %vm573_vm1, %v16441_v60  ;;  %v3145_v60 = vsel %vm1133_vm3, %v3140_v20, %v3144_v19  ;;  %v18632_v11 = vsel %vm1133_vm3, %v5155_v15, %v5159_v59  ;;  %v5161_v20 = vshrl.u32 %v16544_v27, 16  ;;  %v5167_v15 = vrot.slane %v5165_v47, 1  ;;  %v16510_v47 = vld [vmem:[%s18019_s12 + $0x40] sm:$0xff] }
 0x394   : > { %21275 = vst [vmem:[#allocation17_spill] sm:$0xff] %v18632_v11  ;;  %15578 = vmatmul.msk.bf16.gmra.mxu3 %vm573_vm1, %v18632_v11 }
 0x398   : > { %v2025_v7 = vpop.f32.mrf.mxu0 }
 0x399   : > { %15405 = vmatmul.msk.bf16.gmra.mxu2 %vm573_vm1, %v16508_v38 }
 0x39c   : > { %15224 = vmatmul.msk.bf16.gmra.mxu1 %vm573_vm1, %v3810_v2  ;;  %v3158_v2 = vshll.u32 %v16473_v8, 16 }
 0x3a0   : > { %v2028_v1 = vpop.f32.mrf.mxu0 }
 0x3a1   : > { %v18628_v16 = vadd.f32 %v2028_v1, %v18534_v0  ;;  %v3146_v0 = vshrl.u32 %v18585_v17, 16  ;;  %v3811_v17 = vrot.slane %v18647_v28, 1 }
 0x3a3   : > { %15185 = vmatmul.msk.bf16.vlgmr.msra.gmra.mxu0 %vm573_vm1, %v3145_v60  ;;  %v3148_v4 = vor.u32 %v3146_v0, %v3144_v19  ;;  %v5163_v60 = vor.u32 %v5161_v20, %v5159_v59  ;;  %v3812_v19 = vsel %vm1804_vm2, %v3809_v56, %v3811_v17  ;;  %v3154_v59 = vshrl.u32 %v16472_v62, 16 }
 0x3a4   : > { %v3160_v0 = vrot.slane %v3158_v2, 1  ;;  %v5173_v20 = vshll.u32 %v16546_v5, 16 }
 0x3a5   : > { %v3153_v1 = vsel %vm1133_vm3, %v3148_v4, %v3152_v58  ;;  %v5169_v4 = vshrl.u32 %v16545_v39, 16 }
 0x3a8   : > { %v2030_v40 = vpop.f32.mrf.mxu0 }
 0x3a9   : > { %v18641_v7 = vadd.f32 %v2030_v40, %v18539_v41  ;;  %15406 = vmatmul.msk.bf16.gmra.mxu2 %vm573_vm1, %v16509_v45  ;;  %v18651_v41 = vsel %vm1133_vm3, %v5163_v60, %v5167_v15  ;;  %v3156_v40 = vor.u32 %v3154_v59, %v3152_v58  ;;  %v5171_v60 = vor.u32 %v5169_v4, %v5167_v15  ;;  %v18678_v59 = vpop.f32.mrf.mxu2  ;;  %v16547_v4 = vld [vmem:[%s18019_s12 + $0x50] sm:$0xff] }
 0x3aa   : > { %21276 = vst [vmem:[#allocation18_spill] sm:$0xff] %v18651_v41  ;;  %15579 = vmatmul.msk.bf16.gmra.mxu3 %vm573_vm1, %v18651_v41  ;;  %v5175_v41 = vrot.slane %v5173_v20, 1  ;;  %v3162_v15 = vshrl.u32 %v16473_v8, 16  ;;  %v18681_v20 = vpop.f32.mrf.mxu3  ;;  %v5185_v11 = vshrl.u32 %v16547_v4, 16 }
 0x3ab   : > { %21279 = vst [vmem:[#allocation21_spill] sm:$0xff] %v18678_v59 }
 0x3ac   : > { %15225 = vmatmul.msk.bf16.gmra.mxu1 %vm573_vm1, %v3812_v19  ;;  %v18667_v56 = vsel %vm1133_vm3, %v5171_v60, %v5175_v41  ;;  %v3166_v19 = vshll.u32 %v18647_v28, 16  ;;  %v3164_v2 = vor.u32 %v3162_v15, %v3160_v0  ;;  %21280 = vst [vmem:[#allocation22_spill] sm:$0xff] %v18681_v20 }
 0x3ad   : > { %21277 = vst [vmem:[#allocation19_spill] sm:$0xff] %v18667_v56 }
 0x3b0   : > { %v2624_v38 = vpop.f32.mrf.mxu0 }
 0x3b1   : > { %v3161_v38 = vsel %vm1133_vm3, %v3156_v40, %v3160_v0  ;;  %v3168_v40 = vrot.slane %v3166_v19, 1  ;;  %v2163_v19 = vpop.f32.mrf.mxu2 }
 0x3b2   : > { %v16548_v19 = vld [vmem:[%s18019_s12 + $0x58] sm:$0xff] }
 0x3b3   : > { %15186 = vmatmul.msk.bf16.gmra.mxu0 %vm573_vm1, %v3153_v1  ;;  %v18663_v1 = vld [vmem:[%s18019_s12 + $0x38] sm:$0xff]  ;;  %v3169_v60 = vsel %vm1133_vm3, %v3164_v2, %v3168_v40 }
 0x3b4   : > { %v3813_v62 = vrot.slane %v18663_v1, 1 }
 0x3b6   : > { %v3814_v58 = vsel %vm1804_vm2, %v3811_v17, %v3813_v62 }
 0x3b8   : > { %v2626_v27 = vpop.f32.mrf.mxu0 }
 0x3b9   : > { %15407 = vmatmul.msk.bf16.gmra.mxu2 %vm573_vm1, %v16510_v47  ;;  %v18676_v27 = vpop.f32.mrf.mxu1  ;;  %v5177_v47 = vshrl.u32 %v16546_v5, 16 }
 0x3ba   : > { %15580 = vmatmul.msk.bf16.gmra.mxu3 %vm573_vm1, %v18667_v56  ;;  %21278 = vst [vmem:[#allocation20_spill] sm:$0xff] %v18676_v27 }
 0x3bb   : > { %v5179_v8 = vor.u32 %v5177_v47, %v5175_v41  ;;  %v3170_v47 = vshrl.u32 %v18647_v28, 16 }
 0x3bc   : > { %15226 = vmatmul.msk.bf16.gmra.mxu1 %vm573_vm1, %v3814_v58  ;;  %v18686_v58 = vld [vmem:[%s18019_s12 + $0x40] sm:$0xff] }
 0x3bd   : > { %v3815_v5 = vrot.slane %v18686_v58, 1 }
 0x3bf   : > { %v3816_v41 = vsel %vm1804_vm2, %v3813_v62, %v3815_v5  ;;  %v5189_v62 = vshll.u32 %v16548_v19, 16 }
 0x3c0   : > { %v2629_v45 = vpop.f32.mrf.mxu0 }
 0x3c1   : > { %v5181_v45 = vshll.u32 %v16547_v4, 16  ;;  %v1711_v0 = vpop.f32.mrf.mxu1  ;;  %v5191_v20 = vrot.slane %v5189_v62, 1  ;;  %v16549_v62 = vld [vmem:[%s18019_s12 + $0x60] sm:$0xff] }
 0x3c2   : > { %v2165_v0 = vpop.f32.mrf.mxu2 }
 0x3c3   : > { %15187 = vmatmul.msk.bf16.gmra.mxu0 %vm573_vm1, %v3161_v38  ;;  %v16511_v38 = vld [vmem:[%s18019_s12 + $0x48] sm:$0xff] }
 0x3c8   : > { %v2631_v39 = vpop.f32.mrf.mxu0 }
 0x3c9   : > { %v5183_v39 = vrot.slane %v5181_v45, 1  ;;  %15408 = vmatmul.msk.bf16.gmra.mxu2 %vm573_vm1, %v16511_v38  ;;  %v3174_v45 = vshll.u32 %v18663_v1, 16 }
 0x3ca   : > { %v2168_v4 = vpop.f32.mrf.mxu2 }
 0x3cb   : > { %v18693_v15 = vsel %vm1133_vm3, %v5179_v8, %v5183_v39  ;;  %v3176_v8 = vrot.slane %v3174_v45, 1  ;;  %v5187_v28 = vor.u32 %v5185_v11, %v5183_v39  ;;  %v3178_v39 = vshrl.u32 %v18663_v1, 16 }
 0x3cc   : > { %21281 = vst [vmem:[#allocation23_spill] sm:$0xff] %v18693_v15  ;;  %15581 = vmatmul.msk.bf16.gmra.mxu3 %vm573_vm1, %v18693_v15  ;;  %15227 = vmatmul.msk.bf16.gmra.mxu1 %vm573_vm1, %v3816_v41 }
 0x3d0   : > { %v2634_v17 = vpop.f32.mrf.mxu0 }
 0x3d1   : > { %v18689_v56 = vadd.f32 %v2634_v17, %v18559_v35  ;;  %v2789_v35 = vpop.f32.mrf.mxu3  ;;  %v1713_v17 = vpop.f32.mrf.mxu1 }
 0x3d2   : > { %v3180_v17 = vor.u32 %v3178_v39, %v3176_v8  ;;  %v2170_v0 = vpop.f32.mrf.mxu2 }
 0x3d3   : > { %15188 = vmatmul.msk.bf16.gmra.mxu0 %vm573_vm1, %v3169_v60  ;;  %v3172_v60 = vor.u32 %v3170_v47, %v3168_v40  ;;  %v18714_v40 = vsel %vm1133_vm3, %v5187_v28, %v5191_v20  ;;  %v3182_v47 = vshll.u32 %v18686_v58, 16  ;;  %v5197_v28 = vshll.u32 %v16549_v62, 16 }
 0x3d4   : > { %21282 = vst [vmem:[#allocation24_spill] sm:$0xff] %v18714_v40  ;;  %v3190_v0 = vshll.u32 %v18710_v22, 16 }
 0x3d5   : > { %v3177_v35 = vsel %vm1133_vm3, %v3172_v60, %v3176_v8  ;;  %v3184_v60 = vrot.slane %v3182_v47, 1 }
 0x3d8   : > { %v2636_v2 = vpop.f32.mrf.mxu0 }
 0x3d9   : > { %v18704_v38 = vadd.f32 %v2636_v2, %v18568_v10  ;;  %v2791_v15 = vpop.f32.mrf.mxu3  ;;  %15409 = vmatmul.msk.bf16.gmra.mxu2 %vm573_vm1, %v16512_v46  ;;  %v1716_v10 = vpop.f32.mrf.mxu1  ;;  %v3817_v2 = vrot.slane %v18710_v22, 1 }
 0x3da   : > { %v16513_v10 = vld [vmem:[%s18019_s12 + $0x58] sm:$0xff] }
 0x3db   : > { %v3818_v15 = vsel %vm1804_vm2, %v3815_v5, %v3817_v2  ;;  %v3185_v5 = vsel %vm1133_vm3, %v3180_v17, %v3184_v60  ;;  %v3186_v17 = vshrl.u32 %v18686_v58, 16 }
 0x3dc   : > { %15582 = vmatmul.msk.bf16.gmra.mxu3 %vm573_vm1, %v18714_v40  ;;  %15228 = vmatmul.msk.bf16.gmra.mxu1 %vm573_vm1, %v3818_v15  ;;  %v18728_v15 = vld [vmem:[%s18019_s12 + $0x50] sm:$0xff] }
 0x3e0   : > { %v2639_v41 = vpop.f32.mrf.mxu0 }
 0x3e1   : > { %v2794_v46 = vpop.f32.mrf.mxu3  ;;  %v1718_v45 = vpop.f32.mrf.mxu1 }
 0x3e3   : > { %15189 = vmatmul.msk.bf16.gmra.mxu0 %vm573_vm1, %v3177_v35  ;;  %v5193_v35 = vshrl.u32 %v16548_v19, 16  ;;  %v3819_v19 = vrot.slane %v18728_v15, 1 }
 0x3e5   : > { %v5195_v46 = vor.u32 %v5193_v35, %v5191_v20  ;;  %v3820_v20 = vsel %vm1804_vm2, %v3817_v2, %v3819_v19 }
 0x3e8   : > { %v2641_v11 = vpop.f32.mrf.mxu0 }
 0x3e9   : > { %v2796_v41 = vpop.f32.mrf.mxu3  ;;  %v5199_v11 = vrot.slane %v5197_v28, 1  ;;  %15410 = vmatmul.msk.bf16.gmra.mxu2 %vm573_vm1, %v16513_v10  ;;  %v1721_v8 = vpop.f32.mrf.mxu1  ;;  %v3188_v28 = vor.u32 %v3186_v17, %v3184_v60  ;;  %v3192_v10 = vrot.slane %v3190_v0, 1 }
 0x3ea   : > { %v5201_v8 = vshrl.u32 %v16549_v62, 16 }
 0x3eb   : > { %v18735_v39 = vsel %vm1133_vm3, %v5195_v46, %v5199_v11 }
 0x3ec   : > { %21283 = vst [vmem:[#allocation25_spill] sm:$0xff] %v18735_v39  ;;  %15583 = vmatmul.msk.bf16.gmra.mxu3 %vm573_vm1, %v18735_v39  ;;  %v2173_v47 = vpop.f32.mrf.mxu2  ;;  %15229 = vmatmul.msk.bf16.gmra.mxu1 %vm573_vm1, %v3820_v20  ;;  %v18752_v39 = vld [vmem:[%s18019_s12 + $0x58] sm:$0xff]  ;;  %v5203_v58 = vor.u32 %v5201_v8, %v5199_v11 }
 0x3ed   : > { %v16514_v47 = vld [vmem:[%s18019_s12 + $0x60] sm:$0xff]  ;;  %v3821_v60 = vrot.slane %v18752_v39, 1 }
 0x3ef   : > { %v3822_v17 = vsel %vm1804_vm2, %v3819_v19, %v3821_v60 }
 0x3f0   : > { %v2644_v4 = vpop.f32.mrf.mxu0 }
 0x3f1   : > { %v18731_v1 = vadd.f32 %v2644_v4, %v18589_v23  ;;  %v2799_v23 = vpop.f32.mrf.mxu3  ;;  %v1723_v35 = vpop.f32.mrf.mxu1 }
 0x3f2   : > { %v3193_v23 = vsel %vm1133_vm3, %v3188_v28, %v3192_v10  ;;  %v3194_v35 = vshrl.u32 %v18710_v22, 16  ;;  %v3198_v28 = vshll.u32 %v18728_v15, 16 }
 0x3f3   : > { %15190 = vmatmul.msk.bf16.gmra.mxu0 %vm573_vm1, %v3185_v5  ;;  %v16550_v5 = vld [vmem:[%s18019_s12 + $0x68] sm:$0xff] }
 0x3f4   : > { %v2175_v4 = vpop.f32.mrf.mxu2  ;;  %v5205_v2 = vshll.u32 %v16550_v5, 16  ;;  %v3200_v8 = vrot.slane %v3198_v28, 1 }
 0x3f6   : > { %v5207_v40 = vrot.slane %v5205_v2, 1 }
 0x3f8   : > { %v2646_v45 = vpop.f32.mrf.mxu0 }
 0x3f9   : > { %v18746_v41 = vadd.f32 %v2646_v45, %v18606_v13  ;;  %v2801_v46 = vpop.f32.mrf.mxu3  ;;  %15411 = vmatmul.msk.bf16.gmra.mxu2 %vm573_vm1, %v16514_v47  ;;  %v18756_v13 = vsel %vm1133_vm3, %v5203_v58, %v5207_v40  ;;  %v3997_v62 = vpop.f32.mrf.mxu1  ;;  %v16551_v47 = vld [vmem:[%s18019_s12 + $0x70] sm:$0xff] }
 0x3fa   : > { %21284 = vst [vmem:[#allocation26_spill] sm:$0xff] %v18756_v13  ;;  %v3196_v46 = vor.u32 %v3194_v35, %v3192_v10  ;;  %v16515_v62 = vld [vmem:[%s18019_s12 + $0x68] sm:$0xff] }
 0x3fc   : > { %15584 = vmatmul.msk.bf16.gmra.mxu3 %vm573_vm1, %v18756_v13  ;;  %v4623_v45 = vpop.f32.mrf.mxu2  ;;  %15230 = vmatmul.msk.bf16.gmra.mxu1 %vm573_vm1, %v3822_v17  ;;  %v3201_v19 = vsel %vm1133_vm3, %v3196_v46, %v3200_v8  ;;  %v18770_v17 = vld [vmem:[%s18019_s12 + $0x60] sm:$0xff]  ;;  %v3202_v46 = vshrl.u32 %v18728_v15, 16 }
 0x400   : > { %v2649_v20 = vpop.f32.mrf.mxu0 }
 0x401   : > { %v5545_v11 = vpop.f32.mrf.mxu3  ;;  %v3999_v4 = vpop.f32.mrf.mxu1  ;;  %v5209_v20 = vshrl.u32 %v16550_v5, 16  ;;  %v3823_v5 = vrot.slane %v18770_v17, 1 }
 0x403   : > { %15191 = vmatmul.msk.bf16.gmra.mxu0 %vm573_vm1, %v3193_v23  ;;  %v5213_v23 = vshll.u32 %v16551_v47, 16  ;;  %v5211_v11 = vor.u32 %v5209_v20, %v5207_v40  ;;  %v3824_v40 = vsel %vm1804_vm2, %v3821_v60, %v3823_v5 }
 0x404   : > { %v4625_v2 = vpop.f32.mrf.mxu2 }
 0x405   : > { %v3206_v2 = vshll.u32 %v18752_v39, 16 }
 0x408   : > { %v2651_v0 = vpop.f32.mrf.mxu0 }
 0x409   : > { %v5547_v58 = vpop.f32.mrf.mxu3  ;;  %v5215_v0 = vrot.slane %v5213_v23, 1  ;;  %15412 = vmatmul.msk.bf16.gmra.mxu2 %vm573_vm1, %v16515_v62  ;;  %v4002_v35 = vpop.f32.mrf.mxu1  ;;  %v3208_v62 = vrot.slane %v3206_v2, 1 }
 0x40a   : > { %v3204_v58 = vor.u32 %v3202_v46, %v3200_v8 }
 0x40b   : > { %v18777_v10 = vsel %vm1133_vm3, %v5211_v11, %v5215_v0  ;;  %v5217_v11 = vshrl.u32 %v16551_v47, 16 }
 0x40c   : > { %21285 = vst [vmem:[#allocation27_spill] sm:$0xff] %v18777_v10  ;;  %15585 = vmatmul.msk.bf16.gmra.mxu3 %vm573_vm1, %v18777_v10  ;;  %v4628_v28 = vpop.f32.mrf.mxu2  ;;  %15231 = vmatmul.msk.bf16.gmra.mxu1 %vm573_vm1, %v3824_v40  ;;  %v18794_v10 = vld [vmem:[%s18019_s12 + $0x68] sm:$0xff] }
 0x40d   : > { %v16516_v28 = vld [vmem:[%s18019_s12 + $0x70] sm:$0xff]  ;;  %v5219_v15 = vor.u32 %v5217_v11, %v5215_v0  ;;  %v3825_v8 = vrot.slane %v18794_v10, 1 }
 0x40f   : > { %v3826_v0 = vsel %vm1804_vm2, %v3823_v5, %v3825_v8 }
 0x410   : > { %v2654_v45 = vpop.f32.mrf.mxu0 }
 0x411   : > { %v18773_v22 = vadd.f32 %v2654_v45, %v18628_v16  ;;  %v5550_v16 = vpop.f32.mrf.mxu3  ;;  %v4004_v23 = vpop.f32.mrf.mxu1 }
 0x412   : > { %v3209_v16 = vsel %vm1133_vm3, %v3204_v58, %v3208_v62  ;;  %v3210_v23 = vshrl.u32 %v18752_v39, 16  ;;  %v3214_v58 = vshll.u32 %v18770_v17, 16  ;;  %v15714_v39 = vld [vmem:[%s21219_s3 + $0x4] sm:$0x3] }
 0x413   : > { %15192 = vmatmul.msk.bf16.gmra.mxu0 %vm573_vm1, %v3201_v19  ;;  %v16552_v19 = vld [vmem:[%s18019_s12 + $0x78] sm:$0xff] }
 0x414   : > { %v4630_v45 = vpop.f32.mrf.mxu2  ;;  %v5221_v35 = vshll.u32 %v16552_v19, 16  ;;  %v3212_v11 = vor.u32 %v3210_v23, %v3208_v62 }
 0x416   : > { %v5223_v13 = vrot.slane %v5221_v35, 1  ;;  %v3216_v35 = vrot.slane %v3214_v58, 1  ;;  %v9600_v58 = vsel %vm682_vm0, %v15714_v39, 0 }
 0x417   : > { %9609 = vmatpush.bf16.msra.mxu3 %v9600_v58 }
 0x418   : > { %v2656_v4 = vpop.f32.mrf.mxu0  ;;  %v3217_v62 = vsel %vm1133_vm3, %v3212_v11, %v3216_v35 }
 0x419   : > { %v18788_v20 = vadd.f32 %v2656_v4, %v18641_v7  ;;  %v5552_v60 = vpop.f32.mrf.mxu3  ;;  %15413 = vmatmul.msk.bf16.gmra.mxu2 %vm573_vm1, %v16516_v28  ;;  %v18798_v7 = vsel %vm1133_vm3, %v5219_v15, %v5223_v13  ;;  %v18802_v47 = vpop.f32.mrf.mxu1  ;;  %v16553_v28 = vld [vmem:[%s18019_s12 + $0x80] sm:$0xff] }
 0x41a   : > { %21286 = vst [vmem:[#allocation28_spill] sm:$0xff] %v18798_v7  ;;  %v5229_v5 = vshll.u32 %v16553_v28, 16  ;;  %v15681_v15 = vld [vmem:[%s21219_s3 + $0x2] sm:$0x3] }
 0x41b   : > { %v8778_v23 = vsel %vm682_vm0, %v15681_v15, 0 }
 0x41c   : > { %15586 = vmatmul.msk.bf16.gmra.mxu3 %vm573_vm1, %v18798_v7  ;;  %v18806_v4 = vpop.f32.mrf.mxu2  ;;  %15232 = vmatmul.msk.bf16.gmra.mxu1 %vm573_vm1, %v3826_v0  ;;  %v16517_v0 = vld [vmem:[%s18019_s12 + $0x78] sm:$0xff]  ;;  %v18835_v7 = vld [vmem:[%s18019_s12 + $0x70] sm:$0xff]  ;;  %v5231_v9 = vrot.slane %v5229_v5, 1  ;;  %v3218_v5 = vshrl.u32 %v18770_v17, 16 }
 0x41d   : > { %8787 = vmatpush.bf16.msra.mxu2 %v8778_v23  ;;  %v3827_v11 = vrot.slane %v18835_v7, 1 }
 0x41e   : > { %v3220_v23 = vor.u32 %v3218_v5, %v3216_v35 }
 0x420   : > { %v3546_v40 = vpop.f32.mrf.mxu0 }
 0x421   : > { %v18810_v46 = vpop.f32.mrf.mxu3  ;;  %v18814_v45 = vpop.f32.mrf.mxu1  ;;  %v5225_v40 = vshrl.u32 %v16552_v19, 16  ;;  %v7914_v19 = vld [vmem:[%s21219_s3] sm:$0x3] }
 0x422   : > { %v8476_v59 = vsel %vm682_vm0, %v7914_v19, 0  ;;  %v16554_v19 = vld [vmem:[%s18019_s12 + $0x88] sm:$0xff] }
 0x423   : > { %15193 = vmatmul.msk.bf16.gmra.mxu0 %vm573_vm1, %v3209_v16  ;;  %v5227_v27 = vor.u32 %v5225_v40, %v5223_v13  ;;  %8485 = vmatpush.bf16.msra.mxu1 %v8476_v59  ;;  %v3828_v13 = vsel %vm1804_vm2, %v3825_v8, %v3827_v11 }
 0x424   : > { %v18816_v60 = vpop.f32.mrf.mxu2 }
 0x425   : > { %v18842_v39 = vsel %vm1133_vm3, %v5227_v27, %v5231_v9 }
 0x426   : > { %21287 = vst [vmem:[#allocation29_spill] sm:$0xff] %v18842_v39 }
 0x428   : > { %v3548_v2 = vpop.f32.mrf.mxu0 }
 0x429   : > { %v18819_v16 = vpop.f32.mrf.mxu3  ;;  %15414 = vmatmul.msk.bf16.gmra.mxu2 %vm573_vm1, %v16517_v0  ;;  %v4012_v15 = vpop.f32.mrf.mxu1  ;;  %v3222_v0 = vshll.u32 %v18794_v10, 16 }
 0x42a   : > { %v5233_v15 = vshrl.u32 %v16553_v28, 16 }
 0x42b   : > { %v3224_v27 = vrot.slane %v3222_v0, 1 }
 0x42c   : > { %15587 = vmatmul.msk.bf16.gmra.mxu3 %vm573_vm1, %v18842_v39  ;;  %15233 = vmatmul.msk.bf16.gmra.mxu1 %vm573_vm1, %v3828_v13  ;;  %v5237_v39 = vshll.u32 %v16554_v19, 16  ;;  %v18854_v13 = vld [vmem:[%s18019_s12 + $0x78] sm:$0xff] }
 0x42d   : > { %v3225_v8 = vsel %vm1133_vm3, %v3220_v23, %v3224_v27  ;;  %v3829_v5 = vrot.slane %v18854_v13, 1  ;;  %v3230_v23 = vshll.u32 %v18835_v7, 16 }
 0x430   : > { %v3551_v2 = vpop.f32.mrf.mxu0 }
 0x431   : > { %v4638_v2 = vpop.f32.mrf.mxu2  ;;  %v5560_v59 = vpop.f32.mrf.mxu3 }
 0x432   : > { %v16518_v2 = vld [vmem:[%s18019_s12 + $0x80] sm:$0xff]  ;;  %v5235_v59 = vor.u32 %v5233_v15, %v5231_v9 }
 0x433   : > { %15194 = vmatmul.msk.bf16.gmra.mxu0 %vm573_vm1, %v3217_v62  ;;  %v4014_v62 = vpop.f32.mrf.mxu1 }
 0x434   : > { %v3226_v62 = vshrl.u32 %v18794_v10, 16 }
 0x438   : > { %v3553_v40 = vpop.f32.mrf.mxu0 }
 0x439   : > { %v4640_v58 = vpop.f32.mrf.mxu2  ;;  %v5562_v21 = vpop.f32.mrf.mxu3  ;;  %v5239_v40 = vrot.slane %v5237_v39, 1  ;;  %15415 = vmatmul.msk.bf16.gmra.mxu2 %vm573_vm1, %v16518_v2  ;;  %v3228_v2 = vor.u32 %v3226_v62, %v3224_v27 }
 0x43b   : > { %v18859_v35 = vsel %vm1133_vm3, %v5235_v59, %v5239_v40  ;;  %v4017_v21 = vpop.f32.mrf.mxu1  ;;  %v16555_v59 = vld [vmem:[%s18019_s12 + $0x90] sm:$0xff] }
 0x43c   : > { %21288 = vst [vmem:[#allocation30_spill] sm:$0xff] %v18859_v35  ;;  %15588 = vmatmul.msk.bf16.gmra.mxu3 %vm573_vm1, %v18859_v35 }
 0x440   : > { %v3556_v26 = vpop.f32.mrf.mxu0 }
 0x441   : > { %v3730_v17 = vadd.f32 %v3556_v26, %v18689_v56  ;;  %v18866_v9 = vpop.f32.mrf.mxu2  ;;  %v3830_v26 = vsel %vm1804_vm2, %v3827_v11, %v3829_v5  ;;  %v5565_v0 = vpop.f32.mrf.mxu3 }
 0x442   : > { %15234 = vmatmul.msk.bf16.gmra.mxu1 %vm573_vm1, %v3830_v26 }
 0x443   : > { %v4181_v28 = vadd.f32 %v18802_v47, %v3730_v17  ;;  %15195 = vmatmul.msk.bf16.gmra.mxu0 %vm573_vm1, %v3225_v8  ;;  %v4019_v11 = vpop.f32.mrf.mxu1  ;;  %v5241_v17 = vshrl.u32 %v16554_v19, 16 }
 0x445   : > { %v4807_v56 = vadd.f32 %v18806_v4, %v4181_v28  ;;  %v3232_v4 = vrot.slane %v3230_v23, 1  ;;  %v5245_v28 = vshll.u32 %v16555_v59, 16 }
 0x447   : > { %v18872_v39 = vadd.f32 %v18810_v46, %v4807_v56  ;;  %v16519_v56 = vld [vmem:[%s18019_s12 + $0x88] sm:$0xff]  ;;  %v5247_v27 = vrot.slane %v5245_v28, 1 }
 0x448   : > { %v3558_v47 = vpop.f32.mrf.mxu0 }
 0x449   : > { %v3731_v58 = vadd.f32 %v3558_v47, %v18704_v38  ;;  %v18878_v8 = vpop.f32.mrf.mxu2  ;;  %v5567_v10 = vpop.f32.mrf.mxu3  ;;  %v3233_v38 = vsel %vm1133_vm3, %v3228_v2, %v3232_v4  ;;  %v18888_v47 = vld [vmem:[%s18019_s12 + $0x80] sm:$0xff]  ;;  %15416 = vmatmul.msk.bf16.gmra.mxu2 %vm573_vm1, %v16519_v56  ;;  %v16556_v56 = vld [vmem:[%s18019_s12 + $0x98] sm:$0xff] }
 0x44b   : > { %v4182_v15 = vadd.f32 %v18814_v45, %v3731_v58  ;;  %v5243_v45 = vor.u32 %v5241_v17, %v5239_v40  ;;  %v3234_v58 = vshrl.u32 %v18835_v7, 16 }
 0x44d   : > { %v4808_v46 = vadd.f32 %v18816_v60, %v4182_v15  ;;  %v18892_v62 = vsel %vm1133_vm3, %v5243_v45, %v5247_v27  ;;  %v3831_v60 = vrot.slane %v18888_v47, 1  ;;  %v3238_v15 = vshll.u32 %v18854_v13, 16 }
 0x44e   : > { %21290 = vst [vmem:[#allocation32_spill] sm:$0xff] %v18892_v62  ;;  %15589 = vmatmul.msk.bf16.gmra.mxu3 %vm573_vm1, %v18892_v62  ;;  %v5253_v45 = vshll.u32 %v16556_v56, 16 }
 0x44f   : > { %v18883_v26 = vadd.f32 %v18819_v16, %v4808_v46  ;;  %v4022_v16 = vpop.f32.mrf.mxu1  ;;  %v3236_v46 = vor.u32 %v3234_v58, %v3232_v4  ;;  %v3240_v17 = vrot.slane %v3238_v15, 1 }
 0x450   : > { %v3561_v35 = vpop.f32.mrf.mxu0 }
 0x451   : > { %21289 = vst [vmem:[#allocation31_spill] sm:$0xff] %v18883_v26  ;;  %v4648_v19 = vpop.f32.mrf.mxu2  ;;  %v3832_v35 = vsel %vm1804_vm2, %v3829_v5, %v3831_v60  ;;  %v5570_v40 = vpop.f32.mrf.mxu3  ;;  %v3241_v5 = vsel %vm1133_vm3, %v3236_v46, %v3240_v17  ;;  %v18936_v26 = vld [vmem:[%s18019_s12 + $0x90] sm:$0xff] }
 0x452   : > { %15235 = vmatmul.msk.bf16.gmra.mxu1 %vm573_vm1, %v3832_v35  ;;  %v16520_v19 = vld [vmem:[%s18019_s12 + $0x90] sm:$0xff]  ;;  %v18906_v35 = vld [vmem:[%s18019_s12 + $0x88] sm:$0xff] }
 0x453   : > { %15196 = vmatmul.msk.bf16.gmra.mxu0 %vm573_vm1, %v3233_v38  ;;  %v5249_v38 = vshrl.u32 %v16555_v59, 16  ;;  %v3833_v58 = vrot.slane %v18906_v35, 1 }
 0x455   : > { %v5251_v40 = vor.u32 %v5249_v38, %v5247_v27  ;;  %v3834_v27 = vsel %vm1804_vm2, %v3831_v60, %v3833_v58  ;;  %v3246_v38 = vshll.u32 %v18888_v47, 16 }
 0x457   : > { %v4024_v2 = vpop.f32.mrf.mxu1  ;;  %v3248_v60 = vrot.slane %v3246_v38, 1  ;;  %v3254_v38 = vshll.u32 %v18906_v35, 16 }
 0x458   : > { %v3563_v23 = vpop.f32.mrf.mxu0 }
 0x459   : > { %v4650_v28 = vpop.f32.mrf.mxu2  ;;  %v5572_v16 = vpop.f32.mrf.mxu3  ;;  %v5255_v23 = vrot.slane %v5253_v45, 1  ;;  %15417 = vmatmul.msk.bf16.gmra.mxu2 %vm573_vm1, %v16520_v19 }
 0x45a   : > { %v3242_v28 = vshrl.u32 %v18854_v13, 16  ;;  %v16521_v13 = vld [vmem:[%s18019_s12 + $0x98] sm:$0xff] }
 0x45b   : > { %v18911_v4 = vsel %vm1133_vm3, %v5251_v40, %v5255_v23 }
 0x45c   : > { %21291 = vst [vmem:[#allocation33_spill] sm:$0xff] %v18911_v4 }
 0x45e   : > { %15590 = vmatmul.msk.bf16.gmra.mxu3 %vm573_vm1, %v18911_v4 }
 0x45f   : > { %v4027_v15 = vpop.f32.mrf.mxu1 }
 0x460   : > { %v3566_v62 = vpop.f32.mrf.mxu0 }
 0x461   : > { %v3734_v7 = vadd.f32 %v3566_v62, %v18731_v1  ;;  %v18917_v2 = vpop.f32.mrf.mxu2  ;;  %v5575_v46 = vpop.f32.mrf.mxu3 }
 0x462   : > { %15236 = vmatmul.msk.bf16.gmra.mxu1 %vm573_vm1, %v3834_v27 }
 0x463   : > { %v4185_v59 = vadd.f32 %v4017_v21, %v3734_v7  ;;  %15197 = vmatmul.msk.bf16.gmra.mxu0 %vm573_vm1, %v3241_v5  ;;  %v3244_v5 = vor.u32 %v3242_v28, %v3240_v17  ;;  %v5257_v7 = vshrl.u32 %v16556_v56, 16  ;;  %v3250_v28 = vshrl.u32 %v18888_v47, 16 }
 0x465   : > { %v4811_v1 = vadd.f32 %v18866_v9, %v4185_v59  ;;  %v16557_v9 = vld [vmem:[%s18019_s12 + $0xa0] sm:$0xff] }
 0x466   : > { %v5261_v59 = vshll.u32 %v16557_v9, 16 }
 0x467   : > { %v18922_v62 = vadd.f32 %v5565_v0, %v4811_v1  ;;  %v4029_v19 = vpop.f32.mrf.mxu1 }
 0x468   : > { %v3568_v21 = vpop.f32.mrf.mxu0 }
 0x469   : > { %21292 = vst [vmem:[#allocation34_spill] sm:$0xff] %v18922_v62  ;;  %v3735_v45 = vadd.f32 %v3568_v21, %v18746_v41  ;;  %v18927_v40 = vpop.f32.mrf.mxu2  ;;  %v5577_v1 = vpop.f32.mrf.mxu3  ;;  %v3249_v62 = vsel %vm1133_vm3, %v3244_v5, %v3248_v60  ;;  %v5259_v41 = vor.u32 %v5257_v7, %v5255_v23  ;;  %15418 = vmatmul.msk.bf16.gmra.mxu2 %vm573_vm1, %v16521_v13  ;;  %v5265_v7 = vshrl.u32 %v16557_v9, 16 }
 0x46b   : > { %v4186_v16 = vadd.f32 %v4019_v11, %v3735_v45  ;;  %v5263_v11 = vrot.slane %v5261_v59, 1 }
 0x46d   : > { %v4812_v0 = vadd.f32 %v18878_v8, %v4186_v16  ;;  %v18940_v17 = vsel %vm1133_vm3, %v5259_v41, %v5263_v11  ;;  %v3835_v8 = vrot.slane %v18936_v26, 1  ;;  %v3252_v16 = vor.u32 %v3250_v28, %v3248_v60  ;;  %v16522_v41 = vld [vmem:[%s18019_s12 + $0xa0] sm:$0xff] }
 0x46e   : > { %21293 = vst [vmem:[#allocation35_spill] sm:$0xff] %v18940_v17  ;;  %15591 = vmatmul.msk.bf16.gmra.mxu3 %vm573_vm1, %v18940_v17  ;;  %v18984_v17 = vld [vmem:[%s18019_s12 + $0xa0] sm:$0xff] }
 0x46f   : > { %v18931_v27 = vadd.f32 %v5567_v10, %v4812_v0  ;;  %v4032_v10 = vpop.f32.mrf.mxu1  ;;  %v16558_v0 = vld [vmem:[%s18019_s12 + $0xa8] sm:$0xff] }
 0x470   : > { %v3571_v4 = vpop.f32.mrf.mxu0  ;;  %v5269_v59 = vshll.u32 %v16558_v0, 16 }
 0x471   : > { %v4658_v56 = vpop.f32.mrf.mxu2  ;;  %v3836_v4 = vsel %vm1804_vm2, %v3833_v58, %v3835_v8  ;;  %v5580_v23 = vpop.f32.mrf.mxu3 }
 0x472   : > { %15237 = vmatmul.msk.bf16.gmra.mxu1 %vm573_vm1, %v3836_v4  ;;  %v18954_v56 = vld [vmem:[%s18019_s12 + $0x98] sm:$0xff]  ;;  %v5267_v4 = vor.u32 %v5265_v7, %v5263_v11  ;;  %v5271_v23 = vrot.slane %v5269_v59, 1  ;;  %v3262_v7 = vshll.u32 %v18936_v26, 16 }
 0x473   : > { %15198 = vmatmul.msk.bf16.gmra.mxu0 %vm573_vm1, %v3249_v62  ;;  %v3256_v62 = vrot.slane %v3254_v38, 1 }
 0x474   : > { %v18959_v60 = vsel %vm1133_vm3, %v5267_v4, %v5271_v23  ;;  %v5273_v4 = vshrl.u32 %v16558_v0, 16 }
 0x475   : > { %v3257_v58 = vsel %vm1133_vm3, %v3252_v16, %v3256_v62  ;;  %21294 = vst [vmem:[#allocation36_spill] sm:$0xff] %v18959_v60 }
 0x477   : > { %v4034_v45 = vpop.f32.mrf.mxu1 }
 0x478   : > { %v3573_v21 = vpop.f32.mrf.mxu0 }
 0x479   : > { %v4660_v5 = vpop.f32.mrf.mxu2  ;;  %v5582_v13 = vpop.f32.mrf.mxu3  ;;  %15419 = vmatmul.msk.bf16.gmra.mxu2 %vm573_vm1, %v16522_v41  ;;  %v3837_v21 = vrot.slane %v18954_v56, 1 }
 0x47a   : > { %v3258_v5 = vshrl.u32 %v18906_v35, 16  ;;  %v16523_v35 = vld [vmem:[%s18019_s12 + $0xa8] sm:$0xff] }
 0x47b   : > { %v3838_v11 = vsel %vm1804_vm2, %v3835_v8, %v3837_v21  ;;  %v3264_v8 = vrot.slane %v3262_v7, 1  ;;  %v3266_v7 = vshrl.u32 %v18936_v26, 16 }
 0x47e   : > { %15592 = vmatmul.msk.bf16.gmra.mxu3 %vm573_vm1, %v18959_v60 }
 0x47f   : > { %v4037_v28 = vpop.f32.mrf.mxu1 }
 0x480   : > { %v3576_v10 = vpop.f32.mrf.mxu0 }
 0x481   : > { %v3738_v47 = vadd.f32 %v3576_v10, %v18773_v22  ;;  %v18965_v38 = vpop.f32.mrf.mxu2  ;;  %v5585_v16 = vpop.f32.mrf.mxu3  ;;  %v3260_v10 = vor.u32 %v3258_v5, %v3256_v62 }
 0x482   : > { %15238 = vmatmul.msk.bf16.gmra.mxu1 %vm573_vm1, %v3838_v11 }
 0x483   : > { %v4189_v9 = vadd.f32 %v4027_v15, %v3738_v47  ;;  %15199 = vmatmul.msk.bf16.gmra.mxu0 %vm573_vm1, %v3257_v58  ;;  %v3265_v60 = vsel %vm1133_vm3, %v3260_v10, %v3264_v8  ;;  %v3268_v10 = vor.u32 %v3266_v7, %v3264_v8 }
 0x485   : > { %v4815_v22 = vadd.f32 %v18917_v2, %v4189_v9  ;;  %v16559_v2 = vld [vmem:[%s18019_s12 + $0xb0] sm:$0xff] }
 0x486   : > { %v5277_v47 = vshll.u32 %v16559_v2, 16 }
 0x487   : > { %v18970_v45 = vadd.f32 %v5575_v46, %v4815_v22  ;;  %v4039_v41 = vpop.f32.mrf.mxu1 }
 0x488   : > { %v3578_v15 = vpop.f32.mrf.mxu0 }
 0x489   : > { %v3739_v59 = vadd.f32 %v3578_v15, %v18788_v20  ;;  %v18975_v58 = vpop.f32.mrf.mxu2  ;;  %v5587_v11 = vpop.f32.mrf.mxu3  ;;  %v5275_v20 = vor.u32 %v5273_v4, %v5271_v23  ;;  %15420 = vmatmul.msk.bf16.gmra.mxu2 %vm573_vm1, %v16523_v35  ;;  %v16560_v4 = vld [vmem:[%s18019_s12 + $0xb8] sm:$0xff] }
 0x48a   : > { %v5285_v35 = vshll.u32 %v16560_v4, 16 }
 0x48b   : > { %v4190_v13 = vadd.f32 %v4029_v19, %v3739_v59  ;;  %v5279_v19 = vrot.slane %v5277_v47, 1  ;;  %v3270_v59 = vshll.u32 %v18954_v56, 16  ;;  %v5281_v47 = vshrl.u32 %v16559_v2, 16 }
 0x48d   : > { %v4816_v46 = vadd.f32 %v18927_v40, %v4190_v13  ;;  %v18988_v62 = vsel %vm1133_vm3, %v5275_v20, %v5279_v19  ;;  %v3839_v40 = vrot.slane %v18984_v17, 1  ;;  %v16524_v20 = vld [vmem:[%s18019_s12 + $0xb0] sm:$0xff] }
 0x48e   : > { %21295 = vst [vmem:[#allocation37_spill] sm:$0xff] %v18988_v62  ;;  %15593 = vmatmul.msk.bf16.gmra.mxu3 %vm573_vm1, %v18988_v62  ;;  %v19032_v62 = vld [vmem:[%s18019_s12 + $0xb0] sm:$0xff] }
 0x48f   : > { %v18979_v9 = vadd.f32 %v5577_v1, %v4816_v46  ;;  %v4042_v1 = vpop.f32.mrf.mxu1  ;;  %v3840_v15 = vsel %vm1804_vm2, %v3837_v21, %v3839_v40 }
 0x490   : > { %v3581_v22 = vpop.f32.mrf.mxu0 }
 0x491   : > { %v4668_v0 = vpop.f32.mrf.mxu2  ;;  %v5590_v23 = vpop.f32.mrf.mxu3 }
 0x492   : > { %15239 = vmatmul.msk.bf16.gmra.mxu1 %vm573_vm1, %v3840_v15  ;;  %v19002_v0 = vld [vmem:[%s18019_s12 + $0xa8] sm:$0xff]  ;;  %v5283_v15 = vor.u32 %v5281_v47, %v5279_v19  ;;  %v5287_v23 = vrot.slane %v5285_v35, 1  ;;  %v3278_v47 = vshll.u32 %v18984_v17, 16 }
 0x493   : > { %15200 = vmatmul.msk.bf16.gmra.mxu0 %vm573_vm1, %v3265_v60  ;;  %v3272_v60 = vrot.slane %v3270_v59, 1 }
 0x494   : > { %v19007_v8 = vsel %vm1133_vm3, %v5283_v15, %v5287_v23  ;;  %v5289_v15 = vshrl.u32 %v16560_v4, 16 }
 0x495   : > { %v3273_v21 = vsel %vm1133_vm3, %v3268_v10, %v3272_v60  ;;  %21296 = vst [vmem:[#allocation38_spill] sm:$0xff] %v19007_v8 }
 0x497   : > { %v4044_v13 = vpop.f32.mrf.mxu1 }
 0x498   : > { %v3583_v5 = vpop.f32.mrf.mxu0 }
 0x499   : > { %v4670_v46 = vpop.f32.mrf.mxu2  ;;  %v5592_v22 = vpop.f32.mrf.mxu3  ;;  %15421 = vmatmul.msk.bf16.gmra.mxu2 %vm573_vm1, %v16524_v20  ;;  %v3841_v5 = vrot.slane %v19002_v0, 1 }
 0x49a   : > { %v3274_v46 = vshrl.u32 %v18954_v56, 16  ;;  %v16525_v56 = vld [vmem:[%s18019_s12 + $0xb8] sm:$0xff] }
 0x49b   : > { %v3842_v19 = vsel %vm1804_vm2, %v3839_v40, %v3841_v5  ;;  %v3280_v40 = vrot.slane %v3278_v47, 1  ;;  %v3282_v47 = vshrl.u32 %v18984_v17, 16 }
 0x49e   : > { %15594 = vmatmul.msk.bf16.gmra.mxu3 %vm573_vm1, %v19007_v8 }
 0x49f   : > { %v4047_v7 = vpop.f32.mrf.mxu1 }
 0x4a0   : > { %v3586_v1 = vpop.f32.mrf.mxu0 }
 0x4a1   : > { %v3742_v26 = vadd.f32 %v3586_v1, %v18179_v63  ;;  %v19013_v59 = vpop.f32.mrf.mxu2  ;;  %v5595_v10 = vpop.f32.mrf.mxu3  ;;  %v3276_v1 = vor.u32 %v3274_v46, %v3272_v60 }
 0x4a2   : > { %15240 = vmatmul.msk.bf16.gmra.mxu1 %vm573_vm1, %v3842_v19 }
 0x4a3   : > { %v4193_v2 = vadd.f32 %v4037_v28, %v3742_v26  ;;  %15201 = vmatmul.msk.bf16.gmra.mxu0 %vm573_vm1, %v3273_v21  ;;  %v3281_v8 = vsel %vm1133_vm3, %v3276_v1, %v3280_v40  ;;  %v3284_v1 = vor.u32 %v3282_v47, %v3280_v40 }
 0x4a5   : > { %v4819_v63 = vadd.f32 %v18965_v38, %v4193_v2  ;;  %v16561_v38 = vld [vmem:[%s18019_s12 + $0xc0] sm:$0xff] }
 0x4a6   : > { %v5293_v26 = vshll.u32 %v16561_v38, 16 }
 0x4a7   : > { %v19018_v13 = vadd.f32 %v5585_v16, %v4819_v63  ;;  %v4049_v20 = vpop.f32.mrf.mxu1 }
 0x4a8   : > { %v3588_v28 = vpop.f32.mrf.mxu0 }
 0x4a9   : > { %v3743_v35 = vadd.f32 %v3588_v28, %v18183_v12  ;;  %v19023_v21 = vpop.f32.mrf.mxu2  ;;  %v5597_v19 = vpop.f32.mrf.mxu3  ;;  %v5291_v12 = vor.u32 %v5289_v15, %v5287_v23  ;;  %15422 = vmatmul.msk.bf16.gmra.mxu2 %vm573_vm1, %v16525_v56 }
 0x4ab   : > { %v4194_v22 = vadd.f32 %v4039_v41, %v3743_v35  ;;  %v5295_v41 = vrot.slane %v5293_v26, 1  ;;  %v3286_v35 = vshll.u32 %v19002_v0, 16  ;;  %v5297_v26 = vshrl.u32 %v16561_v38, 16 }
 0x4ad   : > { %v4820_v16 = vadd.f32 %v18975_v58, %v4194_v22  ;;  %v19036_v60 = vsel %vm1133_vm3, %v5291_v12, %v5295_v41  ;;  %v3843_v58 = vrot.slane %v19032_v62, 1  ;;  %v16526_v12 = vld [vmem:[%s18019_s12 + $0xc0] sm:$0xff] }
 0x4ae   : > { %21297 = vst [vmem:[#allocation39_spill] sm:$0xff] %v19036_v60  ;;  %15595 = vmatmul.msk.bf16.gmra.mxu3 %vm573_vm1, %v19036_v60  ;;  %v19076_v60 = vld [vmem:[%s18019_s12 + $0xc0] sm:$0xff] }
 0x4af   : > { %v19027_v2 = vadd.f32 %v5587_v11, %v4820_v16  ;;  %v4052_v11 = vpop.f32.mrf.mxu1  ;;  %v3844_v4 = vsel %vm1804_vm2, %v3841_v5, %v3843_v58  ;;  %v16562_v16 = vld [vmem:[%s18019_s12 + $0xc8] sm:$0xff] }
 0x4b0   : > { %v3591_v63 = vpop.f32.mrf.mxu0  ;;  %v5301_v56 = vshll.u32 %v16562_v16, 16 }
 0x4b1   : > { %v4678_v28 = vpop.f32.mrf.mxu2  ;;  %v5600_v23 = vpop.f32.mrf.mxu3 }
 0x4b2   : > { %15241 = vmatmul.msk.bf16.gmra.mxu1 %vm573_vm1, %v3844_v4  ;;  %v19050_v4 = vld [vmem:[%s18019_s12 + $0xb8] sm:$0xff]  ;;  %v5299_v28 = vor.u32 %v5297_v26, %v5295_v41  ;;  %v5303_v23 = vrot.slane %v5301_v56, 1  ;;  %v3294_v26 = vshll.u32 %v19032_v62, 16 }
 0x4b3   : > { %15202 = vmatmul.msk.bf16.gmra.mxu0 %vm573_vm1, %v3281_v8  ;;  %v3288_v8 = vrot.slane %v3286_v35, 1 }
 0x4b4   : > { %v19055_v40 = vsel %vm1133_vm3, %v5299_v28, %v5303_v23 }
 0x4b5   : > { %v3289_v11 = vsel %vm1133_vm3, %v3284_v1, %v3288_v8  ;;  %21298 = vst [vmem:[#allocation40_spill] sm:$0xff] %v19055_v40 }
 0x4b7   : > { %v4054_v22 = vpop.f32.mrf.mxu1 }
 0x4b8   : > { %v3593_v46 = vpop.f32.mrf.mxu0 }
 0x4b9   : > { %v4680_v15 = vpop.f32.mrf.mxu2  ;;  %v5602_v63 = vpop.f32.mrf.mxu3  ;;  %15423 = vmatmul.msk.bf16.gmra.mxu2 %vm573_vm1, %v16526_v12  ;;  %v3845_v46 = vrot.slane %v19050_v4, 1 }
 0x4bb   : > { %v3846_v41 = vsel %vm1804_vm2, %v3843_v58, %v3845_v46 }
 0x4be   : > { %15596 = vmatmul.msk.bf16.gmra.mxu3 %vm573_vm1, %v19055_v40 }
 0x4bf   : > { %v4057_v47 = vpop.f32.mrf.mxu1 }
 0x4c0   : > { %v3596_v5 = vpop.f32.mrf.mxu0 }
 0x4c1   : > { %v3746_v17 = vadd.f32 %v3596_v5, %v18203_v54  ;;  %v4683_v54 = vpop.f32.mrf.mxu2  ;;  %v5605_v1 = vpop.f32.mrf.mxu3  ;;  %v3296_v5 = vrot.slane %v3294_v26, 1  ;;  %v3298_v26 = vshrl.u32 %v19032_v62, 16 }
 0x4c2   : > { %15242 = vmatmul.msk.bf16.gmra.mxu1 %vm573_vm1, %v3846_v41 }
 0x4c3   : > { %v4197_v38 = vadd.f32 %v4047_v7, %v3746_v17  ;;  %15203 = vmatmul.msk.bf16.gmra.mxu0 %vm573_vm1, %v3289_v11  ;;  %v3290_v7 = vshrl.u32 %v19002_v0, 16 }
 0x4c5   : > { %v4823_v35 = vadd.f32 %v19013_v59, %v4197_v38  ;;  %v3292_v58 = vor.u32 %v3290_v7, %v3288_v8  ;;  %v16563_v59 = vld [vmem:[%s18019_s12 + $0xd0] sm:$0xff] }
 0x4c6   : > { %v5309_v17 = vshll.u32 %v16563_v59, 16 }
 0x4c7   : > { %v19064_v22 = vadd.f32 %v5595_v10, %v4823_v35  ;;  %v4059_v12 = vpop.f32.mrf.mxu1  ;;  %v5305_v10 = vshrl.u32 %v16562_v16, 16  ;;  %v16527_v35 = vld [vmem:[%s18019_s12 + $0xc8] sm:$0xff]  ;;  %v3297_v40 = vsel %vm1133_vm3, %v3292_v58, %v3296_v5  ;;  %v3300_v58 = vor.u32 %v3298_v26, %v3296_v5 }
 0x4c8   : > { %v3598_v15 = vpop.f32.mrf.mxu0 }
 0x4c9   : > { %v3747_v56 = vadd.f32 %v3598_v15, %v18207_v6  ;;  %v4685_v28 = vpop.f32.mrf.mxu2  ;;  %v5607_v41 = vpop.f32.mrf.mxu3  ;;  %v5307_v6 = vor.u32 %v5305_v10, %v5303_v23  ;;  %15424 = vmatmul.msk.bf16.gmra.mxu2 %vm573_vm1, %v16527_v35 }
 0x4cb   : > { %v4198_v63 = vadd.f32 %v4049_v20, %v3747_v56  ;;  %v5311_v20 = vrot.slane %v5309_v17, 1  ;;  %v3302_v56 = vshll.u32 %v19050_v4, 16  ;;  %v5313_v17 = vshrl.u32 %v16563_v59, 16 }
 0x4cd   : > { %v4824_v11 = vadd.f32 %v19023_v21, %v4198_v63  ;;  %v19080_v8 = vsel %vm1133_vm3, %v5307_v6, %v5311_v20  ;;  %v3847_v21 = vrot.slane %v19076_v60, 1  ;;  %v16528_v6 = vld [vmem:[%s18019_s12 + $0xd0] sm:$0xff] }
 0x4ce   : > { %21299 = vst [vmem:[#allocation41_spill] sm:$0xff] %v19080_v8  ;;  %15597 = vmatmul.msk.bf16.gmra.mxu3 %vm573_vm1, %v19080_v8  ;;  %v19118_v8 = vld [vmem:[%s18019_s12 + $0xd0] sm:$0xff] }
 0x4cf   : > { %v19071_v38 = vadd.f32 %v5597_v19, %v4824_v11  ;;  %v4062_v19 = vpop.f32.mrf.mxu1  ;;  %v3848_v16 = vsel %vm1804_vm2, %v3845_v46, %v3847_v21  ;;  %v16564_v11 = vld [vmem:[%s18019_s12 + $0xd8] sm:$0xff] }
 0x4d0   : > { %v3601_v0 = vpop.f32.mrf.mxu0  ;;  %v5317_v35 = vshll.u32 %v16564_v11, 16 }
 0x4d1   : > { %v4688_v15 = vpop.f32.mrf.mxu2  ;;  %v5610_v23 = vpop.f32.mrf.mxu3 }
 0x4d2   : > { %15243 = vmatmul.msk.bf16.gmra.mxu1 %vm573_vm1, %v3848_v16  ;;  %v19094_v16 = vld [vmem:[%s18019_s12 + $0xc8] sm:$0xff]  ;;  %v5315_v15 = vor.u32 %v5313_v17, %v5311_v20  ;;  %v5319_v23 = vrot.slane %v5317_v35, 1  ;;  %v3310_v17 = vshll.u32 %v19076_v60, 16 }
 0x4d3   : > { %15204 = vmatmul.msk.bf16.gmra.mxu0 %vm573_vm1, %v3297_v40  ;;  %v3304_v40 = vrot.slane %v3302_v56, 1 }
 0x4d4   : > { %v19099_v5 = vsel %vm1133_vm3, %v5315_v15, %v5319_v23 }
 0x4d5   : > { %v3305_v19 = vsel %vm1133_vm3, %v3300_v58, %v3304_v40  ;;  %21300 = vst [vmem:[#allocation42_spill] sm:$0xff] %v19099_v5 }
 0x4d7   : > { %v4064_v63 = vpop.f32.mrf.mxu1 }
 0x4d8   : > { %v3603_v7 = vpop.f32.mrf.mxu0 }
 0x4d9   : > { %v4690_v10 = vpop.f32.mrf.mxu2  ;;  %v5612_v0 = vpop.f32.mrf.mxu3  ;;  %15425 = vmatmul.msk.bf16.gmra.mxu2 %vm573_vm1, %v16528_v6  ;;  %v3849_v7 = vrot.slane %v19094_v16, 1 }
 0x4db   : > { %v3850_v20 = vsel %vm1804_vm2, %v3847_v21, %v3849_v7  ;;  %v3312_v21 = vrot.slane %v3310_v17, 1 }
 0x4de   : > { %15598 = vmatmul.msk.bf16.gmra.mxu3 %vm573_vm1, %v19099_v5 }
 0x4df   : > { %v4067_v26 = vpop.f32.mrf.mxu1 }
 0x4e0   : > { %v3606_v46 = vpop.f32.mrf.mxu0 }
 0x4e1   : > { %v3750_v62 = vadd.f32 %v3606_v46, %v18227_v48  ;;  %v4693_v63 = vpop.f32.mrf.mxu2  ;;  %v5615_v58 = vpop.f32.mrf.mxu3 }
 0x4e2   : > { %15244 = vmatmul.msk.bf16.gmra.mxu1 %vm573_vm1, %v3850_v20 }
 0x4e3   : > { %v4201_v59 = vadd.f32 %v4057_v47, %v3750_v62  ;;  %15205 = vmatmul.msk.bf16.gmra.mxu0 %vm573_vm1, %v3305_v19  ;;  %v3306_v47 = vshrl.u32 %v19050_v4, 16  ;;  %v5321_v62 = vshrl.u32 %v16564_v11, 16 }
 0x4e5   : > { %v4827_v56 = vadd.f32 %v4683_v54, %v4201_v59  ;;  %v3308_v46 = vor.u32 %v3306_v47, %v3304_v40  ;;  %v16565_v54 = vld [vmem:[%s18019_s12 + $0xe0] sm:$0xff] }
 0x4e7   : > { %v19107_v48 = vadd.f32 %v5605_v1, %v4827_v56  ;;  %v4069_v6 = vpop.f32.mrf.mxu1  ;;  %v5325_v1 = vshll.u32 %v16565_v54, 16  ;;  %v16529_v56 = vld [vmem:[%s18019_s12 + $0xd8] sm:$0xff]  ;;  %v3313_v4 = vsel %vm1133_vm3, %v3308_v46, %v3312_v21 }
 0x4e8   : > { %v3608_v10 = vpop.f32.mrf.mxu0 }
 0x4e9   : > { %21301 = vst [vmem:[#allocation43_spill] sm:$0xff] %v19107_v48  ;;  %v3751_v35 = vadd.f32 %v3608_v10, %v18231_v3  ;;  %v4695_v15 = vpop.f32.mrf.mxu2  ;;  %v5617_v20 = vpop.f32.mrf.mxu3  ;;  %v5323_v48 = vor.u32 %v5321_v62, %v5319_v23  ;;  %v5327_v3 = vrot.slane %v5325_v1, 1  ;;  %15426 = vmatmul.msk.bf16.gmra.mxu2 %vm573_vm1, %v16529_v56  ;;  %v3318_v10 = vshll.u32 %v19094_v16, 16  ;;  %v16530_v56 = vld [vmem:[%s18019_s12 + $0xe0] sm:$0xff] }
 0x4eb   : > { %v4202_v0 = vadd.f32 %v4059_v12, %v3751_v35  ;;  %v19122_v12 = vsel %vm1133_vm3, %v5323_v48, %v5327_v3  ;;  %v3314_v48 = vshrl.u32 %v19076_v60, 16  ;;  %v3320_v35 = vrot.slane %v3318_v10, 1 }
 0x4ec   : > { %21302 = vst [vmem:[#allocation44_spill] sm:$0xff] %v19122_v12 }
 0x4ed   : > { %v4828_v19 = vadd.f32 %v4685_v28, %v4202_v0  ;;  %v3851_v28 = vrot.slane %v19118_v8, 1  ;;  %v3316_v17 = vor.u32 %v3314_v48, %v3312_v21  ;;  %v16566_v0 = vld [vmem:[%s18019_s12 + $0xe8] sm:$0xff] }
 0x4ee   : > { %15599 = vmatmul.msk.bf16.gmra.mxu3 %vm573_vm1, %v19122_v12  ;;  %v5333_v62 = vshll.u32 %v16566_v0, 16 }
 0x4ef   : > { %v19113_v59 = vadd.f32 %v5607_v41, %v4828_v19  ;;  %v4072_v41 = vpop.f32.mrf.mxu1  ;;  %v3852_v40 = vsel %vm1804_vm2, %v3849_v7, %v3851_v28  ;;  %v5329_v19 = vshrl.u32 %v16565_v54, 16 }
 0x4f0   : > { %v3611_v5 = vpop.f32.mrf.mxu0  ;;  %v19136_v41 = vld [vmem:[%s18019_s12 + $0xd8] sm:$0xff] }
 0x4f1   : > { %v4698_v11 = vpop.f32.mrf.mxu2  ;;  %v5620_v23 = vpop.f32.mrf.mxu3 }
 0x4f2   : > { %15245 = vmatmul.msk.bf16.gmra.mxu1 %vm573_vm1, %v3852_v40  ;;  %v5331_v40 = vor.u32 %v5329_v19, %v5327_v3  ;;  %v5335_v11 = vrot.slane %v5333_v62, 1  ;;  %v3853_v23 = vrot.slane %v19136_v41, 1 }
 0x4f3   : > { %15206 = vmatmul.msk.bf16.gmra.mxu0 %vm573_vm1, %v3313_v4  ;;  %v3321_v4 = vsel %vm1133_vm3, %v3316_v17, %v3320_v35 }
 0x4f4   : > { %v19141_v21 = vsel %vm1133_vm3, %v5331_v40, %v5335_v11  ;;  %v3854_v3 = vsel %vm1804_vm2, %v3851_v28, %v3853_v23  ;;  %v5337_v40 = vshrl.u32 %v16566_v0, 16 }
 0x4f5   : > { %21303 = vst [vmem:[#allocation45_spill] sm:$0xff] %v19141_v21 }
 0x4f6   : > { %v5339_v12 = vor.u32 %v5337_v40, %v5335_v11 }
 0x4f7   : > { %v4074_v47 = vpop.f32.mrf.mxu1 }
 0x4f8   : > { %v3613_v5 = vpop.f32.mrf.mxu0 }
 0x4f9   : > { %v4700_v46 = vpop.f32.mrf.mxu2  ;;  %v5622_v1 = vpop.f32.mrf.mxu3  ;;  %15427 = vmatmul.msk.bf16.gmra.mxu2 %vm573_vm1, %v16530_v56 }
 0x4fa   : > { %v3326_v46 = vshll.u32 %v19118_v8, 16 }
 0x4fc   : > { %v3328_v28 = vrot.slane %v3326_v46, 1 }
 0x4fe   : > { %15600 = vmatmul.msk.bf16.gmra.mxu3 %vm573_vm1, %v19141_v21  ;;  %v19160_v21 = vld [vmem:[%s18019_s12 + $0xe0] sm:$0xff] }
 0x4ff   : > { %v4077_v5 = vpop.f32.mrf.mxu1 }
 0x500   : > { %v3616_v7 = vpop.f32.mrf.mxu0 }
 0x501   : > { %v3754_v60 = vadd.f32 %v3616_v7, %v18251_v42  ;;  %v4703_v10 = vpop.f32.mrf.mxu2  ;;  %v5625_v47 = vpop.f32.mrf.mxu3 }
 0x502   : > { %15246 = vmatmul.msk.bf16.gmra.mxu1 %vm573_vm1, %v3854_v3  ;;  %v16531_v3 = vld [vmem:[%s18019_s12 + $0xe8] sm:$0xff] }
 0x503   : > { %v4205_v54 = vadd.f32 %v4067_v26, %v3754_v60  ;;  %15207 = vmatmul.msk.bf16.gmra.mxu0 %vm573_vm1, %v3321_v4  ;;  %v3322_v26 = vshrl.u32 %v19094_v16, 16 }
 0x505   : > { %v4831_v48 = vadd.f32 %v4693_v63, %v4205_v54  ;;  %v3324_v56 = vor.u32 %v3322_v26, %v3320_v35  ;;  %v16567_v63 = vld [vmem:[%s18019_s12 + $0xf0] sm:$0xff]  ;;  %v3334_v26 = vshll.u32 %v19136_v41, 16 }
 0x506   : > { %v5345_v40 = vshrl.u32 %v16567_v63, 16 }
 0x507   : > { %v19149_v42 = vadd.f32 %v5615_v58, %v4831_v48  ;;  %v4079_v1 = vpop.f32.mrf.mxu1  ;;  %v5341_v58 = vshll.u32 %v16567_v63, 16  ;;  %v3329_v16 = vsel %vm1133_vm3, %v3324_v56, %v3328_v28  ;;  %v16568_v56 = vld [vmem:[%s18019_s12 + $0xf8] sm:$0xff] }
 0x508   : > { %v3618_v17 = vpop.f32.mrf.mxu0 }
 0x509   : > { %v3755_v19 = vadd.f32 %v3618_v17, %v18255_v50  ;;  %v4705_v4 = vpop.f32.mrf.mxu2  ;;  %v5627_v54 = vpop.f32.mrf.mxu3  ;;  %v5343_v50 = vrot.slane %v5341_v58, 1  ;;  %15428 = vmatmul.msk.bf16.gmra.mxu2 %vm573_vm1, %v16531_v3  ;;  %v5349_v58 = vshll.u32 %v16568_v56, 16 }
 0x50b   : > { %v4206_v62 = vadd.f32 %v4069_v6, %v3755_v19  ;;  %v19164_v6 = vsel %vm1133_vm3, %v5339_v12, %v5343_v50  ;;  %v3330_v12 = vshrl.u32 %v19118_v8, 16 }
 0x50c   : > { %21304 = vst [vmem:[#allocation46_spill] sm:$0xff] %v19164_v6 }
 0x50d   : > { %v4832_v7 = vadd.f32 %v4695_v15, %v4206_v62  ;;  %v3855_v15 = vrot.slane %v19160_v21, 1  ;;  %v3332_v19 = vor.u32 %v3330_v12, %v3328_v28  ;;  %v3336_v62 = vrot.slane %v3334_v26, 1 }
 0x50e   : > { %15601 = vmatmul.msk.bf16.gmra.mxu3 %vm573_vm1, %v19164_v6 }
 0x50f   : > { %v19155_v60 = vadd.f32 %v5617_v20, %v4832_v7  ;;  %v4082_v20 = vpop.f32.mrf.mxu1  ;;  %v3856_v35 = vsel %vm1804_vm2, %v3853_v23, %v3855_v15 }
 0x510   : > { %v3621_v48 = vpop.f32.mrf.mxu0  ;;  %v19178_v20 = vld [vmem:[%s18019_s12 + $0xe8] sm:$0xff] }
 0x511   : > { %v4708_v0 = vpop.f32.mrf.mxu2  ;;  %v5630_v11 = vpop.f32.mrf.mxu3  ;;  %v16532_v48 = vld [vmem:[%s18019_s12 + $0xf0] sm:$0xff] }
 0x512   : > { %15247 = vmatmul.msk.bf16.gmra.mxu1 %vm573_vm1, %v3856_v35  ;;  %v5347_v35 = vor.u32 %v5345_v40, %v5343_v50  ;;  %v5351_v0 = vrot.slane %v5349_v58, 1  ;;  %v3857_v11 = vrot.slane %v19178_v20, 1 }
 0x513   : > { %15208 = vmatmul.msk.bf16.gmra.mxu0 %vm573_vm1, %v3329_v16  ;;  %v3337_v16 = vsel %vm1133_vm3, %v3332_v19, %v3336_v62 }
 0x514   : > { %v19183_v28 = vsel %vm1133_vm3, %v5347_v35, %v5351_v0  ;;  %v3858_v50 = vsel %vm1804_vm2, %v3855_v15, %v3857_v11  ;;  %v5353_v35 = vshrl.u32 %v16568_v56, 16 }
 0x515   : > { %21305 = vst [vmem:[#allocation47_spill] sm:$0xff] %v19183_v28 }
 0x516   : > { %v5355_v6 = vor.u32 %v5353_v35, %v5351_v0 }
 0x517   : > { %v4084_v46 = vpop.f32.mrf.mxu1 }
 0x518   : > { %v3623_v17 = vpop.f32.mrf.mxu0 }
 0x519   : > { %v4710_v7 = vpop.f32.mrf.mxu2  ;;  %v5632_v3 = vpop.f32.mrf.mxu3  ;;  %15429 = vmatmul.msk.bf16.gmra.mxu2 %vm573_vm1, %v16532_v48 }
 0x51a   : > { %v3342_v7 = vshll.u32 %v19160_v21, 16 }
 0x51c   : > { %v3344_v15 = vrot.slane %v3342_v7, 1 }
 0x51e   : > { %15602 = vmatmul.msk.bf16.gmra.mxu3 %vm573_vm1, %v19183_v28  ;;  %v19202_v28 = vld [vmem:[%s18019_s12 + $0xf0] sm:$0xff] }
 0x51f   : > { %v4087_v17 = vpop.f32.mrf.mxu1 }
 0x520   : > { %v3626_v23 = vpop.f32.mrf.mxu0 }
 0x521   : > { %v3758_v8 = vadd.f32 %v3626_v23, %v18275_v43  ;;  %v4713_v26 = vpop.f32.mrf.mxu2  ;;  %v5635_v46 = vpop.f32.mrf.mxu3 }
 0x522   : > { %15248 = vmatmul.msk.bf16.gmra.mxu1 %vm573_vm1, %v3858_v50  ;;  %v16533_v50 = vld [vmem:[%s18019_s12 + $0xf8] sm:$0xff] }
 0x523   : > { %v4209_v63 = vadd.f32 %v4077_v5, %v3758_v8  ;;  %15209 = vmatmul.msk.bf16.gmra.mxu0 %vm573_vm1, %v3337_v16  ;;  %v3338_v5 = vshrl.u32 %v19136_v41, 16 }
 0x525   : > { %v4835_v12 = vadd.f32 %v4703_v10, %v4209_v63  ;;  %v3340_v48 = vor.u32 %v3338_v5, %v3336_v62  ;;  %v16569_v10 = vld [vmem:[%s18019_s12 + $0x100] sm:$0xff]  ;;  %v3350_v5 = vshll.u32 %v19178_v20, 16 }
 0x526   : > { %v5361_v35 = vshrl.u32 %v16569_v10, 16 }
 0x527   : > { %v19191_v43 = vadd.f32 %v5625_v47, %v4835_v12  ;;  %v4089_v3 = vpop.f32.mrf.mxu1  ;;  %v5357_v47 = vshll.u32 %v16569_v10, 16  ;;  %v3345_v41 = vsel %vm1133_vm3, %v3340_v48, %v3344_v15  ;;  %v16570_v48 = vld [vmem:[%s18019_s12 + $0x108] sm:$0xff] }
 0x528   : > { %v3628_v19 = vpop.f32.mrf.mxu0 }
 0x529   : > { %v3759_v40 = vadd.f32 %v3628_v19, %v18279_v53  ;;  %v4715_v16 = vpop.f32.mrf.mxu2  ;;  %v5637_v63 = vpop.f32.mrf.mxu3  ;;  %v5359_v53 = vrot.slane %v5357_v47, 1  ;;  %15430 = vmatmul.msk.bf16.gmra.mxu2 %vm573_vm1, %v16533_v50  ;;  %v5365_v47 = vshll.u32 %v16570_v48, 16 }
 0x52b   : > { %v4210_v58 = vadd.f32 %v4079_v1, %v3759_v40  ;;  %v19206_v1 = vsel %vm1133_vm3, %v5355_v6, %v5359_v53  ;;  %v3346_v6 = vshrl.u32 %v19160_v21, 16 }
 0x52c   : > { %21306 = vst [vmem:[#allocation48_spill] sm:$0xff] %v19206_v1 }
 0x52d   : > { %v4836_v23 = vadd.f32 %v4705_v4, %v4210_v58  ;;  %v3859_v4 = vrot.slane %v19202_v28, 1  ;;  %v3348_v40 = vor.u32 %v3346_v6, %v3344_v15  ;;  %v3352_v58 = vrot.slane %v3350_v5, 1 }
 0x52e   : > { %15603 = vmatmul.msk.bf16.gmra.mxu3 %vm573_vm1, %v19206_v1 }
 0x52f   : > { %v19197_v8 = vadd.f32 %v5627_v54, %v4836_v23  ;;  %v4092_v54 = vpop.f32.mrf.mxu1  ;;  %v3860_v62 = vsel %vm1804_vm2, %v3857_v11, %v3859_v4 }
 0x530   : > { %v3631_v12 = vpop.f32.mrf.mxu0  ;;  %v19220_v54 = vld [vmem:[%s18019_s12 + $0xf8] sm:$0xff] }
 0x531   : > { %v4718_v56 = vpop.f32.mrf.mxu2  ;;  %v5640_v0 = vpop.f32.mrf.mxu3  ;;  %v16534_v12 = vld [vmem:[%s18019_s12 + $0x100] sm:$0xff] }
 0x532   : > { %15249 = vmatmul.msk.bf16.gmra.mxu1 %vm573_vm1, %v3860_v62  ;;  %v5363_v62 = vor.u32 %v5361_v35, %v5359_v53  ;;  %v5367_v56 = vrot.slane %v5365_v47, 1  ;;  %v3861_v0 = vrot.slane %v19220_v54, 1 }
 0x533   : > { %15210 = vmatmul.msk.bf16.gmra.mxu0 %vm573_vm1, %v3345_v41  ;;  %v3353_v41 = vsel %vm1133_vm3, %v3348_v40, %v3352_v58 }
 0x534   : > { %v19225_v15 = vsel %vm1133_vm3, %v5363_v62, %v5367_v56  ;;  %v3862_v53 = vsel %vm1804_vm2, %v3859_v4, %v3861_v0  ;;  %v5369_v62 = vshrl.u32 %v16570_v48, 16 }
 0x535   : > { %21307 = vst [vmem:[#allocation49_spill] sm:$0xff] %v19225_v15 }
 0x536   : > { %v5371_v1 = vor.u32 %v5369_v62, %v5367_v56 }
 0x537   : > { %v4094_v7 = vpop.f32.mrf.mxu1 }
 0x538   : > { %v3633_v19 = vpop.f32.mrf.mxu0 }
 0x539   : > { %v4720_v23 = vpop.f32.mrf.mxu2  ;;  %v5642_v50 = vpop.f32.mrf.mxu3  ;;  %15431 = vmatmul.msk.bf16.gmra.mxu2 %vm573_vm1, %v16534_v12 }
 0x53a   : > { %v3358_v23 = vshll.u32 %v19202_v28, 16 }
 0x53c   : > { %v3360_v4 = vrot.slane %v3358_v23, 1 }
 0x53e   : > { %15604 = vmatmul.msk.bf16.gmra.mxu3 %vm573_vm1, %v19225_v15  ;;  %v19244_v15 = vld [vmem:[%s18019_s12 + $0x100] sm:$0xff] }
 0x53f   : > { %v4097_v19 = vpop.f32.mrf.mxu1 }
 0x540   : > { %v3636_v11 = vpop.f32.mrf.mxu0 }
 0x541   : > { %v3762_v21 = vadd.f32 %v3636_v11, %v18299_v31  ;;  %v4723_v5 = vpop.f32.mrf.mxu2  ;;  %v5645_v7 = vpop.f32.mrf.mxu3 }
 0x542   : > { %15250 = vmatmul.msk.bf16.gmra.mxu1 %vm573_vm1, %v3862_v53  ;;  %v16535_v53 = vld [vmem:[%s18019_s12 + $0x108] sm:$0xff] }
 0x543   : > { %v4213_v10 = vadd.f32 %v4087_v17, %v3762_v21  ;;  %15211 = vmatmul.msk.bf16.gmra.mxu0 %vm573_vm1, %v3353_v41  ;;  %v3354_v17 = vshrl.u32 %v19178_v20, 16 }
 0x545   : > { %v4839_v6 = vadd.f32 %v4713_v26, %v4213_v10  ;;  %v3356_v12 = vor.u32 %v3354_v17, %v3352_v58  ;;  %v16571_v26 = vld [vmem:[%s18019_s12 + $0x110] sm:$0xff]  ;;  %v3366_v17 = vshll.u32 %v19220_v54, 16 }
 0x546   : > { %v5377_v62 = vshrl.u32 %v16571_v26, 16 }
 0x547   : > { %v19233_v31 = vadd.f32 %v5635_v46, %v4839_v6  ;;  %v4099_v50 = vpop.f32.mrf.mxu1  ;;  %v5373_v46 = vshll.u32 %v16571_v26, 16  ;;  %v3361_v20 = vsel %vm1133_vm3, %v3356_v12, %v3360_v4  ;;  %v16572_v12 = vld [vmem:[%s18019_s12 + $0x118] sm:$0xff] }
 0x548   : > { %v3638_v40 = vpop.f32.mrf.mxu0 }
 0x549   : > { %v3763_v35 = vadd.f32 %v3638_v40, %v18303_v52  ;;  %v4725_v41 = vpop.f32.mrf.mxu2  ;;  %v5647_v10 = vpop.f32.mrf.mxu3  ;;  %v5375_v52 = vrot.slane %v5373_v46, 1  ;;  %15432 = vmatmul.msk.bf16.gmra.mxu2 %vm573_vm1, %v16535_v53  ;;  %v5381_v46 = vshll.u32 %v16572_v12, 16 }
 0x54b   : > { %v4214_v47 = vadd.f32 %v4089_v3, %v3763_v35  ;;  %v19248_v3 = vsel %vm1133_vm3, %v5371_v1, %v5375_v52  ;;  %v3362_v1 = vshrl.u32 %v19202_v28, 16 }
 0x54c   : > { %21308 = vst [vmem:[#allocation50_spill] sm:$0xff] %v19248_v3 }
 0x54d   : > { %v4840_v11 = vadd.f32 %v4715_v16, %v4214_v47  ;;  %v3863_v16 = vrot.slane %v19244_v15, 1  ;;  %v3364_v35 = vor.u32 %v3362_v1, %v3360_v4  ;;  %v3368_v47 = vrot.slane %v3366_v17, 1 }
 0x54e   : > { %15605 = vmatmul.msk.bf16.gmra.mxu3 %vm573_vm1, %v19248_v3 }
 0x54f   : > { %v19239_v21 = vadd.f32 %v5637_v63, %v4840_v11  ;;  %v4102_v63 = vpop.f32.mrf.mxu1  ;;  %v3864_v58 = vsel %vm1804_vm2, %v3861_v0, %v3863_v16 }
 0x550   : > { %v3641_v6 = vpop.f32.mrf.mxu0  ;;  %v19262_v63 = vld [vmem:[%s18019_s12 + $0x108] sm:$0xff] }
 0x551   : > { %v4728_v48 = vpop.f32.mrf.mxu2  ;;  %v5650_v56 = vpop.f32.mrf.mxu3  ;;  %v16536_v6 = vld [vmem:[%s18019_s12 + $0x110] sm:$0xff] }
 0x552   : > { %15251 = vmatmul.msk.bf16.gmra.mxu1 %vm573_vm1, %v3864_v58  ;;  %v5379_v58 = vor.u32 %v5377_v62, %v5375_v52  ;;  %v5383_v48 = vrot.slane %v5381_v46, 1  ;;  %v3865_v56 = vrot.slane %v19262_v63, 1 }
 0x553   : > { %15212 = vmatmul.msk.bf16.gmra.mxu0 %vm573_vm1, %v3361_v20  ;;  %v3369_v20 = vsel %vm1133_vm3, %v3364_v35, %v3368_v47  ;;  %v3370_v35 = vshrl.u32 %v19220_v54, 16  ;;  %v16537_v54 = vld [vmem:[%s18019_s12 + $0x118] sm:$0xff] }
 0x554   : > { %v19267_v4 = vsel %vm1133_vm3, %v5379_v58, %v5383_v48  ;;  %v3866_v52 = vsel %vm1804_vm2, %v3863_v16, %v3865_v56 }
 0x555   : > { %21309 = vst [vmem:[#allocation51_spill] sm:$0xff] %v19267_v4 }
 0x557   : > { %v4104_v23 = vpop.f32.mrf.mxu1 }
 0x558   : > { %v3643_v40 = vpop.f32.mrf.mxu0 }
 0x559   : > { %v4730_v11 = vpop.f32.mrf.mxu2  ;;  %v5652_v53 = vpop.f32.mrf.mxu3  ;;  %15433 = vmatmul.msk.bf16.gmra.mxu2 %vm573_vm1, %v16536_v6 }
 0x55a   : > { %v3374_v11 = vshll.u32 %v19244_v15, 16 }
 0x55c   : > { %v3376_v53 = vrot.slane %v3374_v11, 1 }
 0x55e   : > { %15606 = vmatmul.msk.bf16.gmra.mxu3 %vm573_vm1, %v19267_v4 }
 0x55f   : > { %v19271_v40 = vpop.f32.mrf.mxu1 }
 0x560   : > { %v3646_v0 = vpop.f32.mrf.mxu0 }
 0x561   : > { %v3766_v28 = vadd.f32 %v3646_v0, %v18323_v14  ;;  %v19276_v14 = vpop.f32.mrf.mxu2  ;;  %v19281_v23 = vpop.f32.mrf.mxu3 }
 0x562   : > { %15252 = vmatmul.msk.bf16.gmra.mxu1 %vm573_vm1, %v3866_v52 }
 0x563   : > { %v4217_v26 = vadd.f32 %v4097_v19, %v3766_v28  ;;  %15213 = vmatmul.msk.bf16.gmra.mxu0 %vm573_vm1, %v3369_v20  ;;  %v5385_v20 = vshrl.u32 %v16572_v12, 16 }
 0x565   : > { %v4843_v1 = vadd.f32 %v4723_v5, %v4217_v26  ;;  %v3372_v5 = vor.u32 %v3370_v35, %v3368_v47 }
 0x567   : > { %v19279_v17 = vadd.f32 %v5645_v7, %v4843_v1  ;;  %v19286_v46 = vpop.f32.mrf.mxu1  ;;  %v17080_v7 = vld [vmem:[%s18019_s12 + $0x120] sm:$0xff]   ;;  %v3377_v1 = vsel %vm1133_vm3, %v3372_v5, %v3376_v53 }
 0x568   : > { %v3648_v19 = vpop.f32.mrf.mxu0  ;;  %v5389_v58 = vshll.u32 %v17080_v7, 16  ;;  %v19315_v5 = vld [vmem:[%s21218_s2] ss:$0 sm:$0xff] }
 0x569   : > { %v3767_v62 = vadd.f32 %v3648_v19, %v18333_v34  ;;  %v19288_v0 = vpop.f32.mrf.mxu2  ;;  %v19293_v26 = vpop.f32.mrf.mxu3  ;;  %v19298_v34 = vld [vmem:[%s18019_s12 + $0x110] sm:$0xff]  ;;  %15434 = vmatmul.msk.bf16.gmra.mxu2 %vm573_vm1, %v16537_v54  ;;  %v19320_v54 = vld [vmem:[%s18019_s12 + $0x128] sm:$0xff] }
 0x56a   : > { %v5391_v47 = vrot.slane %v5389_v58, 1  ;;  %v3867_v12 = vrot.slane %v19298_v34, 1 }
 0x56b   : > { %v4218_v16 = vadd.f32 %v4099_v50, %v3767_v62  ;;  %v19300_v50 = vor.u32 %v5385_v20, %v5383_v48  ;;  %v3378_v62 = vshrl.u32 %v19244_v15, 16  ;;  %v5397_v15 = vshll.u32 %v19320_v54, 16 }
 0x56c   : > { %v3868_v19 = vsel %vm1804_vm2, %v3865_v56, %v3867_v12 }
 0x56d   : > { %v4844_v6 = vadd.f32 %v4725_v41, %v4218_v16  ;;  %21310 = vst [vmem:[#allocation52_spill] sm:$0xff] %v19300_v50  ;;  %v5392_v41 = vsel %vm1133_vm3, %v19300_v50, %v5391_v47  ;;  %v3382_v16 = vshll.u32 %v19262_v63, 16  ;;  %v3380_v20 = vor.u32 %v3378_v62, %v3376_v53 }
 0x56e   : > { %15607 = vmatmul.msk.bf16.gmra.mxu3 %vm573_vm1, %v5392_v41 }
 0x56f   : > { %v19291_v28 = vadd.f32 %v5647_v10, %v4844_v6  ;;  %v4112_v10 = vpop.f32.mrf.mxu1  ;;  %v808_v6 = vadd.f32 %v19315_v5, %v18364_v61  ;;  %v3384_v58 = vrot.slane %v3382_v16, 1  ;;  %v19329_v61 = vrot.slane %v5397_v15, 1 }
 0x570   : > { %v3651_v52 = vpop.f32.mrf.mxu0 }
 0x571   : > { %v4738_v35 = vpop.f32.mrf.mxu2  ;;  %v5660_v48 = vpop.f32.mrf.mxu3  ;;  %v1771_v41 = vadd.f32 %v18326_v33, %v808_v6 }
 0x572   : > { %15253 = vmatmul.msk.bf16.gmra.mxu1 %vm573_vm1, %v3868_v19  ;;  %v16538_v19 = vld [vmem:[%s18019_s12 + $0x120] sm:$0xff]  ;;  %v3385_v48 = vsel %vm1133_vm3, %v3380_v20, %v3384_v58 }
 0x573   : > { %15214 = vmatmul.msk.bf16.gmra.mxu0 %vm573_vm1, %v3377_v1  ;;  %v5393_v1 = vshrl.u32 %v17080_v7, 16  ;;  %v2223_v33 = vadd.f32 %v18328_v51, %v1771_v41 }
 0x575   : > { %v5395_v50 = vor.u32 %v5393_v1, %v5391_v47  ;;  %v3390_v1 = vshll.u32 %v19298_v34, 16 }
 0x577   : > { %v4114_v56 = vpop.f32.mrf.mxu1  ;;  %v5400_v7 = vsel %vm1133_vm3, %v5395_v50, %v19329_v61  ;;  %v2849_v50 = vadd.f32 %v18331_v44, %v2223_v33 }
 0x578   : > { %v3653_v11 = vpop.f32.mrf.mxu0 }
 0x579   : > { %v4740_v52 = vpop.f32.mrf.mxu2  ;;  %v5662_v10 = vpop.f32.mrf.mxu3  ;;  %v19327_v11 = vld [vmem:[%s18019_s12 + $0x118] sm:$0xff]  ;;  %15435 = vmatmul.msk.bf16.gmra.mxu2 %vm573_vm1, %v16538_v19 }
 0x57a   : > { %v21256_v62 = vrot.slane %v19327_v11, 1  ;;  %v3386_v52 = vshrl.u32 %v19262_v63, 16  ;;  %v3398_v33 = vshll.u32 %v19327_v11, 16 }
 0x57e   : > { %15608 = vmatmul.msk.bf16.gmra.mxu3 %vm573_vm1, %v5400_v7  ;;  %v3394_v7 = vshrl.u32 %v19298_v34, 16 }
 0x57f   : > { %v4117_v6 = vpop.f32.mrf.mxu1 }
 0x580   : > { %v3656_v35 = vpop.f32.mrf.mxu0 }
 0x581   : > { %v3770_v53 = vadd.f32 %v3656_v35, %v18362_v57  ;;  %v3870_v57 = vsel %vm1804_vm2, %v3867_v12, %v21256_v62  ;;  %v4743_v56 = vpop.f32.mrf.mxu2  ;;  %v3388_v12 = vor.u32 %v3386_v52, %v3384_v58  ;;  %v818_v58 = vadd.f32 %v19315_v5, %v18379_v32 }
 0x582   : > { %15254 = vmatmul.msk.bf16.gmra.mxu1 %vm573_vm1, %v3870_v57 }
 0x583   : > { %v4221_v16 = vadd.f32 %v19271_v40, %v3770_v53  ;;  %15215 = vmatmul.msk.bf16.gmra.mxu0 %vm573_vm1, %v3385_v48  ;;  %v5665_v40 = vpop.f32.mrf.mxu3 }
 0x585   : > { %v4847_v47 = vadd.f32 %v19276_v14, %v4221_v16  ;;  %v3392_v14 = vrot.slane %v3390_v1, 1 }
 0x587   : > { %v19347_v51 = vadd.f32 %v19281_v23, %v4847_v47  ;;  %v19353_v41 = vpop.f32.mrf.mxu1  ;;  %v3393_v23 = vsel %vm1133_vm3, %v3388_v12, %v3392_v14  ;;  %v3396_v57 = vor.u32 %v3394_v7, %v3392_v14  ;;  %v3400_v47 = vrot.slane %v3398_v33, 1 }
 0x588   : > { %v3658_v20 = vpop.f32.mrf.mxu0  ;;  %v3402_v33 = vshrl.u32 %v19327_v11, 16 }
 0x589   : > { %v19351_v15 = vadd.f32 %v3658_v20, %v2849_v50  ;;  %v19355_v10 = vpop.f32.mrf.mxu2  ;;  %v1775_v20 = vadd.f32 %v18366_v36, %v818_v58  ;;  %v3401_v12 = vsel %vm1133_vm3, %v3396_v57, %v3400_v47 }
 0x58a   : > { %v3404_v58 = vor.u32 %v3402_v33, %v3400_v47 }
 0x58b   : > { %v19357_v19 = vpop.f32.mrf.mxu3  ;;  %v2227_v34 = vadd.f32 %v18368_v30, %v1775_v20  ;;  %v19389_v20 = vld [vmem:[%s18019_s12 + $0x128] sm:$0xff] }
 0x58c   : > { %v3414_v47 = vshll.u32 %v19389_v20, 16 }
 0x58f   : > { %v4122_v35 = vpop.f32.mrf.mxu1 }
 0x590   : > { %v3661_v44 = vpop.f32.mrf.mxu0 }
 0x591   : > { %v4748_v48 = vpop.f32.mrf.mxu2 }
 0x592   : > { %v19371_v48 = vld [vmem:[%s18019_s12 + $0x120] sm:$0xff] }
 0x593   : > { %15216 = vmatmul.msk.bf16.gmra.mxu0 %vm573_vm1, %v3393_v23  ;;  %v5670_v63 = vpop.f32.mrf.mxu3 }
 0x594   : > { %v2853_v63 = vadd.f32 %v18370_v55, %v2227_v34  ;;  %v828_v34 = vadd.f32 %v19315_v5, %v18394_v18 }
 0x597   : > { %v4124_v16 = vpop.f32.mrf.mxu1 }
 0x598   : > { %v3663_v53 = vpop.f32.mrf.mxu0 }
 0x599   : > { %v4750_v50 = vpop.f32.mrf.mxu2 }
 0x59b   : > { %v5672_v52 = vpop.f32.mrf.mxu3 }
 0x59f   : > { %v4127_v35 = vpop.f32.mrf.mxu1 }
 0x5a0   : > { %v3666_v1 = vpop.f32.mrf.mxu0 }
 0x5a1   : > { %v3774_v44 = vadd.f32 %v3666_v1, %v18377_v29  ;;  %v4753_v14 = vpop.f32.mrf.mxu2  ;;  %v3406_v29 = vshll.u32 %v19371_v48, 16 }
 0x5a3   : > { %v4225_v23 = vadd.f32 %v4117_v6, %v3774_v44  ;;  %15217 = vmatmul.msk.bf16.gmra.mxu0 %vm573_vm1, %v3401_v12  ;;  %v5675_v53 = vpop.f32.mrf.mxu3  ;;  %v3408_v16 = vrot.slane %v3406_v29, 1  ;;  %v3410_v44 = vshrl.u32 %v19371_v48, 16  ;;  %v1779_v29 = vadd.f32 %v18381_v37, %v828_v34 }
 0x5a5   : > { %v4851_v32 = vadd.f32 %v4743_v56, %v4225_v23 }
 0x5a7   : > { %v19374_v36 = vadd.f32 %v5665_v40, %v4851_v32  ;;  %v19380_v6 = vpop.f32.mrf.mxu1  ;;  %v3409_v40 = vsel %vm1133_vm3, %v3404_v58, %v3408_v16  ;;  %v3412_v32 = vor.u32 %v3410_v44, %v3408_v16 }
 0x5a8   : > { %v3668_v7 = vpop.f32.mrf.mxu0 }
 0x5a9   : > { %v19378_v30 = vadd.f32 %v3668_v7, %v2853_v63  ;;  %v19382_v57 = vpop.f32.mrf.mxu2  ;;  %v3416_v63 = vrot.slane %v3414_v47, 1  ;;  %v2948_v7 = vld [vmem:[%s18019_s12 + $0x130] sm:$0x1] }
 0x5ab   : > { %v19384_v56 = vpop.f32.mrf.mxu3 }
 0x5af   : > { %v4132_v50 = vpop.f32.mrf.mxu1 }
 0x5b0   : > { %v3671_v55 = vpop.f32.mrf.mxu0  ;;  %v3096_v50 = vunpack.c.l.b16 %v2948_v7 }
 0x5b1   : > { %v4758_v52 = vpop.f32.mrf.mxu2 }
 0x5b3   : > { %15218 = vmatmul.msk.bf16.gmra.mxu0 %vm573_vm1, %v3409_v40  ;;  %v5680_v1 = vpop.f32.mrf.mxu3  ;;  %v3417_v40 = vsel %vm1133_vm3, %v3412_v32, %v3416_v63 }
 0x5b4   : > { %v2231_v1 = vadd.f32 %v18383_v49, %v1779_v29 }
 0x5b6   : > { %v2857_v47 = vadd.f32 %v18385_v25, %v2231_v1 }
 0x5b7   : > { %v4134_v23 = vpop.f32.mrf.mxu1 }
 0x5b8   : > { %v3673_v12 = vpop.f32.mrf.mxu0  ;;  %v19401_v23 = vpack.c.b16 %v3096_v50, %v3096_v50  ;;  %v17082_v50 = vld [vmem:[%s18019_s12 + $0x20] sm:$0xe] }
 0x5b9   : > { %v4760_v33 = vpop.f32.mrf.mxu2 }
 0x5ba   : > { %v3422_v49 = vshll.u32 %v19401_v23, 16 }
 0x5bb   : > { %v5682_v58 = vpop.f32.mrf.mxu3 }
 0x5bc   : > { %v3424_v29 = vrot.slane %v3422_v49, 1  ;;  %v17881_v49 = vld [vmem:[%s18019_s12 + $0x28] sm:$0xff] }
 0x5bd   : > { %v5804_v62 = vrot.slane %v17881_v49, 1 }
 0x5bf   : > { %v4137_v18 = vpop.f32.mrf.mxu1 }
 0x5c0   : > { %v3676_v55 = vpop.f32.mrf.mxu0 }
 0x5c1   : > { %v3778_v52 = vadd.f32 %v3676_v55, %v18392_v24  ;;  %v4763_v44 = vpop.f32.mrf.mxu2  ;;  %v3418_v24 = vshrl.u32 %v19389_v20, 16 }
 0x5c3   : > { %v4229_v12 = vadd.f32 %v4127_v35, %v3778_v52  ;;  %15219 = vmatmul.msk.bf16.gmra.mxu0 %vm573_vm1, %v3417_v40  ;;  %v5685_v34 = vpop.f32.mrf.mxu3  ;;  %v3420_v33 = vor.u32 %v3418_v24, %v3416_v63  ;;  %v17081_v40 = vld [vmem:[%s18019_s12 + $0x20] sm:$0xf0] }
 0x5c5   : > { %v4855_v16 = vadd.f32 %v4753_v14, %v4229_v12  ;;  %v3425_v58 = vsel %vm1133_vm3, %v3420_v33, %v3424_v29 }
 0x5c7   : > { %v19404_v37 = vadd.f32 %v5675_v53, %v4855_v16  ;;  %v19410_v7 = vpop.f32.mrf.mxu1  ;;  %v17083_v16 = vor.u32 %v17082_v50, %v17081_v40 }
 0x5c8   : > { %v3678_v32 = vpop.f32.mrf.mxu0 }
 0x5c9   : > { %v19408_v35 = vadd.f32 %v3678_v32, %v2857_v47  ;;  %v19412_v14 = vpop.f32.mrf.mxu2  ;;  %v21313_v47 = vld [vmem:[#allocation7_spill] sm:$0xff]  ;;  %v5803_v24 = vrot.slane %v17083_v16, 1 }
 0x5ca   : > { %21311 = vst [vmem:[#allocation53_spill] sm:$0xff] %v19412_v14  ;;  %v838_v63 = vadd.f32 %v19315_v5, %v21313_v47 }
 0x5cb   : > { %v19414_v25 = vpop.f32.mrf.mxu3 }
 0x5cc   : > { %21312 = vst [vmem:[#allocation54_spill] sm:$0xff] %v19414_v25  ;;  %v21323_v25 = vld [vmem:[#allocation11_spill] sm:$0xff] }
 0x5cf   : > { %v4142_v55 = vpop.f32.mrf.mxu1 }
 0x5d0   : > { %v3681_v53 = vpop.f32.mrf.mxu0  ;;  %v21315_v55 = vld [vmem:[#allocation6_spill] sm:$0xff] }
 0x5d1   : > { %v4768_v52 = vpop.f32.mrf.mxu2  ;;  %v21314_v53 = vld [vmem:[#allocation3_spill] sm:$0xff] }
 0x5d2   : > { %v1783_v3 = vadd.f32 %v21314_v53, %v838_v63 }
 0x5d3   : > { %15220 = vmatmul.msk.bf16.gmra.mxu0 %vm573_vm1, %v3425_v58  ;;  %v5690_v1 = vpop.f32.mrf.mxu3  ;;  %v5805_v58 = vsel %vm1804_vm2, %v5803_v24, %v5804_v62 }
 0x5d4   : > { %v21316_v1 = vld [vmem:[#allocation4_spill] sm:$0xff] }
 0x5d7   : > { %v4144_v32 = vpop.f32.mrf.mxu1 }
 0x5d8   : > { %v3683_v12 = vpop.f32.mrf.mxu0  ;;  %v21317_v32 = vld [vmem:[#allocation5_spill] sm:$0xff] }
 0x5d9   : > { %v4770_v4 = vpop.f32.mrf.mxu2  ;;  %v2235_v12 = vadd.f32 %v21316_v1, %v1783_v3 }
 0x5db   : > { %v5692_v33 = vpop.f32.mrf.mxu3  ;;  %v2861_v49 = vadd.f32 %v21317_v32, %v2235_v12 }
 0x5df   : > { %v4147_v50 = vpop.f32.mrf.mxu1 }
 0x5e0   : > { %v3686_v29 = vpop.f32.mrf.mxu0 }
 0x5e1   : > { %v3782_v52 = vadd.f32 %v3686_v29, %v21315_v55  ;;  %v4773_v16 = vpop.f32.mrf.mxu2  ;;  %v17882_v29 = vld [vmem:[%s18019_s12 + $0x30] sm:$0xff] }
 0x5e2   : > { %v5806_v55 = vrot.slane %v17882_v29, 1 }
 0x5e3   : > { %v4233_v40 = vadd.f32 %v4137_v18, %v3782_v52  ;;  %15613 = vmatmul.msk.bf16.vlgmr.msrb.gmra.mxu0 %vm573_vm1, %v5805_v58  ;;  %v5695_v63 = vpop.f32.mrf.mxu3 }
 0x5e5   : > { %v4859_v47 = vadd.f32 %v4763_v44, %v4233_v40  ;;  %v5807_v44 = vsel %vm1804_vm2, %v5804_v62, %v5806_v55  ;;  %v21321_v40 = vld [vmem:[#allocation12_spill] sm:$0xff] }
 0x5e7   : > { %v19429_v4 = vadd.f32 %v5685_v34, %v4859_v47  ;;  %v19433_v24 = vpop.f32.mrf.mxu1  ;;  %v848_v47 = vadd.f32 %v19315_v5, %v21321_v40  ;;  %v21325_v40 = vld [vmem:[#allocation10_spill] sm:$0xff] }
 0x5e8   : > { %v3688_v53 = vpop.f32.mrf.mxu0  ;;  %21318 = vst [vmem:[#allocation7_spill] sm:$0xff] %v19433_v24 }
 0x5e9   : > { %v19431_v33 = vadd.f32 %v3688_v53, %v2861_v49  ;;  %v19436_v3 = vpop.f32.mrf.mxu2  ;;  %v17883_v49 = vld [vmem:[%s18019_s12 + $0x38] sm:$0xff] }
 0x5ea   : > { %21319 = vst [vmem:[#allocation3_spill] sm:$0xff] %v19436_v3  ;;  %v5808_v53 = vrot.slane %v17883_v49, 1  ;;  %v21322_v3 = vld [vmem:[#allocation8_spill] sm:$0xff] }
 0x5eb   : > { %v19438_v18 = vpop.f32.mrf.mxu3  ;;  %v1787_v24 = vadd.f32 %v21322_v3, %v848_v47  ;;  %v17884_v3 = vld [vmem:[%s18019_s12 + $0x40] sm:$0xff] }
 0x5ec   : > { %21320 = vst [vmem:[#allocation6_spill] sm:$0xff] %v19438_v18  ;;  %v5809_v62 = vsel %vm1804_vm2, %v5806_v55, %v5808_v53 }
 0x5ef   : > { %v4152_v34 = vpop.f32.mrf.mxu1 }
 0x5f0   : > { %v3691_v58 = vpop.f32.mrf.mxu0  ;;  %v21324_v34 = vld [vmem:[#allocation9_spill] sm:$0xff] }
 0x5f1   : > { %v4778_v52 = vpop.f32.mrf.mxu2 }
 0x5f2   : > { %v2239_v52 = vadd.f32 %v21324_v34, %v1787_v24 }
 0x5f3   : > { %15614 = vmatmul.msk.bf16.gmra.mxu0 %vm573_vm1, %v5807_v44  ;;  %v5700_v1 = vpop.f32.mrf.mxu3 }
 0x5f7   : > { %v4154_v32 = vpop.f32.mrf.mxu1 }
 0x5f8   : > { %v3693_v12 = vpop.f32.mrf.mxu0  ;;  %v2865_v32 = vadd.f32 %v21325_v40, %v2239_v52 }
 0x5f9   : > { %v4780_v29 = vpop.f32.mrf.mxu2 }
 0x5fb   : > { %v5702_v18 = vpop.f32.mrf.mxu3 }
 0x5fc   : > { %v5810_v18 = vrot.slane %v17884_v3, 1  ;;  %v16539_v3 = vld [vmem:[%s18019_s12 + $0x128] sm:$0xff] }
 0x5fd   : > { %15436 = vmatmul.msk.bf16.gmra.mxu2 %vm573_vm1, %v16539_v3  ;;  %v17887_v3 = vld [vmem:[%s18019_s12 + $0x58] sm:$0xff] }
 0x5ff   : > { %v4157_v34 = vpop.f32.mrf.mxu1 }
 0x600   : > { %v3696_v58 = vpop.f32.mrf.mxu0 }
 0x601   : > { %v3786_v44 = vadd.f32 %v3696_v58, %v21323_v25  ;;  %v5811_v25 = vsel %vm1804_vm2, %v5808_v53, %v5810_v18  ;;  %v4783_v40 = vpop.f32.mrf.mxu2  ;;  %v21329_v53 = vld [vmem:[#allocation21_spill] sm:$0xff] }
 0x603   : > { %v4237_v1 = vadd.f32 %v4147_v50, %v3786_v44  ;;  %15615 = vmatmul.msk.bf16.gmra.mxu0 %vm573_vm1, %v5809_v62  ;;  %v21326_v50 = vld [vmem:[#allocation14_spill] sm:$0xff]  ;;  %v21327_v62 = vld [vmem:[#allocation20_spill] sm:$0xff] }
 0x604   : > { %v858_v55 = vadd.f32 %v19315_v5, %v21326_v50  ;;  %v5705_v5 = vpop.f32.mrf.mxu3 }
 0x605   : > { %v4863_v12 = vadd.f32 %v4773_v16, %v4237_v1  ;;  %v17885_v16 = vld [vmem:[%s18019_s12 + $0x48] sm:$0xff]  ;;  %v21328_v1 = vld [vmem:[#allocation13_spill] sm:$0xff] }
 0x606   : > { %v5812_v58 = vrot.slane %v17885_v16, 1  ;;  %v17886_v16 = vld [vmem:[%s18019_s12 + $0x50] sm:$0xff] }
 0x607   : > { %v19451_v14 = vadd.f32 %v5695_v63, %v4863_v12  ;;  %v1791_v63 = vadd.f32 %v21327_v62, %v858_v55  ;;  %v5814_v62 = vrot.slane %v17886_v16, 1 }
 0x608   : > { %v3698_v49 = vpop.f32.mrf.mxu0  ;;  %v5813_v52 = vsel %vm1804_vm2, %v5810_v18, %v5812_v58 }
 0x609   : > { %v19453_v29 = vadd.f32 %v3698_v49, %v2865_v32  ;;  %v2243_v32 = vadd.f32 %v21329_v53, %v1791_v63  ;;  %v16540_v53 = vld [vmem:[%s18019_s12 + $0x130] sm:$0xff] }
 0x60d   : > { %15437 = vmatmul.msk.bf16.gmra.mxu2 %vm573_vm1, %v16540_v53 }
 0x610   : > { %v3701_v47 = vpop.f32.mrf.mxu0 }
 0x613   : > { %15616 = vmatmul.msk.bf16.gmra.mxu0 %vm573_vm1, %v5811_v25  ;;  %v21330_v25 = vld [vmem:[#allocation22_spill] sm:$0xff] }
 0x618   : > { %v3703_v24 = vpop.f32.mrf.mxu0 }
 0x619   : > { %v2869_v24 = vadd.f32 %v21330_v25, %v2243_v32 }
 0x620   : > { %v3706_v44 = vpop.f32.mrf.mxu0 }
 0x621   : > { %v3790_v12 = vadd.f32 %v3706_v44, %v21328_v1  ;;  %v16574_v44 = vld [vmem:[%s18019_s12 + $0x130] sm:$0xff] }
 0x622   : > { %v5405_v1 = vshll.u32 %v16574_v44, 16 }
 0x623   : > { %v4241_v49 = vadd.f32 %v4157_v34, %v3790_v12  ;;  %15617 = vmatmul.msk.bf16.gmra.mxu0 %vm573_vm1, %v5813_v52  ;;  %v5815_v34 = vsel %vm1804_vm2, %v5812_v58, %v5814_v62  ;;  %v5401_v52 = vshrl.u32 %v19320_v54, 16  ;;  %v21331_v58 = vrot.slane %v19327_v11, 1  ;;  %v16541_v11 = vld [vmem:[%s18019_s12 + $0x138] sm:$0xff] }
 0x624   : > { %15438 = vmatmul.msk.bf16.gmra.mxu2 %vm573_vm1, %v16541_v11 }
 0x625   : > { %v4867_v47 = vadd.f32 %v4783_v40, %v4241_v49  ;;  %v5403_v12 = vor.u32 %v5401_v52, %v19329_v61  ;;  %v5407_v40 = vrot.slane %v5405_v1, 1  ;;  %v3871_v49 = vrot.slane %v19371_v48, 1 }
 0x627   : > { %v19469_v50 = vadd.f32 %v5705_v5, %v4867_v47  ;;  %v5408_v32 = vsel %vm1133_vm3, %v5403_v12, %v5407_v40  ;;  %v3872_v54 = vsel %vm1804_vm2, %v21331_v58, %v3871_v49  ;;  %v5816_v5 = vrot.slane %v17887_v3, 1  ;;  %v16575_v47 = vld [vmem:[%s18019_s12 + $0x138] sm:$0xff]  ;;  %v17888_v12 = vld [vmem:[%s18019_s12 + $0x60] sm:$0xff] }
 0x628   : > { %v3708_v18 = vpop.f32.mrf.mxu0  ;;  %15609 = vmatmul.msk.bf16.gmra.mxu3 %vm573_vm1, %v5408_v32  ;;  %15255 = vmatmul.msk.bf16.gmra.mxu1 %vm573_vm1, %v3872_v54  ;;  %v17945_v58 = vmov 0.0|0.0  }
 0x629   : > { %v19471_v55 = vadd.f32 %v3708_v18, %v2869_v24  ;;  %v5817_v48 = vsel %vm1804_vm2, %v5814_v62, %v5816_v5  ;;  %v5409_v24 = vshrl.u32 %v16574_v44, 16  ;;  %v5413_v18 = vshll.u32 %v16575_v47, 16  ;;  %v4947_v44 = vld [vmem:[%s18019_s12 + $0x140] sm:$0x1]  ;;  %7777 = vst.msk [vmem:[#allocation2 + $0x10] sm:$0xf] %vm7768_vm4, %v17945_v58 }
 0x62a   : > { %v5095_v53 = vunpack.c.l.b16 %v4947_v44  ;;  %7778 = vst.msk [vmem:[#allocation2 + $0x14] sm:$0xf] %vm7768_vm4, %v17945_v58 }
 0x62b   : > { %v5411_v16 = vor.u32 %v5409_v24, %v5407_v40  ;;  %v5818_v40 = vrot.slane %v17888_v12, 1  ;;  %7779 = vst.msk [vmem:[#allocation2 + $0x18] sm:$0xf] %vm7768_vm4, %v17945_v58 }
 0x62c   : > { %v19501_v32 = vpack.c.b16 %v5095_v53, %v5095_v53  ;;  %7780 = vst.msk [vmem:[#allocation2 + $0x1c] sm:$0xf] %vm7768_vm4, %v17945_v58 }
 0x62d   : > { %v5819_v54 = vsel %vm1804_vm2, %v5816_v5, %v5818_v40  ;;  %7783 = vst.msk [vmem:[#allocation2 + $0x28] sm:$0xf] %vm7768_vm4, %v17945_v58 }
 0x62e   : > { %7784 = vst.msk [vmem:[#allocation2 + $0x2c] sm:$0xf] %vm7768_vm4, %v17945_v58 }
 0x62f   : > { %7787 = vst.msk [vmem:[#allocation2 + $0x38] sm:$0xf] %vm7768_vm4, %v17945_v58 }
 0x630   : > { %v3711_v63 = vpop.f32.mrf.mxu0  ;;  %7788 = vst.msk [vmem:[#allocation2 + $0x3c] sm:$0xf] %vm7768_vm4, %v17945_v58 }
 0x631   : > { %v5415_v63 = vrot.slane %v5413_v18, 1  ;;  %v17084_v24 = vld [vmem:[#allocation2 + $0x10] sm:$0xff]   ;;  %7791 = vst.msk [vmem:[#allocation2 + $0x48] sm:$0xf] %vm7768_vm4, %v17945_v58 }
 0x632   : > { %7792 = vst.msk [vmem:[#allocation2 + $0x4c] sm:$0xf] %vm7768_vm4, %v17945_v58 }
 0x633   : > { %15618 = vmatmul.msk.bf16.gmra.mxu0 %vm573_vm1, %v5815_v34  ;;  %v3873_v34 = vrot.slane %v19389_v20, 1  ;;  %v5416_v52 = vsel %vm1133_vm3, %v5411_v16, %v5415_v63  ;;  %7795 = vst.msk [vmem:[#allocation2 + $0x58] sm:$0xf] %vm7768_vm4, %v17945_v58  ;;  %v19545_v11 = vld [vmem:[#allocation2 + $0x18] sm:$0xff] }
 0x634   : > { %15682 = vmatmul.msk.bf16.vlgmr.msra.gmra.mxu2 %vm573_vm1, %v17084_v24  ;;  %7796 = vst.msk [vmem:[#allocation2 + $0x5c] sm:$0xf] %vm7768_vm4, %v17945_v58  ;;  %v9251_v12 = vshll.u32 %v19545_v11, 16 }
 0x635   : > { %v3874_v1 = vsel %vm1804_vm2, %v3871_v49, %v3873_v34  ;;  %v5421_v49 = vshll.u32 %v19501_v32, 16  ;;  %7799 = vst.msk [vmem:[#allocation2 + $0x68] sm:$0xf] %vm7768_vm4, %v17945_v58 }
 0x636   : > { %7800 = vst.msk [vmem:[#allocation2 + $0x6c] sm:$0xf] %vm7768_vm4, %v17945_v58 }
 0x637   : > { %7803 = vst.msk [vmem:[#allocation2 + $0x78] sm:$0xf] %vm7768_vm4, %v17945_v58 }
 0x638   : > { %v3713_v61 = vpop.f32.mrf.mxu0  ;;  %15610 = vmatmul.msk.bf16.gmra.mxu3 %vm573_vm1, %v5416_v52  ;;  %15256 = vmatmul.msk.bf16.gmra.mxu1 %vm573_vm1, %v3874_v1  ;;  %7804 = vst.msk [vmem:[#allocation2 + $0x7c] sm:$0xf] %vm7768_vm4, %v17945_v58 }
 0x639   : > { %v5417_v61 = vshrl.u32 %v16575_v47, 16  ;;  %v3875_v47 = vrot.slane %v19401_v23, 1  ;;  %v17889_v23 = vld [vmem:[%s18019_s12 + $0x68] sm:$0xff]  ;;  %7807 = vst.msk [vmem:[#allocation2 + $0x88] sm:$0xf] %vm7768_vm4, %v17945_v58 }
 0x63a   : > { %v5820_v16 = vrot.slane %v17889_v23, 1  ;;  %7808 = vst.msk [vmem:[#allocation2 + $0x8c] sm:$0xf] %vm7768_vm4, %v17945_v58  ;;  %v15875_v23 = vld [vmem:[%s21219_s3 + $0x6] sm:$0x3] }
 0x63b   : > { %v5419_v3 = vor.u32 %v5417_v61, %v5415_v63  ;;  %v16576_v63 = vld [vmem:[#allocation2 + $0x10] sm:$0xff]  ;;  %7811 = vst.msk [vmem:[#allocation2 + $0x98] sm:$0xf] %vm7768_vm4, %v17945_v58 }
 0x63c   : > { %v5821_v1 = vsel %vm1804_vm2, %v5818_v40, %v5820_v16  ;;  %7812 = vst.msk [vmem:[#allocation2 + $0x9c] sm:$0xf] %vm7768_vm4, %v17945_v58 }
 0x63d   : > { %7815 = vst.msk [vmem:[#allocation2 + $0xa8] sm:$0xf] %vm7768_vm4, %v17945_v58 }
 0x63e   : > { %7816 = vst.msk [vmem:[#allocation2 + $0xac] sm:$0xf] %vm7768_vm4, %v17945_v58 }
 0x63f   : > { %7819 = vst.msk [vmem:[#allocation2 + $0xb8] sm:$0xf] %vm7768_vm4, %v17945_v58 }
 0x640   : > { %v3716_v25 = vpop.f32.mrf.mxu0  ;;  %7820 = vst.msk [vmem:[#allocation2 + $0xbc] sm:$0xf] %vm7768_vm4, %v17945_v58 }
 0x641   : > { %v5423_v25 = vrot.slane %v5421_v49, 1  ;;  %7823 = vst.msk [vmem:[#allocation2 + $0xc8] sm:$0xf] %vm7768_vm4, %v17945_v58  ;;  %v17890_v49 = vld [vmem:[%s18019_s12 + $0x70] sm:$0xff] }
 0x642   : > { %7824 = vst.msk [vmem:[#allocation2 + $0xcc] sm:$0xf] %vm7768_vm4, %v17945_v58 }
 0x643   : > { %15619 = vmatmul.msk.bf16.gmra.mxu0 %vm573_vm1, %v5817_v48  ;;  %v5424_v5 = vsel %vm1133_vm3, %v5419_v3, %v5423_v25  ;;  %v3876_v48 = vsel %vm1804_vm2, %v3873_v34, %v3875_v47  ;;  %v9246_v34 = vshll.u32 %v16576_v63, 16  ;;  %7827 = vst.msk [vmem:[#allocation2 + $0xd8] sm:$0xf] %vm7768_vm4, %v17945_v58  ;;  %v5822_v3 = vrot.slane %v17890_v49, 1  ;;  %v15908_v25 = vld [vmem:[%s21219_s3 + $0x8] sm:$0x3] }
 0x644   : > { %7828 = vst.msk [vmem:[#allocation2 + $0xdc] sm:$0xf] %vm7768_vm4, %v17945_v58  ;;  %v10824_v24 = vsel %vm682_vm0, %v15908_v25, 0 }
 0x645   : > { %v9248_v44 = vrot.slane %v9246_v34, 1  ;;  %7831 = vst.msk [vmem:[#allocation2 + $0xe8] sm:$0xf] %vm7768_vm4, %v17945_v58  ;;  %10833 = vmatpush.bf16.msrb.mxu2 %v10824_v24  ;;  %v17946_v34 = vmov 0  }
 0x646   : > { %7832 = vst.msk [vmem:[#allocation2 + $0xec] sm:$0xf] %vm7768_vm4, %v17945_v58 }
 0x647   : > { %7835 = vst.msk [vmem:[#allocation2 + $0xf8] sm:$0xf] %vm7768_vm4, %v17945_v58 }
 0x648   : > { %v3718_v62 = vpop.f32.mrf.mxu0  ;;  %15611 = vmatmul.msk.bf16.gmra.mxu3 %vm573_vm1, %v5424_v5  ;;  %15257 = vmatmul.msk.bf16.gmra.mxu1 %vm573_vm1, %v3876_v48  ;;  %7836 = vst.msk [vmem:[#allocation2 + $0xfc] sm:$0xf] %vm7768_vm4, %v17945_v58  ;;  %v15941_v5 = vld [vmem:[%s21219_s3 + $0xa] sm:$0x3]  ;;  %v5823_v48 = vsel %vm1804_vm2, %v5820_v16, %v5822_v3 }
 0x649   : > { %v9244_v62 = vshrl.u32 %v16576_v63, 16  ;;  %7839 = vst.msk [vmem:[#allocation2 + $0x108] sm:$0xf] %vm7768_vm4, %v17945_v58  ;;  %v10458_v63 = vsel %vm682_vm0, %v15875_v23, 0 }
 0x64a   : > { %7840 = vst.msk [vmem:[#allocation2 + $0x10c] sm:$0xf] %vm7768_vm4, %v17945_v58  ;;  %10467 = vmatpush.bf16.msrb.mxu1 %v10458_v63 }
 0x64b   : > { %v9249_v53 = vor.u32 %v9248_v44, %v9244_v62  ;;  %7843 = vst.msk [vmem:[#allocation2 + $0x118] sm:$0xf] %vm7768_vm4, %v17945_v58 }
 0x64c   : > { %7844 = vst.msk [vmem:[#allocation2 + $0x11c] sm:$0xf] %vm7768_vm4, %v17945_v58 }
 0x64d   : > { %7845 = vst.msk [vmem:[#allocation2 + $0x120] sm:$0xf] %vm7768_vm4, %v17945_v58 }
 0x64e   : > { %7846 = vst.msk [vmem:[#allocation2 + $0x124] sm:$0xf] %vm7768_vm4, %v17945_v58 }
 0x64f   : > { %7847 = vst.msk [vmem:[#allocation2 + $0x128] sm:$0xf] %vm7768_vm4, %v17945_v58 }
 0x650   : > { %v3721_v20 = vpop.f32.mrf.mxu0  ;;  %7848 = vst.msk [vmem:[#allocation2 + $0x12c] sm:$0xf] %vm7768_vm4, %v17945_v58 }
 0x651   : > { %v19557_v20 = vrot.slane %v9251_v12, 1  ;;  %7772 = vst.msk [vmem:[#allocation2 + $0xc] sm:$0xf] %vm7768_vm4, %v17946_v34 }
 0x652   : > { %7773 = vst.msk [vmem:[#allocation2 + $0x130] sm:$0xf] %vm7768_vm4, %v17946_v34 }
 0x653   : > { %15620 = vmatmul.msk.bf16.gmra.mxu0 %vm573_vm1, %v5819_v54  ;;  %v9254_v40 = vsel %vm1133_vm3, %v9249_v53, %v19557_v20  ;;  %v17085_v54 = vld [vmem:[#allocation2 + $0x18] sm:$0xff]   ;;  %v17661_v53 = vld [vmem:[#allocation2 + $0xc] sm:$0xf0]  }
 0x654   : > { %15683 = vmatmul.msk.bf16.gmra.mxu2 %vm573_vm1, %v17085_v54 }
 0x658   : > { %v3723_v18 = vpop.f32.mrf.mxu0  ;;  %15843 = vmatmul.msk.bf16.vlgmr.msra.gmra.mxu3 %vm573_vm1, %v9254_v40  ;;  %v17182_v49 = vld [vmem:[#allocation2 + $0xc] sm:$0x8] }
 0x659   : > { %v11646_v18 = vsel %vm682_vm0, %v15941_v5, 0  ;;  %v17183_v25 = vor.u32 %v17661_v53, %v17182_v49 }
 0x65a   : > { %11655 = vmatpush.bf16.msrb.mxu3 %v11646_v18 }
 0x65b   : > { %v8087_v24 = vshll.u32 %v17183_v25, 16 }
 0x65d   : > { %v8089_v63 = vrot.slane %v8087_v24, 4  ;;  %v9255_v24 = vshrl.u32 %v19545_v11, 16 }
 0x660   : > { %v5996_v52 = vpop.f32.mrf.mxu0 }
 0x661   : > { %v17663_v52 = vld [vmem:[#allocation2 + $0x14] sm:$0xff]  }
 0x662   : > { %v8092_v44 = vshrl.u32 %v17663_v52, 16  ;;  %v8095_v12 = vshll.u32 %v17663_v52, 16 }
 0x663   : > { %15621 = vmatmul.msk.bf16.gmra.mxu0 %vm573_vm1, %v5821_v1  ;;  %v17891_v1 = vld [vmem:[%s18019_s12 + $0x78] sm:$0xff] }
 0x664   : > { %v5824_v62 = vrot.slane %v17891_v1, 1  ;;  %v8094_v58 = vrot.slane %v8092_v44, 3  ;;  %v8097_v5 = vrot.slane %v8095_v12, 4  ;;  %v17892_v12 = vld [vmem:[%s18019_s12 + $0x80] sm:$0xff] }
 0x665   : > { %v5826_v53 = vrot.slane %v17892_v12, 1 }
 0x666   : > { %v5825_v54 = vsel %vm1804_vm2, %v5822_v3, %v5824_v62 }
 0x667   : > { %v5827_v49 = vsel %vm1804_vm2, %v5824_v62, %v5826_v53 }
 0x668   : > { %v5998_v61 = vpop.f32.mrf.mxu0 }
 0x670   : > { %v6001_v47 = vpop.f32.mrf.mxu0 }
 0x673   : > { %15622 = vmatmul.msk.bf16.gmra.mxu0 %vm573_vm1, %v5823_v48  ;;  %v8084_v48 = vshrl.u32 %v17183_v25, 16 }
 0x675   : > { %v8086_v23 = vrot.slane %v8084_v48, 3 }
 0x677   : > { %v8090_v34 = vor.u32 %v8089_v63, %v8086_v23 }
 0x678   : > { %v6003_v16 = vpop.f32.mrf.mxu0 }
 0x679   : > { %v8098_v16 = vor.u32 %v8097_v5, %v8094_v58 }
 0x67b   : > { %v8099_v1 = vsel %vm8082_vm5, %v8090_v34, %v8098_v16  ;;  %v9257_v34 = vor.u32 %v9255_v24, %v19557_v20  ;;  %v21333_v20 = vld [vmem:[#allocation34_spill] sm:$0xff]  ;;  %v17087_v24 = vld [vmem:[#allocation2 + $0x28] sm:$0xff]  }
 0x67c   : > { %15649 = vmatmul.msk.bf16.vlgmr.msra.gmra.mxu1 %vm573_vm1, %v8099_v1 }
 0x680   : > { %v6006_v40 = vpop.f32.mrf.mxu0 }
 0x681   : > { %v6180_v61 = vadd.f32 %v6006_v40, %v18872_v39  ;;  %v21332_v39 = vld [vmem:[#allocation31_spill] sm:$0xff] }
 0x683   : > { %v7556_v47 = vmax.f32 %v6180_v61, 0.0  ;;  %15623 = vmatmul.msk.bf16.gmra.mxu0 %vm573_vm1, %v5825_v54 }
 0x685   : > { %v7700_v18 = vpack.c.bf16 %v7556_v47, %v7556_v47 }
 0x687   : > { %7781 = vst.msk [vmem:[#allocation2 + $0x20] sm:$0xf] %vm7768_vm4, %v7700_v18 }
 0x688   : > { %v6008_v3 = vpop.f32.mrf.mxu0 }
 0x689   : > { %v6181_v52 = vadd.f32 %v6008_v3, %v21332_v39 }
 0x68b   : > { %v7557_v44 = vmax.f32 %v6181_v52, 0.0 }
 0x68d   : > { %v7701_v40 = vpack.c.bf16 %v7557_v44, %v7557_v44  ;;  %v17893_v44 = vld [vmem:[%s18019_s12 + $0x88] sm:$0xff] }
 0x68e   : > { %v17665_v54 = vld [vmem:[#allocation2 + $0x1c] sm:$0xff]   ;;  %v5828_v12 = vrot.slane %v17893_v44, 1 }
 0x68f   : > { %7782 = vst.msk [vmem:[#allocation2 + $0x24] sm:$0xf] %vm7768_vm4, %v7701_v40  ;;  %v8101_v25 = vshrl.u32 %v17665_v54, 16  ;;  %v8104_v58 = vshll.u32 %v17665_v54, 16  ;;  %v19641_v54 = vpop.f32.mrf.mxu2 }
 0x690   : > { %v6011_v61 = vpop.f32.mrf.mxu0 }
 0x691   : > { %v8103_v5 = vrot.slane %v8101_v25, 3  ;;  %v8106_v47 = vrot.slane %v8104_v58, 4 }
 0x693   : > { %15624 = vmatmul.msk.bf16.gmra.mxu0 %vm573_vm1, %v5827_v49  ;;  %v8107_v48 = vor.u32 %v8106_v47, %v8103_v5  ;;  %v16579_v49 = vld [vmem:[#allocation2 + $0x28] sm:$0xff] }
 0x695   : > { %v8108_v3 = vsel %vm8082_vm5, %v8098_v16, %v8107_v48  ;;  %v5829_v16 = vsel %vm1804_vm2, %v5826_v53, %v5828_v12 }
 0x696   : > { %v17086_v18 = vld [vmem:[#allocation2 + $0x20] sm:$0xff]   ;;  %15650 = vmatmul.msk.bf16.gmra.mxu1 %vm573_vm1, %v8108_v3 }
 0x697   : > { %v16578_v23 = vld [vmem:[#allocation2 + $0x20] sm:$0xff]  ;;  %15684 = vmatmul.msk.bf16.gmra.mxu2 %vm573_vm1, %v17086_v18  ;;  %v9267_v18 = vshll.u32 %v16579_v49, 16 }
 0x698   : > { %v6013_v63 = vpop.f32.mrf.mxu0  ;;  %v9259_v62 = vshll.u32 %v16578_v23, 16  ;;  %v17667_v52 = vld [vmem:[#allocation2 + $0x24] sm:$0xff]  }
 0x699   : > { %v8110_v11 = vshrl.u32 %v17667_v52, 16  ;;  %v8113_v40 = vshll.u32 %v17667_v52, 16  ;;  %v9269_v52 = vrot.slane %v9267_v18, 1 }
 0x69a   : > { %v9261_v39 = vrot.slane %v9259_v62, 1 }
 0x69b   : > { %v8112_v58 = vrot.slane %v8110_v11, 3  ;;  %v8115_v5 = vrot.slane %v8113_v40, 4 }
 0x69c   : > { %v9262_v1 = vsel %vm1133_vm3, %v9257_v34, %v9261_v39  ;;  %v9263_v34 = vshrl.u32 %v16578_v23, 16  ;;  %v17894_v23 = vld [vmem:[%s18019_s12 + $0x90] sm:$0xff] }
 0x69d   : > { %15844 = vmatmul.msk.bf16.gmra.mxu3 %vm573_vm1, %v9262_v1  ;;  %v8116_v3 = vor.u32 %v8115_v5, %v8112_v58  ;;  %v4788_v1 = vpop.f32.mrf.mxu2 }
 0x69e   : > { %v9265_v53 = vor.u32 %v9263_v34, %v9261_v39  ;;  %v19656_v39 = vpop.f32.mrf.mxu3 }
 0x69f   : > { %v8117_v11 = vsel %vm8082_vm5, %v8107_v48, %v8116_v3 }
 0x6a0   : > { %v6016_v61 = vpop.f32.mrf.mxu0 }
 0x6a1   : > { %v6184_v25 = vadd.f32 %v6016_v61, %v21333_v20  ;;  %v19651_v61 = vpop.f32.mrf.mxu1  ;;  %v5830_v20 = vrot.slane %v17894_v23, 1 }
 0x6a3   : > { %v7560_v47 = vmax.f32 %v6184_v25, 0.0  ;;  %15625 = vmatmul.msk.bf16.gmra.mxu0 %vm573_vm1, %v5829_v16  ;;  %v9270_v16 = vsel %vm1133_vm3, %v9265_v53, %v9269_v52  ;;  %v5831_v48 = vsel %vm1804_vm2, %v5828_v12, %v5830_v20 }
 0x6a5   : > { %v7704_v63 = vpack.c.bf16 %v7560_v47, %v7560_v47 }
 0x6a6   : > { %15651 = vmatmul.msk.bf16.gmra.mxu1 %vm573_vm1, %v8117_v11 }
 0x6a7   : > { %7785 = vst.msk [vmem:[#allocation2 + $0x30] sm:$0xf] %vm7768_vm4, %v7704_v63  ;;  %15685 = vmatmul.msk.bf16.gmra.mxu2 %vm573_vm1, %v17087_v24  ;;  %v4790_v24 = vpop.f32.mrf.mxu2 }
 0x6a8   : > { %v6018_v62 = vpop.f32.mrf.mxu0 }
 0x6a9   : > { %v6185_v44 = vadd.f32 %v6018_v62, %v18931_v27  ;;  %v9271_v62 = vshrl.u32 %v16579_v49, 16  ;;  %v4162_v53 = vpop.f32.mrf.mxu1 }
 0x6ab   : > { %v7561_v40 = vmax.f32 %v6185_v44, 0.0  ;;  %v5710_v23 = vpop.f32.mrf.mxu3 }
 0x6ad   : > { %v7705_v25 = vpack.c.bf16 %v7561_v40, %v7561_v40  ;;  %15845 = vmatmul.msk.bf16.gmra.mxu3 %vm573_vm1, %v9270_v16  ;;  %v9273_v16 = vor.u32 %v9271_v62, %v9269_v52  ;;  %v16581_v52 = vld [vmem:[#allocation2 + $0x38] sm:$0xff] }
 0x6ae   : > { %v17669_v58 = vld [vmem:[#allocation2 + $0x2c] sm:$0xff]   ;;  %v9283_v23 = vshll.u32 %v16581_v52, 16 }
 0x6af   : > { %7786 = vst.msk [vmem:[#allocation2 + $0x34] sm:$0xf] %vm7768_vm4, %v7705_v25  ;;  %v8119_v5 = vshrl.u32 %v17669_v58, 16  ;;  %v8122_v47 = vshll.u32 %v17669_v58, 16  ;;  %v4793_v25 = vpop.f32.mrf.mxu2 }
 0x6b0   : > { %v6021_v27 = vpop.f32.mrf.mxu0 }
 0x6b1   : > { %v8121_v18 = vrot.slane %v8119_v5, 3  ;;  %v8124_v63 = vrot.slane %v8122_v47, 4  ;;  %v17895_v5 = vld [vmem:[%s18019_s12 + $0x98] sm:$0xff]  ;;  %v4164_v47 = vpop.f32.mrf.mxu1 }
 0x6b2   : > { %v5832_v49 = vrot.slane %v17895_v5, 1 }
 0x6b3   : > { %15626 = vmatmul.msk.bf16.gmra.mxu0 %vm573_vm1, %v5831_v48  ;;  %v8125_v34 = vor.u32 %v8124_v63, %v8121_v18  ;;  %v5712_v62 = vpop.f32.mrf.mxu3 }
 0x6b5   : > { %v8126_v40 = vsel %vm8082_vm5, %v8116_v3, %v8125_v34  ;;  %v5833_v3 = vsel %vm1804_vm2, %v5830_v20, %v5832_v49 }
 0x6b6   : > { %v17088_v1 = vld [vmem:[#allocation2 + $0x30] sm:$0xff]   ;;  %15652 = vmatmul.msk.bf16.gmra.mxu1 %vm573_vm1, %v8126_v40 }
 0x6b7   : > { %v16580_v44 = vld [vmem:[#allocation2 + $0x30] sm:$0xff]  ;;  %15686 = vmatmul.msk.bf16.gmra.mxu2 %vm573_vm1, %v17088_v1  ;;  %v4795_v1 = vpop.f32.mrf.mxu2 }
 0x6b8   : > { %v6023_v11 = vpop.f32.mrf.mxu0  ;;  %v9275_v12 = vshll.u32 %v16580_v44, 16  ;;  %v17671_v27 = vld [vmem:[#allocation2 + $0x34] sm:$0xff]   ;;  %v17896_v1 = vld [vmem:[%s18019_s12 + $0xa0] sm:$0xff] }
 0x6b9   : > { %v8128_v24 = vshrl.u32 %v17671_v27, 16  ;;  %v8131_v18 = vshll.u32 %v17671_v27, 16  ;;  %v4167_v25 = vpop.f32.mrf.mxu1  ;;  %v9279_v27 = vshrl.u32 %v16580_v44, 16  ;;  %v5834_v44 = vrot.slane %v17896_v1, 1 }
 0x6ba   : > { %v9277_v58 = vrot.slane %v9275_v12, 1 }
 0x6bb   : > { %v8130_v11 = vrot.slane %v8128_v24, 3  ;;  %v8133_v12 = vrot.slane %v8131_v18, 4 }
 0x6bc   : > { %v9278_v48 = vsel %vm1133_vm3, %v9273_v16, %v9277_v58  ;;  %v17089_v16 = vld [vmem:[#allocation2 + $0x38] sm:$0xff]   ;;  %v9281_v47 = vor.u32 %v9279_v27, %v9277_v58 }
 0x6bd   : > { %15846 = vmatmul.msk.bf16.gmra.mxu3 %vm573_vm1, %v9278_v48  ;;  %v8134_v5 = vor.u32 %v8133_v12, %v8130_v11 }
 0x6bf   : > { %v4798_v18 = vpop.f32.mrf.mxu2 }
 0x6c0   : > { %v6026_v63 = vpop.f32.mrf.mxu0 }
 0x6c1   : > { %v6188_v53 = vadd.f32 %v6026_v63, %v18970_v45  ;;  %v9285_v45 = vrot.slane %v9283_v23, 1  ;;  %v5715_v63 = vpop.f32.mrf.mxu3  ;;  %v4169_v11 = vpop.f32.mrf.mxu1 }
 0x6c3   : > { %v7564_v40 = vmax.f32 %v6188_v53, 0.0  ;;  %15627 = vmatmul.msk.bf16.gmra.mxu0 %vm573_vm1, %v5833_v3  ;;  %v8135_v3 = vsel %vm8082_vm5, %v8125_v34, %v8134_v5  ;;  %v9286_v53 = vsel %vm1133_vm3, %v9281_v47, %v9285_v45  ;;  %v9287_v47 = vshrl.u32 %v16581_v52, 16 }
 0x6c5   : > { %v7708_v48 = vpack.c.bf16 %v7564_v40, %v7564_v40 }
 0x6c6   : > { %15653 = vmatmul.msk.bf16.gmra.mxu1 %vm573_vm1, %v8135_v3 }
 0x6c7   : > { %7789 = vst.msk [vmem:[#allocation2 + $0x40] sm:$0xf] %vm7768_vm4, %v7708_v48  ;;  %15687 = vmatmul.msk.bf16.gmra.mxu2 %vm573_vm1, %v17089_v16  ;;  %v4800_v25 = vpop.f32.mrf.mxu2 }
 0x6c8   : > { %v6028_v20 = vpop.f32.mrf.mxu0 }
 0x6c9   : > { %v6189_v24 = vadd.f32 %v6028_v20, %v18979_v9  ;;  %v5835_v9 = vsel %vm1804_vm2, %v5832_v49, %v5834_v44  ;;  %v5717_v34 = vpop.f32.mrf.mxu3  ;;  %v4172_v63 = vpop.f32.mrf.mxu1  ;;  %v9289_v49 = vor.u32 %v9287_v47, %v9285_v45 }
 0x6cb   : > { %v7565_v62 = vmax.f32 %v6189_v24, 0.0 }
 0x6cd   : > { %v7709_v12 = vpack.c.bf16 %v7565_v62, %v7565_v62  ;;  %15847 = vmatmul.msk.bf16.gmra.mxu3 %vm573_vm1, %v9286_v53 }
 0x6ce   : > { %v17673_v40 = vld [vmem:[#allocation2 + $0x3c] sm:$0xff]  }
 0x6cf   : > { %7790 = vst.msk [vmem:[#allocation2 + $0x44] sm:$0xf] %vm7768_vm4, %v7709_v12  ;;  %v8137_v16 = vshrl.u32 %v17673_v40, 16  ;;  %v8140_v23 = vshll.u32 %v17673_v40, 16 }
 0x6d0   : > { %v6031_v58 = vpop.f32.mrf.mxu0 }
 0x6d1   : > { %v8139_v48 = vrot.slane %v8137_v16, 3  ;;  %v8142_v27 = vrot.slane %v8140_v23, 4  ;;  %v5720_v1 = vpop.f32.mrf.mxu3  ;;  %v17897_v58 = vld [vmem:[%s18019_s12 + $0xa8] sm:$0xff]  ;;  %v4174_v52 = vpop.f32.mrf.mxu1 }
 0x6d3   : > { %15628 = vmatmul.msk.bf16.gmra.mxu0 %vm573_vm1, %v5835_v9  ;;  %v8143_v20 = vor.u32 %v8142_v27, %v8139_v48  ;;  %v5836_v9 = vrot.slane %v17897_v58, 1 }
 0x6d5   : > { %v8144_v62 = vsel %vm8082_vm5, %v8134_v5, %v8143_v20  ;;  %v5837_v25 = vsel %vm1804_vm2, %v5834_v44, %v5836_v9  ;;  %v16583_v5 = vld [vmem:[#allocation2 + $0x48] sm:$0xff] }
 0x6d6   : > { %v17090_v24 = vld [vmem:[#allocation2 + $0x40] sm:$0xff]   ;;  %15654 = vmatmul.msk.bf16.gmra.mxu1 %vm573_vm1, %v8144_v62 }
 0x6d7   : > { %v16582_v18 = vld [vmem:[#allocation2 + $0x40] sm:$0xff]  ;;  %15688 = vmatmul.msk.bf16.gmra.mxu2 %vm573_vm1, %v17090_v24  ;;  %v17091_v24 = vld [vmem:[#allocation2 + $0x48] sm:$0xff]  }
 0x6d8   : > { %v6033_v3 = vpop.f32.mrf.mxu0  ;;  %v9291_v53 = vshll.u32 %v16582_v18, 16  ;;  %v17675_v12 = vld [vmem:[#allocation2 + $0x44] sm:$0xff]  }
 0x6d9   : > { %v8146_v16 = vshrl.u32 %v17675_v12, 16  ;;  %v8149_v23 = vshll.u32 %v17675_v12, 16  ;;  %v5722_v45 = vpop.f32.mrf.mxu3  ;;  %v9299_v3 = vshll.u32 %v16583_v5, 16 }
 0x6da   : > { %v9293_v11 = vrot.slane %v9291_v53, 1  ;;  %v9295_v53 = vshrl.u32 %v16582_v18, 16 }
 0x6db   : > { %v8148_v27 = vrot.slane %v8146_v16, 3  ;;  %v8151_v47 = vrot.slane %v8149_v23, 4  ;;  %v9301_v12 = vrot.slane %v9299_v3, 1  ;;  %v17898_v16 = vld [vmem:[%s18019_s12 + $0xb0] sm:$0xff] }
 0x6dc   : > { %v9294_v40 = vsel %vm1133_vm3, %v9289_v49, %v9293_v11  ;;  %v9297_v1 = vor.u32 %v9295_v53, %v9293_v11  ;;  %v5838_v23 = vrot.slane %v17898_v16, 1 }
 0x6dd   : > { %15848 = vmatmul.msk.bf16.gmra.mxu3 %vm573_vm1, %v9294_v40  ;;  %v8152_v49 = vor.u32 %v8151_v47, %v8148_v27 }
 0x6de   : > { %v9302_v52 = vsel %vm1133_vm3, %v9297_v1, %v9301_v12  ;;  %v5839_v11 = vsel %vm1804_vm2, %v5836_v9, %v5838_v23 }
 0x6df   : > { %v8153_v40 = vsel %vm8082_vm5, %v8143_v20, %v8152_v49 }
 0x6e0   : > { %v6036_v34 = vpop.f32.mrf.mxu0 }
 0x6e1   : > { %v6192_v48 = vadd.f32 %v6036_v34, %v19018_v13 }
 0x6e3   : > { %v7568_v63 = vmax.f32 %v6192_v48, 0.0  ;;  %15629 = vmatmul.msk.bf16.gmra.mxu0 %vm573_vm1, %v5837_v25  ;;  %v8789_v48 = vpop.f32.mrf.mxu2 }
 0x6e5   : > { %v7712_v62 = vpack.c.bf16 %v7568_v63, %v7568_v63  ;;  %v9303_v63 = vshrl.u32 %v16583_v5, 16 }
 0x6e6   : > { %15655 = vmatmul.msk.bf16.gmra.mxu1 %vm573_vm1, %v8153_v40 }
 0x6e7   : > { %7793 = vst.msk [vmem:[#allocation2 + $0x50] sm:$0xf] %vm7768_vm4, %v7712_v62  ;;  %15689 = vmatmul.msk.bf16.gmra.mxu2 %vm573_vm1, %v17091_v24 }
 0x6e8   : > { %v6038_v44 = vpop.f32.mrf.mxu0 }
 0x6e9   : > { %v6193_v13 = vadd.f32 %v6038_v44, %v19027_v2  ;;  %v9305_v44 = vor.u32 %v9303_v63, %v9301_v12 }
 0x6eb   : > { %v7569_v58 = vmax.f32 %v6193_v13, 0.0  ;;  %v8791_v40 = vpop.f32.mrf.mxu2 }
 0x6ed   : > { %v7713_v34 = vpack.c.bf16 %v7569_v58, %v7569_v58  ;;  %15849 = vmatmul.msk.bf16.gmra.mxu3 %vm573_vm1, %v9302_v52  ;;  %v17899_v52 = vld [vmem:[%s18019_s12 + $0xb8] sm:$0xff] }
 0x6ee   : > { %v17677_v18 = vld [vmem:[#allocation2 + $0x4c] sm:$0xff]   ;;  %v5840_v16 = vrot.slane %v17899_v52, 1 }
 0x6ef   : > { %7794 = vst.msk [vmem:[#allocation2 + $0x54] sm:$0xf] %vm7768_vm4, %v7713_v34  ;;  %v8155_v45 = vshrl.u32 %v17677_v18, 16  ;;  %v8158_v2 = vshll.u32 %v17677_v18, 16 }
 0x6f0   : > { %v6041_v25 = vpop.f32.mrf.mxu0 }
 0x6f1   : > { %v8157_v20 = vrot.slane %v8155_v45, 3  ;;  %v8160_v27 = vrot.slane %v8158_v2, 4  ;;  %v5841_v25 = vsel %vm1804_vm2, %v5838_v23, %v5840_v16 }
 0x6f3   : > { %15630 = vmatmul.msk.bf16.gmra.mxu0 %vm573_vm1, %v5839_v11  ;;  %v8161_v47 = vor.u32 %v8160_v27, %v8157_v20  ;;  %v16585_v11 = vld [vmem:[#allocation2 + $0x58] sm:$0xff] }
 0x6f4   : > { %v17093_v20 = vld [vmem:[#allocation2 + $0x58] sm:$0xff]   ;;  %v9315_v27 = vshll.u32 %v16585_v11, 16 }
 0x6f5   : > { %v8162_v53 = vsel %vm8082_vm5, %v8152_v49, %v8161_v47 }
 0x6f6   : > { %v17092_v24 = vld [vmem:[#allocation2 + $0x50] sm:$0xff]   ;;  %15656 = vmatmul.msk.bf16.gmra.mxu1 %vm573_vm1, %v8162_v53 }
 0x6f7   : > { %v16584_v3 = vld [vmem:[#allocation2 + $0x50] sm:$0xff]  ;;  %15690 = vmatmul.msk.bf16.gmra.mxu2 %vm573_vm1, %v17092_v24  ;;  %v19713_v24 = vld [vmem:[%s21220_s4] ss:$0 sm:$0xff] }
 0x6f8   : > { %v6043_v62 = vpop.f32.mrf.mxu0  ;;  %v9307_v1 = vshll.u32 %v16584_v3, 16  ;;  %v17679_v13 = vld [vmem:[#allocation2 + $0x54] sm:$0xff]   ;;  %v9311_v23 = vshrl.u32 %v16584_v3, 16 }
 0x6f9   : > { %v8164_v5 = vshrl.u32 %v17679_v13, 16  ;;  %v8167_v34 = vshll.u32 %v17679_v13, 16  ;;  %v8794_v62 = vpop.f32.mrf.mxu2 }
 0x6fa   : > { %v9309_v9 = vrot.slane %v9307_v1, 1 }
 0x6fb   : > { %v8166_v12 = vrot.slane %v8164_v5, 3  ;;  %v8169_v45 = vrot.slane %v8167_v34, 4 }
 0x6fc   : > { %v9310_v58 = vsel %vm1133_vm3, %v9305_v44, %v9309_v9  ;;  %v8487_v44 = vpop.f32.mrf.mxu1  ;;  %v9313_v13 = vor.u32 %v9311_v23, %v9309_v9 }
 0x6fd   : > { %15850 = vmatmul.msk.bf16.gmra.mxu3 %vm573_vm1, %v9310_v58  ;;  %v8170_v53 = vor.u32 %v8169_v45, %v8166_v12  ;;  %v9317_v58 = vrot.slane %v9315_v27, 1  ;;  %v8488_v52 = vadd.f32 %v19713_v24, %v8487_v44 }
 0x6ff   : > { %v8171_v34 = vsel %vm8082_vm5, %v8161_v47, %v8170_v53  ;;  %v9318_v3 = vsel %vm1133_vm3, %v9313_v13, %v9317_v58 }
 0x700   : > { %v6046_v18 = vpop.f32.mrf.mxu0 }
 0x701   : > { %v6196_v49 = vadd.f32 %v6046_v18, %v19064_v22  ;;  %v9611_v22 = vpop.f32.mrf.mxu3 }
 0x703   : > { %v7572_v2 = vmax.f32 %v6196_v49, 0.0  ;;  %15631 = vmatmul.msk.bf16.gmra.mxu0 %vm573_vm1, %v5841_v25  ;;  %v8949_v25 = vadd.f32 %v8789_v48, %v8488_v52  ;;  %v17900_v49 = vld [vmem:[%s18019_s12 + $0xc0] sm:$0xff] }
 0x704   : > { %v5842_v12 = vrot.slane %v17900_v49, 1 }
 0x705   : > { %v7716_v63 = vpack.c.bf16 %v7572_v2, %v7572_v2  ;;  %v19723_v2 = vadd.f32 %v9611_v22, %v8949_v25 }
 0x706   : > { %15657 = vmatmul.msk.bf16.gmra.mxu1 %vm573_vm1, %v8171_v34  ;;  %v5843_v47 = vsel %vm1804_vm2, %v5840_v16, %v5842_v12 }
 0x707   : > { %7797 = vst.msk [vmem:[#allocation2 + $0x60] sm:$0xf] %vm7768_vm4, %v7716_v63  ;;  %15691 = vmatmul.msk.bf16.gmra.mxu2 %vm573_vm1, %v17093_v20  ;;  %v8796_v20 = vpop.f32.mrf.mxu2 }
 0x708   : > { %v6048_v1 = vpop.f32.mrf.mxu0  ;;  %21334 = vst [vmem:[#allocation4_spill] sm:$0xff] %v19723_v2 }
 0x709   : > { %v6197_v5 = vadd.f32 %v6048_v1, %v19071_v38  ;;  %v8489_v38 = vpop.f32.mrf.mxu1  ;;  %v9613_v44 = vpop.f32.mrf.mxu3 }
 0x70a   : > { %v8490_v48 = vadd.f32 %v19713_v24, %v8489_v38 }
 0x70b   : > { %v7573_v18 = vmax.f32 %v6197_v5, 0.0  ;;  %v9319_v5 = vshrl.u32 %v16585_v11, 16 }
 0x70c   : > { %v8950_v52 = vadd.f32 %v8791_v40, %v8490_v48 }
 0x70d   : > { %v7717_v45 = vpack.c.bf16 %v7573_v18, %v7573_v18  ;;  %15851 = vmatmul.msk.bf16.gmra.mxu3 %vm573_vm1, %v9318_v3 }
 0x70e   : > { %v17681_v9 = vld [vmem:[#allocation2 + $0x5c] sm:$0xff]   ;;  %v19730_v34 = vadd.f32 %v9613_v44, %v8950_v52  ;;  %v16587_v52 = vld [vmem:[#allocation2 + $0x68] sm:$0xff] }
 0x70f   : > { %7798 = vst.msk [vmem:[#allocation2 + $0x64] sm:$0xf] %vm7768_vm4, %v7717_v45  ;;  %v8173_v63 = vshrl.u32 %v17681_v9, 16  ;;  %v8176_v23 = vshll.u32 %v17681_v9, 16  ;;  %v9321_v45 = vor.u32 %v9319_v5, %v9317_v58 }
 0x710   : > { %v6051_v27 = vpop.f32.mrf.mxu0  ;;  %21335 = vst [vmem:[#allocation5_spill] sm:$0xff] %v19730_v34 }
 0x711   : > { %v8175_v1 = vrot.slane %v8173_v63, 3  ;;  %v8178_v13 = vrot.slane %v8176_v23, 4  ;;  %v17901_v23 = vld [vmem:[%s18019_s12 + $0xc8] sm:$0xff] }
 0x712   : > { %v5844_v48 = vrot.slane %v17901_v23, 1  ;;  %v9331_v23 = vshll.u32 %v16587_v52, 16 }
 0x713   : > { %15632 = vmatmul.msk.bf16.gmra.mxu0 %vm573_vm1, %v5843_v47  ;;  %v8179_v22 = vor.u32 %v8178_v13, %v8175_v1  ;;  %v8492_v16 = vpop.f32.mrf.mxu1 }
 0x714   : > { %v8493_v38 = vadd.f32 %v19713_v24, %v8492_v16  ;;  %v5845_v58 = vsel %vm1804_vm2, %v5842_v12, %v5844_v48 }
 0x715   : > { %v8180_v49 = vsel %vm8082_vm5, %v8170_v53, %v8179_v22 }
 0x716   : > { %v17094_v18 = vld [vmem:[#allocation2 + $0x60] sm:$0xff]   ;;  %15658 = vmatmul.msk.bf16.gmra.mxu1 %vm573_vm1, %v8180_v49  ;;  %v8951_v11 = vadd.f32 %v8794_v62, %v8493_v38 }
 0x717   : > { %v16586_v25 = vld [vmem:[#allocation2 + $0x60] sm:$0xff]  ;;  %15692 = vmatmul.msk.bf16.gmra.mxu2 %vm573_vm1, %v17094_v18 }
 0x718   : > { %v6053_v3 = vpop.f32.mrf.mxu0  ;;  %v9323_v9 = vshll.u32 %v16586_v25, 16  ;;  %v17683_v47 = vld [vmem:[#allocation2 + $0x64] sm:$0xff]   ;;  %v9327_v12 = vshrl.u32 %v16586_v25, 16 }
 0x719   : > { %v8182_v44 = vshrl.u32 %v17683_v47, 16  ;;  %v8185_v1 = vshll.u32 %v17683_v47, 16  ;;  %v21336_v18 = vld [vmem:[#allocation43_spill] sm:$0xff]  ;;  %v17095_v47 = vld [vmem:[#allocation2 + $0x68] sm:$0xff]  }
 0x71a   : > { %v8799_v40 = vpop.f32.mrf.mxu2  ;;  %v9325_v27 = vrot.slane %v9323_v9, 1 }
 0x71b   : > { %v8494_v13 = vpop.f32.mrf.mxu1  ;;  %v8187_v9 = vrot.slane %v8185_v1, 4 }
 0x71c   : > { %v9326_v63 = vsel %vm1133_vm3, %v9321_v45, %v9325_v27  ;;  %v8495_v5 = vadd.f32 %v19713_v24, %v8494_v13  ;;  %v8184_v45 = vrot.slane %v8182_v44, 3 }
 0x71d   : > { %15852 = vmatmul.msk.bf16.gmra.mxu3 %vm573_vm1, %v9326_v63 }
 0x71e   : > { %v8952_v63 = vadd.f32 %v8796_v20, %v8495_v5  ;;  %v8188_v2 = vor.u32 %v8187_v9, %v8184_v45  ;;  %v17902_v45 = vld [vmem:[%s18019_s12 + $0xd0] sm:$0xff] }
 0x71f   : > { %v5846_v9 = vrot.slane %v17902_v45, 1 }
 0x720   : > { %v6056_v53 = vpop.f32.mrf.mxu0  ;;  %v9616_v3 = vpop.f32.mrf.mxu3  ;;  %v8189_v20 = vsel %vm8082_vm5, %v8179_v22, %v8188_v2 }
 0x721   : > { %v6200_v16 = vadd.f32 %v6056_v53, %v21336_v18  ;;  %v19742_v49 = vadd.f32 %v9616_v3, %v8951_v11  ;;  %v9329_v53 = vor.u32 %v9327_v12, %v9325_v27  ;;  %v9333_v18 = vrot.slane %v9331_v23, 1 }
 0x722   : > { %v8801_v62 = vpop.f32.mrf.mxu2  ;;  %v5847_v22 = vsel %vm1804_vm2, %v5844_v48, %v5846_v9 }
 0x723   : > { %v7576_v38 = vmax.f32 %v6200_v16, 0.0  ;;  %15633 = vmatmul.msk.bf16.gmra.mxu0 %vm573_vm1, %v5845_v58  ;;  %v8497_v13 = vpop.f32.mrf.mxu1  ;;  %v9334_v3 = vsel %vm1133_vm3, %v9329_v53, %v9333_v18 }
 0x724   : > { %v8498_v44 = vadd.f32 %v19713_v24, %v8497_v13 }
 0x725   : > { %v7720_v34 = vpack.c.bf16 %v7576_v38, %v7576_v38 }
 0x726   : > { %15659 = vmatmul.msk.bf16.gmra.mxu1 %vm573_vm1, %v8189_v20  ;;  %v9335_v20 = vshrl.u32 %v16587_v52, 16 }
 0x727   : > { %7801 = vst.msk [vmem:[#allocation2 + $0x70] sm:$0xf] %vm7768_vm4, %v7720_v34  ;;  %15693 = vmatmul.msk.bf16.gmra.mxu2 %vm573_vm1, %v17095_v47  ;;  %v8953_v34 = vadd.f32 %v8799_v40, %v8498_v44 }
 0x728   : > { %v6058_v11 = vpop.f32.mrf.mxu0  ;;  %v9618_v58 = vpop.f32.mrf.mxu3 }
 0x729   : > { %v6201_v1 = vadd.f32 %v6058_v11, %v19113_v59  ;;  %v19750_v5 = vadd.f32 %v9618_v58, %v8952_v63 }
 0x72a   : > { %v8804_v16 = vpop.f32.mrf.mxu2 }
 0x72b   : > { %v7577_v25 = vmax.f32 %v6201_v1, 0.0  ;;  %v8499_v59 = vpop.f32.mrf.mxu1 }
 0x72c   : > { %v8500_v12 = vadd.f32 %v19713_v24, %v8499_v59 }
 0x72d   : > { %v7721_v27 = vpack.c.bf16 %v7577_v25, %v7577_v25  ;;  %15853 = vmatmul.msk.bf16.gmra.mxu3 %vm573_vm1, %v9334_v3 }
 0x72e   : > { %v17685_v38 = vld [vmem:[#allocation2 + $0x6c] sm:$0xff]   ;;  %v8954_v1 = vadd.f32 %v8801_v62, %v8500_v12 }
 0x72f   : > { %7802 = vst.msk [vmem:[#allocation2 + $0x74] sm:$0xf] %vm7768_vm4, %v7721_v27  ;;  %v8191_v63 = vshrl.u32 %v17685_v38, 16  ;;  %v8194_v23 = vshll.u32 %v17685_v38, 16  ;;  %v9337_v38 = vor.u32 %v9335_v20, %v9333_v18 }
 0x730   : > { %v6061_v47 = vpop.f32.mrf.mxu0  ;;  %v9621_v13 = vpop.f32.mrf.mxu3 }
 0x731   : > { %v19759_v40 = vadd.f32 %v9621_v13, %v8953_v34  ;;  %v8193_v53 = vrot.slane %v8191_v63, 3  ;;  %v8196_v44 = vrot.slane %v8194_v23, 4  ;;  %v17903_v13 = vld [vmem:[%s18019_s12 + $0xd8] sm:$0xff] }
 0x732   : > { %v8806_v11 = vpop.f32.mrf.mxu2 }
 0x733   : > { %21337 = vst [vmem:[#allocation12_spill] sm:$0xff] %v19759_v40  ;;  %15634 = vmatmul.msk.bf16.gmra.mxu0 %vm573_vm1, %v5847_v22  ;;  %v8197_v58 = vor.u32 %v8196_v44, %v8193_v53  ;;  %v8502_v48 = vpop.f32.mrf.mxu1  ;;  %v5848_v53 = vrot.slane %v17903_v13, 1 }
 0x734   : > { %v8503_v59 = vadd.f32 %v19713_v24, %v8502_v48 }
 0x735   : > { %v8198_v27 = vsel %vm8082_vm5, %v8188_v2, %v8197_v58 }
 0x736   : > { %v17096_v25 = vld [vmem:[#allocation2 + $0x70] sm:$0xff]   ;;  %15660 = vmatmul.msk.bf16.gmra.mxu1 %vm573_vm1, %v8198_v27  ;;  %v8955_v52 = vadd.f32 %v8804_v16, %v8503_v59 }
 0x737   : > { %v16588_v3 = vld [vmem:[#allocation2 + $0x70] sm:$0xff]  ;;  %15694 = vmatmul.msk.bf16.gmra.mxu2 %vm573_vm1, %v17096_v25  ;;  %v5849_v25 = vsel %vm1804_vm2, %v5846_v9, %v5848_v53 }
 0x738   : > { %v6063_v45 = vpop.f32.mrf.mxu0  ;;  %v9339_v34 = vshll.u32 %v16588_v3, 16  ;;  %v9623_v47 = vpop.f32.mrf.mxu3  ;;  %v17687_v23 = vld [vmem:[#allocation2 + $0x74] sm:$0xff]   ;;  %v9343_v9 = vshrl.u32 %v16588_v3, 16 }
 0x739   : > { %v19765_v63 = vadd.f32 %v9623_v47, %v8954_v1  ;;  %v8200_v2 = vshrl.u32 %v17687_v23, 16  ;;  %v8203_v18 = vshll.u32 %v17687_v23, 16  ;;  %v16589_v1 = vld [vmem:[#allocation2 + $0x78] sm:$0xff] }
 0x73a   : > { %v8809_v22 = vpop.f32.mrf.mxu2  ;;  %v9341_v62 = vrot.slane %v9339_v34, 1  ;;  %v17097_v23 = vld [vmem:[#allocation2 + $0x78] sm:$0xff]   ;;  %v9347_v13 = vshll.u32 %v16589_v1, 16 }
 0x73b   : > { %21338 = vst [vmem:[#allocation8_spill] sm:$0xff] %v19765_v63  ;;  %v8504_v44 = vpop.f32.mrf.mxu1  ;;  %v8205_v59 = vrot.slane %v8203_v18, 4 }
 0x73c   : > { %v9342_v12 = vsel %vm1133_vm3, %v9337_v38, %v9341_v62  ;;  %v8505_v48 = vadd.f32 %v19713_v24, %v8504_v44  ;;  %v8202_v38 = vrot.slane %v8200_v2, 3  ;;  %v9345_v44 = vor.u32 %v9343_v9, %v9341_v62 }
 0x73d   : > { %15854 = vmatmul.msk.bf16.gmra.mxu3 %vm573_vm1, %v9342_v12 }
 0x73e   : > { %v8956_v12 = vadd.f32 %v8806_v11, %v8505_v48  ;;  %v8206_v40 = vor.u32 %v8205_v59, %v8202_v38  ;;  %v17904_v38 = vld [vmem:[%s18019_s12 + $0xe0] sm:$0xff] }
 0x73f   : > { %v5850_v59 = vrot.slane %v17904_v38, 1 }
 0x740   : > { %v6066_v20 = vpop.f32.mrf.mxu0  ;;  %v9626_v34 = vpop.f32.mrf.mxu3  ;;  %v8207_v11 = vsel %vm8082_vm5, %v8197_v58, %v8206_v40 }
 0x741   : > { %v6204_v45 = vadd.f32 %v6066_v20, %v19149_v42  ;;  %v19774_v27 = vadd.f32 %v9626_v34, %v8955_v52  ;;  %v9349_v20 = vrot.slane %v9347_v13, 1  ;;  %v5851_v58 = vsel %vm1804_vm2, %v5848_v53, %v5850_v59 }
 0x742   : > { %v8811_v16 = vpop.f32.mrf.mxu2 }
 0x743   : > { %v7580_v47 = vmax.f32 %v6204_v45, 0.0  ;;  %15635 = vmatmul.msk.bf16.gmra.mxu0 %vm573_vm1, %v5849_v25  ;;  %v8507_v42 = vpop.f32.mrf.mxu1  ;;  %v9350_v34 = vsel %vm1133_vm3, %v9345_v44, %v9349_v20 }
 0x744   : > { %v8508_v2 = vadd.f32 %v19713_v24, %v8507_v42 }
 0x745   : > { %v7724_v63 = vpack.c.bf16 %v7580_v47, %v7580_v47 }
 0x746   : > { %15661 = vmatmul.msk.bf16.gmra.mxu1 %vm573_vm1, %v8207_v11  ;;  %v9351_v11 = vshrl.u32 %v16589_v1, 16 }
 0x747   : > { %7805 = vst.msk [vmem:[#allocation2 + $0x80] sm:$0xf] %vm7768_vm4, %v7724_v63  ;;  %15695 = vmatmul.msk.bf16.gmra.mxu2 %vm573_vm1, %v17097_v23  ;;  %v8957_v63 = vadd.f32 %v8809_v22, %v8508_v2 }
 0x748   : > { %v6068_v52 = vpop.f32.mrf.mxu0  ;;  %v9628_v25 = vpop.f32.mrf.mxu3 }
 0x749   : > { %v6205_v18 = vadd.f32 %v6068_v52, %v19155_v60  ;;  %v19782_v48 = vadd.f32 %v9628_v25, %v8956_v12 }
 0x74a   : > { %v8814_v45 = vpop.f32.mrf.mxu2 }
 0x74b   : > { %v7581_v3 = vmax.f32 %v6205_v18, 0.0  ;;  %v8509_v60 = vpop.f32.mrf.mxu1 }
 0x74c   : > { %v8510_v9 = vadd.f32 %v19713_v24, %v8509_v60 }
 0x74d   : > { %v7725_v62 = vpack.c.bf16 %v7581_v3, %v7581_v3  ;;  %15855 = vmatmul.msk.bf16.gmra.mxu3 %vm573_vm1, %v9350_v34 }
 0x74e   : > { %v17689_v47 = vld [vmem:[#allocation2 + $0x7c] sm:$0xff]   ;;  %v8958_v18 = vadd.f32 %v8811_v16, %v8510_v9 }
 0x74f   : > { %7806 = vst.msk [vmem:[#allocation2 + $0x84] sm:$0xf] %vm7768_vm4, %v7725_v62  ;;  %v8209_v12 = vshrl.u32 %v17689_v47, 16  ;;  %v8212_v13 = vshll.u32 %v17689_v47, 16  ;;  %v9353_v47 = vor.u32 %v9351_v11, %v9349_v20 }
 0x750   : > { %v6071_v23 = vpop.f32.mrf.mxu0  ;;  %v9631_v42 = vpop.f32.mrf.mxu3 }
 0x751   : > { %v19791_v22 = vadd.f32 %v9631_v42, %v8957_v63  ;;  %v8211_v44 = vrot.slane %v8209_v12, 3  ;;  %v8214_v2 = vrot.slane %v8212_v13, 4  ;;  %v17905_v42 = vld [vmem:[%s18019_s12 + $0xe8] sm:$0xff] }
 0x752   : > { %v8816_v52 = vpop.f32.mrf.mxu2 }
 0x753   : > { %21339 = vst [vmem:[#allocation11_spill] sm:$0xff] %v19791_v22  ;;  %15636 = vmatmul.msk.bf16.gmra.mxu0 %vm573_vm1, %v5851_v58  ;;  %v8215_v25 = vor.u32 %v8214_v2, %v8211_v44  ;;  %v8512_v53 = vpop.f32.mrf.mxu1  ;;  %v5852_v44 = vrot.slane %v17905_v42, 1 }
 0x754   : > { %v8513_v60 = vadd.f32 %v19713_v24, %v8512_v53 }
 0x755   : > { %v8216_v62 = vsel %vm8082_vm5, %v8206_v40, %v8215_v25 }
 0x756   : > { %v17098_v3 = vld [vmem:[#allocation2 + $0x80] sm:$0xff]   ;;  %15662 = vmatmul.msk.bf16.gmra.mxu1 %vm573_vm1, %v8216_v62  ;;  %v8959_v1 = vadd.f32 %v8814_v45, %v8513_v60 }
 0x757   : > { %v16590_v34 = vld [vmem:[#allocation2 + $0x80] sm:$0xff]  ;;  %15696 = vmatmul.msk.bf16.gmra.mxu2 %vm573_vm1, %v17098_v3  ;;  %v5853_v3 = vsel %vm1804_vm2, %v5850_v59, %v5852_v44 }
 0x758   : > { %v6073_v38 = vpop.f32.mrf.mxu0  ;;  %v9355_v63 = vshll.u32 %v16590_v34, 16  ;;  %v9633_v23 = vpop.f32.mrf.mxu3  ;;  %v17691_v13 = vld [vmem:[#allocation2 + $0x84] sm:$0xff]   ;;  %v9359_v59 = vshrl.u32 %v16590_v34, 16 }
 0x759   : > { %v19797_v12 = vadd.f32 %v9633_v23, %v8958_v18  ;;  %v8218_v40 = vshrl.u32 %v17691_v13, 16  ;;  %v8221_v20 = vshll.u32 %v17691_v13, 16  ;;  %v16591_v18 = vld [vmem:[#allocation2 + $0x88] sm:$0xff] }
 0x75a   : > { %v8819_v58 = vpop.f32.mrf.mxu2  ;;  %v9357_v16 = vrot.slane %v9355_v63, 1  ;;  %v17099_v13 = vld [vmem:[#allocation2 + $0x88] sm:$0xff]   ;;  %v9363_v42 = vshll.u32 %v16591_v18, 16 }
 0x75b   : > { %21340 = vst [vmem:[#allocation9_spill] sm:$0xff] %v19797_v12  ;;  %v8514_v2 = vpop.f32.mrf.mxu1  ;;  %v8223_v60 = vrot.slane %v8221_v20, 4 }
 0x75c   : > { %v9358_v9 = vsel %vm1133_vm3, %v9353_v47, %v9357_v16  ;;  %v8515_v53 = vadd.f32 %v19713_v24, %v8514_v2  ;;  %v8220_v47 = vrot.slane %v8218_v40, 3  ;;  %v9361_v2 = vor.u32 %v9359_v59, %v9357_v16 }
 0x75d   : > { %15856 = vmatmul.msk.bf16.gmra.mxu3 %vm573_vm1, %v9358_v9 }
 0x75e   : > { %v8960_v9 = vadd.f32 %v8816_v52, %v8515_v53  ;;  %v8224_v22 = vor.u32 %v8223_v60, %v8220_v47  ;;  %v17906_v47 = vld [vmem:[%s18019_s12 + $0xf0] sm:$0xff] }
 0x75f   : > { %v5854_v60 = vrot.slane %v17906_v47, 1 }
 0x760   : > { %v6076_v11 = vpop.f32.mrf.mxu0  ;;  %v9636_v63 = vpop.f32.mrf.mxu3  ;;  %v8225_v52 = vsel %vm8082_vm5, %v8215_v25, %v8224_v22 }
 0x761   : > { %v6208_v38 = vadd.f32 %v6076_v11, %v19191_v43  ;;  %v19806_v62 = vadd.f32 %v9636_v63, %v8959_v1  ;;  %v9365_v11 = vrot.slane %v9363_v42, 1  ;;  %v5855_v25 = vsel %vm1804_vm2, %v5852_v44, %v5854_v60 }
 0x762   : > { %v8821_v45 = vpop.f32.mrf.mxu2 }
 0x763   : > { %v7584_v23 = vmax.f32 %v6208_v38, 0.0  ;;  %15637 = vmatmul.msk.bf16.gmra.mxu0 %vm573_vm1, %v5853_v3  ;;  %v8517_v43 = vpop.f32.mrf.mxu1  ;;  %v9366_v63 = vsel %vm1133_vm3, %v9361_v2, %v9365_v11 }
 0x764   : > { %v8518_v40 = vadd.f32 %v19713_v24, %v8517_v43 }
 0x765   : > { %v7728_v12 = vpack.c.bf16 %v7584_v23, %v7584_v23 }
 0x766   : > { %15663 = vmatmul.msk.bf16.gmra.mxu1 %vm573_vm1, %v8225_v52  ;;  %v9367_v52 = vshrl.u32 %v16591_v18, 16 }
 0x767   : > { %7809 = vst.msk [vmem:[#allocation2 + $0x90] sm:$0xf] %vm7768_vm4, %v7728_v12  ;;  %15697 = vmatmul.msk.bf16.gmra.mxu2 %vm573_vm1, %v17099_v13  ;;  %v8961_v12 = vadd.f32 %v8819_v58, %v8518_v40 }
 0x768   : > { %v6078_v1 = vpop.f32.mrf.mxu0  ;;  %v9638_v3 = vpop.f32.mrf.mxu3 }
 0x769   : > { %v6209_v20 = vadd.f32 %v6078_v1, %v19197_v8  ;;  %v19814_v53 = vadd.f32 %v9638_v3, %v8960_v9 }
 0x76a   : > { %v8824_v38 = vpop.f32.mrf.mxu2 }
 0x76b   : > { %v7585_v34 = vmax.f32 %v6209_v20, 0.0  ;;  %v8519_v8 = vpop.f32.mrf.mxu1 }
 0x76c   : > { %v8520_v59 = vadd.f32 %v19713_v24, %v8519_v8 }
 0x76d   : > { %v7729_v16 = vpack.c.bf16 %v7585_v34, %v7585_v34  ;;  %15857 = vmatmul.msk.bf16.gmra.mxu3 %vm573_vm1, %v9366_v63 }
 0x76e   : > { %v17693_v23 = vld [vmem:[#allocation2 + $0x8c] sm:$0xff]   ;;  %v8962_v20 = vadd.f32 %v8821_v45, %v8520_v59 }
 0x76f   : > { %7810 = vst.msk [vmem:[#allocation2 + $0x94] sm:$0xf] %vm7768_vm4, %v7729_v16  ;;  %v8227_v9 = vshrl.u32 %v17693_v23, 16  ;;  %v8230_v42 = vshll.u32 %v17693_v23, 16  ;;  %v9369_v23 = vor.u32 %v9367_v52, %v9365_v11 }
 0x770   : > { %v6081_v13 = vpop.f32.mrf.mxu0  ;;  %v9641_v43 = vpop.f32.mrf.mxu3 }
 0x771   : > { %v19823_v58 = vadd.f32 %v9641_v43, %v8961_v12  ;;  %v8229_v2 = vrot.slane %v8227_v9, 3  ;;  %v8232_v40 = vrot.slane %v8230_v42, 4  ;;  %v17907_v43 = vld [vmem:[%s18019_s12 + $0xf8] sm:$0xff] }
 0x772   : > { %v8826_v1 = vpop.f32.mrf.mxu2 }
 0x773   : > { %21341 = vst [vmem:[#allocation10_spill] sm:$0xff] %v19823_v58  ;;  %15638 = vmatmul.msk.bf16.gmra.mxu0 %vm573_vm1, %v5855_v25  ;;  %v8233_v3 = vor.u32 %v8232_v40, %v8229_v2  ;;  %v8522_v44 = vpop.f32.mrf.mxu1  ;;  %v5856_v2 = vrot.slane %v17907_v43, 1 }
 0x774   : > { %v8523_v8 = vadd.f32 %v19713_v24, %v8522_v44 }
 0x775   : > { %v8234_v16 = vsel %vm8082_vm5, %v8224_v22, %v8233_v3 }
 0x776   : > { %v17100_v34 = vld [vmem:[#allocation2 + $0x90] sm:$0xff]   ;;  %15664 = vmatmul.msk.bf16.gmra.mxu1 %vm573_vm1, %v8234_v16  ;;  %v8963_v18 = vadd.f32 %v8824_v38, %v8523_v8 }
 0x777   : > { %v16592_v63 = vld [vmem:[#allocation2 + $0x90] sm:$0xff]  ;;  %15698 = vmatmul.msk.bf16.gmra.mxu2 %vm573_vm1, %v17100_v34  ;;  %v5857_v34 = vsel %vm1804_vm2, %v5854_v60, %v5856_v2 }
 0x778   : > { %v6083_v47 = vpop.f32.mrf.mxu0  ;;  %v9371_v12 = vshll.u32 %v16592_v63, 16  ;;  %v9643_v13 = vpop.f32.mrf.mxu3  ;;  %v17695_v42 = vld [vmem:[#allocation2 + $0x94] sm:$0xff]   ;;  %v9375_v60 = vshrl.u32 %v16592_v63, 16 }
 0x779   : > { %v19829_v9 = vadd.f32 %v9643_v13, %v8962_v20  ;;  %v8236_v22 = vshrl.u32 %v17695_v42, 16  ;;  %v8239_v11 = vshll.u32 %v17695_v42, 16  ;;  %v16593_v20 = vld [vmem:[#allocation2 + $0x98] sm:$0xff] }
 0x77a   : > { %v8829_v25 = vpop.f32.mrf.mxu2  ;;  %v9373_v45 = vrot.slane %v9371_v12, 1  ;;  %v17101_v42 = vld [vmem:[#allocation2 + $0x98] sm:$0xff]   ;;  %v9379_v43 = vshll.u32 %v16593_v20, 16 }
 0x77b   : > { %21342 = vst [vmem:[#allocation14_spill] sm:$0xff] %v19829_v9  ;;  %v8524_v40 = vpop.f32.mrf.mxu1  ;;  %v8241_v8 = vrot.slane %v8239_v11, 4 }
 0x77c   : > { %v9374_v59 = vsel %vm1133_vm3, %v9369_v23, %v9373_v45  ;;  %v8525_v44 = vadd.f32 %v19713_v24, %v8524_v40  ;;  %v8238_v23 = vrot.slane %v8236_v22, 3  ;;  %v9377_v40 = vor.u32 %v9375_v60, %v9373_v45 }
 0x77d   : > { %15858 = vmatmul.msk.bf16.gmra.mxu3 %vm573_vm1, %v9374_v59 }
 0x77e   : > { %v8964_v59 = vadd.f32 %v8826_v1, %v8525_v44  ;;  %v8242_v58 = vor.u32 %v8241_v8, %v8238_v23  ;;  %v17908_v23 = vld [vmem:[%s18019_s12 + $0x100] sm:$0xff] }
 0x77f   : > { %v5858_v8 = vrot.slane %v17908_v23, 1 }
 0x780   : > { %v6086_v52 = vpop.f32.mrf.mxu0  ;;  %v9646_v12 = vpop.f32.mrf.mxu3  ;;  %v8243_v1 = vsel %vm8082_vm5, %v8233_v3, %v8242_v58 }
 0x781   : > { %v6212_v47 = vadd.f32 %v6086_v52, %v19233_v31  ;;  %v19838_v16 = vadd.f32 %v9646_v12, %v8963_v18  ;;  %v9381_v52 = vrot.slane %v9379_v43, 1  ;;  %v5859_v3 = vsel %vm1804_vm2, %v5856_v2, %v5858_v8 }
 0x782   : > { %v8831_v38 = vpop.f32.mrf.mxu2 }
 0x783   : > { %v7588_v13 = vmax.f32 %v6212_v47, 0.0  ;;  %15639 = vmatmul.msk.bf16.gmra.mxu0 %vm573_vm1, %v5857_v34  ;;  %v8527_v31 = vpop.f32.mrf.mxu1  ;;  %v9382_v12 = vsel %vm1133_vm3, %v9377_v40, %v9381_v52 }
 0x784   : > { %v8528_v22 = vadd.f32 %v19713_v24, %v8527_v31 }
 0x785   : > { %v7732_v9 = vpack.c.bf16 %v7588_v13, %v7588_v13 }
 0x786   : > { %15665 = vmatmul.msk.bf16.gmra.mxu1 %vm573_vm1, %v8243_v1  ;;  %v9383_v1 = vshrl.u32 %v16593_v20, 16 }
 0x787   : > { %7813 = vst.msk [vmem:[#allocation2 + $0xa0] sm:$0xf] %vm7768_vm4, %v7732_v9  ;;  %15699 = vmatmul.msk.bf16.gmra.mxu2 %vm573_vm1, %v17101_v42  ;;  %v8965_v9 = vadd.f32 %v8829_v25, %v8528_v22 }
 0x788   : > { %v6088_v18 = vpop.f32.mrf.mxu0  ;;  %v9648_v34 = vpop.f32.mrf.mxu3 }
 0x789   : > { %v6213_v11 = vadd.f32 %v6088_v18, %v19239_v21  ;;  %v19846_v44 = vadd.f32 %v9648_v34, %v8964_v59 }
 0x78a   : > { %v8834_v47 = vpop.f32.mrf.mxu2 }
 0x78b   : > { %v7589_v63 = vmax.f32 %v6213_v11, 0.0  ;;  %v8529_v21 = vpop.f32.mrf.mxu1 }
 0x78c   : > { %v8530_v60 = vadd.f32 %v19713_v24, %v8529_v21 }
 0x78d   : > { %v7733_v45 = vpack.c.bf16 %v7589_v63, %v7589_v63  ;;  %15859 = vmatmul.msk.bf16.gmra.mxu3 %vm573_vm1, %v9382_v12 }
 0x78e   : > { %v17697_v13 = vld [vmem:[#allocation2 + $0x9c] sm:$0xff]   ;;  %v8966_v11 = vadd.f32 %v8831_v38, %v8530_v60 }
 0x78f   : > { %7814 = vst.msk [vmem:[#allocation2 + $0xa4] sm:$0xf] %vm7768_vm4, %v7733_v45  ;;  %v8245_v59 = vshrl.u32 %v17697_v13, 16  ;;  %v8248_v43 = vshll.u32 %v17697_v13, 16  ;;  %v9385_v13 = vor.u32 %v9383_v1, %v9381_v52 }
 0x790   : > { %v6091_v42 = vpop.f32.mrf.mxu0  ;;  %v9651_v31 = vpop.f32.mrf.mxu3 }
 0x791   : > { %v19855_v25 = vadd.f32 %v9651_v31, %v8965_v9  ;;  %v8247_v40 = vrot.slane %v8245_v59, 3  ;;  %v8250_v22 = vrot.slane %v8248_v43, 4  ;;  %v17909_v31 = vld [vmem:[%s18019_s12 + $0x108] sm:$0xff] }
 0x792   : > { %v8836_v18 = vpop.f32.mrf.mxu2 }
 0x793   : > { %21343 = vst [vmem:[#allocation20_spill] sm:$0xff] %v19855_v25  ;;  %15640 = vmatmul.msk.bf16.gmra.mxu0 %vm573_vm1, %v5859_v3  ;;  %v8251_v34 = vor.u32 %v8250_v22, %v8247_v40  ;;  %v8532_v2 = vpop.f32.mrf.mxu1  ;;  %v5860_v40 = vrot.slane %v17909_v31, 1 }
 0x794   : > { %v8533_v21 = vadd.f32 %v19713_v24, %v8532_v2 }
 0x795   : > { %v8252_v45 = vsel %vm8082_vm5, %v8242_v58, %v8251_v34 }
 0x796   : > { %v17102_v63 = vld [vmem:[#allocation2 + $0xa0] sm:$0xff]   ;;  %15666 = vmatmul.msk.bf16.gmra.mxu1 %vm573_vm1, %v8252_v45  ;;  %v8967_v20 = vadd.f32 %v8834_v47, %v8533_v21 }
 0x797   : > { %v16594_v12 = vld [vmem:[#allocation2 + $0xa0] sm:$0xff]  ;;  %15700 = vmatmul.msk.bf16.gmra.mxu2 %vm573_vm1, %v17102_v63  ;;  %v5861_v63 = vsel %vm1804_vm2, %v5858_v8, %v5860_v40 }
 0x798   : > { %v6093_v23 = vpop.f32.mrf.mxu0  ;;  %v9387_v9 = vshll.u32 %v16594_v12, 16  ;;  %v9653_v42 = vpop.f32.mrf.mxu3  ;;  %v17699_v43 = vld [vmem:[#allocation2 + $0xa4] sm:$0xff]   ;;  %v9391_v8 = vshrl.u32 %v16594_v12, 16 }
 0x799   : > { %v19861_v59 = vadd.f32 %v9653_v42, %v8966_v11  ;;  %v8254_v58 = vshrl.u32 %v17699_v43, 16  ;;  %v8257_v52 = vshll.u32 %v17699_v43, 16  ;;  %v16595_v11 = vld [vmem:[#allocation2 + $0xa8] sm:$0xff] }
 0x79a   : > { %v8839_v3 = vpop.f32.mrf.mxu2  ;;  %v9389_v38 = vrot.slane %v9387_v9, 1  ;;  %v17103_v43 = vld [vmem:[#allocation2 + $0xa8] sm:$0xff]   ;;  %v9395_v31 = vshll.u32 %v16595_v11, 16 }
 0x79b   : > { %21344 = vst [vmem:[#allocation13_spill] sm:$0xff] %v19861_v59  ;;  %v8534_v22 = vpop.f32.mrf.mxu1  ;;  %v8259_v21 = vrot.slane %v8257_v52, 4 }
 0x79c   : > { %v9390_v60 = vsel %vm1133_vm3, %v9385_v13, %v9389_v38  ;;  %v8535_v2 = vadd.f32 %v19713_v24, %v8534_v22  ;;  %v8256_v13 = vrot.slane %v8254_v58, 3  ;;  %v9393_v22 = vor.u32 %v9391_v8, %v9389_v38 }
 0x79d   : > { %15860 = vmatmul.msk.bf16.gmra.mxu3 %vm573_vm1, %v9390_v60 }
 0x79e   : > { %v8968_v60 = vadd.f32 %v8836_v18, %v8535_v2  ;;  %v8260_v25 = vor.u32 %v8259_v21, %v8256_v13  ;;  %v17910_v13 = vld [vmem:[%s18019_s12 + $0x110] sm:$0xff] }
 0x79f   : > { %v5862_v21 = vrot.slane %v17910_v13, 1 }
 0x7a0   : > { %v6096_v1 = vpop.f32.mrf.mxu0  ;;  %v9656_v9 = vpop.f32.mrf.mxu3  ;;  %v8261_v18 = vsel %vm8082_vm5, %v8251_v34, %v8260_v25 }
 0x7a1   : > { %v6216_v23 = vadd.f32 %v6096_v1, %v19279_v17  ;;  %v19870_v45 = vadd.f32 %v9656_v9, %v8967_v20  ;;  %v9397_v1 = vrot.slane %v9395_v31, 1  ;;  %v5863_v34 = vsel %vm1804_vm2, %v5860_v40, %v5862_v21 }
 0x7a2   : > { %v8841_v47 = vpop.f32.mrf.mxu2 }
 0x7a3   : > { %v7592_v42 = vmax.f32 %v6216_v23, 0.0  ;;  %15641 = vmatmul.msk.bf16.gmra.mxu0 %vm573_vm1, %v5861_v63  ;;  %v8537_v17 = vpop.f32.mrf.mxu1  ;;  %v9398_v9 = vsel %vm1133_vm3, %v9393_v22, %v9397_v1 }
 0x7a4   : > { %v8538_v58 = vadd.f32 %v19713_v24, %v8537_v17 }
 0x7a5   : > { %v7736_v59 = vpack.c.bf16 %v7592_v42, %v7592_v42 }
 0x7a6   : > { %15667 = vmatmul.msk.bf16.gmra.mxu1 %vm573_vm1, %v8261_v18  ;;  %v9399_v18 = vshrl.u32 %v16595_v11, 16 }
 0x7a7   : > { %7817 = vst.msk [vmem:[#allocation2 + $0xb0] sm:$0xf] %vm7768_vm4, %v7736_v59  ;;  %15701 = vmatmul.msk.bf16.gmra.mxu2 %vm573_vm1, %v17103_v43  ;;  %v8969_v59 = vadd.f32 %v8839_v3, %v8538_v58 }
 0x7a8   : > { %v6098_v20 = vpop.f32.mrf.mxu0  ;;  %v9658_v63 = vpop.f32.mrf.mxu3 }
 0x7a9   : > { %v6217_v52 = vadd.f32 %v6098_v20, %v19291_v28  ;;  %v19878_v2 = vadd.f32 %v9658_v63, %v8968_v60 }
 0x7aa   : > { %v8844_v23 = vpop.f32.mrf.mxu2 }
 0x7ab   : > { %v7593_v12 = vmax.f32 %v6217_v52, 0.0  ;;  %v8539_v28 = vpop.f32.mrf.mxu1 }
 0x7ac   : > { %v8540_v8 = vadd.f32 %v19713_v24, %v8539_v28 }
 0x7ad   : > { %v7737_v38 = vpack.c.bf16 %v7593_v12, %v7593_v12  ;;  %15861 = vmatmul.msk.bf16.gmra.mxu3 %vm573_vm1, %v9398_v9 }
 0x7ae   : > { %v17701_v42 = vld [vmem:[#allocation2 + $0xac] sm:$0xff]   ;;  %v8970_v52 = vadd.f32 %v8841_v47, %v8540_v8 }
 0x7af   : > { %7818 = vst.msk [vmem:[#allocation2 + $0xb4] sm:$0xf] %vm7768_vm4, %v7737_v38  ;;  %v8263_v60 = vshrl.u32 %v17701_v42, 16  ;;  %v8266_v31 = vshll.u32 %v17701_v42, 16  ;;  %v9401_v42 = vor.u32 %v9399_v18, %v9397_v1 }
 0x7b0   : > { %v6101_v43 = vpop.f32.mrf.mxu0  ;;  %v9661_v17 = vpop.f32.mrf.mxu3 }
 0x7b1   : > { %v19887_v3 = vadd.f32 %v9661_v17, %v8969_v59  ;;  %v8265_v22 = vrot.slane %v8263_v60, 3  ;;  %v8268_v58 = vrot.slane %v8266_v31, 4  ;;  %v17911_v17 = vld [vmem:[%s18019_s12 + $0x118] sm:$0xff] }
 0x7b2   : > { %v8846_v20 = vpop.f32.mrf.mxu2 }
 0x7b3   : > { %21345 = vst [vmem:[#allocation21_spill] sm:$0xff] %v19887_v3  ;;  %15642 = vmatmul.msk.bf16.gmra.mxu0 %vm573_vm1, %v5863_v34  ;;  %v8269_v63 = vor.u32 %v8268_v58, %v8265_v22  ;;  %v8542_v40 = vpop.f32.mrf.mxu1  ;;  %v5864_v22 = vrot.slane %v17911_v17, 1  ;;  %v4222_v58 = vadd.f32 %v19286_v46, %v19351_v15  ;;  %v17105_v15 = vld [vmem:[#allocation2 + $0xb8] sm:$0xff]  }
 0x7b4   : > { %v8543_v28 = vadd.f32 %v19713_v24, %v8542_v40  ;;  %v16597_v40 = vld [vmem:[#allocation2 + $0xb8] sm:$0xff] }
 0x7b5   : > { %v8270_v38 = vsel %vm8082_vm5, %v8260_v25, %v8269_v63  ;;  %v9411_v17 = vshll.u32 %v16597_v40, 16 }
 0x7b6   : > { %v17104_v12 = vld [vmem:[#allocation2 + $0xb0] sm:$0xff]   ;;  %15668 = vmatmul.msk.bf16.gmra.mxu1 %vm573_vm1, %v8270_v38  ;;  %v8971_v11 = vadd.f32 %v8844_v23, %v8543_v28 }
 0x7b7   : > { %v16596_v9 = vld [vmem:[#allocation2 + $0xb0] sm:$0xff]  ;;  %15702 = vmatmul.msk.bf16.gmra.mxu2 %vm573_vm1, %v17104_v12  ;;  %v5865_v12 = vsel %vm1804_vm2, %v5862_v21, %v5864_v22 }
 0x7b8   : > { %v6103_v13 = vpop.f32.mrf.mxu0  ;;  %v9403_v59 = vshll.u32 %v16596_v9, 16  ;;  %v9663_v43 = vpop.f32.mrf.mxu3  ;;  %v17703_v31 = vld [vmem:[#allocation2 + $0xb4] sm:$0xff]   ;;  %v9407_v3 = vshrl.u32 %v16596_v9, 16 }
 0x7b9   : > { %v19893_v60 = vadd.f32 %v9663_v43, %v8970_v52  ;;  %v8272_v25 = vshrl.u32 %v17703_v31, 16  ;;  %v8275_v1 = vshll.u32 %v17703_v31, 16  ;;  %v4848_v31 = vadd.f32 %v19288_v0, %v4222_v58 }
 0x7ba   : > { %v8849_v34 = vpop.f32.mrf.mxu2  ;;  %v9405_v47 = vrot.slane %v9403_v59, 1  ;;  %v9413_v0 = vrot.slane %v9411_v17, 1 }
 0x7bb   : > { %21346 = vst [vmem:[#allocation22_spill] sm:$0xff] %v19893_v60  ;;  %v8544_v18 = vpop.f32.mrf.mxu1  ;;  %v8274_v28 = vrot.slane %v8272_v25, 3  ;;  %v8277_v43 = vrot.slane %v8275_v1, 4 }
 0x7bc   : > { %v9406_v8 = vsel %vm1133_vm3, %v9401_v42, %v9405_v47  ;;  %v8545_v13 = vadd.f32 %v19713_v24, %v8544_v18  ;;  %v5770_v18 = vadd.f32 %v19293_v26, %v4848_v31  ;;  %v9409_v25 = vor.u32 %v9407_v3, %v9405_v47 }
 0x7bd   : > { %15862 = vmatmul.msk.bf16.gmra.mxu3 %vm573_vm1, %v9406_v8  ;;  %v8278_v60 = vor.u32 %v8277_v43, %v8274_v28 }
 0x7be   : > { %v8972_v46 = vadd.f32 %v8846_v20, %v8545_v13 }
 0x7c0   : > { %v6106_v52 = vpop.f32.mrf.mxu0  ;;  %v9666_v38 = vpop.f32.mrf.mxu3 }
 0x7c1   : > { %v6220_v23 = vadd.f32 %v6106_v52, %v19347_v51  ;;  %v19904_v42 = vadd.f32 %v9666_v38, %v8971_v11  ;;  %v8279_v52 = vsel %vm8082_vm5, %v8269_v63, %v8278_v60  ;;  %v17912_v38 = vld [vmem:[%s18019_s12 + $0x120] sm:$0xff]  }
 0x7c2   : > { %v8851_v59 = vpop.f32.mrf.mxu2  ;;  %v5866_v28 = vrot.slane %v17912_v38, 1 }
 0x7c3   : > { %v7596_v8 = vmax.f32 %v6220_v23, 0.0  ;;  %15643 = vmatmul.msk.bf16.gmra.mxu0 %vm573_vm1, %v5865_v12  ;;  %v8547_v51 = vpop.f32.mrf.mxu1  ;;  %v9414_v23 = vsel %vm1133_vm3, %v9409_v25, %v9413_v0 }
 0x7c4   : > { %v8548_v1 = vadd.f32 %v19713_v24, %v8547_v51  ;;  %v5867_v63 = vsel %vm1804_vm2, %v5864_v22, %v5866_v28 }
 0x7c5   : > { %v7740_v21 = vpack.c.bf16 %v7596_v8, %v7596_v8 }
 0x7c6   : > { %15669 = vmatmul.msk.bf16.gmra.mxu1 %vm573_vm1, %v8279_v52  ;;  %v8973_v26 = vadd.f32 %v8849_v34, %v8548_v1  ;;  %v9415_v1 = vshrl.u32 %v16597_v40, 16 }
 0x7c7   : > { %7821 = vst.msk [vmem:[#allocation2 + $0xc0] sm:$0xf] %vm7768_vm4, %v7740_v21  ;;  %15703 = vmatmul.msk.bf16.gmra.mxu2 %vm573_vm1, %v17105_v15 }
 0x7c8   : > { %v6108_v11 = vpop.f32.mrf.mxu0  ;;  %v9668_v20 = vpop.f32.mrf.mxu3 }
 0x7c9   : > { %v6221_v58 = vadd.f32 %v6108_v11, %v5770_v18  ;;  %v19913_v12 = vadd.f32 %v9668_v20, %v8972_v46 }
 0x7ca   : > { %v8854_v9 = vpop.f32.mrf.mxu2 }
 0x7cb   : > { %v7597_v13 = vmax.f32 %v6221_v58, 0.0  ;;  %v8549_v47 = vpop.f32.mrf.mxu1 }
 0x7cc   : > { %v8550_v15 = vadd.f32 %v19713_v24, %v8549_v47 }
 0x7cd   : > { %v7741_v43 = vpack.c.bf16 %v7597_v13, %v7597_v13  ;;  %15863 = vmatmul.msk.bf16.gmra.mxu3 %vm573_vm1, %v9414_v23  ;;  %v9417_v23 = vor.u32 %v9415_v1, %v9413_v0 }
 0x7ce   : > { %v17705_v3 = vld [vmem:[#allocation2 + $0xbc] sm:$0xff]   ;;  %v8974_v11 = vadd.f32 %v8851_v59, %v8550_v15 }
 0x7cf   : > { %7822 = vst.msk [vmem:[#allocation2 + $0xc4] sm:$0xf] %vm7768_vm4, %v7741_v43  ;;  %v8281_v8 = vshrl.u32 %v17705_v3, 16  ;;  %v8284_v46 = vshll.u32 %v17705_v3, 16 }
 0x7d0   : > { %v6111_v31 = vpop.f32.mrf.mxu0  ;;  %v9671_v17 = vpop.f32.mrf.mxu3 }
 0x7d1   : > { %v19922_v34 = vadd.f32 %v9671_v17, %v8973_v26  ;;  %v8283_v18 = vrot.slane %v8281_v8, 3  ;;  %v8286_v51 = vrot.slane %v8284_v46, 4  ;;  %v17913_v8 = vld [vmem:[%s18019_s12 + $0x128] sm:$0xff] }
 0x7d2   : > { %v8856_v21 = vpop.f32.mrf.mxu2  ;;  %v5868_v46 = vrot.slane %v17913_v8, 1 }
 0x7d3   : > { %15644 = vmatmul.msk.bf16.gmra.mxu0 %vm573_vm1, %v5867_v63  ;;  %v8287_v25 = vor.u32 %v8286_v51, %v8283_v18  ;;  %v8552_v22 = vpop.f32.mrf.mxu1  ;;  %v19937_v51 = vld [vmem:[#allocation2 + $0xc8] sm:$0xff] }
 0x7d4   : > { %v8553_v38 = vadd.f32 %v19713_v24, %v8552_v22  ;;  %v4226_v24 = vadd.f32 %v19353_v41, %v19378_v30  ;;  %v5869_v18 = vsel %vm1804_vm2, %v5866_v28, %v5868_v46 }
 0x7d5   : > { %v8288_v13 = vsel %vm8082_vm5, %v8278_v60, %v8287_v25 }
 0x7d6   : > { %v17106_v58 = vld [vmem:[#allocation2 + $0xc0] sm:$0xff]   ;;  %15670 = vmatmul.msk.bf16.gmra.mxu1 %vm573_vm1, %v8288_v13  ;;  %v8975_v40 = vadd.f32 %v8854_v9, %v8553_v38  ;;  %v4852_v13 = vadd.f32 %v19355_v10, %v4226_v24  ;;  %v9427_v38 = vshll.u32 %v19937_v51, 16 }
 0x7d7   : > { %v16598_v20 = vld [vmem:[#allocation2 + $0xc0] sm:$0xff]  ;;  %15704 = vmatmul.msk.bf16.gmra.mxu2 %vm573_vm1, %v17106_v58 }
 0x7d8   : > { %v6113_v52 = vpop.f32.mrf.mxu0  ;;  %v9419_v26 = vshll.u32 %v16598_v20, 16  ;;  %v9673_v43 = vpop.f32.mrf.mxu3  ;;  %v17707_v31 = vld [vmem:[#allocation2 + $0xc4] sm:$0xff]   ;;  %v19942_v9 = vld [vmem:[%s21220_s4] ss:$0 sm:$0xff] }
 0x7d9   : > { %v19928_v3 = vadd.f32 %v9673_v43, %v8974_v11  ;;  %v8290_v60 = vshrl.u32 %v17707_v31, 16  ;;  %v8293_v0 = vshll.u32 %v17707_v31, 16 }
 0x7da   : > { %v8859_v47 = vpop.f32.mrf.mxu2  ;;  %v9421_v59 = vrot.slane %v9419_v26, 1  ;;  %v17107_v26 = vld [vmem:[#allocation2 + $0xc8] sm:$0xff]  }
 0x7db   : > { %v8554_v15 = vpop.f32.mrf.mxu1  ;;  %v8292_v41 = vrot.slane %v8290_v60, 3  ;;  %v8295_v30 = vrot.slane %v8293_v0, 4  ;;  %v9429_v60 = vrot.slane %v9427_v38, 1 }
 0x7dc   : > { %v9422_v63 = vsel %vm1133_vm3, %v9417_v23, %v9421_v59  ;;  %v8555_v11 = vadd.f32 %v19942_v9, %v8554_v15 }
 0x7dd   : > { %15864 = vmatmul.msk.bf16.gmra.mxu3 %vm573_vm1, %v9422_v63  ;;  %v8296_v31 = vor.u32 %v8295_v30, %v8292_v41  ;;  %v9423_v63 = vshrl.u32 %v16598_v20, 16 }
 0x7de   : > { %v8976_v23 = vadd.f32 %v8856_v21, %v8555_v11 }
 0x7df   : > { %v9425_v10 = vor.u32 %v9423_v63, %v9421_v59  ;;  %v8297_v15 = vsel %vm8082_vm5, %v8287_v25, %v8296_v31 }
 0x7e0   : > { %v6116_v17 = vpop.f32.mrf.mxu0  ;;  %v9676_v58 = vpop.f32.mrf.mxu3 }
 0x7e1   : > { %v6224_v1 = vadd.f32 %v6116_v17, %v19374_v36  ;;  %v19946_v22 = vadd.f32 %v9676_v58, %v8975_v40  ;;  %v5774_v36 = vadd.f32 %v19357_v19, %v4852_v13  ;;  %v9430_v11 = vsel %vm1133_vm3, %v9425_v10, %v9429_v60 }
 0x7e2   : > { %v8861_v52 = vpop.f32.mrf.mxu2  ;;  %v9431_v10 = vshrl.u32 %v19937_v51, 16 }
 0x7e3   : > { %v7600_v28 = vmax.f32 %v6224_v1, 0.0  ;;  %15645 = vmatmul.msk.bf16.gmra.mxu0 %vm573_vm1, %v5869_v18  ;;  %v8557_v40 = vpop.f32.mrf.mxu1  ;;  %v17915_v1 = vld [vmem:[%s18019_s12 + $0x130] sm:$0xff] }
 0x7e4   : > { %v8558_v0 = vadd.f32 %v19942_v9, %v8557_v40  ;;  %v5870_v58 = vrot.slane %v17915_v1, 1 }
 0x7e5   : > { %v7744_v43 = vpack.c.bf16 %v7600_v28, %v7600_v28 }
 0x7e6   : > { %15671 = vmatmul.msk.bf16.gmra.mxu1 %vm573_vm1, %v8297_v15  ;;  %v8977_v19 = vadd.f32 %v8859_v47, %v8558_v0  ;;  %v5871_v25 = vsel %vm1804_vm2, %v5868_v46, %v5870_v58 }
 0x7e7   : > { %7825 = vst.msk [vmem:[#allocation2 + $0xd0] sm:$0xf] %vm7768_vm4, %v7744_v43  ;;  %15705 = vmatmul.msk.bf16.gmra.mxu2 %vm573_vm1, %v17107_v26 }
 0x7e8   : > { %v6118_v8 = vpop.f32.mrf.mxu0  ;;  %v9678_v24 = vpop.f32.mrf.mxu3 }
 0x7e9   : > { %v6225_v21 = vadd.f32 %v6118_v8, %v5774_v36  ;;  %v19956_v17 = vadd.f32 %v9678_v24, %v8976_v23 }
 0x7ea   : > { %v8864_v20 = vpop.f32.mrf.mxu2 }
 0x7eb   : > { %v7601_v18 = vmax.f32 %v6225_v21, 0.0  ;;  %v8559_v30 = vpop.f32.mrf.mxu1 }
 0x7ec   : > { %v8560_v26 = vadd.f32 %v19942_v9, %v8559_v30 }
 0x7ed   : > { %v7745_v41 = vpack.c.bf16 %v7601_v18, %v7601_v18  ;;  %15865 = vmatmul.msk.bf16.gmra.mxu3 %vm573_vm1, %v9430_v11  ;;  %v9433_v18 = vor.u32 %v9431_v10, %v9429_v60 }
 0x7ee   : > { %v17709_v59 = vld [vmem:[#allocation2 + $0xcc] sm:$0xff]   ;;  %v8978_v40 = vadd.f32 %v8861_v52, %v8560_v26 }
 0x7ef   : > { %7826 = vst.msk [vmem:[#allocation2 + $0xd4] sm:$0xf] %vm7768_vm4, %v7745_v41  ;;  %v8299_v28 = vshrl.u32 %v17709_v59, 16  ;;  %v8302_v23 = vshll.u32 %v17709_v59, 16 }
 0x7f0   : > { %v6121_v13 = vpop.f32.mrf.mxu0  ;;  %v9681_v38 = vpop.f32.mrf.mxu3 }
 0x7f1   : > { %v19965_v47 = vadd.f32 %v9681_v38, %v8977_v19  ;;  %v8301_v63 = vrot.slane %v8299_v28, 3  ;;  %v8304_v36 = vrot.slane %v8302_v23, 4  ;;  %v4230_v23 = vadd.f32 %v19380_v6, %v19408_v35  ;;  %v16102_v6 = vld [vmem:[%s21219_s3 + $0xc] sm:$0x3] }
 0x7f2   : > { %v8866_v43 = vpop.f32.mrf.mxu2 }
 0x7f3   : > { %15646 = vmatmul.msk.bf16.gmra.mxu0 %vm573_vm1, %v5871_v25  ;;  %v8305_v8 = vor.u32 %v8304_v36, %v8301_v63  ;;  %v8562_v46 = vpop.f32.mrf.mxu1  ;;  %v17916_v25 = vld [vmem:[%s18019_s12 + $0x138] sm:$0xff]  ;;  %v4856_v35 = vadd.f32 %v19382_v57, %v4230_v23 }
 0x7f4   : > { %v8563_v11 = vadd.f32 %v19942_v9, %v8562_v46  ;;  %v5872_v28 = vrot.slane %v17916_v25, 1  ;;  %v19981_v36 = vld [vmem:[#allocation2 + $0xd8] sm:$0xff] }
 0x7f5   : > { %v8306_v15 = vsel %vm8082_vm5, %v8296_v31, %v8305_v8 }
 0x7f6   : > { %v17108_v0 = vld [vmem:[#allocation2 + $0xd0] sm:$0xff]   ;;  %15672 = vmatmul.msk.bf16.gmra.mxu1 %vm573_vm1, %v8306_v15  ;;  %v8979_v51 = vadd.f32 %v8864_v20, %v8563_v11  ;;  %v5873_v63 = vsel %vm1804_vm2, %v5870_v58, %v5872_v28  ;;  %v17109_v11 = vld [vmem:[#allocation2 + $0xd8] sm:$0xff]  }
 0x7f7   : > { %v16600_v21 = vld [vmem:[#allocation2 + $0xd0] sm:$0xff]  ;;  %15706 = vmatmul.msk.bf16.gmra.mxu2 %vm573_vm1, %v17108_v0 }
 0x7f8   : > { %v6123_v24 = vpop.f32.mrf.mxu0  ;;  %v9435_v19 = vshll.u32 %v16600_v21, 16  ;;  %v9683_v1 = vpop.f32.mrf.mxu3  ;;  %v17711_v30 = vld [vmem:[#allocation2 + $0xd4] sm:$0xff]  }
 0x7f9   : > { %v19972_v41 = vadd.f32 %v9683_v1, %v8978_v40  ;;  %v8308_v31 = vshrl.u32 %v17711_v30, 16  ;;  %v8311_v60 = vshll.u32 %v17711_v30, 16 }
 0x7fa   : > { %v8869_v52 = vpop.f32.mrf.mxu2  ;;  %v9437_v59 = vrot.slane %v9435_v19, 1  ;;  %v12504_v19 = vsel %vm682_vm0, %v16102_v6, 0 }
 0x7fb   : > { %v8564_v26 = vpop.f32.mrf.mxu1  ;;  %v8310_v24 = vrot.slane %v8308_v31, 3  ;;  %v8313_v15 = vrot.slane %v8311_v60, 4  ;;  %12513 = vmatpush.bf16.msra.mxu0 %v12504_v19  ;;  %v17787_v19 = vld [vmem:[#allocation2 + $0x2c] sm:$0xf0]  }
 0x7fc   : > { %v9438_v13 = vsel %vm1133_vm3, %v9433_v18, %v9437_v59  ;;  %v8565_v40 = vadd.f32 %v19942_v9, %v8564_v26 }
 0x7fd   : > { %15866 = vmatmul.msk.bf16.gmra.mxu3 %vm573_vm1, %v9438_v13  ;;  %v8314_v30 = vor.u32 %v8313_v15, %v8310_v24  ;;  %v5778_v13 = vadd.f32 %v19384_v56, %v4856_v35 }
 0x7fe   : > { %v8980_v58 = vadd.f32 %v8866_v43, %v8565_v40 }
 0x800   : > { %v6126_v38 = vpop.f32.mrf.mxu0  ;;  %v9686_v10 = vpop.f32.mrf.mxu3 }
 0x801   : > { %v6228_v20 = vadd.f32 %v6126_v38, %v19404_v37  ;;  %v19985_v0 = vadd.f32 %v9686_v10, %v8979_v51  ;;  %v9443_v37 = vshll.u32 %v19981_v36, 16  ;;  %v9439_v51 = vshrl.u32 %v16600_v21, 16 }
 0x802   : > { %v8871_v46 = vpop.f32.mrf.mxu2  ;;  %v8315_v38 = vsel %vm8082_vm5, %v8305_v8, %v8314_v30  ;;  %v5874_v10 = vrot.slane %v19501_v32, 1 }
 0x803   : > { %v7604_v18 = vmax.f32 %v6228_v20, 0.0  ;;  %15647 = vmatmul.msk.bf16.gmra.mxu0 %vm573_vm1, %v5873_v63  ;;  %v8567_v57 = vpop.f32.mrf.mxu1  ;;  %v9441_v31 = vor.u32 %v9439_v51, %v9437_v59  ;;  %v9445_v60 = vrot.slane %v9443_v37, 1 }
 0x804   : > { %v8568_v43 = vadd.f32 %v19942_v9, %v8567_v57  ;;  %v5875_v8 = vsel %vm1804_vm2, %v5872_v28, %v5874_v10  ;;  %v9447_v28 = vshrl.u32 %v19981_v36, 16 }
 0x805   : > { %v7748_v1 = vpack.c.bf16 %v7604_v18, %v7604_v18  ;;  %v9446_v20 = vsel %vm1133_vm3, %v9441_v31, %v9445_v60 }
 0x806   : > { %15673 = vmatmul.msk.bf16.gmra.mxu1 %vm573_vm1, %v8315_v38  ;;  %v8981_v56 = vadd.f32 %v8869_v52, %v8568_v43 }
 0x807   : > { %7829 = vst.msk [vmem:[#allocation2 + $0xe0] sm:$0xf] %vm7768_vm4, %v7748_v1  ;;  %15707 = vmatmul.msk.bf16.gmra.mxu2 %vm573_vm1, %v17109_v11 }
 0x808   : > { %v6128_v25 = vpop.f32.mrf.mxu0  ;;  %v9688_v26 = vpop.f32.mrf.mxu3 }
 0x809   : > { %v6229_v23 = vadd.f32 %v6128_v25, %v5778_v13  ;;  %v19999_v63 = vadd.f32 %v9688_v26, %v8980_v58  ;;  %v17500_v58 = vld [vmem:[#allocation2 + $0x2c] sm:$0x8]  ;;  %v17789_v13 = vld [vmem:[#allocation2 + $0x34] sm:$0xff]  }
 0x80a   : > { %v8874_v40 = vpop.f32.mrf.mxu2  ;;  %v17501_v25 = vor.u32 %v17787_v19, %v17500_v58  ;;  %v12120_v26 = vshrl.u32 %v17789_v13, 16  ;;  %v12123_v38 = vshll.u32 %v17789_v13, 16 }
 0x80b   : > { %v7605_v21 = vmax.f32 %v6229_v23, 0.0  ;;  %v8569_v15 = vpop.f32.mrf.mxu1 }
 0x80c   : > { %v8570_v52 = vadd.f32 %v19942_v9, %v8569_v15  ;;  %v12125_v58 = vrot.slane %v12123_v38, 4 }
 0x80d   : > { %v7749_v24 = vpack.c.bf16 %v7605_v21, %v7605_v21  ;;  %15867 = vmatmul.msk.bf16.gmra.mxu3 %vm573_vm1, %v9446_v20  ;;  %v12112_v21 = vshrl.u32 %v17501_v25, 16 }
 0x80e   : > { %v17713_v59 = vld [vmem:[#allocation2 + $0xdc] sm:$0xff]   ;;  %v8982_v57 = vadd.f32 %v8871_v46, %v8570_v52  ;;  %v12115_v46 = vshll.u32 %v17501_v25, 16 }
 0x80f   : > { %7830 = vst.msk [vmem:[#allocation2 + $0xe4] sm:$0xf] %vm7768_vm4, %v7749_v24  ;;  %v8317_v35 = vshrl.u32 %v17713_v59, 16  ;;  %v8320_v18 = vshll.u32 %v17713_v59, 16  ;;  %v9449_v24 = vor.u32 %v9447_v28, %v9445_v60 }
 0x810   : > { %v6131_v6 = vpop.f32.mrf.mxu0  ;;  %v9691_v11 = vpop.f32.mrf.mxu3 }
 0x811   : > { %v20008_v37 = vadd.f32 %v9691_v11, %v8981_v56  ;;  %v8319_v1 = vrot.slane %v8317_v35, 3  ;;  %v8322_v51 = vrot.slane %v8320_v18, 4  ;;  %v12122_v18 = vrot.slane %v12120_v26, 3  ;;  %v20025_v26 = vld [vmem:[#allocation2 + $0xe8] sm:$0xff] }
 0x812   : > { %v8876_v32 = vpop.f32.mrf.mxu2 }
 0x813   : > { %15648 = vmatmul.msk.bf16.gmra.mxu0 %vm573_vm1, %v5875_v8  ;;  %v20011_v31 = vor.u32 %v8322_v51, %v8319_v1  ;;  %v8572_v56 = vpop.f32.mrf.mxu1  ;;  %v12114_v1 = vrot.slane %v12112_v21, 3  ;;  %v12126_v60 = vor.u32 %v12125_v58, %v12122_v18  ;;  %v17111_v18 = vld [vmem:[#allocation2 + $0xe8] sm:$0xff]   ;;  %v9459_v58 = vshll.u32 %v20025_v26, 16 }
 0x814   : > { %v8573_v15 = vadd.f32 %v19942_v9, %v8572_v56 }
 0x815   : > { %v8324_v10 = vsel %vm8082_vm5, %v8314_v30, %v20011_v31  ;;  %v12117_v30 = vrot.slane %v12115_v46, 4  ;;  %v17791_v46 = vld [vmem:[#allocation2 + $0x3c] sm:$0xff]  }
 0x816   : > { %v17110_v43 = vld [vmem:[#allocation2 + $0xe0] sm:$0xff]   ;;  %15674 = vmatmul.msk.bf16.gmra.mxu1 %vm573_vm1, %v8324_v10  ;;  %v8983_v52 = vadd.f32 %v8874_v40, %v8573_v15  ;;  %v21347_v15 = vld [vmem:[#allocation53_spill] sm:$0xff] }
 0x817   : > { %v16602_v23 = vld [vmem:[#allocation2 + $0xe0] sm:$0xff]  ;;  %15708 = vmatmul.msk.bf16.gmra.mxu2 %vm573_vm1, %v17110_v43  ;;  %v12118_v43 = vor.u32 %v12117_v30, %v12114_v1  ;;  %v12132_v1 = vshll.u32 %v17791_v46, 16  ;;  %v21348_v30 = vld [vmem:[#allocation54_spill] sm:$0xff] }
 0x818   : > { %v6133_v20 = vpop.f32.mrf.mxu0  ;;  %v9451_v59 = vshll.u32 %v16602_v23, 16  ;;  %v9693_v6 = vpop.f32.mrf.mxu3  ;;  %v17715_v19 = vld [vmem:[#allocation2 + $0xe4] sm:$0xff]  }
 0x819   : > { %v20018_v8 = vadd.f32 %v9693_v6, %v8982_v57  ;;  %v8326_v51 = vshrl.u32 %v17715_v19, 16  ;;  %v8329_v13 = vshll.u32 %v17715_v19, 16  ;;  %v4234_v57 = vadd.f32 %v19410_v7, %v19431_v33 }
 0x81a   : > { %v8879_v36 = vpop.f32.mrf.mxu2  ;;  %v9453_v35 = vrot.slane %v9451_v59, 1  ;;  %v12127_v10 = vsel %vm8082_vm5, %v12118_v43, %v12126_v60 }
 0x81b   : > { %v8574_v25 = vpop.f32.mrf.mxu1  ;;  %v8331_v59 = vrot.slane %v8329_v13, 4  ;;  %v4860_v7 = vadd.f32 %v21347_v15, %v4234_v57 }
 0x81c   : > { %v9454_v11 = vsel %vm1133_vm3, %v9449_v24, %v9453_v35  ;;  %v8575_v38 = vadd.f32 %v19942_v9, %v8574_v25  ;;  %v8328_v24 = vrot.slane %v8326_v51, 3 }
 0x81d   : > { %15868 = vmatmul.msk.bf16.gmra.mxu3 %vm573_vm1, %v9454_v11  ;;  %v9455_v11 = vshrl.u32 %v16602_v23, 16  ;;  %v5782_v25 = vadd.f32 %v21348_v30, %v4860_v7 }
 0x81e   : > { %v8984_v6 = vadd.f32 %v8876_v32, %v8575_v38 }
 0x81f   : > { %v9457_v57 = vor.u32 %v9455_v11, %v9453_v35 }
 0x820   : > { %v6136_v28 = vpop.f32.mrf.mxu0  ;;  %v9696_v56 = vpop.f32.mrf.mxu3 }
 0x821   : > { %v6232_v40 = vadd.f32 %v6136_v28, %v19429_v4  ;;  %v20029_v21 = vadd.f32 %v9696_v56, %v8983_v52  ;;  %v8332_v4 = vor.u32 %v8331_v59, %v8328_v24  ;;  %v12129_v52 = vshrl.u32 %v17791_v46, 16 }
 0x822   : > { %v8881_v20 = vpop.f32.mrf.mxu2  ;;  %v9461_v28 = vrot.slane %v9459_v58, 1  ;;  %v12134_v24 = vrot.slane %v12132_v1, 4 }
 0x823   : > { %v7608_v33 = vmax.f32 %v6232_v40, 0.0  ;;  %16103 = vmatmul.msk.bf16.vlgmr.msra.gmra.mxu0 %vm573_vm1, %v12127_v10  ;;  %v8577_v51 = vpop.f32.mrf.mxu1  ;;  %v8333_v40 = vsel %vm8082_vm5, %v20011_v31, %v8332_v4  ;;  %v12131_v10 = vrot.slane %v12129_v52, 3 }
 0x824   : > { %v8578_v32 = vadd.f32 %v19942_v9, %v8577_v51  ;;  %v9462_v15 = vsel %vm1133_vm3, %v9457_v57, %v9461_v28  ;;  %v17793_v51 = vld [vmem:[#allocation2 + $0x44] sm:$0xff]  }
 0x825   : > { %v7752_v19 = vpack.c.bf16 %v7608_v33, %v7608_v33  ;;  %v12135_v7 = vor.u32 %v12134_v24, %v12131_v10  ;;  %v12141_v10 = vshll.u32 %v17793_v51, 16 }
 0x826   : > { %15675 = vmatmul.msk.bf16.gmra.mxu1 %vm573_vm1, %v8333_v40  ;;  %v8985_v46 = vadd.f32 %v8879_v36, %v8578_v32  ;;  %v9463_v32 = vshrl.u32 %v20025_v26, 16  ;;  %v12138_v40 = vshrl.u32 %v17793_v51, 16 }
 0x827   : > { %7833 = vst.msk [vmem:[#allocation2 + $0xf0] sm:$0xf] %vm7768_vm4, %v7752_v19  ;;  %15709 = vmatmul.msk.bf16.gmra.mxu2 %vm573_vm1, %v17111_v18  ;;  %v12136_v36 = vsel %vm8082_vm5, %v12126_v60, %v12135_v7 }
 0x828   : > { %v6138_v13 = vpop.f32.mrf.mxu0  ;;  %v9698_v38 = vpop.f32.mrf.mxu3  ;;  %v9465_v60 = vor.u32 %v9463_v32, %v9461_v28  ;;  %v12140_v26 = vrot.slane %v12138_v40, 3  ;;  %v20063_v32 = vld [vmem:[#allocation2 + $0xf8] sm:$0xff] }
 0x829   : > { %v6233_v43 = vadd.f32 %v6138_v13, %v5782_v25  ;;  %v20041_v23 = vadd.f32 %v9698_v38, %v8984_v6 }
 0x82a   : > { %v8884_v56 = vpop.f32.mrf.mxu2 }
 0x82b   : > { %v7609_v59 = vmax.f32 %v6233_v43, 0.0  ;;  %v8579_v18 = vpop.f32.mrf.mxu1 }
 0x82c   : > { %v8580_v19 = vadd.f32 %v19942_v9, %v8579_v18 }
 0x82d   : > { %v7753_v35 = vpack.c.bf16 %v7609_v59, %v7609_v59  ;;  %15869 = vmatmul.msk.bf16.gmra.mxu3 %vm573_vm1, %v9462_v15 }
 0x82e   : > { %v17717_v33 = vld [vmem:[#allocation2 + $0xec] sm:$0xff]   ;;  %v8986_v13 = vadd.f32 %v8881_v20, %v8580_v19 }
 0x82f   : > { %7834 = vst.msk [vmem:[#allocation2 + $0xf4] sm:$0xf] %vm7768_vm4, %v7753_v35  ;;  %v8335_v6 = vshrl.u32 %v17717_v33, 16  ;;  %v8338_v58 = vshll.u32 %v17717_v33, 16 }
 0x830   : > { %v6141_v31 = vpop.f32.mrf.mxu0  ;;  %v9701_v11 = vpop.f32.mrf.mxu3 }
 0x831   : > { %v20048_v52 = vadd.f32 %v9701_v11, %v8985_v46  ;;  %v8337_v30 = vrot.slane %v8335_v6, 3  ;;  %v8340_v25 = vrot.slane %v8338_v58, 4  ;;  %v12143_v6 = vrot.slane %v12141_v10, 4 }
 0x832   : > { %v8886_v1 = vpop.f32.mrf.mxu2 }
 0x833   : > { %16104 = vmatmul.msk.bf16.gmra.mxu0 %vm573_vm1, %v12136_v36  ;;  %v8341_v57 = vor.u32 %v8340_v25, %v8337_v30  ;;  %v8582_v24 = vpop.f32.mrf.mxu1  ;;  %v21349_v30 = vld [vmem:[#allocation7_spill] sm:$0xff] }
 0x834   : > { %v8583_v35 = vadd.f32 %v19942_v9, %v8582_v24  ;;  %v4238_v25 = vadd.f32 %v21349_v30, %v19453_v29 }
 0x835   : > { %v8342_v46 = vsel %vm8082_vm5, %v8332_v4, %v8341_v57  ;;  %v12144_v4 = vor.u32 %v12143_v6, %v12140_v26  ;;  %v17113_v6 = vld [vmem:[#allocation2 + $0xf8] sm:$0xff]  }
 0x836   : > { %v17112_v43 = vld [vmem:[#allocation2 + $0xf0] sm:$0xff]   ;;  %15676 = vmatmul.msk.bf16.gmra.mxu1 %vm573_vm1, %v8342_v46  ;;  %v8987_v19 = vadd.f32 %v8884_v56, %v8583_v35  ;;  %v21350_v35 = vld [vmem:[#allocation3_spill] sm:$0xff] }
 0x837   : > { %v16604_v38 = vld [vmem:[#allocation2 + $0xf0] sm:$0xff]  ;;  %15710 = vmatmul.msk.bf16.gmra.mxu2 %vm573_vm1, %v17112_v43 }
 0x838   : > { %v6143_v59 = vpop.f32.mrf.mxu0  ;;  %v9467_v15 = vshll.u32 %v16604_v38, 16  ;;  %v9703_v33 = vpop.f32.mrf.mxu3  ;;  %v17719_v58 = vld [vmem:[#allocation2 + $0xf4] sm:$0xff]   ;;  %v9471_v30 = vshrl.u32 %v16604_v38, 16 }
 0x839   : > { %v20056_v18 = vadd.f32 %v9703_v33, %v8986_v13  ;;  %v8344_v28 = vshrl.u32 %v17719_v58, 16  ;;  %v8347_v36 = vshll.u32 %v17719_v58, 16  ;;  %v12145_v59 = vsel %vm8082_vm5, %v12135_v7, %v12144_v4 }
 0x83a   : > { %v8889_v20 = vpop.f32.mrf.mxu2  ;;  %v9469_v31 = vrot.slane %v9467_v15, 1  ;;  %v17795_v15 = vld [vmem:[#allocation2 + $0x4c] sm:$0xff]   ;;  %v4864_v33 = vadd.f32 %v21350_v35, %v4238_v25  ;;  %v9475_v58 = vshll.u32 %v20063_v32, 16 }
 0x83b   : > { %v8584_v51 = vpop.f32.mrf.mxu1  ;;  %v8346_v46 = vrot.slane %v8344_v28, 3 }
 0x83c   : > { %v9470_v11 = vsel %vm1133_vm3, %v9465_v60, %v9469_v31  ;;  %v8585_v43 = vadd.f32 %v19942_v9, %v8584_v51  ;;  %v8349_v60 = vrot.slane %v8347_v36, 4  ;;  %v12150_v51 = vshll.u32 %v17795_v15, 16 }
 0x83d   : > { %15870 = vmatmul.msk.bf16.gmra.mxu3 %vm573_vm1, %v9470_v11  ;;  %v9473_v36 = vor.u32 %v9471_v30, %v9469_v31  ;;  %v9477_v25 = vrot.slane %v9475_v58, 1 }
 0x83e   : > { %v8988_v26 = vadd.f32 %v8886_v1, %v8585_v43 }
 0x840   : > { %v6146_v13 = vpop.f32.mrf.mxu0  ;;  %v9706_v10 = vpop.f32.mrf.mxu3 }
 0x841   : > { %v6236_v40 = vadd.f32 %v6146_v13, %v19451_v14  ;;  %v20067_v56 = vadd.f32 %v9706_v10, %v8987_v19  ;;  %v8350_v14 = vor.u32 %v8349_v60, %v8346_v46  ;;  %v12147_v19 = vshrl.u32 %v17795_v15, 16  ;;  %v21351_v13 = vld [vmem:[#allocation6_spill] sm:$0xff] }
 0x842   : > { %v8891_v24 = vpop.f32.mrf.mxu2  ;;  %v5786_v10 = vadd.f32 %v21351_v13, %v4864_v33  ;;  %v12152_v15 = vrot.slane %v12150_v51, 4 }
 0x843   : > { %v7612_v29 = vmax.f32 %v6236_v40, 0.0  ;;  %16105 = vmatmul.msk.bf16.gmra.mxu0 %vm573_vm1, %v12145_v59  ;;  %v8587_v7 = vpop.f32.mrf.mxu1  ;;  %v8351_v59 = vsel %vm8082_vm5, %v8341_v57, %v8350_v14  ;;  %v12149_v60 = vrot.slane %v12147_v19, 3 }
 0x844   : > { %v8588_v1 = vadd.f32 %v19942_v9, %v8587_v7 }
 0x845   : > { %v7756_v11 = vpack.c.bf16 %v7612_v29, %v7612_v29  ;;  %v9478_v29 = vsel %vm1133_vm3, %v9473_v36, %v9477_v25  ;;  %v12153_v31 = vor.u32 %v12152_v15, %v12149_v60  ;;  %v17797_v36 = vld [vmem:[#allocation2 + $0x54] sm:$0xff]  }
 0x846   : > { %15677 = vmatmul.msk.bf16.gmra.mxu1 %vm573_vm1, %v8351_v59  ;;  %v8989_v33 = vadd.f32 %v8889_v20, %v8588_v1  ;;  %v12156_v15 = vshrl.u32 %v17797_v36, 16 }
 0x847   : > { %7837 = vst.msk [vmem:[#allocation2 + $0x100] sm:$0xf] %vm7768_vm4, %v7756_v11  ;;  %15711 = vmatmul.msk.bf16.gmra.mxu2 %vm573_vm1, %v17113_v6  ;;  %v12154_v20 = vsel %vm8082_vm5, %v12144_v4, %v12153_v31 }
 0x848   : > { %v6148_v28 = vpop.f32.mrf.mxu0  ;;  %v9708_v40 = vpop.f32.mrf.mxu3 }
 0x849   : > { %v6237_v43 = vadd.f32 %v6148_v28, %v5786_v10  ;;  %v20078_v46 = vadd.f32 %v9708_v40, %v8988_v26  ;;  %v9479_v40 = vshrl.u32 %v20063_v32, 16 }
 0x84a   : > { %v8894_v38 = vpop.f32.mrf.mxu2 }
 0x84b   : > { %v7613_v35 = vmax.f32 %v6237_v43, 0.0  ;;  %v8589_v11 = vpop.f32.mrf.mxu1 }
 0x84c   : > { %v8590_v19 = vadd.f32 %v19942_v9, %v8589_v11 }
 0x84d   : > { %v7757_v6 = vpack.c.bf16 %v7613_v35, %v7613_v35  ;;  %15871 = vmatmul.msk.bf16.gmra.mxu3 %vm573_vm1, %v9478_v29  ;;  %v12159_v35 = vshll.u32 %v17797_v36, 16  ;;  %v4242_v36 = vadd.f32 %v19651_v61, %v19471_v55 }
 0x84e   : > { %v17721_v58 = vld [vmem:[#allocation2 + $0xfc] sm:$0xff]   ;;  %v8990_v1 = vadd.f32 %v8891_v24, %v8590_v19 }
 0x84f   : > { %7838 = vst.msk [vmem:[#allocation2 + $0x104] sm:$0xf] %vm7768_vm4, %v7757_v6  ;;  %v8353_v26 = vshrl.u32 %v17721_v58, 16  ;;  %v8356_v30 = vshll.u32 %v17721_v58, 16  ;;  %v9481_v6 = vor.u32 %v9479_v40, %v9477_v25  ;;  %v12161_v19 = vrot.slane %v12159_v35, 4 }
 0x850   : > { %v6151_v57 = vpop.f32.mrf.mxu0  ;;  %v9711_v51 = vpop.f32.mrf.mxu3  ;;  %v4868_v55 = vadd.f32 %v19641_v54, %v4242_v36 }
 0x851   : > { %v20085_v13 = vadd.f32 %v9711_v51, %v8989_v33  ;;  %v8355_v7 = vrot.slane %v8353_v26, 3  ;;  %v8358_v28 = vrot.slane %v8356_v30, 4  ;;  %v12158_v30 = vrot.slane %v12156_v15, 3  ;;  %v17799_v15 = vld [vmem:[#allocation2 + $0x5c] sm:$0xff]  }
 0x852   : > { %v8896_v10 = vpop.f32.mrf.mxu2 }
 0x853   : > { %16106 = vmatmul.msk.bf16.gmra.mxu0 %vm573_vm1, %v12154_v20  ;;  %v20089_v43 = vor.u32 %v8358_v28, %v8355_v7  ;;  %v8592_v33 = vpop.f32.mrf.mxu1 }
 0x854   : > { %v8593_v11 = vadd.f32 %v19942_v9, %v8592_v33 }
 0x855   : > { %v8360_v4 = vsel %vm8082_vm5, %v8350_v14, %v20089_v43  ;;  %v12162_v14 = vor.u32 %v12161_v19, %v12158_v30 }
 0x856   : > { %v17114_v59 = vld [vmem:[#allocation2 + $0x100] sm:$0xff]   ;;  %15678 = vmatmul.msk.bf16.gmra.mxu1 %vm573_vm1, %v8360_v4  ;;  %v8991_v20 = vadd.f32 %v8894_v38, %v8593_v11 }
 0x857   : > { %v16606_v60 = vld [vmem:[#allocation2 + $0x100] sm:$0xff]  ;;  %15712 = vmatmul.msk.bf16.gmra.mxu2 %vm573_vm1, %v17114_v59  ;;  %v20103_v59 = vld [vmem:[#allocation2 + $0x108] sm:$0xff] }
 0x858   : > { %v6153_v29 = vpop.f32.mrf.mxu0  ;;  %v9483_v58 = vshll.u32 %v16606_v60, 16  ;;  %v9713_v24 = vpop.f32.mrf.mxu3  ;;  %v17722_v51 = vld [vmem:[#allocation2 + $0x104] sm:$0xff]   ;;  %v9491_v19 = vshll.u32 %v20103_v59, 16 }
 0x859   : > { %v20096_v57 = vadd.f32 %v9713_v24, %v8990_v1  ;;  %v8362_v25 = vshrl.u32 %v17722_v51, 16  ;;  %v8365_v28 = vshll.u32 %v17722_v51, 16  ;;  %v12165_v51 = vshrl.u32 %v17799_v15, 16 }
 0x85a   : > { %v8899_v26 = vpop.f32.mrf.mxu2  ;;  %v9485_v32 = vrot.slane %v9483_v58, 1  ;;  %v17115_v58 = vld [vmem:[#allocation2 + $0x108] sm:$0xff]   ;;  %v9493_v36 = vrot.slane %v9491_v19, 1 }
 0x85b   : > { %v8594_v1 = vpop.f32.mrf.mxu1  ;;  %v8364_v11 = vrot.slane %v8362_v25, 3  ;;  %v8367_v24 = vrot.slane %v8365_v28, 4 }
 0x85c   : > { %v9486_v7 = vsel %vm1133_vm3, %v9481_v6, %v9485_v32  ;;  %v8595_v35 = vadd.f32 %v19942_v9, %v8594_v1  ;;  %v12163_v6 = vsel %vm8082_vm5, %v12153_v31, %v12162_v14  ;;  %v12168_v1 = vshll.u32 %v17799_v15, 16 }
 0x85d   : > { %15872 = vmatmul.msk.bf16.gmra.mxu3 %vm573_vm1, %v9486_v7  ;;  %v5790_v31 = vadd.f32 %v19656_v39, %v4868_v55 }
 0x85e   : > { %v8992_v30 = vadd.f32 %v8896_v10, %v8595_v35  ;;  %v12167_v10 = vrot.slane %v12165_v51, 3  ;;  %v12170_v15 = vrot.slane %v12168_v1, 4 }
 0x860   : > { %v6156_v40 = vpop.f32.mrf.mxu0  ;;  %v9716_v38 = vpop.f32.mrf.mxu3  ;;  %v20127_v19 = vor.u32 %v12170_v15, %v12167_v10 }
 0x861   : > { %v6240_v33 = vadd.f32 %v6156_v40, %v19469_v50  ;;  %v20107_v29 = vadd.f32 %v9716_v38, %v8991_v20  ;;  %v16815_v50 = vunpack.c.h.b16 %v17115_v58  ;;  %v20113_v20 = vor.u32 %v8367_v24, %v8364_v11 }
 0x862   : > { %v8901_v4 = vpop.f32.mrf.mxu2  ;;  %v9487_v40 = vshrl.u32 %v16606_v60, 16 }
 0x863   : > { %v7616_v61 = vmax.f32 %v6240_v33, 0.0  ;;  %16107 = vmatmul.msk.bf16.gmra.mxu0 %vm573_vm1, %v12163_v6  ;;  %v8597_v54 = vpop.f32.mrf.mxu1  ;;  %v8081_v33 = vpack.c.b16 %v16815_v50, %v16815_v50  ;;  %v8369_v60 = vsel %vm8082_vm5, %v20089_v43, %v20113_v20 }
 0x864   : > { %v9489_v28 = vor.u32 %v9487_v40, %v9485_v32  ;;  %v8598_v35 = vadd.f32 %v19942_v9, %v8597_v54 }
 0x865   : > { %v7760_v7 = vpack.c.bf16 %v7616_v61, %v7616_v61  ;;  %v8371_v55 = vshrl.u32 %v8081_v33, 16  ;;  %v8374_v51 = vshll.u32 %v8081_v33, 16 }
 0x866   : > { %15679 = vmatmul.msk.bf16.gmra.mxu1 %vm573_vm1, %v8369_v60  ;;  %v9494_v32 = vsel %vm1133_vm3, %v9489_v28, %v9493_v36  ;;  %v13927_v28 = vld [vmem:[%s21221_s5] sm:$0x3] }
 0x867   : > { %7841 = vst.msk [vmem:[#allocation2 + $0x110] sm:$0xf] %vm7768_vm4, %v7760_v7  ;;  %15713 = vmatmul.msk.bf16.gmra.mxu2 %vm573_vm1, %v17115_v58  ;;  %v8993_v58 = vadd.f32 %v8899_v26, %v8598_v35  ;;  %v8373_v1 = vrot.slane %v8371_v55, 3  ;;  %v12172_v26 = vsel %vm8082_vm5, %v12162_v14, %v20127_v19  ;;  %v8376_v10 = vrot.slane %v8374_v51, 4  ;;  %v16135_v14 = vld [vmem:[%s21219_s3 + $0xe] sm:$0x3] }
 0x868   : > { %v6158_v25 = vpop.f32.mrf.mxu0  ;;  %v9718_v6 = vpop.f32.mrf.mxu3  ;;  %v13942_v15 = vsel %vm682_vm0, %v13927_v28, 0  ;;  %v17116_v55 = vld [vmem:[#allocation2 + $0x20] sm:$0xff]  }
 0x869   : > { %v6241_v38 = vadd.f32 %v6158_v25, %v5790_v31  ;;  %v20122_v39 = vadd.f32 %v9718_v6, %v8992_v30  ;;  %v16168_v25 = vld [vmem:[%s21219_s3 + $0x10] sm:$0x3]  ;;  %13951 = vmatpush.bf16.msra.mxu3 %v13942_v15 }
 0x86a   : > { %v8904_v11 = vpop.f32.mrf.mxu2  ;;  %v13692_v6 = vsel %vm682_vm0, %v16168_v25, 0  ;;  %v17724_v25 = vld [vmem:[#allocation2 + $0x1c] sm:$0xf0]  }
 0x86b   : > { %v7617_v24 = vmax.f32 %v6241_v38, 0.0  ;;  %v8599_v30 = vpop.f32.mrf.mxu1  ;;  %v17801_v38 = vld [vmem:[#allocation2 + $0x64] sm:$0xff]   ;;  %13701 = vmatpush.bf16.msra.mxu2 %v13692_v6 }
 0x86c   : > { %v8600_v40 = vadd.f32 %v19942_v9, %v8599_v30  ;;  %v12174_v51 = vshrl.u32 %v17801_v38, 16 }
 0x86d   : > { %v7761_v61 = vpack.c.bf16 %v7617_v24, %v7617_v24  ;;  %15873 = vmatmul.msk.bf16.gmra.mxu3 %vm573_vm1, %v9494_v32  ;;  %v12870_v24 = vsel %vm682_vm0, %v16135_v14, 0  ;;  %v9495_v32 = vshrl.u32 %v20103_v59, 16  ;;  %v16608_v14 = vld [vmem:[#allocation2 + $0x20] sm:$0xff] }
 0x86e   : > { %v9077_v7 = vld [vmem:[#allocation2 + $0x110] sm:$0x1]  ;;  %v8994_v60 = vadd.f32 %v8901_v4, %v8600_v40  ;;  %12879 = vmatpush.bf16.msra.mxu1 %v12870_v24 }
 0x86f   : > { %7842 = vst.msk [vmem:[#allocation2 + $0x114] sm:$0xf] %vm7768_vm4, %v7761_v61  ;;  %v9209_v43 = vunpack.c.l.b16 %v9077_v7  ;;  %v8377_v61 = vor.u32 %v8376_v10, %v8373_v1  ;;  %v12177_v7 = vshll.u32 %v17801_v38, 16  ;;  %v12176_v1 = vrot.slane %v12174_v51, 3  ;;  %v17726_v38 = vld [vmem:[#allocation2 + $0x24] sm:$0xff]  }
 0x870   : > { %v6161_v50 = vpop.f32.mrf.mxu0  ;;  %v9721_v31 = vpop.f32.mrf.mxu3  ;;  %v11292_v51 = vshll.u32 %v16608_v14, 16 }
 0x871   : > { %v9242_v54 = vpack.c.b16 %v9209_v43, %v9209_v43  ;;  %v20139_v35 = vadd.f32 %v9721_v31, %v8993_v58  ;;  %v9497_v50 = vor.u32 %v9495_v32, %v9493_v36  ;;  %v8378_v59 = vsel %vm8082_vm5, %v20113_v20, %v8377_v61 }
 0x872   : > { %v8906_v33 = vpop.f32.mrf.mxu2  ;;  %v12179_v10 = vrot.slane %v12177_v7, 4  ;;  %v10074_v32 = vshrl.u32 %v17726_v38, 16 }
 0x873   : > { %16108 = vmatmul.msk.bf16.gmra.mxu0 %vm573_vm1, %v12172_v26  ;;  %v9499_v58 = vshll.u32 %v9242_v54, 16  ;;  %v8602_v43 = vpop.f32.mrf.mxu1  ;;  %v17341_v26 = vld [vmem:[#allocation2 + $0x1c] sm:$0x8] }
 0x874   : > { %v8603_v4 = vadd.f32 %v19942_v9, %v8602_v43  ;;  %v17342_v15 = vor.u32 %v17724_v25, %v17341_v26  ;;  %v12180_v24 = vor.u32 %v12179_v10, %v12176_v1  ;;  %v20158_v43 = vld [vmem:[#allocation2 + $0x28] sm:$0xff] }
 0x875   : > { %v9501_v31 = vrot.slane %v9499_v58, 1  ;;  %v10077_v58 = vshll.u32 %v17726_v38, 16  ;;  %v17803_v26 = vld [vmem:[#allocation2 + $0x6c] sm:$0xff]   ;;  %v11294_v38 = vrot.slane %v11292_v51, 1 }
 0x876   : > { %15680 = vmatmul.msk.bf16.gmra.mxu1 %vm573_vm1, %v8378_v59  ;;  %v8995_v6 = vadd.f32 %v8904_v11, %v8603_v4  ;;  %v10069_v61 = vshll.u32 %v17342_v15, 16  ;;  %v10076_v4 = vrot.slane %v10074_v32, 3  ;;  %v17117_v59 = vld [vmem:[#allocation2 + $0x28] sm:$0xff]  }
 0x877   : > { %15909 = vmatmul.msk.bf16.vlgmr.msrb.gmra.mxu2 %vm573_vm1, %v17116_v55  ;;  %v9502_v36 = vsel %vm1133_vm3, %v9497_v50, %v9501_v31  ;;  %v12181_v31 = vsel %vm8082_vm5, %v20127_v19, %v12180_v24 }
 0x878   : > { %v6163_v30 = vpop.f32.mrf.mxu0  ;;  %v9723_v40 = vpop.f32.mrf.mxu3  ;;  %v10071_v10 = vrot.slane %v10069_v61, 4 }
 0x879   : > { %v20153_v54 = vadd.f32 %v9723_v40, %v8994_v60  ;;  %v10066_v60 = vshrl.u32 %v17342_v15, 16  ;;  %v10079_v40 = vrot.slane %v10077_v58, 4 }
 0x87a   : > { %v8909_v28 = vpop.f32.mrf.mxu2 }
 0x87b   : > { %v8604_v55 = vpop.f32.mrf.mxu1  ;;  %v10068_v1 = vrot.slane %v10066_v60, 3  ;;  %v10080_v15 = vor.u32 %v10079_v40, %v10076_v4 }
 0x87c   : > { %v8605_v7 = vadd.f32 %v19942_v9, %v8604_v55  ;;  %v11290_v55 = vshrl.u32 %v16608_v14, 16  ;;  %v17728_v14 = vld [vmem:[#allocation2 + $0x2c] sm:$0xff]  }
 0x87d   : > { %15874 = vmatmul.msk.bf16.gmra.mxu3 %vm573_vm1, %v9502_v36  ;;  %v11297_v36 = vshll.u32 %v20158_v43, 16  ;;  %v10072_v32 = vor.u32 %v10071_v10, %v10068_v1  ;;  %v10083_v1 = vshrl.u32 %v17728_v14, 16  ;;  %v10086_v10 = vshll.u32 %v17728_v14, 16 }
 0x87e   : > { %v8996_v25 = vadd.f32 %v8906_v33, %v8605_v7  ;;  %v11295_v58 = vor.u32 %v11294_v38, %v11290_v55  ;;  %v16610_v55 = vld [vmem:[#allocation2 + $0x30] sm:$0xff] }
 0x87f   : > { %v10081_v60 = vsel %vm8082_vm5, %v10072_v32, %v10080_v15  ;;  %v10085_v32 = vrot.slane %v10083_v1, 3 }
 0x880   : > { %v6166_v20 = vpop.f32.mrf.mxu0  ;;  %v9726_v30 = vpop.f32.mrf.mxu3 }
 0x881   : > { %v20161_v11 = vadd.f32 %v9726_v30, %v8995_v6  ;;  %v12183_v6 = vshrl.u32 %v17803_v26, 16  ;;  %v12186_v20 = vshll.u32 %v17803_v26, 16 }
 0x882   : > { %v8911_v50 = vpop.f32.mrf.mxu2 }
 0x883   : > { %21352 = vst [vmem:[#allocation31_spill] sm:$0xff] %v20161_v11  ;;  %16109 = vmatmul.msk.bf16.gmra.mxu0 %vm573_vm1, %v12181_v31  ;;  %v8607_v30 = vpop.f32.mrf.mxu1  ;;  %v11299_v11 = vrot.slane %v11297_v36, 1  ;;  %v12185_v7 = vrot.slane %v12183_v6, 3  ;;  %v12188_v4 = vrot.slane %v12186_v20, 4 }
 0x884   : > { %v8608_v31 = vadd.f32 %v19942_v9, %v8607_v30 }
 0x885   : > { %v11300_v26 = vsel %vm1133_vm3, %v11295_v58, %v11299_v11 }
 0x886   : > { %15876 = vmatmul.msk.bf16.vlgmr.msrb.gmra.mxu1 %vm573_vm1, %v10081_v60  ;;  %v8997_v40 = vadd.f32 %v8909_v28, %v8608_v31  ;;  %v10088_v28 = vrot.slane %v10086_v10, 4  ;;  %v17805_v31 = vld [vmem:[#allocation2 + $0x74] sm:$0xff]   ;;  %v11305_v60 = vshll.u32 %v16610_v55, 16 }
 0x887   : > { %15910 = vmatmul.msk.bf16.gmra.mxu2 %vm573_vm1, %v17117_v59  ;;  %v12189_v59 = vor.u32 %v12188_v4, %v12185_v7  ;;  %v17118_v7 = vld [vmem:[#allocation2 + $0x30] sm:$0xff]   ;;  %v12192_v14 = vshrl.u32 %v17805_v31, 16 }
 0x888   : > { %v6168_v19 = vpop.f32.mrf.mxu0  ;;  %v9728_v33 = vpop.f32.mrf.mxu3  ;;  %v10089_v4 = vor.u32 %v10088_v28, %v10085_v32  ;;  %v17730_v32 = vld [vmem:[#allocation2 + $0x34] sm:$0xff]  }
 0x889   : > { %v20170_v61 = vadd.f32 %v9728_v33, %v8996_v25  ;;  %v12190_v20 = vsel %vm8082_vm5, %v12180_v24, %v12189_v59  ;;  %v11301_v33 = vshrl.u32 %v20158_v43, 16  ;;  %v20185_v24 = vld [vmem:[%s21220_s4] ss:$0 sm:$0xff] }
 0x88a   : > { %v8914_v51 = vpop.f32.mrf.mxu2  ;;  %v10090_v43 = vsel %vm8082_vm5, %v10080_v15, %v10089_v4  ;;  %v16611_v15 = vld [vmem:[#allocation2 + $0x38] sm:$0xff] }
 0x88b   : > { %v8609_v38 = vpop.f32.mrf.mxu1 }
 0x88c   : > { %v8610_v25 = vadd.f32 %v19942_v9, %v8609_v38  ;;  %v11303_v38 = vor.u32 %v11301_v33, %v11299_v11  ;;  %v10092_v33 = vshrl.u32 %v17730_v32, 16 }
 0x88d   : > { %16070 = vmatmul.msk.bf16.vlgmr.msrb.gmra.mxu3 %vm573_vm1, %v11300_v26  ;;  %v12195_v26 = vshll.u32 %v17805_v31, 16 }
 0x88e   : > { %v8998_v58 = vadd.f32 %v8911_v50, %v8610_v25 }
 0x890   : > { %v6171_v36 = vpop.f32.mrf.mxu0  ;;  %v9731_v30 = vpop.f32.mrf.mxu3 }
 0x891   : > { %v20176_v19 = vadd.f32 %v9731_v30, %v8997_v40  ;;  %v11307_v36 = vrot.slane %v11305_v60, 1  ;;  %v12194_v30 = vrot.slane %v12192_v14, 3  ;;  %v10095_v60 = vshll.u32 %v17730_v32, 16 }
 0x892   : > { %v8916_v6 = vpop.f32.mrf.mxu2 }
 0x893   : > { %21353 = vst [vmem:[#allocation34_spill] sm:$0xff] %v20176_v19  ;;  %16110 = vmatmul.msk.bf16.gmra.mxu0 %vm573_vm1, %v12190_v20  ;;  %v8612_v9 = vpop.f32.mrf.mxu1  ;;  %v12197_v20 = vrot.slane %v12195_v26, 4  ;;  %v11308_v28 = vsel %vm1133_vm3, %v11303_v38, %v11307_v36  ;;  %v17807_v38 = vld [vmem:[#allocation2 + $0x7c] sm:$0xff]  }
 0x894   : > { %v8613_v50 = vadd.f32 %v20185_v24, %v8612_v9 }
 0x895   : > { %v12198_v31 = vor.u32 %v12197_v20, %v12194_v30  ;;  %v17119_v30 = vld [vmem:[#allocation2 + $0x38] sm:$0xff]   ;;  %v11313_v20 = vshll.u32 %v16611_v15, 16 }
 0x896   : > { %15877 = vmatmul.msk.bf16.gmra.mxu1 %vm573_vm1, %v10090_v43  ;;  %v8999_v11 = vadd.f32 %v8914_v51, %v8613_v50  ;;  %v10094_v51 = vrot.slane %v10092_v33, 3  ;;  %v10097_v50 = vrot.slane %v10095_v60, 4 }
 0x897   : > { %15911 = vmatmul.msk.bf16.gmra.mxu2 %vm573_vm1, %v17118_v7 }
 0x898   : > { %v6173_v40 = vpop.f32.mrf.mxu0  ;;  %v9733_v1 = vpop.f32.mrf.mxu3  ;;  %v10098_v32 = vor.u32 %v10097_v50, %v10094_v51 }
 0x899   : > { %v20189_v10 = vadd.f32 %v9733_v1, %v8998_v58  ;;  %v12199_v1 = vsel %vm8082_vm5, %v12189_v59, %v12198_v31 }
 0x89a   : > { %v8919_v25 = vpop.f32.mrf.mxu2  ;;  %v10099_v60 = vsel %vm8082_vm5, %v10089_v4, %v10098_v32  ;;  %v16612_v4 = vld [vmem:[#allocation2 + $0x40] sm:$0xff] }
 0x89b   : > { %21354 = vst [vmem:[#allocation43_spill] sm:$0xff] %v20189_v10  ;;  %v8614_v7 = vpop.f32.mrf.mxu1  ;;  %v12204_v10 = vshll.u32 %v17807_v38, 16 }
 0x89c   : > { %v8615_v58 = vadd.f32 %v20185_v24, %v8614_v7 }
 0x89d   : > { %16071 = vmatmul.msk.bf16.gmra.mxu3 %vm573_vm1, %v11308_v28  ;;  %v11309_v28 = vshrl.u32 %v16610_v55, 16  ;;  %v12206_v51 = vrot.slane %v12204_v10, 4  ;;  %v17732_v55 = vld [vmem:[#allocation2 + $0x3c] sm:$0xff]  }
 0x89e   : > { %v9000_v43 = vadd.f32 %v8916_v6, %v8615_v58 }
 0x8a0   : > { %v20194_v9 = vpop.f32.mrf.mxu0  ;;  %v9736_v40 = vpop.f32.mrf.mxu3 }
 0x8a1   : > { %21355 = vst [vmem:[#allocation53_spill] sm:$0xff] %v20194_v9  ;;  %v20197_v14 = vadd.f32 %v9736_v40, %v8999_v11  ;;  %v12201_v9 = vshrl.u32 %v17807_v38, 16  ;;  %v11311_v40 = vor.u32 %v11309_v28, %v11307_v36 }
 0x8a2   : > { %v8921_v26 = vpop.f32.mrf.mxu2 }
 0x8a3   : > { %21356 = vst [vmem:[#allocation54_spill] sm:$0xff] %v20197_v14  ;;  %16111 = vmatmul.msk.bf16.gmra.mxu0 %vm573_vm1, %v12199_v1  ;;  %v8617_v7 = vpop.f32.mrf.mxu1  ;;  %v11315_v14 = vrot.slane %v11313_v20, 1  ;;  %v12203_v58 = vrot.slane %v12201_v9, 3  ;;  %v10104_v20 = vshll.u32 %v17732_v55, 16 }
 0x8a4   : > { %v8618_v59 = vadd.f32 %v20185_v24, %v8617_v7 }
 0x8a5   : > { %v11316_v38 = vsel %vm1133_vm3, %v11311_v40, %v11315_v14  ;;  %v12207_v36 = vor.u32 %v12206_v51, %v12203_v58  ;;  %v17809_v40 = vld [vmem:[#allocation2 + $0x84] sm:$0xff]   ;;  %v11317_v51 = vshrl.u32 %v16611_v15, 16 }
 0x8a6   : > { %15878 = vmatmul.msk.bf16.gmra.mxu1 %vm573_vm1, %v10099_v60  ;;  %v9001_v50 = vadd.f32 %v8919_v25, %v8618_v59  ;;  %v10106_v59 = vrot.slane %v10104_v20, 4 }
 0x8a7   : > { %15912 = vmatmul.msk.bf16.gmra.mxu2 %vm573_vm1, %v17119_v30  ;;  %v10101_v30 = vshrl.u32 %v17732_v55, 16  ;;  %v12208_v60 = vsel %vm8082_vm5, %v12198_v31, %v12207_v36  ;;  %v11321_v55 = vshll.u32 %v16612_v4, 16 }
 0x8a8   : > { %v20202_v11 = vpop.f32.mrf.mxu0  ;;  %v9738_v33 = vpop.f32.mrf.mxu3 }
 0x8a9   : > { %21357 = vst [vmem:[#allocation7_spill] sm:$0xff] %v20202_v11  ;;  %v20206_v1 = vadd.f32 %v9738_v33, %v9000_v43  ;;  %v10103_v25 = vrot.slane %v10101_v30, 3 }
 0x8aa   : > { %v8924_v6 = vpop.f32.mrf.mxu2 }
 0x8ab   : > { %21358 = vst [vmem:[#allocation3_spill] sm:$0xff] %v20206_v1  ;;  %v8619_v28 = vpop.f32.mrf.mxu1  ;;  %v10107_v11 = vor.u32 %v10106_v59, %v10103_v25  ;;  %v12213_v1 = vshll.u32 %v17809_v40, 16  ;;  %v17734_v25 = vld [vmem:[#allocation2 + $0x44] sm:$0xff]  }
 0x8ac   : > { %v8620_v43 = vadd.f32 %v20185_v24, %v8619_v28 }
 0x8ad   : > { %16072 = vmatmul.msk.bf16.gmra.mxu3 %vm573_vm1, %v11316_v38  ;;  %v17120_v38 = vld [vmem:[#allocation2 + $0x40] sm:$0xff]   ;;  %v10108_v20 = vsel %vm8082_vm5, %v10098_v32, %v10107_v11  ;;  %v16613_v32 = vld [vmem:[#allocation2 + $0x48] sm:$0xff] }
 0x8ae   : > { %v9002_v58 = vadd.f32 %v8921_v26, %v8620_v43  ;;  %v12215_v43 = vrot.slane %v12213_v1, 4 }
 0x8b0   : > { %v20211_v7 = vpop.f32.mrf.mxu0  ;;  %v9741_v33 = vpop.f32.mrf.mxu3 }
 0x8b1   : > { %21359 = vst [vmem:[#allocation6_spill] sm:$0xff] %v20211_v7  ;;  %v20214_v9 = vadd.f32 %v9741_v33, %v9001_v50  ;;  %v12210_v7 = vshrl.u32 %v17809_v40, 16  ;;  %v11319_v33 = vor.u32 %v11317_v51, %v11315_v14  ;;  %v10110_v51 = vshrl.u32 %v17734_v25, 16 }
 0x8b2   : > { %v8926_v10 = vpop.f32.mrf.mxu2 }
 0x8b3   : > { %21360 = vst [vmem:[#allocation55_spill] sm:$0xff] %v20214_v9  ;;  %16112 = vmatmul.msk.bf16.gmra.mxu0 %vm573_vm1, %v12208_v60  ;;  %v8622_v28 = vpop.f32.mrf.mxu1  ;;  %v11323_v9 = vrot.slane %v11321_v55, 1  ;;  %v12212_v26 = vrot.slane %v12210_v7, 3  ;;  %v10113_v55 = vshll.u32 %v17734_v25, 16  ;;  %v11329_v25 = vshll.u32 %v16613_v32, 16 }
 0x8b4   : > { %v8623_v31 = vadd.f32 %v20185_v24, %v8622_v28 }
 0x8b5   : > { %v11324_v40 = vsel %vm1133_vm3, %v11319_v33, %v11323_v9  ;;  %v12216_v14 = vor.u32 %v12215_v43, %v12212_v26  ;;  %v17811_v33 = vld [vmem:[#allocation2 + $0x8c] sm:$0xff]  }
 0x8b6   : > { %15879 = vmatmul.msk.bf16.gmra.mxu1 %vm573_vm1, %v10108_v20  ;;  %v9003_v59 = vadd.f32 %v8924_v6, %v8623_v31  ;;  %v10112_v6 = vrot.slane %v10110_v51, 3  ;;  %v10115_v31 = vrot.slane %v10113_v55, 4  ;;  %v17121_v43 = vld [vmem:[#allocation2 + $0x48] sm:$0xff]  }
 0x8b7   : > { %15913 = vmatmul.msk.bf16.gmra.mxu2 %vm573_vm1, %v17120_v38  ;;  %v12217_v20 = vsel %vm8082_vm5, %v12207_v36, %v12216_v14 }
 0x8b8   : > { %v20219_v50 = vpop.f32.mrf.mxu0  ;;  %v9743_v30 = vpop.f32.mrf.mxu3 }
 0x8b9   : > { %21361 = vst [vmem:[#allocation56_spill] sm:$0xff] %v20219_v50  ;;  %v20223_v60 = vadd.f32 %v9743_v30, %v9002_v58  ;;  %v11325_v50 = vshrl.u32 %v16612_v4, 16  ;;  %v17736_v4 = vld [vmem:[#allocation2 + $0x4c] sm:$0xff]  }
 0x8ba   : > { %v8929_v15 = vpop.f32.mrf.mxu2 }
 0x8bb   : > { %21362 = vst [vmem:[#allocation57_spill] sm:$0xff] %v20223_v60  ;;  %v8624_v38 = vpop.f32.mrf.mxu1  ;;  %v12222_v60 = vshll.u32 %v17811_v33, 16 }
 0x8bc   : > { %v8625_v58 = vadd.f32 %v20185_v24, %v8624_v38 }
 0x8bd   : > { %16073 = vmatmul.msk.bf16.gmra.mxu3 %vm573_vm1, %v11324_v40  ;;  %v10116_v40 = vor.u32 %v10115_v31, %v10112_v6  ;;  %v12224_v6 = vrot.slane %v12222_v60, 4 }
 0x8be   : > { %v9004_v26 = vadd.f32 %v8926_v10, %v8625_v58 }
 0x8bf   : > { %v10117_v55 = vsel %vm8082_vm5, %v10107_v11, %v10116_v40 }
 0x8c0   : > { %v20228_v28 = vpop.f32.mrf.mxu0  ;;  %v9746_v30 = vpop.f32.mrf.mxu3 }
 0x8c1   : > { %21363 = vst [vmem:[#allocation58_spill] sm:$0xff] %v20228_v28  ;;  %v20231_v7 = vadd.f32 %v9746_v30, %v9003_v59  ;;  %v12219_v28 = vshrl.u32 %v17811_v33, 16  ;;  %v11327_v30 = vor.u32 %v11325_v50, %v11323_v9  ;;  %v10119_v50 = vshrl.u32 %v17736_v4, 16 }
 0x8c2   : > { %v8931_v1 = vpop.f32.mrf.mxu2 }
 0x8c3   : > { %21364 = vst [vmem:[#allocation59_spill] sm:$0xff] %v20231_v7  ;;  %16113 = vmatmul.msk.bf16.gmra.mxu0 %vm573_vm1, %v12217_v20  ;;  %v8627_v38 = vpop.f32.mrf.mxu1  ;;  %v11331_v7 = vrot.slane %v11329_v25, 1  ;;  %v12221_v58 = vrot.slane %v12219_v28, 3 }
 0x8c4   : > { %v8628_v36 = vadd.f32 %v20185_v24, %v8627_v38  ;;  %v16614_v38 = vld [vmem:[#allocation2 + $0x50] sm:$0xff] }
 0x8c5   : > { %v11332_v33 = vsel %vm1133_vm3, %v11327_v30, %v11331_v7  ;;  %v12225_v9 = vor.u32 %v12224_v6, %v12221_v58  ;;  %v17813_v30 = vld [vmem:[#allocation2 + $0x94] sm:$0xff]   ;;  %v11333_v6 = vshrl.u32 %v16613_v32, 16 }
 0x8c6   : > { %15880 = vmatmul.msk.bf16.gmra.mxu1 %vm573_vm1, %v10117_v55  ;;  %v9005_v31 = vadd.f32 %v8929_v15, %v8628_v36  ;;  %v10121_v15 = vrot.slane %v10119_v50, 3 }
 0x8c7   : > { %15914 = vmatmul.msk.bf16.gmra.mxu2 %vm573_vm1, %v17121_v43  ;;  %v10122_v43 = vshll.u32 %v17736_v4, 16  ;;  %v12226_v55 = vsel %vm8082_vm5, %v12216_v14, %v12225_v9  ;;  %v11337_v4 = vshll.u32 %v16614_v38, 16 }
 0x8c8   : > { %v20236_v59 = vpop.f32.mrf.mxu0  ;;  %v9748_v51 = vpop.f32.mrf.mxu3 }
 0x8c9   : > { %21365 = vst [vmem:[#allocation60_spill] sm:$0xff] %v20236_v59  ;;  %v20240_v20 = vadd.f32 %v9748_v51, %v9004_v26  ;;  %v10124_v36 = vrot.slane %v10122_v43, 4 }
 0x8ca   : > { %v8934_v10 = vpop.f32.mrf.mxu2 }
 0x8cb   : > { %21366 = vst [vmem:[#allocation61_spill] sm:$0xff] %v20240_v20  ;;  %v8629_v25 = vpop.f32.mrf.mxu1  ;;  %v10125_v59 = vor.u32 %v10124_v36, %v10121_v15  ;;  %v12228_v20 = vshrl.u32 %v17813_v30, 16 }
 0x8cc   : > { %v8630_v11 = vadd.f32 %v20185_v24, %v8629_v25  ;;  %v12231_v25 = vshll.u32 %v17813_v30, 16 }
 0x8cd   : > { %16074 = vmatmul.msk.bf16.gmra.mxu3 %vm573_vm1, %v11332_v33  ;;  %v17122_v33 = vld [vmem:[#allocation2 + $0x50] sm:$0xff]   ;;  %v10126_v50 = vsel %vm8082_vm5, %v10116_v40, %v10125_v59  ;;  %v16615_v40 = vld [vmem:[#allocation2 + $0x58] sm:$0xff] }
 0x8ce   : > { %v9006_v58 = vadd.f32 %v8931_v1, %v8630_v11  ;;  %v12230_v1 = vrot.slane %v12228_v20, 3  ;;  %v12233_v32 = vrot.slane %v12231_v25, 4  ;;  %v17738_v11 = vld [vmem:[#allocation2 + $0x54] sm:$0xff]  }
 0x8d0   : > { %v20246_v26 = vpop.f32.mrf.mxu0  ;;  %v9751_v51 = vpop.f32.mrf.mxu3 }
 0x8d1   : > { %21367 = vst [vmem:[#allocation62_spill] sm:$0xff] %v20246_v26  ;;  %v20248_v28 = vadd.f32 %v9751_v51, %v9005_v31  ;;  %v11335_v31 = vor.u32 %v11333_v6, %v11331_v7  ;;  %v11339_v51 = vrot.slane %v11337_v4, 1  ;;  %v12234_v7 = vor.u32 %v12233_v32, %v12230_v1 }
 0x8d2   : > { %v8936_v60 = vpop.f32.mrf.mxu2  ;;  %v10131_v6 = vshll.u32 %v17738_v11, 16  ;;  %v11345_v1 = vshll.u32 %v16615_v40, 16 }
 0x8d3   : > { %21368 = vst [vmem:[#allocation63_spill] sm:$0xff] %v20248_v28  ;;  %16114 = vmatmul.msk.bf16.gmra.mxu0 %vm573_vm1, %v12226_v55  ;;  %v8632_v26 = vpop.f32.mrf.mxu1  ;;  %v11340_v30 = vsel %vm1133_vm3, %v11335_v31, %v11339_v51  ;;  %v17123_v31 = vld [vmem:[#allocation2 + $0x58] sm:$0xff]  }
 0x8d4   : > { %v8633_v28 = vadd.f32 %v20185_v24, %v8632_v26  ;;  %v10128_v26 = vshrl.u32 %v17738_v11, 16 }
 0x8d6   : > { %15881 = vmatmul.msk.bf16.gmra.mxu1 %vm573_vm1, %v10126_v50  ;;  %v9007_v36 = vadd.f32 %v8934_v10, %v8633_v28  ;;  %v10130_v50 = vrot.slane %v10128_v26, 3  ;;  %v17815_v10 = vld [vmem:[#allocation2 + $0x9c] sm:$0xff]  }
 0x8d7   : > { %15915 = vmatmul.msk.bf16.gmra.mxu2 %vm573_vm1, %v17122_v33 }
 0x8d8   : > { %v9753_v14 = vpop.f32.mrf.mxu3  ;;  %v20258_v15 = vpop.f32.mrf.mxu0 }
 0x8d9   : > { %v20255_v43 = vadd.f32 %v9753_v14, %v9006_v58  ;;  %21370 = vst [vmem:[#allocation65_spill] sm:$0xff] %v20258_v15  ;;  %v12235_v14 = vsel %vm8082_vm5, %v12225_v9, %v12234_v7  ;;  %v10133_v15 = vrot.slane %v10131_v6, 4 }
 0x8da   : > { %v8939_v55 = vpop.f32.mrf.mxu2 }
 0x8db   : > { %21369 = vst [vmem:[#allocation64_spill] sm:$0xff] %v20255_v43  ;;  %v8634_v4 = vpop.f32.mrf.mxu1  ;;  %v10134_v11 = vor.u32 %v10133_v15, %v10130_v50  ;;  %v12237_v43 = vshrl.u32 %v17815_v10, 16 }
 0x8dc   : > { %v8635_v58 = vadd.f32 %v20185_v24, %v8634_v4  ;;  %v12240_v4 = vshll.u32 %v17815_v10, 16 }
 0x8dd   : > { %16075 = vmatmul.msk.bf16.gmra.mxu3 %vm573_vm1, %v11340_v30  ;;  %v11341_v30 = vshrl.u32 %v16614_v38, 16  ;;  %v10135_v6 = vsel %vm8082_vm5, %v10125_v59, %v10134_v11  ;;  %v16616_v59 = vld [vmem:[#allocation2 + $0x60] sm:$0xff] }
 0x8de   : > { %v9008_v28 = vadd.f32 %v8936_v60, %v8635_v58  ;;  %v12239_v58 = vrot.slane %v12237_v43, 3  ;;  %v12242_v19 = vrot.slane %v12240_v4, 4 }
 0x8e0   : > { %v9756_v33 = vpop.f32.mrf.mxu3  ;;  %v20267_v32 = vpop.f32.mrf.mxu0 }
 0x8e1   : > { %v20263_v20 = vadd.f32 %v9756_v33, %v9007_v36  ;;  %21372 = vst [vmem:[#allocation67_spill] sm:$0xff] %v20267_v32  ;;  %v11343_v33 = vor.u32 %v11341_v30, %v11339_v51  ;;  %v17740_v32 = vld [vmem:[#allocation2 + $0x5c] sm:$0xff]   ;;  %v12243_v51 = vor.u32 %v12242_v19, %v12239_v58 }
 0x8e2   : > { %v8941_v25 = vpop.f32.mrf.mxu2  ;;  %v10137_v50 = vshrl.u32 %v17740_v32, 16  ;;  %v10140_v10 = vshll.u32 %v17740_v32, 16  ;;  %v11353_v32 = vshll.u32 %v16616_v59, 16 }
 0x8e3   : > { %21371 = vst [vmem:[#allocation66_spill] sm:$0xff] %v20263_v20  ;;  %16115 = vmatmul.msk.bf16.gmra.mxu0 %vm573_vm1, %v12235_v14  ;;  %v8637_v36 = vpop.f32.mrf.mxu1  ;;  %v11347_v20 = vrot.slane %v11345_v1, 1 }
 0x8e4   : > { %v8638_v9 = vadd.f32 %v20185_v24, %v8637_v36  ;;  %v12244_v36 = vsel %vm8082_vm5, %v12234_v7, %v12243_v51 }
 0x8e5   : > { %v11348_v15 = vsel %vm1133_vm3, %v11343_v33, %v11347_v20  ;;  %v17817_v33 = vld [vmem:[#allocation2 + $0xa4] sm:$0xff]  }
 0x8e6   : > { %15882 = vmatmul.msk.bf16.gmra.mxu1 %vm573_vm1, %v10135_v6  ;;  %v9009_v38 = vadd.f32 %v8939_v55, %v8638_v9  ;;  %v10139_v55 = vrot.slane %v10137_v50, 3  ;;  %v10142_v9 = vrot.slane %v10140_v10, 4  ;;  %v17124_v6 = vld [vmem:[#allocation2 + $0x60] sm:$0xff]  }
 0x8e7   : > { %15916 = vmatmul.msk.bf16.gmra.mxu2 %vm573_vm1, %v17123_v31 }
 0x8e8   : > { %v9758_v26 = vpop.f32.mrf.mxu3  ;;  %v20277_v31 = vpop.f32.mrf.mxu0  ;;  %v10143_v58 = vor.u32 %v10142_v9, %v10139_v55  ;;  %v17742_v55 = vld [vmem:[#allocation2 + $0x64] sm:$0xff]  }
 0x8e9   : > { %v20272_v14 = vadd.f32 %v9758_v26, %v9008_v28  ;;  %21374 = vst [vmem:[#allocation69_spill] sm:$0xff] %v20277_v31  ;;  %v11349_v26 = vshrl.u32 %v16615_v40, 16  ;;  %v12249_v31 = vshll.u32 %v17817_v33, 16 }
 0x8ea   : > { %v8944_v60 = vpop.f32.mrf.mxu2  ;;  %v10144_v10 = vsel %vm8082_vm5, %v10134_v11, %v10143_v58 }
 0x8eb   : > { %21373 = vst [vmem:[#allocation68_spill] sm:$0xff] %v20272_v14  ;;  %v8639_v1 = vpop.f32.mrf.mxu1  ;;  %v17744_v14 = vld [vmem:[#allocation2 + $0x6c] sm:$0xff]  }
 0x8ec   : > { %v8640_v28 = vadd.f32 %v20185_v24, %v8639_v1 }
 0x8ed   : > { %16076 = vmatmul.msk.bf16.gmra.mxu3 %vm573_vm1, %v11348_v15  ;;  %v12246_v15 = vshrl.u32 %v17817_v33, 16 }
 0x8ee   : > { %v9010_v19 = vadd.f32 %v8941_v25, %v8640_v28  ;;  %v12251_v28 = vrot.slane %v12249_v31, 4 }
 0x8ef   : > { %v12248_v25 = vrot.slane %v12246_v15, 3 }
 0x8f0   : > { %v9761_v30 = vpop.f32.mrf.mxu3 }
 0x8f1   : > { %v20280_v43 = vadd.f32 %v9761_v30, %v9009_v38  ;;  %v11351_v38 = vor.u32 %v11349_v26, %v11347_v20  ;;  %v11355_v30 = vrot.slane %v11353_v32, 1  ;;  %v12252_v20 = vor.u32 %v12251_v28, %v12248_v25  ;;  %v17125_v25 = vld [vmem:[#allocation2 + $0x68] sm:$0xff]  }
 0x8f2   : > { %v8946_v4 = vpop.f32.mrf.mxu2  ;;  %v10146_v26 = vshrl.u32 %v17742_v55, 16  ;;  %v10149_v32 = vshll.u32 %v17742_v55, 16 }
 0x8f3   : > { %21375 = vst [vmem:[#allocation70_spill] sm:$0xff] %v20280_v43  ;;  %16116 = vmatmul.msk.bf16.gmra.mxu0 %vm573_vm1, %v12244_v36  ;;  %v8642_v1 = vpop.f32.mrf.mxu1  ;;  %v20285_v43 = vpop.f32.mrf.mxu0  ;;  %v11356_v33 = vsel %vm1133_vm3, %v11351_v38, %v11355_v30  ;;  %v12253_v31 = vsel %vm8082_vm5, %v12243_v51, %v12252_v20  ;;  %v21380_v51 = vld [vmem:[#allocation4_spill] sm:$0xff] }
 0x8f4   : > { %21376 = vst [vmem:[#allocation71_spill] sm:$0xff] %v20285_v43  ;;  %v8643_v7 = vadd.f32 %v20185_v24, %v8642_v1  ;;  %v16617_v1 = vld [vmem:[#allocation2 + $0x68] sm:$0xff]  ;;  %v10148_v43 = vrot.slane %v10146_v26, 3 }
 0x8f5   : > { %v11361_v28 = vshll.u32 %v16617_v1, 16 }
 0x8f6   : > { %15883 = vmatmul.msk.bf16.gmra.mxu1 %vm573_vm1, %v10144_v10  ;;  %v9011_v9 = vadd.f32 %v8944_v60, %v8643_v7  ;;  %v10151_v10 = vrot.slane %v10149_v32, 4  ;;  %v17819_v60 = vld [vmem:[#allocation2 + $0xac] sm:$0xff]  }
 0x8f7   : > { %15917 = vmatmul.msk.bf16.gmra.mxu2 %vm573_vm1, %v17124_v6 }
 0x8f8   : > { %v9763_v50 = vpop.f32.mrf.mxu3  ;;  %v10152_v55 = vor.u32 %v10151_v10, %v10148_v43 }
 0x8f9   : > { %v20289_v36 = vadd.f32 %v9763_v50, %v9010_v19 }
 0x8fa   : > { %v10835_v40 = vpop.f32.mrf.mxu2 }
 0x8fb   : > { %21377 = vst [vmem:[#allocation72_spill] sm:$0xff] %v20289_v36  ;;  %v8644_v6 = vpop.f32.mrf.mxu1  ;;  %v20298_v7 = vpop.f32.mrf.mxu0  ;;  %v12255_v36 = vshrl.u32 %v17819_v60, 16 }
 0x8fc   : > { %v8645_v11 = vadd.f32 %v20185_v24, %v8644_v6  ;;  %21379 = vst [vmem:[#allocation74_spill] sm:$0xff] %v20298_v7  ;;  %v12258_v24 = vshll.u32 %v17819_v60, 16  ;;  %v10155_v60 = vshrl.u32 %v17744_v14, 16 }
 0x8fd   : > { %16077 = vmatmul.msk.bf16.gmra.mxu3 %vm573_vm1, %v11356_v33  ;;  %v11357_v33 = vshrl.u32 %v16616_v59, 16 }
 0x8fe   : > { %v9012_v38 = vadd.f32 %v8946_v4, %v8645_v11  ;;  %v12257_v4 = vrot.slane %v12255_v36, 3  ;;  %v12260_v11 = vrot.slane %v12258_v24, 4 }
 0x8ff   : > { %v11359_v6 = vor.u32 %v11357_v33, %v11355_v30 }
 0x900   : > { %v9766_v19 = vpop.f32.mrf.mxu3  ;;  %v12261_v30 = vor.u32 %v12260_v11, %v12257_v4  ;;  %v17126_v11 = vld [vmem:[#allocation2 + $0x70] sm:$0xff]  }
 0x901   : > { %v20295_v50 = vadd.f32 %v9766_v19, %v9011_v9  ;;  %v11363_v19 = vrot.slane %v11361_v28, 1 }
 0x902   : > { %v10837_v15 = vpop.f32.mrf.mxu2 }
 0x903   : > { %21378 = vst [vmem:[#allocation73_spill] sm:$0xff] %v20295_v50  ;;  %16117 = vmatmul.msk.bf16.gmra.mxu0 %vm573_vm1, %v12253_v31  ;;  %v10469_v9 = vpop.f32.mrf.mxu1  ;;  %v10153_v50 = vsel %vm8082_vm5, %v10143_v58, %v10152_v55  ;;  %v11364_v43 = vsel %vm1133_vm3, %v11359_v6, %v11363_v19  ;;  %v20308_v10 = vpop.f32.mrf.mxu0  ;;  %v16618_v58 = vld [vmem:[#allocation2 + $0x70] sm:$0xff] }
 0x904   : > { %v10629_v26 = vadd.f32 %v10469_v9, %v21380_v51  ;;  %21382 = vst [vmem:[#allocation75_spill] sm:$0xff] %v20308_v10  ;;  %v17821_v6 = vld [vmem:[#allocation2 + $0xb4] sm:$0xff]   ;;  %v11369_v4 = vshll.u32 %v16618_v58, 16 }
 0x905   : > { %v12267_v10 = vshll.u32 %v17821_v6, 16 }
 0x906   : > { %15884 = vmatmul.msk.bf16.gmra.mxu1 %vm573_vm1, %v10153_v50  ;;  %v10995_v59 = vadd.f32 %v10835_v40, %v10629_v26  ;;  %v12262_v50 = vsel %vm8082_vm5, %v12252_v20, %v12261_v30  ;;  %v10157_v40 = vrot.slane %v10155_v60, 3 }
 0x907   : > { %15918 = vmatmul.msk.bf16.gmra.mxu2 %vm573_vm1, %v17125_v25  ;;  %v10158_v25 = vshll.u32 %v17744_v14, 16 }
 0x908   : > { %v9768_v32 = vpop.f32.mrf.mxu3 }
 0x909   : > { %v20304_v7 = vadd.f32 %v9768_v32, %v9012_v38  ;;  %v21383_v38 = vld [vmem:[#allocation5_spill] sm:$0xff]  ;;  %v10160_v51 = vrot.slane %v10158_v25, 4  ;;  %v11365_v32 = vshrl.u32 %v16617_v1, 16 }
 0x90a   : > { %v10840_v31 = vpop.f32.mrf.mxu2 }
 0x90b   : > { %21381 = vst [vmem:[#allocation4_spill] sm:$0xff] %v20304_v7  ;;  %v10471_v28 = vpop.f32.mrf.mxu1  ;;  %v10161_v14 = vor.u32 %v10160_v51, %v10157_v40  ;;  %v20316_v7 = vpop.f32.mrf.mxu0 }
 0x90c   : > { %v10630_v33 = vadd.f32 %v10471_v28, %v21383_v38  ;;  %21384 = vst [vmem:[#allocation5_spill] sm:$0xff] %v20316_v7  ;;  %v11367_v28 = vor.u32 %v11365_v32, %v11363_v19  ;;  %v11371_v38 = vrot.slane %v11369_v4, 1  ;;  %v16619_v4 = vld [vmem:[#allocation2 + $0x78] sm:$0xff] }
 0x90d   : > { %16078 = vmatmul.msk.bf16.gmra.mxu3 %vm573_vm1, %v11364_v43  ;;  %v12264_v43 = vshrl.u32 %v17821_v6, 16  ;;  %v10162_v25 = vsel %vm8082_vm5, %v10152_v55, %v10161_v14 }
 0x90e   : > { %v10996_v26 = vadd.f32 %v10837_v15, %v10630_v33  ;;  %v12269_v33 = vrot.slane %v12267_v10, 4  ;;  %v11372_v51 = vsel %vm1133_vm3, %v11367_v28, %v11371_v38  ;;  %v17823_v28 = vld [vmem:[#allocation2 + $0xbc] sm:$0xff]  }
 0x90f   : > { %v12266_v15 = vrot.slane %v12264_v43, 3 }
 0x910   : > { %v11657_v9 = vpop.f32.mrf.mxu3 }
 0x911   : > { %v20312_v36 = vadd.f32 %v11657_v9, %v10995_v59  ;;  %v12270_v19 = vor.u32 %v12269_v33, %v12266_v15  ;;  %v11377_v15 = vshll.u32 %v16619_v4, 16 }
 0x912   : > { %v10842_v24 = vpop.f32.mrf.mxu2 }
 0x913   : > { %16118 = vmatmul.msk.bf16.gmra.mxu0 %vm573_vm1, %v12262_v50  ;;  %v10474_v59 = vpop.f32.mrf.mxu1  ;;  %v17746_v50 = vld [vmem:[#allocation2 + $0x74] sm:$0xff]  }
 0x914   : > { %v10631_v20 = vadd.f32 %v10474_v59, %v19742_v49  ;;  %v10164_v6 = vshrl.u32 %v17746_v50, 16  ;;  %v10167_v32 = vshll.u32 %v17746_v50, 16  ;;  %v12271_v59 = vsel %vm8082_vm5, %v12261_v30, %v12270_v19 }
 0x915   : > { %v11373_v50 = vshrl.u32 %v16618_v58, 16 }
 0x916   : > { %15885 = vmatmul.msk.bf16.gmra.mxu1 %vm573_vm1, %v10162_v25  ;;  %v10997_v40 = vadd.f32 %v10840_v31, %v10631_v20  ;;  %v10166_v31 = vrot.slane %v10164_v6, 3  ;;  %v10169_v20 = vrot.slane %v10167_v32, 4  ;;  %v17127_v25 = vld [vmem:[#allocation2 + $0x78] sm:$0xff]  }
 0x917   : > { %15919 = vmatmul.msk.bf16.gmra.mxu2 %vm573_vm1, %v17126_v11  ;;  %v20326_v11 = vpop.f32.mrf.mxu0 }
 0x918   : > { %v11659_v60 = vpop.f32.mrf.mxu3  ;;  %21385 = vst [vmem:[#allocation76_spill] sm:$0xff] %v20326_v11  ;;  %v10170_v33 = vor.u32 %v10169_v20, %v10166_v31  ;;  %v12276_v11 = vshll.u32 %v17823_v28, 16 }
 0x919   : > { %v20321_v9 = vadd.f32 %v11659_v60, %v10996_v26 }
 0x91a   : > { %v10845_v1 = vpop.f32.mrf.mxu2  ;;  %v10171_v6 = vsel %vm8082_vm5, %v10161_v14, %v10170_v33  ;;  %v16620_v14 = vld [vmem:[#allocation2 + $0x80] sm:$0xff] }
 0x91b   : > { %v10476_v49 = vpop.f32.mrf.mxu1 }
 0x91c   : > { %v10632_v55 = vadd.f32 %v10476_v49, %v19750_v5  ;;  %v11379_v49 = vrot.slane %v11377_v15, 1 }
 0x91d   : > { %16079 = vmatmul.msk.bf16.gmra.mxu3 %vm573_vm1, %v11372_v51  ;;  %v12273_v51 = vshrl.u32 %v17823_v28, 16 }
 0x91e   : > { %v10998_v60 = vadd.f32 %v10842_v24, %v10632_v55  ;;  %v12278_v55 = vrot.slane %v12276_v11, 4 }
 0x91f   : > { %v12275_v24 = vrot.slane %v12273_v51, 3  ;;  %v20338_v31 = vpop.f32.mrf.mxu0 }
 0x920   : > { %v11662_v26 = vpop.f32.mrf.mxu3 }
 0x921   : > { %v20329_v43 = vadd.f32 %v11662_v26, %v10997_v40  ;;  %v11375_v40 = vor.u32 %v11373_v50, %v11371_v38  ;;  %v21387_v26 = vld [vmem:[#allocation12_spill] sm:$0xff]  ;;  %v12279_v38 = vor.u32 %v12278_v55, %v12275_v24  ;;  %v11385_v24 = vshll.u32 %v16620_v14, 16 }
 0x922   : > { %v10847_v10 = vpop.f32.mrf.mxu2  ;;  %21388 = vst [vmem:[#allocation12_spill] sm:$0xff] %v20338_v31 }
 0x923   : > { %21386 = vst [vmem:[#allocation77_spill] sm:$0xff] %v20329_v43  ;;  %16119 = vmatmul.msk.bf16.gmra.mxu0 %vm573_vm1, %v12271_v59  ;;  %v10479_v5 = vpop.f32.mrf.mxu1  ;;  %v17748_v43 = vld [vmem:[#allocation2 + $0x7c] sm:$0xff]   ;;  %v11380_v20 = vsel %vm1133_vm3, %v11375_v40, %v11379_v49  ;;  %v11381_v40 = vshrl.u32 %v16619_v4, 16 }
 0x924   : > { %v10633_v7 = vadd.f32 %v10479_v5, %v21387_v26  ;;  %v10173_v28 = vshrl.u32 %v17748_v43, 16  ;;  %v12280_v26 = vsel %vm8082_vm5, %v12270_v19, %v12279_v38 }
 0x926   : > { %15886 = vmatmul.msk.bf16.gmra.mxu1 %vm573_vm1, %v10171_v6  ;;  %v10999_v58 = vadd.f32 %v10845_v1, %v10633_v7  ;;  %v17825_v7 = vld [vmem:[#allocation2 + $0xc4] sm:$0xff]  }
 0x927   : > { %15920 = vmatmul.msk.bf16.gmra.mxu2 %vm573_vm1, %v17127_v25  ;;  %v10176_v25 = vshll.u32 %v17748_v43, 16  ;;  %v20348_v55 = vpop.f32.mrf.mxu0  ;;  %v17128_v43 = vld [vmem:[#allocation2 + $0x80] sm:$0xff]   ;;  %v12282_v31 = vshrl.u32 %v17825_v7, 16 }
 0x928   : > { %v11664_v30 = vpop.f32.mrf.mxu3 }
 0x929   : > { %v20336_v32 = vadd.f32 %v11664_v30, %v10998_v60  ;;  %v21389_v60 = vld [vmem:[#allocation8_spill] sm:$0xff]  ;;  %v10175_v30 = vrot.slane %v10173_v28, 3  ;;  %v10178_v6 = vrot.slane %v10176_v25, 4 }
 0x92a   : > { %v10850_v59 = vpop.f32.mrf.mxu2  ;;  %21390 = vst [vmem:[#allocation8_spill] sm:$0xff] %v20348_v55  ;;  %v17750_v55 = vld [vmem:[#allocation2 + $0x84] sm:$0xff]  }
 0x92b   : > { %v10481_v15 = vpop.f32.mrf.mxu1 }
 0x92c   : > { %v10634_v50 = vadd.f32 %v10481_v15, %v21389_v60  ;;  %v12285_v15 = vshll.u32 %v17825_v7, 16  ;;  %v11383_v60 = vor.u32 %v11381_v40, %v11379_v49  ;;  %v10182_v7 = vshrl.u32 %v17750_v55, 16 }
 0x92d   : > { %16080 = vmatmul.msk.bf16.gmra.mxu3 %vm573_vm1, %v11380_v20  ;;  %v10179_v20 = vor.u32 %v10178_v6, %v10175_v30  ;;  %v10185_v40 = vshll.u32 %v17750_v55, 16 }
 0x92e   : > { %v11000_v1 = vadd.f32 %v10847_v10, %v10634_v50  ;;  %v12284_v10 = vrot.slane %v12282_v31, 3  ;;  %v12287_v50 = vrot.slane %v12285_v15, 4 }
 0x92f   : > { %v10180_v25 = vsel %vm8082_vm5, %v10170_v33, %v10179_v20  ;;  %v16621_v33 = vld [vmem:[#allocation2 + $0x88] sm:$0xff] }
 0x930   : > { %v11667_v5 = vpop.f32.mrf.mxu3  ;;  %v12288_v49 = vor.u32 %v12287_v50, %v12284_v10  ;;  %v11393_v55 = vshll.u32 %v16621_v33, 16  ;;  %v11389_v50 = vshrl.u32 %v16620_v14, 16  ;;  %v17752_v14 = vld [vmem:[#allocation2 + $0x8c] sm:$0xff]  }
 0x931   : > { %v20344_v51 = vadd.f32 %v11667_v5, %v10999_v58  ;;  %v11387_v5 = vrot.slane %v11385_v24, 1 }
 0x932   : > { %v10852_v11 = vpop.f32.mrf.mxu2 }
 0x933   : > { %16120 = vmatmul.msk.bf16.gmra.mxu0 %vm573_vm1, %v12280_v26  ;;  %v10484_v58 = vpop.f32.mrf.mxu1  ;;  %v11388_v6 = vsel %vm1133_vm3, %v11383_v60, %v11387_v5  ;;  %v17827_v60 = vld [vmem:[#allocation2 + $0xcc] sm:$0xff]  }
 0x934   : > { %v10635_v19 = vadd.f32 %v10484_v58, %v19774_v27  ;;  %v20358_v27 = vpop.f32.mrf.mxu0  ;;  %v12289_v58 = vsel %vm8082_vm5, %v12279_v38, %v12288_v49  ;;  %v21394_v38 = vld [vmem:[#allocation11_spill] sm:$0xff] }
 0x935   : > { %21391 = vst [vmem:[#allocation78_spill] sm:$0xff] %v20358_v27  ;;  %v12294_v27 = vshll.u32 %v17827_v60, 16 }
 0x936   : > { %15887 = vmatmul.msk.bf16.gmra.mxu1 %vm573_vm1, %v10180_v25  ;;  %v11001_v30 = vadd.f32 %v10850_v59, %v10635_v19  ;;  %v10184_v59 = vrot.slane %v10182_v7, 3  ;;  %v10187_v19 = vrot.slane %v10185_v40, 4  ;;  %v17129_v25 = vld [vmem:[#allocation2 + $0x88] sm:$0xff]  }
 0x937   : > { %15921 = vmatmul.msk.bf16.gmra.mxu2 %vm573_vm1, %v17128_v43 }
 0x938   : > { %v11669_v28 = vpop.f32.mrf.mxu3  ;;  %v10188_v10 = vor.u32 %v10187_v19, %v10184_v59  ;;  %v12296_v59 = vrot.slane %v12294_v27, 4 }
 0x939   : > { %v20353_v26 = vadd.f32 %v11669_v28, %v11000_v1 }
 0x93a   : > { %v10855_v4 = vpop.f32.mrf.mxu2 }
 0x93b   : > { %v10486_v24 = vpop.f32.mrf.mxu1 }
 0x93c   : > { %v10636_v1 = vadd.f32 %v10486_v24, %v19782_v48  ;;  %v11395_v24 = vrot.slane %v11393_v55, 1  ;;  %v10194_v55 = vshll.u32 %v17752_v14, 16 }
 0x93d   : > { %16081 = vmatmul.msk.bf16.gmra.mxu3 %vm573_vm1, %v11388_v6  ;;  %v12291_v6 = vshrl.u32 %v17827_v60, 16 }
 0x93e   : > { %v11002_v28 = vadd.f32 %v10852_v11, %v10636_v1 }
 0x93f   : > { %v12293_v1 = vrot.slane %v12291_v6, 3 }
 0x940   : > { %v11672_v43 = vpop.f32.mrf.mxu3 }
 0x941   : > { %v20361_v31 = vadd.f32 %v11672_v43, %v11001_v30  ;;  %v11391_v30 = vor.u32 %v11389_v50, %v11387_v5  ;;  %v20366_v43 = vpop.f32.mrf.mxu0  ;;  %v12297_v5 = vor.u32 %v12296_v59, %v12293_v1  ;;  %v11397_v1 = vshrl.u32 %v16621_v33, 16 }
 0x942   : > { %v10857_v15 = vpop.f32.mrf.mxu2  ;;  %21393 = vst [vmem:[#allocation80_spill] sm:$0xff] %v20366_v43 }
 0x943   : > { %21392 = vst [vmem:[#allocation79_spill] sm:$0xff] %v20361_v31  ;;  %16121 = vmatmul.msk.bf16.gmra.mxu0 %vm573_vm1, %v12289_v58  ;;  %v10489_v48 = vpop.f32.mrf.mxu1  ;;  %v10189_v31 = vsel %vm8082_vm5, %v10179_v20, %v10188_v10  ;;  %v11396_v60 = vsel %vm1133_vm3, %v11391_v30, %v11395_v24  ;;  %v12298_v27 = vsel %vm8082_vm5, %v12288_v49, %v12297_v5 }
 0x944   : > { %v10637_v7 = vadd.f32 %v10489_v48, %v21394_v38  ;;  %v16622_v48 = vld [vmem:[#allocation2 + $0x90] sm:$0xff] }
 0x945   : > { %v21396_v38 = vld [vmem:[#allocation9_spill] sm:$0xff]  ;;  %v11401_v59 = vshll.u32 %v16622_v48, 16 }
 0x946   : > { %15888 = vmatmul.msk.bf16.gmra.mxu1 %vm573_vm1, %v10189_v31  ;;  %v11003_v19 = vadd.f32 %v10855_v4, %v10637_v7  ;;  %v10196_v31 = vrot.slane %v10194_v55, 4  ;;  %v17829_v4 = vld [vmem:[#allocation2 + $0xd4] sm:$0xff]  }
 0x947   : > { %15922 = vmatmul.msk.bf16.gmra.mxu2 %vm573_vm1, %v17129_v25  ;;  %v10191_v25 = vshrl.u32 %v17752_v14, 16  ;;  %v17130_v14 = vld [vmem:[#allocation2 + $0x90] sm:$0xff]  }
 0x948   : > { %v11674_v40 = vpop.f32.mrf.mxu3 }
 0x949   : > { %v20370_v58 = vadd.f32 %v11674_v40, %v11002_v28  ;;  %v10193_v43 = vrot.slane %v10191_v25, 3  ;;  %v20379_v7 = vpop.f32.mrf.mxu0 }
 0x94a   : > { %v10860_v11 = vpop.f32.mrf.mxu2  ;;  %21397 = vst [vmem:[#allocation9_spill] sm:$0xff] %v20379_v7 }
 0x94b   : > { %21395 = vst [vmem:[#allocation11_spill] sm:$0xff] %v20370_v58  ;;  %v10491_v50 = vpop.f32.mrf.mxu1  ;;  %v12300_v58 = vshrl.u32 %v17829_v4, 16 }
 0x94c   : > { %v10638_v20 = vadd.f32 %v10491_v50, %v21396_v38  ;;  %v12303_v50 = vshll.u32 %v17829_v4, 16  ;;  %v11399_v38 = vor.u32 %v11397_v1, %v11395_v24 }
 0x94d   : > { %16082 = vmatmul.msk.bf16.gmra.mxu3 %vm573_vm1, %v11396_v60  ;;  %v10197_v60 = vor.u32 %v10196_v31, %v10193_v43 }
 0x94e   : > { %v11004_v30 = vadd.f32 %v10857_v15, %v10638_v20  ;;  %v12302_v15 = vrot.slane %v12300_v58, 3  ;;  %v12305_v33 = vrot.slane %v12303_v50, 4  ;;  %v17754_v20 = vld [vmem:[#allocation2 + $0x94] sm:$0xff]  }
 0x94f   : > { %v10198_v55 = vsel %vm8082_vm5, %v10188_v10, %v10197_v60  ;;  %v10203_v1 = vshll.u32 %v17754_v20, 16  ;;  %v16623_v10 = vld [vmem:[#allocation2 + $0x98] sm:$0xff] }
 0x950   : > { %v11677_v28 = vpop.f32.mrf.mxu3  ;;  %v12306_v24 = vor.u32 %v12305_v33, %v12302_v15  ;;  %v11409_v15 = vshll.u32 %v16623_v10, 16 }
 0x951   : > { %v20376_v40 = vadd.f32 %v11677_v28, %v11003_v19  ;;  %v11403_v28 = vrot.slane %v11401_v59, 1  ;;  %v20389_v4 = vpop.f32.mrf.mxu0 }
 0x952   : > { %v10862_v6 = vpop.f32.mrf.mxu2  ;;  %21399 = vst [vmem:[#allocation82_spill] sm:$0xff] %v20389_v4 }
 0x953   : > { %16122 = vmatmul.msk.bf16.gmra.mxu0 %vm573_vm1, %v12298_v27  ;;  %v10494_v19 = vpop.f32.mrf.mxu1  ;;  %v11404_v31 = vsel %vm1133_vm3, %v11399_v38, %v11403_v28  ;;  %v17831_v38 = vld [vmem:[#allocation2 + $0xdc] sm:$0xff]  }
 0x954   : > { %v10639_v49 = vadd.f32 %v10494_v19, %v19806_v62  ;;  %v10200_v62 = vshrl.u32 %v17754_v20, 16  ;;  %v12307_v19 = vsel %vm8082_vm5, %v12297_v5, %v12306_v24  ;;  %v11405_v20 = vshrl.u32 %v16622_v48, 16  ;;  %v21401_v5 = vld [vmem:[#allocation10_spill] sm:$0xff] }
 0x955   : > { %v12312_v4 = vshll.u32 %v17831_v38, 16  ;;  %v17756_v48 = vld [vmem:[#allocation2 + $0x9c] sm:$0xff]  }
 0x956   : > { %15889 = vmatmul.msk.bf16.gmra.mxu1 %vm573_vm1, %v10198_v55  ;;  %v11005_v43 = vadd.f32 %v10860_v11, %v10639_v49  ;;  %v10202_v11 = vrot.slane %v10200_v62, 3  ;;  %v10205_v49 = vrot.slane %v10203_v1, 4  ;;  %v17131_v55 = vld [vmem:[#allocation2 + $0x98] sm:$0xff]  }
 0x957   : > { %15923 = vmatmul.msk.bf16.gmra.mxu2 %vm573_vm1, %v17130_v14 }
 0x958   : > { %v11679_v25 = vpop.f32.mrf.mxu3  ;;  %v10206_v33 = vor.u32 %v10205_v49, %v10202_v11  ;;  %v12314_v11 = vrot.slane %v12312_v4, 4 }
 0x959   : > { %v20385_v7 = vadd.f32 %v11679_v25, %v11004_v30 }
 0x95a   : > { %v10865_v27 = vpop.f32.mrf.mxu2 }
 0x95b   : > { %21398 = vst [vmem:[#allocation81_spill] sm:$0xff] %v20385_v7  ;;  %v10496_v59 = vpop.f32.mrf.mxu1  ;;  %v20397_v7 = vpop.f32.mrf.mxu0 }
 0x95c   : > { %v10640_v30 = vadd.f32 %v10496_v59, %v19814_v53  ;;  %21400 = vst [vmem:[#allocation83_spill] sm:$0xff] %v20397_v7  ;;  %v11411_v59 = vrot.slane %v11409_v15, 1  ;;  %v10212_v15 = vshll.u32 %v17756_v48, 16 }
 0x95d   : > { %16083 = vmatmul.msk.bf16.gmra.mxu3 %vm573_vm1, %v11404_v31  ;;  %v12309_v31 = vshrl.u32 %v17831_v38, 16 }
 0x95e   : > { %v11006_v25 = vadd.f32 %v10862_v6, %v10640_v30 }
 0x95f   : > { %v12311_v30 = vrot.slane %v12309_v31, 3 }
 0x960   : > { %v11682_v14 = vpop.f32.mrf.mxu3 }
 0x961   : > { %v20393_v58 = vadd.f32 %v11682_v14, %v11005_v43  ;;  %v11407_v43 = vor.u32 %v11405_v20, %v11403_v28  ;;  %v10207_v14 = vsel %vm8082_vm5, %v10197_v60, %v10206_v33  ;;  %v12315_v28 = vor.u32 %v12314_v11, %v12311_v30  ;;  %v21404_v60 = vld [vmem:[#allocation14_spill] sm:$0xff] }
 0x962   : > { %v10867_v50 = vpop.f32.mrf.mxu2  ;;  %v11413_v11 = vshrl.u32 %v16623_v10, 16 }
 0x963   : > { %16123 = vmatmul.msk.bf16.gmra.mxu0 %vm573_vm1, %v12307_v19  ;;  %v10499_v53 = vpop.f32.mrf.mxu1  ;;  %v11412_v38 = vsel %vm1133_vm3, %v11407_v43, %v11411_v59  ;;  %v17833_v43 = vld [vmem:[#allocation2 + $0xe4] sm:$0xff]  }
 0x964   : > { %v10641_v62 = vadd.f32 %v10499_v53, %v21401_v5  ;;  %v16624_v53 = vld [vmem:[#allocation2 + $0xa0] sm:$0xff]  ;;  %v20407_v5 = vpop.f32.mrf.mxu0 }
 0x965   : > { %21403 = vst [vmem:[#allocation84_spill] sm:$0xff] %v20407_v5  ;;  %v12321_v5 = vshll.u32 %v17833_v43, 16 }
 0x966   : > { %15890 = vmatmul.msk.bf16.gmra.mxu1 %vm573_vm1, %v10207_v14  ;;  %v11007_v49 = vadd.f32 %v10865_v27, %v10641_v62  ;;  %v12316_v14 = vsel %vm8082_vm5, %v12306_v24, %v12315_v28  ;;  %v10214_v62 = vrot.slane %v10212_v15, 4 }
 0x967   : > { %15924 = vmatmul.msk.bf16.gmra.mxu2 %vm573_vm1, %v17131_v55  ;;  %v10209_v55 = vshrl.u32 %v17756_v48, 16  ;;  %v11417_v48 = vshll.u32 %v16624_v53, 16  ;;  %v12323_v10 = vrot.slane %v12321_v5, 4 }
 0x968   : > { %v11684_v1 = vpop.f32.mrf.mxu3 }
 0x969   : > { %v20402_v19 = vadd.f32 %v11684_v1, %v11006_v25  ;;  %v10211_v27 = vrot.slane %v10209_v55, 3 }
 0x96a   : > { %v10870_v6 = vpop.f32.mrf.mxu2 }
 0x96b   : > { %21402 = vst [vmem:[#allocation10_spill] sm:$0xff] %v20402_v19  ;;  %v10501_v20 = vpop.f32.mrf.mxu1  ;;  %v10215_v7 = vor.u32 %v10214_v62, %v10211_v27  ;;  %v12318_v19 = vshrl.u32 %v17833_v43, 16 }
 0x96c   : > { %v10642_v25 = vadd.f32 %v10501_v20, %v21404_v60  ;;  %v11419_v60 = vrot.slane %v11417_v48, 1 }
 0x96d   : > { %16084 = vmatmul.msk.bf16.gmra.mxu3 %vm573_vm1, %v11412_v38  ;;  %v17132_v38 = vld [vmem:[#allocation2 + $0xa0] sm:$0xff]   ;;  %v10216_v55 = vsel %vm8082_vm5, %v10206_v33, %v10215_v7  ;;  %v16625_v33 = vld [vmem:[#allocation2 + $0xa8] sm:$0xff] }
 0x96e   : > { %v11008_v30 = vadd.f32 %v10867_v50, %v10642_v25  ;;  %v12320_v50 = vrot.slane %v12318_v19, 3  ;;  %v17758_v25 = vld [vmem:[#allocation2 + $0xa4] sm:$0xff]  }
 0x96f   : > { %v10221_v43 = vshll.u32 %v17758_v25, 16 }
 0x970   : > { %v11687_v1 = vpop.f32.mrf.mxu3 }
 0x971   : > { %v20410_v31 = vadd.f32 %v11687_v1, %v11007_v49  ;;  %v11415_v49 = vor.u32 %v11413_v11, %v11411_v59  ;;  %v12324_v59 = vor.u32 %v12323_v10, %v12320_v50 }
 0x972   : > { %v10872_v4 = vpop.f32.mrf.mxu2 }
 0x973   : > { %21405 = vst [vmem:[#allocation14_spill] sm:$0xff] %v20410_v31  ;;  %16124 = vmatmul.msk.bf16.gmra.mxu0 %vm573_vm1, %v12316_v14  ;;  %v10504_v20 = vpop.f32.mrf.mxu1  ;;  %v20419_v31 = vpop.f32.mrf.mxu0  ;;  %v11420_v62 = vsel %vm1133_vm3, %v11415_v49, %v11419_v60 }
 0x974   : > { %v10643_v1 = vadd.f32 %v10504_v20, %v19838_v16  ;;  %21406 = vst [vmem:[#allocation85_spill] sm:$0xff] %v20419_v31  ;;  %v10218_v16 = vshrl.u32 %v17758_v25, 16  ;;  %v11421_v25 = vshrl.u32 %v16624_v53, 16 }
 0x976   : > { %15891 = vmatmul.msk.bf16.gmra.mxu1 %vm573_vm1, %v10216_v55  ;;  %v11009_v27 = vadd.f32 %v10870_v6, %v10643_v1  ;;  %v10220_v20 = vrot.slane %v10218_v16, 3  ;;  %v17835_v6 = vld [vmem:[#allocation2 + $0xec] sm:$0xff]   ;;  %v11425_v55 = vshll.u32 %v16625_v33, 16 }
 0x977   : > { %15925 = vmatmul.msk.bf16.gmra.mxu2 %vm573_vm1, %v17132_v38  ;;  %v12325_v38 = vsel %vm8082_vm5, %v12315_v28, %v12324_v59  ;;  %v17133_v1 = vld [vmem:[#allocation2 + $0xa8] sm:$0xff]  }
 0x978   : > { %v11689_v24 = vpop.f32.mrf.mxu3  ;;  %v21409_v28 = vld [vmem:[#allocation20_spill] sm:$0xff] }
 0x979   : > { %v20417_v15 = vadd.f32 %v11689_v24, %v11008_v30  ;;  %v10223_v24 = vrot.slane %v10221_v43, 4 }
 0x97a   : > { %v10875_v14 = vpop.f32.mrf.mxu2 }
 0x97b   : > { %v10506_v11 = vpop.f32.mrf.mxu1  ;;  %v20429_v50 = vpop.f32.mrf.mxu0  ;;  %v10224_v10 = vor.u32 %v10223_v24, %v10220_v20 }
 0x97c   : > { %v10644_v30 = vadd.f32 %v10506_v11, %v19846_v44  ;;  %21408 = vst [vmem:[#allocation87_spill] sm:$0xff] %v20429_v50  ;;  %v12330_v44 = vshll.u32 %v17835_v6, 16  ;;  %v11423_v11 = vor.u32 %v11421_v25, %v11419_v60  ;;  %v17760_v50 = vld [vmem:[#allocation2 + $0xac] sm:$0xff]  }
 0x97d   : > { %16085 = vmatmul.msk.bf16.gmra.mxu3 %vm573_vm1, %v11420_v62  ;;  %v12327_v62 = vshrl.u32 %v17835_v6, 16  ;;  %v10225_v31 = vsel %vm8082_vm5, %v10215_v7, %v10224_v10  ;;  %v10227_v24 = vshrl.u32 %v17760_v50, 16  ;;  %v10230_v6 = vshll.u32 %v17760_v50, 16  ;;  %v16626_v7 = vld [vmem:[#allocation2 + $0xb0] sm:$0xff] }
 0x97e   : > { %v11010_v49 = vadd.f32 %v10872_v4, %v10644_v30  ;;  %v11433_v50 = vshll.u32 %v16626_v7, 16 }
 0x97f   : > { %v12329_v30 = vrot.slane %v12327_v62, 3 }
 0x980   : > { %v11692_v48 = vpop.f32.mrf.mxu3 }
 0x981   : > { %v20425_v19 = vadd.f32 %v11692_v48, %v11009_v27  ;;  %v11427_v48 = vrot.slane %v11425_v55, 1 }
 0x982   : > { %v10877_v5 = vpop.f32.mrf.mxu2 }
 0x983   : > { %21407 = vst [vmem:[#allocation86_spill] sm:$0xff] %v20425_v19  ;;  %16125 = vmatmul.msk.bf16.gmra.mxu0 %vm573_vm1, %v12325_v38  ;;  %v10509_v27 = vpop.f32.mrf.mxu1  ;;  %v12332_v19 = vrot.slane %v12330_v44, 4  ;;  %v11428_v20 = vsel %vm1133_vm3, %v11423_v11, %v11427_v48  ;;  %v17837_v11 = vld [vmem:[#allocation2 + $0xf4] sm:$0xff]  }
 0x984   : > { %v10645_v16 = vadd.f32 %v10509_v27, %v21409_v28  ;;  %v10232_v28 = vrot.slane %v10230_v6, 4 }
 0x985   : > { %v12333_v60 = vor.u32 %v12332_v19, %v12329_v30 }
 0x986   : > { %15892 = vmatmul.msk.bf16.gmra.mxu1 %vm573_vm1, %v10225_v31  ;;  %v11011_v53 = vadd.f32 %v10875_v14, %v10645_v16  ;;  %v10229_v14 = vrot.slane %v10227_v24, 3  ;;  %v11429_v16 = vshrl.u32 %v16625_v33, 16 }
 0x987   : > { %15926 = vmatmul.msk.bf16.gmra.mxu2 %vm573_vm1, %v17133_v1  ;;  %v20439_v1 = vpop.f32.mrf.mxu0  ;;  %v12334_v31 = vsel %vm8082_vm5, %v12324_v59, %v12333_v60 }
 0x988   : > { %v11694_v43 = vpop.f32.mrf.mxu3  ;;  %21410 = vst [vmem:[#allocation20_spill] sm:$0xff] %v20439_v1  ;;  %v10233_v30 = vor.u32 %v10232_v28, %v10229_v14  ;;  %v12339_v1 = vshll.u32 %v17837_v11, 16  ;;  %v17762_v14 = vld [vmem:[#allocation2 + $0xb4] sm:$0xff]  }
 0x989   : > { %v20434_v38 = vadd.f32 %v11694_v43, %v11010_v49  ;;  %v21411_v49 = vld [vmem:[#allocation13_spill] sm:$0xff] }
 0x98a   : > { %v10880_v4 = vpop.f32.mrf.mxu2  ;;  %v17134_v43 = vld [vmem:[#allocation2 + $0xb0] sm:$0xff]   ;;  %v10234_v6 = vsel %vm8082_vm5, %v10224_v10, %v10233_v30 }
 0x98b   : > { %v10511_v55 = vpop.f32.mrf.mxu1 }
 0x98c   : > { %v10646_v25 = vadd.f32 %v10511_v55, %v21411_v49  ;;  %v11435_v49 = vrot.slane %v11433_v50, 1  ;;  %v10239_v50 = vshll.u32 %v17762_v14, 16 }
 0x98d   : > { %16086 = vmatmul.msk.bf16.gmra.mxu3 %vm573_vm1, %v11428_v20  ;;  %v12336_v20 = vshrl.u32 %v17837_v11, 16 }
 0x98e   : > { %v11012_v19 = vadd.f32 %v10877_v5, %v10646_v25  ;;  %v12341_v25 = vrot.slane %v12339_v1, 4 }
 0x98f   : > { %v12338_v5 = vrot.slane %v12336_v20, 3 }
 0x990   : > { %v11697_v27 = vpop.f32.mrf.mxu3 }
 0x991   : > { %v20442_v62 = vadd.f32 %v11697_v27, %v11011_v53  ;;  %v11431_v53 = vor.u32 %v11429_v16, %v11427_v48  ;;  %v20447_v27 = vpop.f32.mrf.mxu0  ;;  %v12342_v48 = vor.u32 %v12341_v25, %v12338_v5  ;;  %v10236_v16 = vshrl.u32 %v17762_v14, 16  ;;  %v17135_v5 = vld [vmem:[#allocation2 + $0xb8] sm:$0xff]  }
 0x992   : > { %v10882_v44 = vpop.f32.mrf.mxu2  ;;  %21412 = vst [vmem:[#allocation13_spill] sm:$0xff] %v20447_v27 }
 0x993   : > { %16126 = vmatmul.msk.bf16.gmra.mxu0 %vm573_vm1, %v12334_v31  ;;  %v10514_v55 = vpop.f32.mrf.mxu1  ;;  %v11436_v11 = vsel %vm1133_vm3, %v11431_v53, %v11435_v49  ;;  %v12343_v1 = vsel %vm8082_vm5, %v12333_v60, %v12342_v48  ;;  %v21416_v60 = vld [vmem:[#allocation21_spill] sm:$0xff] }
 0x994   : > { %v10647_v59 = vadd.f32 %v10514_v55, %v19870_v45 }
 0x996   : > { %15893 = vmatmul.msk.bf16.gmra.mxu1 %vm573_vm1, %v10234_v6  ;;  %v11013_v28 = vadd.f32 %v10880_v4, %v10647_v59  ;;  %v10241_v6 = vrot.slane %v10239_v50, 4  ;;  %v17839_v4 = vld [vmem:[#allocation2 + $0xfc] sm:$0xff]  }
 0x997   : > { %15927 = vmatmul.msk.bf16.gmra.mxu2 %vm573_vm1, %v17134_v43  ;;  %v16627_v43 = vld [vmem:[#allocation2 + $0xb8] sm:$0xff]  ;;  %v12345_v27 = vshrl.u32 %v17839_v4, 16 }
 0x998   : > { %v11699_v24 = vpop.f32.mrf.mxu3  ;;  %v11441_v25 = vshll.u32 %v16627_v43, 16 }
 0x999   : > { %v20451_v31 = vadd.f32 %v11699_v24, %v11012_v19  ;;  %v10238_v24 = vrot.slane %v10236_v16, 3  ;;  %v20460_v59 = vpop.f32.mrf.mxu0 }
 0x99a   : > { %v10885_v33 = vpop.f32.mrf.mxu2  ;;  %21415 = vst [vmem:[#allocation90_spill] sm:$0xff] %v20460_v59 }
 0x99b   : > { %21413 = vst [vmem:[#allocation88_spill] sm:$0xff] %v20451_v31  ;;  %v10516_v45 = vpop.f32.mrf.mxu1  ;;  %v10242_v14 = vor.u32 %v10241_v6, %v10238_v24  ;;  %v17764_v31 = vld [vmem:[#allocation2 + $0xbc] sm:$0xff]  }
 0x99c   : > { %v10648_v10 = vadd.f32 %v10516_v45, %v19878_v2  ;;  %v12348_v2 = vshll.u32 %v17839_v4, 16  ;;  %v10245_v4 = vshrl.u32 %v17764_v31, 16 }
 0x99d   : > { %16087 = vmatmul.msk.bf16.gmra.mxu3 %vm573_vm1, %v11436_v11  ;;  %v11437_v11 = vshrl.u32 %v16626_v7, 16 }
 0x99e   : > { %v11014_v53 = vadd.f32 %v10882_v44, %v10648_v10  ;;  %v12347_v44 = vrot.slane %v12345_v27, 3  ;;  %v12350_v10 = vrot.slane %v12348_v2, 4 }
 0x99f   : > { %v11439_v45 = vor.u32 %v11437_v11, %v11435_v49 }
 0x9a0   : > { %v11702_v19 = vpop.f32.mrf.mxu3  ;;  %v12351_v49 = vor.u32 %v12350_v10, %v12347_v44  ;;  %v17136_v10 = vld [vmem:[#allocation2 + $0xc0] sm:$0xff]  }
 0x9a1   : > { %v20457_v55 = vadd.f32 %v11702_v19, %v11013_v28  ;;  %v11443_v19 = vrot.slane %v11441_v25, 1  ;;  %v20470_v6 = vpop.f32.mrf.mxu0 }
 0x9a2   : > { %v10887_v20 = vpop.f32.mrf.mxu2  ;;  %21418 = vst [vmem:[#allocation91_spill] sm:$0xff] %v20470_v6 }
 0x9a3   : > { %21414 = vst [vmem:[#allocation89_spill] sm:$0xff] %v20457_v55  ;;  %16127 = vmatmul.msk.bf16.gmra.mxu0 %vm573_vm1, %v12343_v1  ;;  %v10519_v28 = vpop.f32.mrf.mxu1  ;;  %v10243_v55 = vsel %vm8082_vm5, %v10233_v30, %v10242_v14  ;;  %v11444_v24 = vsel %vm1133_vm3, %v11439_v45, %v11443_v19  ;;  %v16628_v30 = vld [vmem:[#allocation2 + $0xc0] sm:$0xff] }
 0x9a4   : > { %v10649_v16 = vadd.f32 %v10519_v28, %v21416_v60  ;;  %v17841_v45 = vld [vmem:[#allocation2 + $0x104] sm:$0xff]   ;;  %v11449_v44 = vshll.u32 %v16628_v30, 16 }
 0x9a5   : > { %v12357_v6 = vshll.u32 %v17841_v45, 16 }
 0x9a6   : > { %15894 = vmatmul.msk.bf16.gmra.mxu1 %vm573_vm1, %v10243_v55  ;;  %v11015_v7 = vadd.f32 %v10885_v33, %v10649_v16  ;;  %v12352_v55 = vsel %vm8082_vm5, %v12342_v48, %v12351_v49  ;;  %v10247_v33 = vrot.slane %v10245_v4, 3 }
 0x9a7   : > { %15928 = vmatmul.msk.bf16.gmra.mxu2 %vm573_vm1, %v17135_v5  ;;  %v10248_v5 = vshll.u32 %v17764_v31, 16 }
 0x9a8   : > { %v11704_v50 = vpop.f32.mrf.mxu3 }
 0x9a9   : > { %v20466_v59 = vadd.f32 %v11704_v50, %v11014_v53  ;;  %v21419_v53 = vld [vmem:[#allocation22_spill] sm:$0xff]  ;;  %v10250_v60 = vrot.slane %v10248_v5, 4  ;;  %v11445_v50 = vshrl.u32 %v16627_v43, 16 }
 0x9aa   : > { %v10890_v1 = vpop.f32.mrf.mxu2 }
 0x9ab   : > { %21417 = vst [vmem:[#allocation21_spill] sm:$0xff] %v20466_v59  ;;  %v10521_v25 = vpop.f32.mrf.mxu1  ;;  %v10251_v31 = vor.u32 %v10250_v60, %v10247_v33  ;;  %v20478_v59 = vpop.f32.mrf.mxu0 }
 0x9ac   : > { %v10650_v11 = vadd.f32 %v10521_v25, %v21419_v53  ;;  %21420 = vst [vmem:[#allocation22_spill] sm:$0xff] %v20478_v59  ;;  %v11447_v25 = vor.u32 %v11445_v50, %v11443_v19  ;;  %v11451_v53 = vrot.slane %v11449_v44, 1  ;;  %v16629_v44 = vld [vmem:[#allocation2 + $0xc8] sm:$0xff] }
 0x9ad   : > { %16088 = vmatmul.msk.bf16.gmra.mxu3 %vm573_vm1, %v11444_v24  ;;  %v12354_v24 = vshrl.u32 %v17841_v45, 16  ;;  %v10252_v5 = vsel %vm8082_vm5, %v10242_v14, %v10251_v31  ;;  %v17768_v59 = vld [vmem:[#allocation2 + $0xcc] sm:$0xff]  }
 0x9ae   : > { %v11016_v16 = vadd.f32 %v10887_v20, %v10650_v11  ;;  %v12359_v11 = vrot.slane %v12357_v6, 4  ;;  %v11452_v60 = vsel %vm1133_vm3, %v11447_v25, %v11451_v53  ;;  %v17843_v25 = vld [vmem:[#allocation2 + $0x10c] sm:$0xff]  }
 0x9af   : > { %v12356_v20 = vrot.slane %v12354_v24, 3 }
 0x9b0   : > { %v11707_v28 = vpop.f32.mrf.mxu3 }
 0x9b1   : > { %v20474_v27 = vadd.f32 %v11707_v28, %v11015_v7  ;;  %v12360_v19 = vor.u32 %v12359_v11, %v12356_v20  ;;  %v11457_v20 = vshll.u32 %v16629_v44, 16 }
 0x9b2   : > { %v10892_v2 = vpop.f32.mrf.mxu2 }
 0x9b3   : > { %16128 = vmatmul.msk.bf16.gmra.mxu0 %vm573_vm1, %v12352_v55  ;;  %v10524_v7 = vpop.f32.mrf.mxu1  ;;  %v17766_v55 = vld [vmem:[#allocation2 + $0xc4] sm:$0xff]  }
 0x9b4   : > { %v10651_v48 = vadd.f32 %v10524_v7, %v19904_v42  ;;  %v10254_v45 = vshrl.u32 %v17766_v55, 16  ;;  %v10257_v50 = vshll.u32 %v17766_v55, 16  ;;  %v12361_v7 = vsel %vm8082_vm5, %v12351_v49, %v12360_v19 }
 0x9b5   : > { %v11453_v55 = vshrl.u32 %v16628_v30, 16 }
 0x9b6   : > { %15895 = vmatmul.msk.bf16.gmra.mxu1 %vm573_vm1, %v10252_v5  ;;  %v11017_v33 = vadd.f32 %v10890_v1, %v10651_v48  ;;  %v10256_v1 = vrot.slane %v10254_v45, 3  ;;  %v10259_v48 = vrot.slane %v10257_v50, 4  ;;  %v17137_v5 = vld [vmem:[#allocation2 + $0xc8] sm:$0xff]  }
 0x9b7   : > { %15929 = vmatmul.msk.bf16.gmra.mxu2 %vm573_vm1, %v17136_v10  ;;  %v20488_v10 = vpop.f32.mrf.mxu0 }
 0x9b8   : > { %v11709_v4 = vpop.f32.mrf.mxu3  ;;  %21421 = vst [vmem:[#allocation92_spill] sm:$0xff] %v20488_v10  ;;  %v10260_v11 = vor.u32 %v10259_v48, %v10256_v1  ;;  %v12366_v10 = vshll.u32 %v17843_v25, 16 }
 0x9b9   : > { %v20483_v28 = vadd.f32 %v11709_v4, %v11016_v16 }
 0x9ba   : > { %v10895_v43 = vpop.f32.mrf.mxu2  ;;  %v10261_v45 = vsel %vm8082_vm5, %v10251_v31, %v10260_v11  ;;  %v16630_v31 = vld [vmem:[#allocation2 + $0xd0] sm:$0xff] }
 0x9bb   : > { %v10526_v42 = vpop.f32.mrf.mxu1 }
 0x9bc   : > { %v10652_v14 = vadd.f32 %v10526_v42, %v19913_v12  ;;  %v11459_v42 = vrot.slane %v11457_v20, 1 }
 0x9bd   : > { %16089 = vmatmul.msk.bf16.gmra.mxu3 %vm573_vm1, %v11452_v60  ;;  %v12363_v60 = vshrl.u32 %v17843_v25, 16  ;;  %v10266_v25 = vshll.u32 %v17768_v59, 16 }
 0x9be   : > { %v11018_v4 = vadd.f32 %v10892_v2, %v10652_v14  ;;  %v12368_v14 = vrot.slane %v12366_v10, 4 }
 0x9bf   : > { %v12365_v2 = vrot.slane %v12363_v60, 3  ;;  %v20500_v1 = vpop.f32.mrf.mxu0 }
 0x9c0   : > { %v11712_v16 = vpop.f32.mrf.mxu3 }
 0x9c1   : > { %v20491_v24 = vadd.f32 %v11712_v16, %v11017_v33  ;;  %v11455_v33 = vor.u32 %v11453_v55, %v11451_v53  ;;  %v12369_v53 = vor.u32 %v12368_v14, %v12365_v2 }
 0x9c2   : > { %v10897_v6 = vpop.f32.mrf.mxu2 }
 0x9c3   : > { %16129 = vmatmul.msk.bf16.gmra.mxu0 %vm573_vm1, %v12361_v7  ;;  %v10529_v12 = vpop.f32.mrf.mxu1  ;;  %v11460_v48 = vsel %vm1133_vm3, %v11455_v33, %v11459_v42  ;;  %v12370_v60 = vsel %vm8082_vm5, %v12360_v19, %v12369_v53 }
 0x9c4   : > { %v10653_v16 = vadd.f32 %v10529_v12, %v19922_v34  ;;  %v10263_v34 = vshrl.u32 %v17768_v59, 16  ;;  %v17138_v59 = vld [vmem:[#allocation2 + $0xd0] sm:$0xff]  }
 0x9c6   : > { %15896 = vmatmul.msk.bf16.gmra.mxu1 %vm573_vm1, %v10261_v45  ;;  %v11019_v30 = vadd.f32 %v10895_v43, %v10653_v16  ;;  %v10265_v12 = vrot.slane %v10263_v34, 3  ;;  %v17845_v43 = vld [vmem:[#allocation2 + $0x114] sm:$0xff]   ;;  %v11461_v16 = vshrl.u32 %v16629_v44, 16  ;;  %v11465_v45 = vshll.u32 %v16630_v31, 16 }
 0x9c7   : > { %15930 = vmatmul.msk.bf16.gmra.mxu2 %vm573_vm1, %v17137_v5  ;;  %v20510_v2 = vpop.f32.mrf.mxu0 }
 0x9c8   : > { %v11714_v49 = vpop.f32.mrf.mxu3  ;;  %21422 = vst [vmem:[#allocation93_spill] sm:$0xff] %v20510_v2  ;;  %v17770_v2 = vld [vmem:[#allocation2 + $0xd4] sm:$0xff]  }
 0x9c9   : > { %v20498_v50 = vadd.f32 %v11714_v49, %v11018_v4  ;;  %v10268_v49 = vrot.slane %v10266_v25, 4 }
 0x9ca   : > { %v10900_v7 = vpop.f32.mrf.mxu2 }
 0x9cb   : > { %v10531_v5 = vpop.f32.mrf.mxu1  ;;  %v10269_v14 = vor.u32 %v10268_v49, %v10265_v12 }
 0x9cc   : > { %v10654_v4 = vadd.f32 %v10531_v5, %v19928_v3  ;;  %v12375_v3 = vshll.u32 %v17845_v43, 16  ;;  %v11463_v5 = vor.u32 %v11461_v16, %v11459_v42  ;;  %v10275_v16 = vshll.u32 %v17770_v2, 16 }
 0x9cd   : > { %16090 = vmatmul.msk.bf16.gmra.mxu3 %vm573_vm1, %v11460_v48  ;;  %v12372_v48 = vshrl.u32 %v17845_v43, 16  ;;  %v10270_v25 = vsel %vm8082_vm5, %v10260_v11, %v10269_v14  ;;  %v10272_v43 = vshrl.u32 %v17770_v2, 16  ;;  %v16631_v11 = vld [vmem:[#allocation2 + $0xd8] sm:$0xff] }
 0x9ce   : > { %v11020_v33 = vadd.f32 %v10897_v6, %v10654_v4  ;;  %v12377_v4 = vrot.slane %v12375_v3, 4  ;;  %v11473_v2 = vshll.u32 %v16631_v11, 16 }
 0x9cf   : > { %v12374_v6 = vrot.slane %v12372_v48, 3 }
 0x9d0   : > { %v11717_v20 = vpop.f32.mrf.mxu3 }
 0x9d1   : > { %v20506_v55 = vadd.f32 %v11717_v20, %v11019_v30  ;;  %v11467_v20 = vrot.slane %v11465_v45, 1  ;;  %v12378_v42 = vor.u32 %v12377_v4, %v12374_v6  ;;  %v11469_v4 = vshrl.u32 %v16630_v31, 16  ;;  %v17772_v31 = vld [vmem:[#allocation2 + $0xdc] sm:$0xff]  }
 0x9d2   : > { %v10902_v10 = vpop.f32.mrf.mxu2 }
 0x9d3   : > { %16130 = vmatmul.msk.bf16.gmra.mxu0 %vm573_vm1, %v12370_v60  ;;  %v10534_v30 = vpop.f32.mrf.mxu1  ;;  %v11468_v49 = vsel %vm1133_vm3, %v11463_v5, %v11467_v20  ;;  %v17847_v5 = vld [vmem:[#allocation2 + $0x11c] sm:$0xff]  }
 0x9d4   : > { %v10655_v19 = vadd.f32 %v10534_v30, %v19946_v22  ;;  %v20520_v22 = vpop.f32.mrf.mxu0  ;;  %v12379_v30 = vsel %vm8082_vm5, %v12369_v53, %v12378_v42 }
 0x9d5   : > { %21423 = vst [vmem:[#allocation94_spill] sm:$0xff] %v20520_v22  ;;  %v12384_v22 = vshll.u32 %v17847_v5, 16 }
 0x9d6   : > { %15897 = vmatmul.msk.bf16.gmra.mxu1 %vm573_vm1, %v10270_v25  ;;  %v11021_v12 = vadd.f32 %v10900_v7, %v10655_v19  ;;  %v10274_v7 = vrot.slane %v10272_v43, 3  ;;  %v10277_v19 = vrot.slane %v10275_v16, 4  ;;  %v17139_v25 = vld [vmem:[#allocation2 + $0xd8] sm:$0xff]  }
 0x9d7   : > { %15931 = vmatmul.msk.bf16.gmra.mxu2 %vm573_vm1, %v17138_v59 }
 0x9d8   : > { %v11719_v34 = vpop.f32.mrf.mxu3  ;;  %v10278_v6 = vor.u32 %v10277_v19, %v10274_v7  ;;  %v12386_v7 = vrot.slane %v12384_v22, 4 }
 0x9d9   : > { %v20515_v60 = vadd.f32 %v11719_v34, %v11020_v33 }
 0x9da   : > { %v10905_v44 = vpop.f32.mrf.mxu2  ;;  %v10279_v16 = vsel %vm8082_vm5, %v10269_v14, %v10278_v6 }
 0x9db   : > { %v10536_v45 = vpop.f32.mrf.mxu1 }
 0x9dc   : > { %v10656_v33 = vadd.f32 %v10536_v45, %v19956_v17  ;;  %v11475_v45 = vrot.slane %v11473_v2, 1 }
 0x9dd   : > { %16091 = vmatmul.msk.bf16.gmra.mxu3 %vm573_vm1, %v11468_v49  ;;  %v12381_v49 = vshrl.u32 %v17847_v5, 16 }
 0x9de   : > { %v11022_v34 = vadd.f32 %v10902_v10, %v10656_v33 }
 0x9df   : > { %v12383_v33 = vrot.slane %v12381_v49, 3 }
 0x9e0   : > { %v11722_v59 = vpop.f32.mrf.mxu3 }
 0x9e1   : > { %v20523_v48 = vadd.f32 %v11722_v59, %v11021_v12  ;;  %v11471_v12 = vor.u32 %v11469_v4, %v11467_v20  ;;  %v20528_v59 = vpop.f32.mrf.mxu0  ;;  %v20537_v20 = vor.u32 %v12386_v7, %v12383_v33  ;;  %v16632_v4 = vld [vmem:[#allocation2 + $0xe0] sm:$0xff] }
 0x9e2   : > { %v10907_v3 = vpop.f32.mrf.mxu2  ;;  %21424 = vst [vmem:[#allocation95_spill] sm:$0xff] %v20528_v59  ;;  %v11481_v33 = vshll.u32 %v16632_v4, 16  ;;  %v17140_v7 = vld [vmem:[#allocation2 + $0xe0] sm:$0xff]  }
 0x9e3   : > { %16131 = vmatmul.msk.bf16.gmra.mxu0 %vm573_vm1, %v12379_v30  ;;  %v10539_v17 = vpop.f32.mrf.mxu1  ;;  %v11476_v5 = vsel %vm1133_vm3, %v11471_v12, %v11475_v45  ;;  %v12388_v49 = vsel %vm8082_vm5, %v12378_v42, %v20537_v20 }
 0x9e4   : > { %v10657_v53 = vadd.f32 %v10539_v17, %v19965_v47  ;;  %v10284_v47 = vshll.u32 %v17772_v31, 16 }
 0x9e6   : > { %15898 = vmatmul.msk.bf16.gmra.mxu1 %vm573_vm1, %v10279_v16  ;;  %v11023_v19 = vadd.f32 %v10905_v44, %v10657_v53  ;;  %v10286_v53 = vrot.slane %v10284_v47, 4  ;;  %v11477_v16 = vshrl.u32 %v16631_v11, 16 }
 0x9e7   : > { %15932 = vmatmul.msk.bf16.gmra.mxu2 %vm573_vm1, %v17139_v25  ;;  %v10281_v25 = vshrl.u32 %v17772_v31, 16 }
 0x9e8   : > { %v11724_v43 = vpop.f32.mrf.mxu3 }
 0x9e9   : > { %v20532_v30 = vadd.f32 %v11724_v43, %v11022_v34  ;;  %v10283_v44 = vrot.slane %v10281_v25, 3  ;;  %v20544_v12 = vpop.f32.mrf.mxu0 }
 0x9ea   : > { %v10910_v10 = vpop.f32.mrf.mxu2  ;;  %21425 = vst [vmem:[#allocation96_spill] sm:$0xff] %v20544_v12  ;;  %v17774_v12 = vld [vmem:[#allocation2 + $0xe4] sm:$0xff]  }
 0x9eb   : > { %v10541_v2 = vpop.f32.mrf.mxu1  ;;  %v10287_v31 = vor.u32 %v10286_v53, %v10283_v44  ;;  %v16633_v44 = vld [vmem:[#allocation2 + $0xe8] sm:$0xff] }
 0x9ec   : > { %v10658_v14 = vadd.f32 %v10541_v2, %v19972_v41 }
 0x9ed   : > { %16092 = vmatmul.msk.bf16.gmra.mxu3 %vm573_vm1, %v11476_v5  ;;  %v11483_v5 = vrot.slane %v11481_v33, 1  ;;  %v10288_v42 = vsel %vm8082_vm5, %v10278_v6, %v10287_v31 }
 0x9ee   : > { %v11024_v43 = vadd.f32 %v10907_v3, %v10658_v14  ;;  %v10290_v14 = vshrl.u32 %v17774_v12, 16 }
 0x9f0   : > { %v11727_v34 = vpop.f32.mrf.mxu3 }
 0x9f1   : > { %v20540_v17 = vadd.f32 %v11727_v34, %v11023_v19  ;;  %v11479_v19 = vor.u32 %v11477_v16, %v11475_v45 }
 0x9f2   : > { %v10912_v22 = vpop.f32.mrf.mxu2 }
 0x9f3   : > { %16132 = vmatmul.msk.bf16.gmra.mxu0 %vm573_vm1, %v12388_v49  ;;  %v10544_v41 = vpop.f32.mrf.mxu1  ;;  %v11484_v3 = vsel %vm1133_vm3, %v11479_v19, %v11483_v5  ;;  %v10293_v49 = vshll.u32 %v17774_v12, 16 }
 0x9f4   : > { %v10659_v2 = vadd.f32 %v10544_v41, %v19985_v0  ;;  %v17141_v41 = vld [vmem:[#allocation2 + $0xe8] sm:$0xff]  }
 0x9f5   : > { %v10295_v33 = vrot.slane %v10293_v49, 4 }
 0x9f6   : > { %15899 = vmatmul.msk.bf16.gmra.mxu1 %vm573_vm1, %v10288_v42  ;;  %v11025_v11 = vadd.f32 %v10910_v10, %v10659_v2  ;;  %v11485_v2 = vshrl.u32 %v16632_v4, 16 }
 0x9f7   : > { %15933 = vmatmul.msk.bf16.gmra.mxu2 %vm573_vm1, %v17140_v7 }
 0x9f8   : > { %v11729_v34 = vpop.f32.mrf.mxu3  ;;  %v11487_v42 = vor.u32 %v11485_v2, %v11483_v5 }
 0x9f9   : > { %v20550_v25 = vadd.f32 %v11729_v34, %v11024_v43  ;;  %v10292_v43 = vrot.slane %v10290_v14, 3  ;;  %v11489_v34 = vshll.u32 %v16633_v44, 16  ;;  %v17776_v14 = vld [vmem:[#allocation2 + $0xec] sm:$0xff]  }
 0x9fa   : > { %v10915_v47 = vpop.f32.mrf.mxu2  ;;  %v10299_v4 = vshrl.u32 %v17776_v14, 16 }
 0x9fb   : > { %v10546_v45 = vpop.f32.mrf.mxu1  ;;  %v10296_v10 = vor.u32 %v10295_v33, %v10292_v43  ;;  %v11491_v12 = vrot.slane %v11489_v34, 1  ;;  %v11493_v34 = vshrl.u32 %v16633_v44, 16 }
 0x9fc   : > { %v10660_v0 = vadd.f32 %v10546_v45, %v19999_v63 }
 0x9fd   : > { %16093 = vmatmul.msk.bf16.gmra.mxu3 %vm573_vm1, %v11484_v3  ;;  %v10297_v63 = vsel %vm8082_vm5, %v10287_v31, %v10296_v10  ;;  %v11492_v49 = vsel %vm1133_vm3, %v11487_v42, %v11491_v12  ;;  %v10301_v31 = vrot.slane %v10299_v4, 3  ;;  %v17778_v4 = vld [vmem:[#allocation2 + $0xf4] sm:$0xff]  }
 0x9fe   : > { %v11026_v7 = vadd.f32 %v10912_v22, %v10660_v0  ;;  %v10302_v0 = vshll.u32 %v17776_v14, 16 }
 0xa00   : > { %v11732_v53 = vpop.f32.mrf.mxu3 }
 0xa01   : > { %v20556_v16 = vadd.f32 %v11732_v53, %v11025_v11  ;;  %v16634_v53 = vld [vmem:[#allocation2 + $0xf0] sm:$0xff] }
 0xa02   : > { %v10917_v6 = vpop.f32.mrf.mxu2  ;;  %v11497_v2 = vshll.u32 %v16634_v53, 16 }
 0xa03   : > { %v10549_v19 = vpop.f32.mrf.mxu1 }
 0xa04   : > { %v10661_v3 = vadd.f32 %v10549_v19, %v20008_v37 }
 0xa06   : > { %15900 = vmatmul.msk.bf16.gmra.mxu1 %vm573_vm1, %v10297_v63  ;;  %v11027_v22 = vadd.f32 %v10915_v47, %v10661_v3  ;;  %v17142_v47 = vld [vmem:[#allocation2 + $0xf0] sm:$0xff]   ;;  %v11495_v3 = vor.u32 %v11493_v34, %v11491_v12  ;;  %v11499_v63 = vrot.slane %v11497_v2, 1 }
 0xa07   : > { %15934 = vmatmul.msk.bf16.gmra.mxu2 %vm573_vm1, %v17141_v41 }
 0xa08   : > { %v11734_v59 = vpop.f32.mrf.mxu3 }
 0xa09   : > { %v20561_v11 = vadd.f32 %v11734_v59, %v11026_v7  ;;  %v10304_v7 = vrot.slane %v10302_v0, 4  ;;  %v10308_v0 = vshrl.u32 %v17778_v4, 16 }
 0xa0a   : > { %v10920_v45 = vpop.f32.mrf.mxu2 }
 0xa0b   : > { %v10551_v5 = vpop.f32.mrf.mxu1  ;;  %v10305_v19 = vor.u32 %v10304_v7, %v10301_v31 }
 0xa0c   : > { %v10662_v37 = vadd.f32 %v10551_v5, %v20018_v8 }
 0xa0d   : > { %16094 = vmatmul.msk.bf16.gmra.mxu3 %vm573_vm1, %v11492_v49  ;;  %v10306_v8 = vsel %vm8082_vm5, %v10296_v10, %v10305_v19 }
 0xa0e   : > { %v11028_v41 = vadd.f32 %v10917_v6, %v10662_v37  ;;  %v11500_v6 = vsel %vm1133_vm3, %v11495_v3, %v11499_v63  ;;  %v10311_v37 = vshll.u32 %v17778_v4, 16 }
 0xa10   : > { %v11737_v43 = vpop.f32.mrf.mxu3  ;;  %v10313_v34 = vrot.slane %v10311_v37, 4 }
 0xa11   : > { %v20567_v33 = vadd.f32 %v11737_v43, %v11027_v22  ;;  %v16635_v43 = vld [vmem:[#allocation2 + $0xf8] sm:$0xff] }
 0xa12   : > { %v10922_v59 = vpop.f32.mrf.mxu2 }
 0xa13   : > { %v10554_v42 = vpop.f32.mrf.mxu1 }
 0xa14   : > { %v10663_v14 = vadd.f32 %v10554_v42, %v20029_v21  ;;  %v11505_v42 = vshll.u32 %v16635_v43, 16 }
 0xa16   : > { %15901 = vmatmul.msk.bf16.gmra.mxu1 %vm573_vm1, %v10306_v8  ;;  %v11029_v44 = vadd.f32 %v10920_v45, %v10663_v14  ;;  %v11501_v14 = vshrl.u32 %v16634_v53, 16  ;;  %v11507_v8 = vrot.slane %v11505_v42, 1 }
 0xa17   : > { %15935 = vmatmul.msk.bf16.gmra.mxu2 %vm573_vm1, %v17142_v47  ;;  %v17143_v47 = vld [vmem:[#allocation2 + $0xf8] sm:$0xff]  }
 0xa18   : > { %v11739_v49 = vpop.f32.mrf.mxu3 }
 0xa19   : > { %v20572_v22 = vadd.f32 %v11739_v49, %v11028_v41  ;;  %v10310_v41 = vrot.slane %v10308_v0, 3  ;;  %v11503_v49 = vor.u32 %v11501_v14, %v11499_v63  ;;  %v17780_v0 = vld [vmem:[#allocation2 + $0xfc] sm:$0xff]   ;;  %v11509_v14 = vshrl.u32 %v16635_v43, 16 }
 0xa1a   : > { %v10925_v5 = vpop.f32.mrf.mxu2  ;;  %v10317_v53 = vshrl.u32 %v17780_v0, 16 }
 0xa1b   : > { %v10556_v12 = vpop.f32.mrf.mxu1  ;;  %v10314_v45 = vor.u32 %v10313_v34, %v10310_v41  ;;  %v11508_v37 = vsel %vm1133_vm3, %v11503_v49, %v11507_v8 }
 0xa1c   : > { %v10664_v21 = vadd.f32 %v10556_v12, %v20041_v23 }
 0xa1d   : > { %16095 = vmatmul.msk.bf16.gmra.mxu3 %vm573_vm1, %v11500_v6  ;;  %v10315_v23 = vsel %vm8082_vm5, %v10305_v19, %v10314_v45 }
 0xa1e   : > { %v11030_v2 = vadd.f32 %v10922_v59, %v10664_v21  ;;  %v10320_v21 = vshll.u32 %v17780_v0, 16 }
 0xa20   : > { %v11742_v31 = vpop.f32.mrf.mxu3 }
 0xa21   : > { %v20578_v7 = vadd.f32 %v11742_v31, %v11029_v44  ;;  %v16636_v31 = vld [vmem:[#allocation2 + $0x100] sm:$0xff] }
 0xa22   : > { %v10927_v10 = vpop.f32.mrf.mxu2 }
 0xa23   : > { %v10559_v3 = vpop.f32.mrf.mxu1 }
 0xa24   : > { %v10665_v4 = vadd.f32 %v10559_v3, %v20048_v52  ;;  %v11513_v3 = vshll.u32 %v16636_v31, 16 }
 0xa26   : > { %15902 = vmatmul.msk.bf16.gmra.mxu1 %vm573_vm1, %v10315_v23  ;;  %v11031_v59 = vadd.f32 %v10925_v5, %v10665_v4  ;;  %v17144_v5 = vld [vmem:[#allocation2 + $0x100] sm:$0xff]   ;;  %v11515_v23 = vrot.slane %v11513_v3, 1 }
 0xa27   : > { %15936 = vmatmul.msk.bf16.gmra.mxu2 %vm573_vm1, %v17143_v47  ;;  %v10322_v47 = vrot.slane %v10320_v21, 4 }
 0xa28   : > { %v11744_v6 = vpop.f32.mrf.mxu3 }
 0xa29   : > { %v20583_v44 = vadd.f32 %v11744_v6, %v11030_v2  ;;  %v10319_v2 = vrot.slane %v10317_v53, 3  ;;  %v11511_v6 = vor.u32 %v11509_v14, %v11507_v8  ;;  %v17782_v53 = vld [vmem:[#allocation2 + $0x104] sm:$0xff]  }
 0xa2a   : > { %v10930_v12 = vpop.f32.mrf.mxu2  ;;  %v10326_v21 = vshrl.u32 %v17782_v53, 16 }
 0xa2b   : > { %v10561_v63 = vpop.f32.mrf.mxu1  ;;  %v10323_v4 = vor.u32 %v10322_v47, %v10319_v2 }
 0xa2c   : > { %v10666_v52 = vadd.f32 %v10561_v63, %v20056_v18 }
 0xa2d   : > { %16096 = vmatmul.msk.bf16.gmra.mxu3 %vm573_vm1, %v11508_v37  ;;  %v10324_v18 = vsel %vm8082_vm5, %v10314_v45, %v10323_v4 }
 0xa2e   : > { %v11032_v42 = vadd.f32 %v10927_v10, %v10666_v52  ;;  %v11516_v10 = vsel %vm1133_vm3, %v11511_v6, %v11515_v23  ;;  %v10329_v52 = vshll.u32 %v17782_v53, 16 }
 0xa30   : > { %v11747_v41 = vpop.f32.mrf.mxu3  ;;  %v10331_v14 = vrot.slane %v10329_v52, 4 }
 0xa31   : > { %v20589_v34 = vadd.f32 %v11747_v41, %v11031_v59  ;;  %v16637_v41 = vld [vmem:[#allocation2 + $0x108] sm:$0xff] }
 0xa32   : > { %v10932_v19 = vpop.f32.mrf.mxu2 }
 0xa33   : > { %v10564_v49 = vpop.f32.mrf.mxu1 }
 0xa34   : > { %v10667_v0 = vadd.f32 %v10564_v49, %v20067_v56  ;;  %v11521_v49 = vshll.u32 %v16637_v41, 16 }
 0xa36   : > { %15903 = vmatmul.msk.bf16.gmra.mxu1 %vm573_vm1, %v10324_v18  ;;  %v11033_v43 = vadd.f32 %v10930_v12, %v10667_v0  ;;  %v11517_v0 = vshrl.u32 %v16636_v31, 16  ;;  %v11523_v18 = vrot.slane %v11521_v49, 1 }
 0xa37   : > { %15937 = vmatmul.msk.bf16.gmra.mxu2 %vm573_vm1, %v17144_v5  ;;  %v17145_v5 = vld [vmem:[#allocation2 + $0x108] sm:$0xff]  }
 0xa38   : > { %v11749_v37 = vpop.f32.mrf.mxu3 }
 0xa39   : > { %v20594_v59 = vadd.f32 %v11749_v37, %v11032_v42  ;;  %v10328_v42 = vrot.slane %v10326_v21, 3  ;;  %v11519_v37 = vor.u32 %v11517_v0, %v11515_v23  ;;  %v17784_v21 = vld [vmem:[#allocation2 + $0x10c] sm:$0xff]   ;;  %v20610_v23 = vpop.f32.mrf.mxu0 }
 0xa3a   : > { %v10935_v63 = vpop.f32.mrf.mxu2  ;;  %v10335_v31 = vshrl.u32 %v17784_v21, 16 }
 0xa3b   : > { %v10566_v8 = vpop.f32.mrf.mxu1  ;;  %v10332_v12 = vor.u32 %v10331_v14, %v10328_v42  ;;  %v11524_v52 = vsel %vm1133_vm3, %v11519_v37, %v11523_v18  ;;  %v17848_v37 = vld [vmem:[#allocation2 + $0x124] sm:$0xff]  }
 0xa3c   : > { %v10668_v56 = vadd.f32 %v10566_v8, %v20078_v46 }
 0xa3d   : > { %16097 = vmatmul.msk.bf16.gmra.mxu3 %vm573_vm1, %v11516_v10  ;;  %v10333_v46 = vsel %vm8082_vm5, %v10323_v4, %v10332_v12 }
 0xa3e   : > { %v11034_v3 = vadd.f32 %v10932_v19, %v10668_v56  ;;  %v10338_v56 = vshll.u32 %v17784_v21, 16  ;;  %v12393_v21 = vshll.u32 %v17848_v37, 16 }
 0xa40   : > { %v11752_v2 = vpop.f32.mrf.mxu3  ;;  %v10340_v49 = vrot.slane %v10338_v56, 4 }
 0xa41   : > { %v20600_v47 = vadd.f32 %v11752_v2, %v11033_v43 }
 0xa42   : > { %v10937_v45 = vpop.f32.mrf.mxu2 }
 0xa43   : > { %21426 = vst [vmem:[#allocation97_spill] sm:$0xff] %v20600_v47  ;;  %v10569_v6 = vpop.f32.mrf.mxu1 }
 0xa44   : > { %v10669_v53 = vadd.f32 %v10569_v6, %v20085_v13  ;;  %v16638_v13 = vld [vmem:[#allocation2 + $0x110] sm:$0xff] }
 0xa45   : > { %v11529_v6 = vshll.u32 %v16638_v13, 16 }
 0xa46   : > { %15904 = vmatmul.msk.bf16.gmra.mxu1 %vm573_vm1, %v10333_v46  ;;  %v11035_v19 = vadd.f32 %v10935_v63, %v10669_v53  ;;  %v11525_v63 = vshrl.u32 %v16637_v41, 16  ;;  %v17146_v53 = vld [vmem:[#allocation2 + $0x110] sm:$0xff]   ;;  %v12390_v46 = vshrl.u32 %v17848_v37, 16 }
 0xa47   : > { %15938 = vmatmul.msk.bf16.gmra.mxu2 %vm573_vm1, %v17145_v5  ;;  %v10337_v5 = vrot.slane %v10335_v31, 3  ;;  %v11531_v47 = vrot.slane %v11529_v6, 1 }
 0xa48   : > { %v11754_v10 = vpop.f32.mrf.mxu3 }
 0xa49   : > { %v20605_v43 = vadd.f32 %v11754_v10, %v11034_v3  ;;  %v10341_v10 = vor.u32 %v10340_v49, %v10337_v5 }
 0xa4a   : > { %v10940_v8 = vpop.f32.mrf.mxu2 }
 0xa4b   : > { %21427 = vst [vmem:[#allocation98_spill] sm:$0xff] %v20605_v43  ;;  %v10571_v2 = vpop.f32.mrf.mxu1  ;;  %v11527_v43 = vor.u32 %v11525_v63, %v11523_v18  ;;  %v10342_v41 = vsel %vm8082_vm5, %v10332_v12, %v10341_v10 }
 0xa4c   : > { %v10670_v42 = vadd.f32 %v10571_v2, %v20096_v57  ;;  %v12392_v57 = vrot.slane %v12390_v46, 3  ;;  %v12395_v2 = vrot.slane %v12393_v21, 4  ;;  %v17179_v46 = vld [vmem:[#allocation2 + $0x128] sm:$0xff]  }
 0xa4d   : > { %16098 = vmatmul.msk.bf16.gmra.mxu3 %vm573_vm1, %v11524_v52  ;;  %v11532_v18 = vsel %vm1133_vm3, %v11527_v43, %v11531_v47  ;;  %v17147_v43 = vld [vmem:[#allocation2 + $0x118] sm:$0xff]  }
 0xa4e   : > { %v11036_v0 = vadd.f32 %v10937_v45, %v10670_v42  ;;  %v12396_v5 = vor.u32 %v12395_v2, %v12392_v57 }
 0xa50   : > { %v11757_v4 = vpop.f32.mrf.mxu3  ;;  %v12397_v63 = vsel %vm8082_vm5, %v20537_v20, %v12396_v5  ;;  %v17071_v20 = vunpack.c.h.b16 %v17179_v46 }
 0xa51   : > { %v20613_v14 = vadd.f32 %v11757_v4, %v11035_v19  ;;  %v20616_v19 = vpop.f32.mrf.mxu0  ;;  %v17785_v4 = vld [vmem:[#allocation2 + $0x114] sm:$0xff]   ;;  %16133 = vmatmul.msk.bf16.gmra.mxu0 %vm573_vm1, %v12397_v63 }
 0xa52   : > { %v10942_v3 = vpop.f32.mrf.mxu2  ;;  %21429 = vst [vmem:[#allocation100_spill] sm:$0xff] %v20616_v19  ;;  %v10347_v6 = vshll.u32 %v17785_v4, 16 }
 0xa53   : > { %21428 = vst [vmem:[#allocation99_spill] sm:$0xff] %v20613_v14  ;;  %v10574_v52 = vpop.f32.mrf.mxu1 }
 0xa54   : > { %v10671_v31 = vadd.f32 %v10574_v52, %v20107_v29  ;;  %v10344_v29 = vshrl.u32 %v17785_v4, 16  ;;  %v10349_v57 = vrot.slane %v10347_v6, 4  ;;  %v16943_v4 = vunpack.c.h.b16 %v17147_v43 }
 0xa56   : > { %15905 = vmatmul.msk.bf16.gmra.mxu1 %vm573_vm1, %v10342_v41  ;;  %v11037_v49 = vadd.f32 %v10940_v8, %v10671_v31  ;;  %v10346_v52 = vrot.slane %v10344_v29, 3  ;;  %v12110_v41 = vpack.c.b16 %v17071_v20, %v17071_v20 }
 0xa57   : > { %15939 = vmatmul.msk.bf16.gmra.mxu2 %vm573_vm1, %v17146_v53 }
 0xa58   : > { %v11759_v56 = vpop.f32.mrf.mxu3  ;;  %v10350_v63 = vor.u32 %v10349_v57, %v10346_v52 }
 0xa59   : > { %v20620_v45 = vadd.f32 %v11759_v56, %v11036_v0  ;;  %v20628_v0 = vld [vmem:[#allocation2 + $0x118] sm:$0xff]  ;;  %v20633_v2 = vpop.f32.mrf.mxu0 }
 0xa5a   : > { %v10945_v42 = vpop.f32.mrf.mxu2  ;;  %21432 = vst [vmem:[#allocation103_spill] sm:$0xff] %v20633_v2  ;;  %v11537_v56 = vshll.u32 %v20628_v0, 16  ;;  %v16641_v2 = vld [vmem:[#allocation2 + $0x38] sm:$0xff]  ;;  %v10351_v19 = vsel %vm8082_vm5, %v10341_v10, %v10350_v63 }
 0xa5b   : > { %21430 = vst [vmem:[#allocation101_spill] sm:$0xff] %v20620_v45  ;;  %v10576_v12 = vpop.f32.mrf.mxu1  ;;  %v11533_v45 = vshrl.u32 %v16638_v13, 16 }
 0xa5c   : > { %v10672_v37 = vadd.f32 %v10576_v12, %v20122_v39  ;;  %v12399_v39 = vshrl.u32 %v12110_v41, 16  ;;  %v12402_v12 = vshll.u32 %v12110_v41, 16  ;;  %v11539_v29 = vrot.slane %v11537_v56, 1 }
 0xa5d   : > { %16099 = vmatmul.msk.bf16.gmra.mxu3 %vm573_vm1, %v11532_v18  ;;  %v16640_v18 = vld [vmem:[#allocation2 + $0x30] sm:$0xff] }
 0xa5e   : > { %v11038_v31 = vadd.f32 %v10942_v3, %v10672_v37  ;;  %v12401_v6 = vrot.slane %v12399_v39, 3  ;;  %v12404_v46 = vrot.slane %v12402_v12, 4  ;;  %v10064_v3 = vpack.c.b16 %v16943_v4, %v16943_v4 }
 0xa5f   : > { %v13338_v20 = vshll.u32 %v16640_v18, 16  ;;  %v13343_v39 = vshll.u32 %v16641_v2, 16  ;;  %v13336_v12 = vshrl.u32 %v16640_v18, 16 }
 0xa60   : > { %v11762_v53 = vpop.f32.mrf.mxu3  ;;  %v12405_v41 = vor.u32 %v12404_v46, %v12401_v6  ;;  %v10356_v10 = vshll.u32 %v10064_v3, 16 }
 0xa61   : > { %v20631_v21 = vadd.f32 %v11762_v53, %v11037_v49  ;;  %v11123_v49 = vld [vmem:[#allocation2 + $0x120] sm:$0x1]  ;;  %v20644_v56 = vpop.f32.mrf.mxu0  ;;  %v13340_v4 = vrot.slane %v13338_v20, 1 }
 0xa62   : > { %v10947_v8 = vpop.f32.mrf.mxu2  ;;  %v11255_v57 = vunpack.c.l.b16 %v11123_v49 }
 0xa63   : > { %21431 = vst [vmem:[#allocation102_spill] sm:$0xff] %v20631_v21  ;;  %v10579_v53 = vpop.f32.mrf.mxu1  ;;  %v11535_v21 = vor.u32 %v11533_v45, %v11531_v47  ;;  %v12406_v45 = vsel %vm8082_vm5, %v12396_v5, %v12405_v41  ;;  %v10358_v5 = vrot.slane %v10356_v10, 4 }
 0xa64   : > { %v10673_v14 = vadd.f32 %v10579_v53, %v20139_v35  ;;  %v10353_v35 = vshrl.u32 %v10064_v3, 16  ;;  %16134 = vmatmul.msk.bf16.gmra.mxu0 %vm573_vm1, %v12406_v45 }
 0xa65   : > { %v11540_v47 = vsel %vm1133_vm3, %v11535_v21, %v11539_v29  ;;  %v13345_v21 = vrot.slane %v13343_v39, 1 }
 0xa66   : > { %15906 = vmatmul.msk.bf16.gmra.mxu1 %vm573_vm1, %v10351_v19  ;;  %v10355_v53 = vrot.slane %v10353_v35, 3 }
 0xa67   : > { %15940 = vmatmul.msk.bf16.gmra.mxu2 %vm573_vm1, %v17147_v43  ;;  %v11039_v43 = vadd.f32 %v10945_v42, %v10673_v14  ;;  %v13341_v42 = vor.u32 %v13340_v4, %v13336_v12 }
 0xa68   : > { %v11764_v37 = vpop.f32.mrf.mxu3  ;;  %v10359_v3 = vor.u32 %v10358_v5, %v10355_v53 }
 0xa69   : > { %v20639_v52 = vadd.f32 %v11764_v37, %v11038_v31  ;;  %v11288_v31 = vpack.c.b16 %v11255_v57, %v11255_v57  ;;  %v11541_v37 = vshrl.u32 %v20628_v0, 16 }
 0xa6a   : > { %v10950_v13 = vpop.f32.mrf.mxu2  ;;  %v10360_v39 = vsel %vm8082_vm5, %v10350_v63, %v10359_v3 }
 0xa6b   : > { %v10581_v49 = vpop.f32.mrf.mxu1  ;;  %v11545_v20 = vshll.u32 %v11288_v31, 16  ;;  %v11543_v57 = vor.u32 %v11541_v37, %v11539_v29  ;;  %v16642_v31 = vld [vmem:[#allocation2 + $0x40] sm:$0xff]  ;;  %v13347_v29 = vshrl.u32 %v16641_v2, 16  ;;  %v17148_v2 = vld [vmem:[#allocation2 + $0x30] sm:$0xff]  }
 0xa6c   : > { %v10674_v14 = vadd.f32 %v10581_v49, %v20153_v54  ;;  %v21433_v54 = vld [vmem:[#allocation31_spill] sm:$0xff]  ;;  %v13351_v12 = vshll.u32 %v16642_v31, 16 }
 0xa6d   : > { %16100 = vmatmul.msk.bf16.gmra.mxu3 %vm573_vm1, %v11540_v47  ;;  %v13346_v47 = vsel %vm1133_vm3, %v13341_v42, %v13345_v21  ;;  %v11547_v18 = vrot.slane %v11545_v20, 1  ;;  %v13349_v42 = vor.u32 %v13347_v29, %v13345_v21 }
 0xa6e   : > { %v11040_v41 = vadd.f32 %v10947_v8, %v10674_v14  ;;  %v13353_v5 = vrot.slane %v13351_v12, 1 }
 0xa6f   : > { %v11548_v0 = vsel %vm1133_vm3, %v11543_v57, %v11547_v18 }
 0xa70   : > { %v11767_v19 = vpop.f32.mrf.mxu3  ;;  %v13354_v20 = vsel %vm1133_vm3, %v13349_v42, %v13353_v5  ;;  %v17149_v42 = vld [vmem:[#allocation2 + $0x38] sm:$0xff]  }
 0xa71   : > { %v20649_v6 = vadd.f32 %v11767_v19, %v11039_v43 }
 0xa72   : > { %v10952_v46 = vpop.f32.mrf.mxu2 }
 0xa73   : > { %v10584_v45 = vpop.f32.mrf.mxu1 }
 0xa74   : > { %v10675_v35 = vadd.f32 %v10584_v45, %v21433_v54  ;;  %v21435_v54 = vld [vmem:[#allocation15_spill] sm:$0xff] }
 0xa76   : > { %15907 = vmatmul.msk.bf16.gmra.mxu1 %vm573_vm1, %v10360_v39  ;;  %v11041_v8 = vadd.f32 %v10950_v13, %v10675_v35  ;;  %v21434_v13 = vld [vmem:[#allocation34_spill] sm:$0xff]  ;;  %v13355_v35 = vshrl.u32 %v16642_v31, 16 }
 0xa77   : > { %16297 = vmatmul.msk.bf16.vlgmr.msra.gmra.mxu2 %vm573_vm1, %v13346_v47 }
 0xa78   : > { %v11769_v4 = vpop.f32.mrf.mxu3  ;;  %v13357_v12 = vor.u32 %v13355_v35, %v13353_v5 }
 0xa79   : > { %v20656_v43 = vadd.f32 %v11769_v4, %v11040_v41  ;;  %v21436_v4 = vld [vmem:[#allocation43_spill] sm:$0xff] }
 0xa7a   : > { %v10955_v10 = vpop.f32.mrf.mxu2 }
 0xa7b   : > { %v10586_v49 = vpop.f32.mrf.mxu1 }
 0xa7c   : > { %v10676_v53 = vadd.f32 %v10586_v49, %v20170_v61  ;;  %v16643_v61 = vld [vmem:[#allocation2 + $0x48] sm:$0xff] }
 0xa7d   : > { %16101 = vmatmul.msk.bf16.gmra.mxu3 %vm573_vm1, %v11548_v0  ;;  %v13359_v21 = vshll.u32 %v16643_v61, 16 }
 0xa7e   : > { %v11042_v37 = vadd.f32 %v10952_v46, %v10676_v53 }
 0xa7f   : > { %v13361_v49 = vrot.slane %v13359_v21, 1 }
 0xa80   : > { %v11772_v14 = vpop.f32.mrf.mxu3 }
 0xa81   : > { %v20662_v19 = vadd.f32 %v11772_v14, %v11041_v8  ;;  %v13362_v14 = vsel %vm1133_vm3, %v13357_v12, %v13361_v49 }
 0xa82   : > { %v10957_v63 = vpop.f32.mrf.mxu2 }
 0xa83   : > { %v10589_v41 = vpop.f32.mrf.mxu1 }
 0xa84   : > { %v10677_v47 = vadd.f32 %v10589_v41, %v21434_v13 }
 0xa86   : > { %16136 = vmatmul.msk.bf16.vlgmr.msra.gmra.mxu1 %vm573_vm1, %v17148_v2  ;;  %v11043_v45 = vadd.f32 %v10955_v10, %v10677_v47  ;;  %v16644_v47 = vld [vmem:[#allocation2 + $0x50] sm:$0xff]  ;;  %v21438_v2 = vld [vmem:[#allocation16_spill] sm:$0xff] }
 0xa87   : > { %16298 = vmatmul.msk.bf16.gmra.mxu2 %vm573_vm1, %v13354_v20  ;;  %v13367_v5 = vshll.u32 %v16644_v47, 16 }
 0xa88   : > { %v11774_v3 = vpop.f32.mrf.mxu3 }
 0xa89   : > { %v20667_v57 = vadd.f32 %v11774_v3, %v11042_v37  ;;  %v21437_v37 = vld [vmem:[#allocation54_spill] sm:$0xff] }
 0xa8a   : > { %v10960_v18 = vpop.f32.mrf.mxu2 }
 0xa8b   : > { %v10591_v46 = vpop.f32.mrf.mxu1 }
 0xa8c   : > { %v10678_v39 = vadd.f32 %v10591_v46, %v21436_v4 }
 0xa8d   : > { %16329 = vmatmul.msk.bf16.vlgmr.msra.gmra.mxu3 %vm573_vm1, %v21435_v54  ;;  %v21439_v54 = vld [vmem:[#allocation3_spill] sm:$0xff] }
 0xa8e   : > { %v11044_v53 = vadd.f32 %v10957_v63, %v10678_v39  ;;  %v13363_v63 = vshrl.u32 %v16643_v61, 16  ;;  %v17150_v61 = vld [vmem:[#allocation2 + $0x40] sm:$0xff]  }
 0xa90   : > { %v11777_v0 = vpop.f32.mrf.mxu3  ;;  %v13365_v39 = vor.u32 %v13363_v63, %v13361_v49  ;;  %v13371_v63 = vshrl.u32 %v16644_v47, 16 }
 0xa91   : > { %v20673_v8 = vadd.f32 %v11777_v0, %v11043_v45  ;;  %v13369_v0 = vrot.slane %v13367_v5, 1  ;;  %v21442_v5 = vld [vmem:[#allocation57_spill] sm:$0xff] }
 0xa92   : > { %v10962_v29 = vpop.f32.mrf.mxu2 }
 0xa93   : > { %v10594_v10 = vpop.f32.mrf.mxu1 }
 0xa94   : > { %v10679_v20 = vadd.f32 %v10594_v10, %v21437_v37 }
 0xa96   : > { %16137 = vmatmul.msk.bf16.gmra.mxu1 %vm573_vm1, %v17149_v42  ;;  %v11045_v3 = vadd.f32 %v10960_v18, %v10679_v20 }
 0xa97   : > { %16299 = vmatmul.msk.bf16.gmra.mxu2 %vm573_vm1, %v13362_v14  ;;  %v21440_v14 = vld [vmem:[#allocation55_spill] sm:$0xff] }
 0xa98   : > { %v11779_v41 = vpop.f32.mrf.mxu3 }
 0xa99   : > { %v20678_v13 = vadd.f32 %v11779_v41, %v11044_v53  ;;  %v13370_v53 = vsel %vm1133_vm3, %v13365_v39, %v13369_v0  ;;  %v16645_v41 = vld [vmem:[#allocation2 + $0x58] sm:$0xff]  ;;  %v13373_v39 = vor.u32 %v13371_v63, %v13369_v0  ;;  %v21447_v63 = vld [vmem:[#allocation61_spill] sm:$0xff] }
 0xa9a   : > { %v10965_v31 = vpop.f32.mrf.mxu2 }
 0xa9b   : > { %v10596_v45 = vpop.f32.mrf.mxu1 }
 0xa9c   : > { %v10680_v21 = vadd.f32 %v10596_v45, %v21439_v54 }
 0xa9d   : > { %16330 = vmatmul.msk.bf16.gmra.mxu3 %vm573_vm1, %v21438_v2  ;;  %v21441_v2 = vld [vmem:[#allocation17_spill] sm:$0xff] }
 0xa9e   : > { %v11046_v12 = vadd.f32 %v10962_v29, %v10680_v21  ;;  %v13375_v29 = vshll.u32 %v16645_v41, 16 }
 0xaa0   : > { %v11782_v46 = vpop.f32.mrf.mxu3 }
 0xaa1   : > { %v20684_v35 = vadd.f32 %v11782_v46, %v11045_v3 }
 0xaa2   : > { %v10967_v4 = vpop.f32.mrf.mxu2 }
 0xaa3   : > { %v10599_v18 = vpop.f32.mrf.mxu1 }
 0xaa4   : > { %v10681_v10 = vadd.f32 %v10599_v18, %v21440_v14  ;;  %v17151_v14 = vld [vmem:[#allocation2 + $0x48] sm:$0xff]  }
 0xaa6   : > { %16138 = vmatmul.msk.bf16.gmra.mxu1 %vm573_vm1, %v17150_v61  ;;  %v11047_v3 = vadd.f32 %v10965_v31, %v10681_v10  ;;  %v21444_v10 = vld [vmem:[#allocation59_spill] sm:$0xff] }
 0xaa7   : > { %16300 = vmatmul.msk.bf16.gmra.mxu2 %vm573_vm1, %v13370_v53 }
 0xaa8   : > { %v11784_v42 = vpop.f32.mrf.mxu3 }
 0xaa9   : > { %v20689_v37 = vadd.f32 %v11784_v42, %v11046_v12  ;;  %v13377_v12 = vrot.slane %v13375_v29, 1 }
 0xaaa   : > { %v10970_v20 = vpop.f32.mrf.mxu2 }
 0xaab   : > { %v10601_v49 = vpop.f32.mrf.mxu1  ;;  %v13378_v18 = vsel %vm1133_vm3, %v13373_v39, %v13377_v12 }
 0xaac   : > { %v10682_v45 = vadd.f32 %v10601_v49, %v21442_v5  ;;  %v16646_v49 = vld [vmem:[#allocation2 + $0x60] sm:$0xff]  ;;  %v21446_v5 = vld [vmem:[#allocation18_spill] sm:$0xff] }
 0xaad   : > { %16331 = vmatmul.msk.bf16.gmra.mxu3 %vm573_vm1, %v21441_v2  ;;  %v13383_v0 = vshll.u32 %v16646_v49, 16 }
 0xaae   : > { %v11048_v53 = vadd.f32 %v10967_v4, %v10682_v45  ;;  %v13379_v4 = vshrl.u32 %v16645_v41, 16  ;;  %v17152_v41 = vld [vmem:[#allocation2 + $0x50] sm:$0xff]  }
 0xab0   : > { %v11787_v54 = vpop.f32.mrf.mxu3 }
 0xab1   : > { %v20695_v21 = vadd.f32 %v11787_v54, %v11047_v3 }
 0xab2   : > { %v10972_v46 = vpop.f32.mrf.mxu2 }
 0xab3   : > { %21443 = vst [vmem:[#allocation31_spill] sm:$0xff] %v20695_v21  ;;  %v10604_v31 = vpop.f32.mrf.mxu1 }
 0xab4   : > { %v10683_v42 = vadd.f32 %v10604_v31, %v21444_v10  ;;  %v13381_v31 = vor.u32 %v13379_v4, %v13377_v12  ;;  %v13387_v4 = vshrl.u32 %v16646_v49, 16 }
 0xab6   : > { %16139 = vmatmul.msk.bf16.gmra.mxu1 %vm573_vm1, %v17151_v14  ;;  %v11049_v3 = vadd.f32 %v10970_v20, %v10683_v42  ;;  %v21449_v14 = vld [vmem:[#allocation63_spill] sm:$0xff] }
 0xab7   : > { %16301 = vmatmul.msk.bf16.gmra.mxu2 %vm573_vm1, %v13378_v18 }
 0xab8   : > { %v11789_v61 = vpop.f32.mrf.mxu3 }
 0xab9   : > { %v20700_v2 = vadd.f32 %v11789_v61, %v11048_v53  ;;  %v13385_v53 = vrot.slane %v13383_v0, 1  ;;  %v21452_v0 = vld [vmem:[#allocation64_spill] sm:$0xff] }
 0xaba   : > { %v10975_v47 = vpop.f32.mrf.mxu2 }
 0xabb   : > { %21445 = vst [vmem:[#allocation34_spill] sm:$0xff] %v20700_v2  ;;  %v10606_v29 = vpop.f32.mrf.mxu1  ;;  %v13386_v61 = vsel %vm1133_vm3, %v13381_v31, %v13385_v53 }
 0xabc   : > { %v10684_v45 = vadd.f32 %v10606_v29, %v21447_v63  ;;  %v16647_v29 = vld [vmem:[#allocation2 + $0x68] sm:$0xff]  ;;  %v21451_v63 = vld [vmem:[#allocation19_spill] sm:$0xff] }
 0xabd   : > { %16332 = vmatmul.msk.bf16.gmra.mxu3 %vm573_vm1, %v21446_v5 }
 0xabe   : > { %v11050_v10 = vadd.f32 %v10972_v46, %v10684_v45  ;;  %v13391_v46 = vshll.u32 %v16647_v29, 16 }
 0xac0   : > { %v11792_v54 = vpop.f32.mrf.mxu3 }
 0xac1   : > { %v20706_v39 = vadd.f32 %v11792_v54, %v11049_v3 }
 0xac2   : > { %v10977_v18 = vpop.f32.mrf.mxu2 }
 0xac3   : > { %21448 = vst [vmem:[#allocation15_spill] sm:$0xff] %v20706_v39  ;;  %v10609_v20 = vpop.f32.mrf.mxu1 }
 0xac4   : > { %v10685_v42 = vadd.f32 %v10609_v20, %v21449_v14  ;;  %v13389_v20 = vor.u32 %v13387_v4, %v13385_v53  ;;  %v21457_v4 = vld [vmem:[#allocation68_spill] sm:$0xff] }
 0xac6   : > { %16140 = vmatmul.msk.bf16.gmra.mxu1 %vm573_vm1, %v17152_v41  ;;  %v11051_v3 = vadd.f32 %v10975_v47, %v10685_v42  ;;  %v17153_v42 = vld [vmem:[#allocation2 + $0x58] sm:$0xff]  }
 0xac7   : > { %16302 = vmatmul.msk.bf16.gmra.mxu2 %vm573_vm1, %v13386_v61  ;;  %v21454_v41 = vld [vmem:[#allocation66_spill] sm:$0xff] }
 0xac8   : > { %v11794_v5 = vpop.f32.mrf.mxu3 }
 0xac9   : > { %v20711_v2 = vadd.f32 %v11794_v5, %v11050_v10  ;;  %v13393_v10 = vrot.slane %v13391_v46, 1 }
 0xaca   : > { %v10980_v21 = vpop.f32.mrf.mxu2 }
 0xacb   : > { %21450 = vst [vmem:[#allocation43_spill] sm:$0xff] %v20711_v2  ;;  %v10611_v12 = vpop.f32.mrf.mxu1  ;;  %v13394_v5 = vsel %vm1133_vm3, %v13389_v20, %v13393_v10 }
 0xacc   : > { %v10686_v45 = vadd.f32 %v10611_v12, %v21452_v0  ;;  %v16648_v12 = vld [vmem:[#allocation2 + $0x70] sm:$0xff]  ;;  %v21456_v0 = vld [vmem:[#allocation23_spill] sm:$0xff] }
 0xacd   : > { %16333 = vmatmul.msk.bf16.gmra.mxu3 %vm573_vm1, %v21451_v63  ;;  %v13399_v53 = vshll.u32 %v16648_v12, 16 }
 0xace   : > { %v11052_v14 = vadd.f32 %v10977_v18, %v10686_v45  ;;  %v13395_v18 = vshrl.u32 %v16647_v29, 16  ;;  %v17154_v29 = vld [vmem:[#allocation2 + $0x60] sm:$0xff]  }
 0xad0   : > { %v11797_v54 = vpop.f32.mrf.mxu3 }
 0xad1   : > { %v20717_v31 = vadd.f32 %v11797_v54, %v11051_v3 }
 0xad2   : > { %v10982_v61 = vpop.f32.mrf.mxu2 }
 0xad3   : > { %21453 = vst [vmem:[#allocation54_spill] sm:$0xff] %v20717_v31  ;;  %v10614_v47 = vpop.f32.mrf.mxu1 }
 0xad4   : > { %v10687_v63 = vadd.f32 %v10614_v47, %v21454_v41  ;;  %v13397_v47 = vor.u32 %v13395_v18, %v13393_v10  ;;  %v13403_v18 = vshrl.u32 %v16648_v12, 16 }
 0xad6   : > { %16141 = vmatmul.msk.bf16.gmra.mxu1 %vm573_vm1, %v17153_v42  ;;  %v11053_v3 = vadd.f32 %v10980_v21, %v10687_v63  ;;  %v21459_v42 = vld [vmem:[#allocation70_spill] sm:$0xff] }
 0xad7   : > { %16303 = vmatmul.msk.bf16.gmra.mxu2 %vm573_vm1, %v13394_v5 }
 0xad8   : > { %v11799_v2 = vpop.f32.mrf.mxu3 }
 0xad9   : > { %v20722_v39 = vadd.f32 %v11799_v2, %v11052_v14  ;;  %v13401_v2 = vrot.slane %v13399_v53, 1  ;;  %v21462_v53 = vld [vmem:[#allocation72_spill] sm:$0xff] }
 0xada   : > { %v10985_v49 = vpop.f32.mrf.mxu2 }
 0xadb   : > { %21455 = vst [vmem:[#allocation16_spill] sm:$0xff] %v20722_v39  ;;  %v10616_v46 = vpop.f32.mrf.mxu1  ;;  %v13402_v41 = vsel %vm1133_vm3, %v13397_v47, %v13401_v2 }
 0xadc   : > { %v10688_v45 = vadd.f32 %v10616_v46, %v21457_v4  ;;  %v16649_v46 = vld [vmem:[#allocation2 + $0x78] sm:$0xff]  ;;  %v21461_v4 = vld [vmem:[#allocation24_spill] sm:$0xff] }
 0xadd   : > { %16334 = vmatmul.msk.bf16.gmra.mxu3 %vm573_vm1, %v21456_v0 }
 0xade   : > { %v11054_v14 = vadd.f32 %v10982_v61, %v10688_v45  ;;  %v13407_v61 = vshll.u32 %v16649_v46, 16 }
 0xae0   : > { %v11802_v54 = vpop.f32.mrf.mxu3 }
 0xae1   : > { %v20728_v20 = vadd.f32 %v11802_v54, %v11053_v3 }
 0xae2   : > { %v10987_v5 = vpop.f32.mrf.mxu2 }
 0xae3   : > { %21458 = vst [vmem:[#allocation3_spill] sm:$0xff] %v20728_v20  ;;  %v10619_v21 = vpop.f32.mrf.mxu1 }
 0xae4   : > { %v10689_v63 = vadd.f32 %v10619_v21, %v21459_v42  ;;  %v13405_v21 = vor.u32 %v13403_v18, %v13401_v2  ;;  %v21467_v18 = vld [vmem:[#allocation4_spill] sm:$0xff] }
 0xae6   : > { %16142 = vmatmul.msk.bf16.gmra.mxu1 %vm573_vm1, %v17154_v29  ;;  %v11055_v3 = vadd.f32 %v10985_v49, %v10689_v63  ;;  %v17155_v63 = vld [vmem:[#allocation2 + $0x68] sm:$0xff]   ;;  %v21464_v29 = vld [vmem:[#allocation73_spill] sm:$0xff] }
 0xae7   : > { %16304 = vmatmul.msk.bf16.gmra.mxu2 %vm573_vm1, %v13402_v41 }
 0xae8   : > { %v11804_v0 = vpop.f32.mrf.mxu3 }
 0xae9   : > { %v20733_v39 = vadd.f32 %v11804_v0, %v11054_v14  ;;  %v13409_v14 = vrot.slane %v13407_v61, 1 }
 0xaea   : > { %v10990_v31 = vpop.f32.mrf.mxu2 }
 0xaeb   : > { %21460 = vst [vmem:[#allocation55_spill] sm:$0xff] %v20733_v39  ;;  %v10621_v10 = vpop.f32.mrf.mxu1  ;;  %v13410_v0 = vsel %vm1133_vm3, %v13405_v21, %v13409_v14 }
 0xaec   : > { %v10690_v45 = vadd.f32 %v10621_v10, %v21462_v53  ;;  %v16650_v10 = vld [vmem:[#allocation2 + $0x80] sm:$0xff]  ;;  %v21466_v53 = vld [vmem:[#allocation25_spill] sm:$0xff] }
 0xaed   : > { %16335 = vmatmul.msk.bf16.gmra.mxu3 %vm573_vm1, %v21461_v4  ;;  %v13415_v2 = vshll.u32 %v16650_v10, 16 }
 0xaee   : > { %v11056_v42 = vadd.f32 %v10987_v5, %v10690_v45  ;;  %v13411_v5 = vshrl.u32 %v16649_v46, 16 }
 0xaf0   : > { %v11807_v54 = vpop.f32.mrf.mxu3 }
 0xaf1   : > { %v20739_v47 = vadd.f32 %v11807_v54, %v11055_v3 }
 0xaf2   : > { %v10992_v41 = vpop.f32.mrf.mxu2 }
 0xaf3   : > { %21463 = vst [vmem:[#allocation17_spill] sm:$0xff] %v20739_v47  ;;  %v10624_v49 = vpop.f32.mrf.mxu1 }
 0xaf4   : > { %v10691_v4 = vadd.f32 %v10624_v49, %v21464_v29  ;;  %v13413_v49 = vor.u32 %v13411_v5, %v13409_v14  ;;  %v21471_v14 = vld [vmem:[#allocation26_spill] sm:$0xff]  ;;  %v20764_v5 = vld [vmem:[%s21222_s6] ss:$0 sm:$0xff] }
 0xaf6   : > { %16143 = vmatmul.msk.bf16.gmra.mxu1 %vm573_vm1, %v17155_v63  ;;  %v11057_v3 = vadd.f32 %v10990_v31, %v10691_v4  ;;  %v17156_v4 = vld [vmem:[#allocation2 + $0x70] sm:$0xff]  }
 0xaf7   : > { %16305 = vmatmul.msk.bf16.gmra.mxu2 %vm573_vm1, %v13410_v0 }
 0xaf8   : > { %v11809_v39 = vpop.f32.mrf.mxu3 }
 0xaf9   : > { %v20744_v20 = vadd.f32 %v11809_v39, %v11056_v42  ;;  %v13417_v39 = vrot.slane %v13415_v2, 1 }
 0xafa   : > { %v13703_v12 = vpop.f32.mrf.mxu2 }
 0xafb   : > { %21465 = vst [vmem:[#allocation57_spill] sm:$0xff] %v20744_v20  ;;  %v10626_v61 = vpop.f32.mrf.mxu1  ;;  %v13418_v29 = vsel %vm1133_vm3, %v13413_v49, %v13417_v39  ;;  %v16651_v20 = vld [vmem:[#allocation2 + $0x88] sm:$0xff] }
 0xafc   : > { %v10692_v45 = vadd.f32 %v10626_v61, %v21467_v18  ;;  %v13423_v2 = vshll.u32 %v16651_v20, 16 }
 0xafd   : > { %16336 = vmatmul.msk.bf16.gmra.mxu3 %vm573_vm1, %v21466_v53 }
 0xafe   : > { %v11058_v42 = vadd.f32 %v10992_v41, %v10692_v45  ;;  %v13419_v45 = vshrl.u32 %v16650_v10, 16 }
 0xb00   : > { %v11812_v54 = vpop.f32.mrf.mxu3 }
 0xb01   : > { %v20750_v21 = vadd.f32 %v11812_v54, %v11057_v3  ;;  %v21470_v3 = vld [vmem:[#allocation53_spill] sm:$0xff] }
 0xb02   : > { %v13705_v0 = vpop.f32.mrf.mxu2  ;;  %v12675_v61 = vadd.f32 %v21470_v3, %v20312_v36  ;;  %v21472_v36 = vld [vmem:[#allocation7_spill] sm:$0xff] }
 0xb03   : > { %21468 = vst [vmem:[#allocation59_spill] sm:$0xff] %v20750_v21  ;;  %v12881_v31 = vpop.f32.mrf.mxu1  ;;  %v12676_v3 = vadd.f32 %v21472_v36, %v20321_v9  ;;  %v21475_v36 = vld [vmem:[#allocation27_spill] sm:$0xff] }
 0xb04   : > { %v13041_v41 = vadd.f32 %v12881_v31, %v12675_v61 }
 0xb06   : > { %16144 = vmatmul.msk.bf16.gmra.mxu1 %vm573_vm1, %v17156_v4  ;;  %v13863_v49 = vadd.f32 %v13703_v12, %v13041_v41  ;;  %v13425_v4 = vrot.slane %v13423_v2, 1 }
 0xb07   : > { %16306 = vmatmul.msk.bf16.gmra.mxu2 %vm573_vm1, %v13418_v29 }
 0xb08   : > { %v11814_v63 = vpop.f32.mrf.mxu3 }
 0xb09   : > { %v20754_v53 = vadd.f32 %v11814_v63, %v11058_v42  ;;  %v13421_v63 = vor.u32 %v13419_v45, %v13417_v39  ;;  %v17157_v39 = vld [vmem:[#allocation2 + $0x78] sm:$0xff]   ;;  %v16652_v45 = vld [vmem:[#allocation2 + $0x90] sm:$0xff] }
 0xb0a   : > { %v13708_v46 = vpop.f32.mrf.mxu2 }
 0xb0b   : > { %21469 = vst [vmem:[#allocation18_spill] sm:$0xff] %v20754_v53  ;;  %v12883_v18 = vpop.f32.mrf.mxu1  ;;  %v13426_v53 = vsel %vm1133_vm3, %v13421_v63, %v13425_v4 }
 0xb0c   : > { %v13042_v61 = vadd.f32 %v12883_v18, %v12676_v3 }
 0xb0d   : > { %16337 = vmatmul.msk.bf16.gmra.mxu3 %vm573_vm1, %v21471_v14 }
 0xb0e   : > { %v13864_v2 = vadd.f32 %v13705_v0, %v13042_v61  ;;  %v13431_v0 = vshll.u32 %v16652_v45, 16 }
 0xb10   : > { %v13953_v54 = vpop.f32.mrf.mxu3 }
 0xb11   : > { %v13954_v42 = vadd.f32 %v20764_v5, %v13953_v54  ;;  %v21473_v54 = vld [vmem:[#allocation77_spill] sm:$0xff] }
 0xb12   : > { %v13710_v29 = vpop.f32.mrf.mxu2 }
 0xb13   : > { %v14113_v31 = vadd.f32 %v13954_v42, %v13863_v49  ;;  %v12886_v10 = vpop.f32.mrf.mxu1  ;;  %v21474_v49 = vld [vmem:[#allocation6_spill] sm:$0xff] }
 0xb14   : > { %v12677_v42 = vadd.f32 %v21474_v49, %v21473_v54  ;;  %v13433_v54 = vrot.slane %v13431_v0, 1  ;;  %v16653_v0 = vld [vmem:[#allocation2 + $0x98] sm:$0xff] }
 0xb15   : > { %v14177_v14 = vmax.f32 %v14113_v31, 0.0  ;;  %v13427_v31 = vshrl.u32 %v16651_v20, 16 }
 0xb16   : > { %16145 = vmatmul.msk.bf16.gmra.mxu1 %vm573_vm1, %v17157_v39 }
 0xb17   : > { %16307 = vmatmul.msk.bf16.gmra.mxu2 %vm573_vm1, %v13426_v53  ;;  %v14241_v12 = vpack.c.bf16 %v14177_v14, %v14177_v14  ;;  %v13043_v53 = vadd.f32 %v12886_v10, %v12677_v42  ;;  %v13429_v47 = vor.u32 %v13427_v31, %v13425_v4 }
 0xb18   : > { %v13955_v41 = vpop.f32.mrf.mxu3 }
 0xb19   : > { %14305 = vst.msk [vmem:[%s20774_s9] sm:$0xf] %vm7768_vm4, %v14241_v12  ;;  %v13956_v9 = vadd.f32 %v20764_v5, %v13955_v41  ;;  %v13865_v21 = vadd.f32 %v13708_v46, %v13043_v53  ;;  %v13434_v20 = vsel %vm1133_vm3, %v13429_v47, %v13433_v54 }
 0xb1a   : > { %v13713_v18 = vpop.f32.mrf.mxu2 }
 0xb1b   : > { %v14114_v63 = vadd.f32 %v13956_v9, %v13864_v2  ;;  %v12888_v14 = vpop.f32.mrf.mxu1  ;;  %v21476_v2 = vld [vmem:[#allocation56_spill] sm:$0xff] }
 0xb1c   : > { %v12678_v9 = vadd.f32 %v21476_v2, %v20336_v32  ;;  %v21477_v32 = vld [vmem:[#allocation58_spill] sm:$0xff] }
 0xb1d   : > { %16338 = vmatmul.msk.bf16.gmra.mxu3 %vm573_vm1, %v21475_v36  ;;  %v14178_v3 = vmax.f32 %v14114_v63, 0.0 }
 0xb1e   : > { %v13044_v10 = vadd.f32 %v12888_v14, %v12678_v9  ;;  %v13435_v9 = vshrl.u32 %v16652_v45, 16 }
 0xb1f   : > { %v14242_v61 = vpack.c.bf16 %v14178_v3, %v14178_v3  ;;  %v17158_v3 = vld [vmem:[#allocation2 + $0x80] sm:$0xff]  }
 0xb20   : > { %v13958_v12 = vpop.f32.mrf.mxu3  ;;  %v13866_v53 = vadd.f32 %v13710_v29, %v13044_v10  ;;  %v13439_v29 = vshll.u32 %v16653_v0, 16 }
 0xb21   : > { %14306 = vst.msk [vmem:[%s20774_s9 + $0x4] sm:$0xf] %vm7768_vm4, %v14242_v61  ;;  %v13959_v39 = vadd.f32 %v20764_v5, %v13958_v12  ;;  %v21478_v61 = vld [vmem:[#allocation28_spill] sm:$0xff] }
 0xb22   : > { %v13715_v41 = vpop.f32.mrf.mxu2 }
 0xb23   : > { %v14115_v49 = vadd.f32 %v13959_v39, %v13865_v21  ;;  %v12891_v46 = vpop.f32.mrf.mxu1  ;;  %v12679_v21 = vadd.f32 %v21477_v32, %v20344_v51  ;;  %v13441_v51 = vrot.slane %v13439_v29, 1  ;;  %v21481_v29 = vld [vmem:[#allocation62_spill] sm:$0xff] }
 0xb25   : > { %v14179_v42 = vmax.f32 %v14115_v49, 0.0  ;;  %v13045_v14 = vadd.f32 %v12891_v46, %v12679_v21  ;;  %v17159_v21 = vld [vmem:[#allocation2 + $0x88] sm:$0xff]  }
 0xb26   : > { %16146 = vmatmul.msk.bf16.gmra.mxu1 %vm573_vm1, %v17158_v3 }
 0xb27   : > { %16308 = vmatmul.msk.bf16.gmra.mxu2 %vm573_vm1, %v13434_v20  ;;  %v14243_v63 = vpack.c.bf16 %v14179_v42, %v14179_v42  ;;  %v13867_v10 = vadd.f32 %v13713_v18, %v13045_v14 }
 0xb28   : > { %v13960_v36 = vpop.f32.mrf.mxu3 }
 0xb29   : > { %14307 = vst.msk [vmem:[%s20774_s9 + $0x8] sm:$0xf] %vm7768_vm4, %v14243_v63  ;;  %v13961_v4 = vadd.f32 %v20764_v5, %v13960_v36  ;;  %v13437_v63 = vor.u32 %v13435_v9, %v13433_v54  ;;  %v21479_v36 = vld [vmem:[#allocation60_spill] sm:$0xff]  ;;  %v21482_v9 = vld [vmem:[#allocation29_spill] sm:$0xff] }
 0xb2a   : > { %v13718_v31 = vpop.f32.mrf.mxu2 }
 0xb2b   : > { %v14116_v47 = vadd.f32 %v13961_v4, %v13866_v53  ;;  %v12893_v2 = vpop.f32.mrf.mxu1  ;;  %v12680_v53 = vadd.f32 %v21479_v36, %v20353_v26  ;;  %v13442_v32 = vsel %vm1133_vm3, %v13437_v63, %v13441_v51  ;;  %v21480_v26 = vld [vmem:[#allocation79_spill] sm:$0xff] }
 0xb2d   : > { %16339 = vmatmul.msk.bf16.gmra.mxu3 %vm573_vm1, %v21478_v61  ;;  %v14180_v12 = vmax.f32 %v14116_v47, 0.0  ;;  %v13046_v46 = vadd.f32 %v12893_v2, %v12680_v53 }
 0xb2f   : > { %v14244_v39 = vpack.c.bf16 %v14180_v12, %v14180_v12  ;;  %v13868_v61 = vadd.f32 %v13715_v41, %v13046_v46  ;;  %v16654_v12 = vld [vmem:[#allocation2 + $0xa0] sm:$0xff] }
 0xb30   : > { %v13963_v49 = vpop.f32.mrf.mxu3  ;;  %v13447_v41 = vshll.u32 %v16654_v12, 16 }
 0xb31   : > { %14308 = vst.msk [vmem:[%s20774_s9 + $0xc] sm:$0xf] %vm7768_vm4, %v14244_v39  ;;  %v13964_v42 = vadd.f32 %v20764_v5, %v13963_v49  ;;  %v12681_v39 = vadd.f32 %v21481_v29, %v21480_v26 }
 0xb32   : > { %v13720_v20 = vpop.f32.mrf.mxu2 }
 0xb33   : > { %v14117_v3 = vadd.f32 %v13964_v42, %v13867_v10  ;;  %v12896_v18 = vpop.f32.mrf.mxu1  ;;  %v13443_v42 = vshrl.u32 %v16653_v0, 16 }
 0xb34   : > { %v13047_v49 = vadd.f32 %v12896_v18, %v12681_v39 }
 0xb35   : > { %v14181_v4 = vmax.f32 %v14117_v3, 0.0 }
 0xb36   : > { %16147 = vmatmul.msk.bf16.gmra.mxu1 %vm573_vm1, %v17159_v21  ;;  %v13869_v3 = vadd.f32 %v13718_v31, %v13047_v49  ;;  %v21483_v21 = vld [vmem:[#allocation11_spill] sm:$0xff] }
 0xb37   : > { %16309 = vmatmul.msk.bf16.gmra.mxu2 %vm573_vm1, %v13442_v32  ;;  %v14245_v45 = vpack.c.bf16 %v14181_v4, %v14181_v4  ;;  %v13445_v32 = vor.u32 %v13443_v42, %v13441_v51  ;;  %v21485_v42 = vld [vmem:[#allocation67_spill] sm:$0xff] }
 0xb38   : > { %v13965_v47 = vpop.f32.mrf.mxu3 }
 0xb39   : > { %14309 = vst.msk [vmem:[%s20774_s9 + $0x10] sm:$0xf] %vm7768_vm4, %v14245_v45  ;;  %v13966_v54 = vadd.f32 %v20764_v5, %v13965_v47  ;;  %v13449_v45 = vrot.slane %v13447_v41, 1  ;;  %v21484_v47 = vld [vmem:[#allocation65_spill] sm:$0xff]  ;;  %v12683_v41 = vadd.f32 %v21485_v42, %v20376_v40  ;;  %v17161_v42 = vld [vmem:[#allocation2 + $0x98] sm:$0xff]  }
 0xb3a   : > { %v13723_v14 = vpop.f32.mrf.mxu2 }
 0xb3b   : > { %v14118_v2 = vadd.f32 %v13966_v54, %v13868_v61  ;;  %v12898_v36 = vpop.f32.mrf.mxu1  ;;  %v12682_v61 = vadd.f32 %v21484_v47, %v21483_v21  ;;  %v13450_v0 = vsel %vm1133_vm3, %v13445_v32, %v13449_v45  ;;  %v13451_v21 = vshrl.u32 %v16654_v12, 16 }
 0xb3d   : > { %16340 = vmatmul.msk.bf16.gmra.mxu3 %vm573_vm1, %v21482_v9  ;;  %v14182_v10 = vmax.f32 %v14118_v2, 0.0  ;;  %v13048_v18 = vadd.f32 %v12898_v36, %v12682_v61  ;;  %v17160_v9 = vld [vmem:[#allocation2 + $0x90] sm:$0xff]   ;;  %v21486_v36 = vld [vmem:[#allocation30_spill] sm:$0xff] }
 0xb3f   : > { %v14246_v63 = vpack.c.bf16 %v14182_v10, %v14182_v10  ;;  %v13870_v2 = vadd.f32 %v13720_v20, %v13048_v18  ;;  %v16655_v10 = vld [vmem:[#allocation2 + $0xa8] sm:$0xff] }
 0xb40   : > { %v13968_v53 = vpop.f32.mrf.mxu3  ;;  %v13455_v20 = vshll.u32 %v16655_v10, 16 }
 0xb41   : > { %14310 = vst.msk [vmem:[%s20774_s9 + $0x14] sm:$0xf] %vm7768_vm4, %v14246_v63  ;;  %v13969_v46 = vadd.f32 %v20764_v5, %v13968_v53 }
 0xb42   : > { %v13725_v4 = vpop.f32.mrf.mxu2  ;;  %v13457_v40 = vrot.slane %v13455_v20, 1 }
 0xb43   : > { %v14119_v54 = vadd.f32 %v13969_v46, %v13869_v3  ;;  %v12901_v31 = vpop.f32.mrf.mxu1 }
 0xb44   : > { %v13049_v53 = vadd.f32 %v12901_v31, %v12683_v41 }
 0xb45   : > { %v14183_v26 = vmax.f32 %v14119_v54, 0.0 }
 0xb46   : > { %16148 = vmatmul.msk.bf16.gmra.mxu1 %vm573_vm1, %v17160_v9  ;;  %v13871_v61 = vadd.f32 %v13723_v14, %v13049_v53  ;;  %v16656_v53 = vld [vmem:[#allocation2 + $0xb0] sm:$0xff] }
 0xb47   : > { %16310 = vmatmul.msk.bf16.gmra.mxu2 %vm573_vm1, %v13450_v0  ;;  %v14247_v29 = vpack.c.bf16 %v14183_v26, %v14183_v26  ;;  %v13453_v26 = vor.u32 %v13451_v21, %v13449_v45  ;;  %v21487_v0 = vld [vmem:[#allocation81_spill] sm:$0xff] }
 0xb48   : > { %v13970_v39 = vpop.f32.mrf.mxu3 }
 0xb49   : > { %14311 = vst.msk [vmem:[%s20774_s9 + $0x18] sm:$0xf] %vm7768_vm4, %v14247_v29  ;;  %v13971_v51 = vadd.f32 %v20764_v5, %v13970_v39  ;;  %v21488_v29 = vld [vmem:[#allocation69_spill] sm:$0xff] }
 0xb4a   : > { %v13728_v49 = vpop.f32.mrf.mxu2  ;;  %v12684_v39 = vadd.f32 %v21488_v29, %v21487_v0 }
 0xb4b   : > { %v14120_v63 = vadd.f32 %v13971_v51, %v13870_v2  ;;  %v12903_v32 = vpop.f32.mrf.mxu1  ;;  %v13458_v51 = vsel %vm1133_vm3, %v13453_v26, %v13457_v40 }
 0xb4c   : > { %v13050_v31 = vadd.f32 %v12903_v32, %v12684_v39  ;;  %v21490_v32 = vld [vmem:[#allocation32_spill] sm:$0xff] }
 0xb4d   : > { %16341 = vmatmul.msk.bf16.gmra.mxu3 %vm573_vm1, %v21486_v36  ;;  %v14184_v3 = vmax.f32 %v14120_v63, 0.0 }
 0xb4e   : > { %v13872_v63 = vadd.f32 %v13725_v4, %v13050_v31  ;;  %v13463_v4 = vshll.u32 %v16656_v53, 16 }
 0xb4f   : > { %v14248_v46 = vpack.c.bf16 %v14184_v3, %v14184_v3  ;;  %v21489_v3 = vld [vmem:[#allocation71_spill] sm:$0xff] }
 0xb50   : > { %v13973_v47 = vpop.f32.mrf.mxu3  ;;  %v12685_v20 = vadd.f32 %v21489_v3, %v20393_v58  ;;  %v13465_v58 = vrot.slane %v13463_v4, 1 }
 0xb51   : > { %14312 = vst.msk [vmem:[%s20774_s9 + $0x1c] sm:$0xf] %vm7768_vm4, %v14248_v46  ;;  %v13974_v54 = vadd.f32 %v20764_v5, %v13973_v47 }
 0xb52   : > { %v13730_v18 = vpop.f32.mrf.mxu2 }
 0xb53   : > { %v14121_v2 = vadd.f32 %v13974_v54, %v13871_v61  ;;  %v12906_v14 = vpop.f32.mrf.mxu1  ;;  %v13459_v61 = vshrl.u32 %v16655_v10, 16 }
 0xb54   : > { %v13051_v21 = vadd.f32 %v12906_v14, %v12685_v20  ;;  %v17162_v20 = vld [vmem:[#allocation2 + $0xa0] sm:$0xff]  }
 0xb55   : > { %v14185_v9 = vmax.f32 %v14121_v2, 0.0  ;;  %v13461_v31 = vor.u32 %v13459_v61, %v13457_v40 }
 0xb56   : > { %16149 = vmatmul.msk.bf16.gmra.mxu1 %vm573_vm1, %v17161_v42  ;;  %v13873_v29 = vadd.f32 %v13728_v49, %v13051_v21  ;;  %v21493_v21 = vld [vmem:[#allocation14_spill] sm:$0xff] }
 0xb57   : > { %16311 = vmatmul.msk.bf16.gmra.mxu2 %vm573_vm1, %v13458_v51  ;;  %v14249_v12 = vpack.c.bf16 %v14185_v9, %v14185_v9  ;;  %v21491_v9 = vld [vmem:[#allocation10_spill] sm:$0xff]  ;;  %v13466_v10 = vsel %vm1133_vm3, %v13461_v31, %v13465_v58  ;;  %v13467_v31 = vshrl.u32 %v16656_v53, 16 }
 0xb58   : > { %v13975_v41 = vpop.f32.mrf.mxu3  ;;  %v21492_v51 = vld [vmem:[#allocation74_spill] sm:$0xff] }
 0xb59   : > { %14313 = vst.msk [vmem:[%s20774_s9 + $0x20] sm:$0xf] %vm7768_vm4, %v14249_v12  ;;  %v13976_v45 = vadd.f32 %v20764_v5, %v13975_v41  ;;  %v12686_v12 = vadd.f32 %v21492_v51, %v21491_v9 }
 0xb5a   : > { %v13733_v36 = vpop.f32.mrf.mxu2 }
 0xb5b   : > { %v14122_v46 = vadd.f32 %v13976_v45, %v13872_v63  ;;  %v12908_v26 = vpop.f32.mrf.mxu1 }
 0xb5c   : > { %v13052_v14 = vadd.f32 %v12908_v26, %v12686_v12 }
 0xb5d   : > { %16342 = vmatmul.msk.bf16.gmra.mxu3 %vm573_vm1, %v21490_v32  ;;  %v14186_v47 = vmax.f32 %v14122_v46, 0.0  ;;  %v16657_v32 = vld [vmem:[#allocation2 + $0xb8] sm:$0xff] }
 0xb5e   : > { %v13874_v3 = vadd.f32 %v13730_v18, %v13052_v14  ;;  %v13471_v18 = vshll.u32 %v16657_v32, 16  ;;  %v13469_v14 = vor.u32 %v13467_v31, %v13465_v58  ;;  %v13475_v31 = vshrl.u32 %v16657_v32, 16 }
 0xb5f   : > { %v14250_v54 = vpack.c.bf16 %v14186_v47, %v14186_v47  ;;  %v21494_v47 = vld [vmem:[#allocation75_spill] sm:$0xff] }
 0xb60   : > { %v13978_v0 = vpop.f32.mrf.mxu3  ;;  %v12687_v61 = vadd.f32 %v21494_v47, %v21493_v21 }
 0xb61   : > { %14314 = vst.msk [vmem:[%s20774_s9 + $0x24] sm:$0xf] %vm7768_vm4, %v14250_v54  ;;  %v13979_v39 = vadd.f32 %v20764_v5, %v13978_v0  ;;  %v21495_v54 = vld [vmem:[#allocation33_spill] sm:$0xff] }
 0xb62   : > { %v13735_v2 = vpop.f32.mrf.mxu2 }
 0xb63   : > { %v14123_v42 = vadd.f32 %v13979_v39, %v13873_v29  ;;  %v12911_v49 = vpop.f32.mrf.mxu1 }
 0xb64   : > { %v13053_v26 = vadd.f32 %v12911_v49, %v12687_v61 }
 0xb65   : > { %v14187_v41 = vmax.f32 %v14123_v42, 0.0 }
 0xb66   : > { %16150 = vmatmul.msk.bf16.gmra.mxu1 %vm573_vm1, %v17162_v20  ;;  %v13875_v51 = vadd.f32 %v13733_v36, %v13053_v26 }
 0xb67   : > { %16312 = vmatmul.msk.bf16.gmra.mxu2 %vm573_vm1, %v13466_v10  ;;  %v14251_v63 = vpack.c.bf16 %v14187_v41, %v14187_v41  ;;  %v13473_v41 = vrot.slane %v13471_v18, 1  ;;  %v21496_v10 = vld [vmem:[#allocation5_spill] sm:$0xff]  ;;  %v21499_v18 = vld [vmem:[#allocation35_spill] sm:$0xff] }
 0xb68   : > { %v13980_v45 = vpop.f32.mrf.mxu3 }
 0xb69   : > { %14315 = vst.msk [vmem:[%s20774_s9 + $0x28] sm:$0xf] %vm7768_vm4, %v14251_v63  ;;  %v13981_v40 = vadd.f32 %v20764_v5, %v13980_v45  ;;  %v12688_v63 = vadd.f32 %v21496_v10, %v20417_v15  ;;  %v13474_v20 = vsel %vm1133_vm3, %v13469_v14, %v13473_v41  ;;  %v21497_v15 = vld [vmem:[#allocation86_spill] sm:$0xff] }
 0xb6a   : > { %v13738_v46 = vpop.f32.mrf.mxu2 }
 0xb6b   : > { %v14124_v4 = vadd.f32 %v13981_v40, %v13874_v3  ;;  %v12913_v39 = vpop.f32.mrf.mxu1  ;;  %v17163_v40 = vld [vmem:[#allocation2 + $0xa8] sm:$0xff]  }
 0xb6c   : > { %v13054_v49 = vadd.f32 %v12913_v39, %v12688_v63 }
 0xb6d   : > { %16343 = vmatmul.msk.bf16.gmra.mxu3 %vm573_vm1, %v21495_v54  ;;  %v14188_v0 = vmax.f32 %v14124_v4, 0.0  ;;  %v16658_v4 = vld [vmem:[#allocation2 + $0xc0] sm:$0xff]  ;;  %v21498_v54 = vld [vmem:[#allocation76_spill] sm:$0xff] }
 0xb6e   : > { %v13876_v47 = vadd.f32 %v13735_v2, %v13054_v49  ;;  %v12689_v26 = vadd.f32 %v21498_v54, %v21497_v15  ;;  %v13479_v2 = vshll.u32 %v16658_v4, 16  ;;  %v17164_v15 = vld [vmem:[#allocation2 + $0xb0] sm:$0xff]  }
 0xb6f   : > { %v14252_v29 = vpack.c.bf16 %v14188_v0, %v14188_v0 }
 0xb70   : > { %v13983_v9 = vpop.f32.mrf.mxu3  ;;  %v13481_v49 = vrot.slane %v13479_v2, 1 }
 0xb71   : > { %14316 = vst.msk [vmem:[%s20774_s9 + $0x2c] sm:$0xf] %vm7768_vm4, %v14252_v29  ;;  %v13984_v12 = vadd.f32 %v20764_v5, %v13983_v9 }
 0xb72   : > { %v13740_v42 = vpop.f32.mrf.mxu2 }
 0xb73   : > { %v14125_v45 = vadd.f32 %v13984_v12, %v13875_v51  ;;  %v12916_v36 = vpop.f32.mrf.mxu1 }
 0xb74   : > { %v13055_v29 = vadd.f32 %v12916_v36, %v12689_v26  ;;  %v16659_v26 = vld [vmem:[#allocation2 + $0xc8] sm:$0xff] }
 0xb75   : > { %v14189_v3 = vmax.f32 %v14125_v45, 0.0  ;;  %v13477_v45 = vor.u32 %v13475_v31, %v13473_v41 }
 0xb76   : > { %16151 = vmatmul.msk.bf16.gmra.mxu1 %vm573_vm1, %v17163_v40  ;;  %v13877_v14 = vadd.f32 %v13738_v46, %v13055_v29  ;;  %v21502_v29 = vld [vmem:[#allocation36_spill] sm:$0xff] }
 0xb77   : > { %16313 = vmatmul.msk.bf16.gmra.mxu2 %vm573_vm1, %v13474_v20  ;;  %v14253_v53 = vpack.c.bf16 %v14189_v3, %v14189_v3  ;;  %v21500_v3 = vld [vmem:[#allocation12_spill] sm:$0xff]  ;;  %v13482_v32 = vsel %vm1133_vm3, %v13477_v45, %v13481_v49 }
 0xb78   : > { %v13985_v21 = vpop.f32.mrf.mxu3  ;;  %v12690_v20 = vadd.f32 %v21500_v3, %v20434_v38  ;;  %v21501_v38 = vld [vmem:[#allocation8_spill] sm:$0xff] }
 0xb79   : > { %14317 = vst.msk [vmem:[%s20774_s9 + $0x30] sm:$0xf] %vm7768_vm4, %v14253_v53  ;;  %v13986_v58 = vadd.f32 %v20764_v5, %v13985_v21 }
 0xb7a   : > { %v13743_v61 = vpop.f32.mrf.mxu2 }
 0xb7b   : > { %v14126_v0 = vadd.f32 %v13986_v58, %v13876_v47  ;;  %v12918_v51 = vpop.f32.mrf.mxu1 }
 0xb7c   : > { %v13056_v36 = vadd.f32 %v12918_v51, %v12690_v20  ;;  %v13483_v51 = vshrl.u32 %v16658_v4, 16  ;;  %v21503_v20 = vld [vmem:[#allocation88_spill] sm:$0xff] }
 0xb7d   : > { %16344 = vmatmul.msk.bf16.gmra.mxu3 %vm573_vm1, %v21499_v18  ;;  %v14190_v39 = vmax.f32 %v14126_v0, 0.0  ;;  %v12691_v0 = vadd.f32 %v21501_v38, %v20442_v62  ;;  %v16660_v38 = vld [vmem:[#allocation2 + $0xd0] sm:$0xff] }
 0xb7e   : > { %v13878_v58 = vadd.f32 %v13740_v42, %v13056_v36  ;;  %v13487_v42 = vshll.u32 %v16659_v26, 16  ;;  %v13485_v3 = vor.u32 %v13483_v51, %v13481_v49 }
 0xb7f   : > { %v14254_v9 = vpack.c.bf16 %v14190_v39, %v14190_v39 }
 0xb80   : > { %v13988_v12 = vpop.f32.mrf.mxu3  ;;  %v13489_v62 = vrot.slane %v13487_v42, 1 }
 0xb81   : > { %14318 = vst.msk [vmem:[%s20774_s9 + $0x34] sm:$0xf] %vm7768_vm4, %v14254_v9  ;;  %v13989_v10 = vadd.f32 %v20764_v5, %v13988_v12 }
 0xb82   : > { %v13745_v63 = vpop.f32.mrf.mxu2 }
 0xb83   : > { %v14127_v53 = vadd.f32 %v13989_v10, %v13877_v14  ;;  %v12921_v46 = vpop.f32.mrf.mxu1 }
 0xb84   : > { %v13057_v39 = vadd.f32 %v12921_v46, %v12691_v0  ;;  %v13490_v46 = vsel %vm1133_vm3, %v13485_v3, %v13489_v62  ;;  %v21505_v0 = vld [vmem:[#allocation89_spill] sm:$0xff] }
 0xb85   : > { %v14191_v40 = vmax.f32 %v14127_v53, 0.0  ;;  %v21504_v53 = vld [vmem:[#allocation78_spill] sm:$0xff] }
 0xb86   : > { %16152 = vmatmul.msk.bf16.gmra.mxu1 %vm573_vm1, %v17164_v15  ;;  %v13879_v14 = vadd.f32 %v13743_v61, %v13057_v39  ;;  %v12692_v36 = vadd.f32 %v21504_v53, %v21503_v20 }
 0xb87   : > { %16314 = vmatmul.msk.bf16.gmra.mxu2 %vm573_vm1, %v13482_v32  ;;  %v14255_v21 = vpack.c.bf16 %v14191_v40, %v14191_v40 }
 0xb88   : > { %v13990_v47 = vpop.f32.mrf.mxu3 }
 0xb89   : > { %14319 = vst.msk [vmem:[%s20774_s9 + $0x38] sm:$0xf] %vm7768_vm4, %v14255_v21  ;;  %v13991_v41 = vadd.f32 %v20764_v5, %v13990_v47  ;;  %v17165_v47 = vld [vmem:[#allocation2 + $0xb8] sm:$0xff]  }
 0xb8a   : > { %v13748_v54 = vpop.f32.mrf.mxu2 }
 0xb8b   : > { %v14128_v18 = vadd.f32 %v13991_v41, %v13878_v58  ;;  %v12923_v9 = vpop.f32.mrf.mxu1 }
 0xb8c   : > { %v13058_v32 = vadd.f32 %v12923_v9, %v12692_v36  ;;  %v13491_v9 = vshrl.u32 %v16659_v26, 16 }
 0xb8d   : > { %16345 = vmatmul.msk.bf16.gmra.mxu3 %vm573_vm1, %v21502_v29  ;;  %v14192_v31 = vmax.f32 %v14128_v18, 0.0  ;;  %v21506_v18 = vld [vmem:[#allocation80_spill] sm:$0xff] }
 0xb8e   : > { %v13880_v15 = vadd.f32 %v13745_v63, %v13058_v32  ;;  %v12693_v29 = vadd.f32 %v21506_v18, %v21505_v0  ;;  %v13495_v63 = vshll.u32 %v16660_v38, 16  ;;  %v13493_v53 = vor.u32 %v13491_v9, %v13489_v62  ;;  %v21509_v32 = vld [vmem:[#allocation9_spill] sm:$0xff]  ;;  %v16661_v18 = vld [vmem:[#allocation2 + $0xd8] sm:$0xff] }
 0xb8f   : > { %v14256_v2 = vpack.c.bf16 %v14192_v31, %v14192_v31  ;;  %v21507_v31 = vld [vmem:[#allocation37_spill] sm:$0xff] }
 0xb90   : > { %v13993_v12 = vpop.f32.mrf.mxu3  ;;  %v13497_v36 = vrot.slane %v13495_v63, 1 }
 0xb91   : > { %14320 = vst.msk [vmem:[%s20774_s9 + $0x3c] sm:$0xf] %vm7768_vm4, %v14256_v2  ;;  %v13994_v10 = vadd.f32 %v20764_v5, %v13993_v12 }
 0xb92   : > { %v13750_v45 = vpop.f32.mrf.mxu2  ;;  %v13498_v26 = vsel %vm1133_vm3, %v13493_v53, %v13497_v36 }
 0xb93   : > { %v14129_v40 = vadd.f32 %v13994_v10, %v13879_v14  ;;  %v12926_v61 = vpop.f32.mrf.mxu1 }
 0xb94   : > { %v13059_v42 = vadd.f32 %v12926_v61, %v12693_v29  ;;  %v21510_v29 = vld [vmem:[#allocation82_spill] sm:$0xff] }
 0xb95   : > { %v14193_v21 = vmax.f32 %v14129_v40, 0.0  ;;  %v21508_v40 = vld [vmem:[#allocation21_spill] sm:$0xff] }
 0xb96   : > { %16153 = vmatmul.msk.bf16.gmra.mxu1 %vm573_vm1, %v17165_v47  ;;  %v13881_v10 = vadd.f32 %v13748_v54, %v13059_v42  ;;  %v21511_v42 = vld [vmem:[#allocation38_spill] sm:$0xff] }
 0xb97   : > { %16315 = vmatmul.msk.bf16.gmra.mxu2 %vm573_vm1, %v13490_v46  ;;  %v14257_v4 = vpack.c.bf16 %v14193_v21, %v14193_v21  ;;  %v12694_v21 = vadd.f32 %v21509_v32, %v21508_v40  ;;  %v21512_v32 = vld [vmem:[#allocation83_spill] sm:$0xff] }
 0xb98   : > { %v13995_v58 = vpop.f32.mrf.mxu3 }
 0xb99   : > { %14321 = vst.msk [vmem:[%s20774_s9 + $0x40] sm:$0xf] %vm7768_vm4, %v14257_v4  ;;  %v13996_v49 = vadd.f32 %v20764_v5, %v13995_v58 }
 0xb9a   : > { %v13753_v41 = vpop.f32.mrf.mxu2 }
 0xb9b   : > { %v14130_v39 = vadd.f32 %v13996_v49, %v13880_v15  ;;  %v12928_v12 = vpop.f32.mrf.mxu1  ;;  %v17166_v49 = vld [vmem:[#allocation2 + $0xc0] sm:$0xff]  }
 0xb9c   : > { %v13060_v4 = vadd.f32 %v12928_v12, %v12694_v21  ;;  %v13499_v12 = vshrl.u32 %v16660_v38, 16  ;;  %v12696_v21 = vadd.f32 %v21512_v32, %v20483_v28  ;;  %v21513_v28 = vld [vmem:[#allocation84_spill] sm:$0xff] }
 0xb9d   : > { %16346 = vmatmul.msk.bf16.gmra.mxu3 %vm573_vm1, %v21507_v31  ;;  %v14194_v2 = vmax.f32 %v14130_v39, 0.0  ;;  %v12695_v39 = vadd.f32 %v21510_v29, %v20474_v27 }
 0xb9e   : > { %v13882_v15 = vadd.f32 %v13750_v45, %v13060_v4  ;;  %v13503_v45 = vshll.u32 %v16661_v18, 16  ;;  %v13501_v40 = vor.u32 %v13499_v12, %v13497_v36 }
 0xb9f   : > { %v14258_v51 = vpack.c.bf16 %v14194_v2, %v14194_v2 }
 0xba0   : > { %v13998_v14 = vpop.f32.mrf.mxu3  ;;  %v13505_v27 = vrot.slane %v13503_v45, 1 }
 0xba1   : > { %14322 = vst.msk [vmem:[%s20774_s9 + $0x44] sm:$0xf] %vm7768_vm4, %v14258_v51  ;;  %v13999_v3 = vadd.f32 %v20764_v5, %v13998_v14 }
 0xba2   : > { %v13755_v20 = vpop.f32.mrf.mxu2 }
 0xba3   : > { %v14131_v46 = vadd.f32 %v13999_v3, %v13881_v10  ;;  %v12931_v54 = vpop.f32.mrf.mxu1 }
 0xba4   : > { %v13061_v2 = vadd.f32 %v12931_v54, %v12695_v39  ;;  %v21514_v39 = vld [vmem:[#allocation39_spill] sm:$0xff] }
 0xba5   : > { %v14195_v61 = vmax.f32 %v14131_v46, 0.0 }
 0xba6   : > { %16154 = vmatmul.msk.bf16.gmra.mxu1 %vm573_vm1, %v17166_v49  ;;  %v13883_v10 = vadd.f32 %v13753_v41, %v13061_v2  ;;  %v16662_v49 = vld [vmem:[#allocation2 + $0xe0] sm:$0xff]  ;;  %v13507_v2 = vshrl.u32 %v16661_v18, 16 }
 0xba7   : > { %16316 = vmatmul.msk.bf16.gmra.mxu2 %vm573_vm1, %v13498_v26  ;;  %v14259_v47 = vpack.c.bf16 %v14195_v61, %v14195_v61  ;;  %v13506_v26 = vsel %vm1133_vm3, %v13501_v40, %v13505_v27 }
 0xba8   : > { %v14000_v58 = vpop.f32.mrf.mxu3 }
 0xba9   : > { %14323 = vst.msk [vmem:[%s20774_s9 + $0x48] sm:$0xf] %vm7768_vm4, %v14259_v47  ;;  %v14001_v62 = vadd.f32 %v20764_v5, %v14000_v58  ;;  %v17167_v47 = vld [vmem:[#allocation2 + $0xc8] sm:$0xff]  }
 0xbaa   : > { %v13758_v0 = vpop.f32.mrf.mxu2 }
 0xbab   : > { %v14132_v31 = vadd.f32 %v14001_v62, %v13882_v15  ;;  %v12933_v51 = vpop.f32.mrf.mxu1  ;;  %v12697_v62 = vadd.f32 %v21513_v28, %v20491_v24 }
 0xbac   : > { %v13062_v4 = vadd.f32 %v12933_v51, %v12696_v21 }
 0xbad   : > { %16347 = vmatmul.msk.bf16.gmra.mxu3 %vm573_vm1, %v21511_v42  ;;  %v14196_v9 = vmax.f32 %v14132_v31, 0.0 }
 0xbae   : > { %v13884_v58 = vadd.f32 %v13755_v20, %v13062_v4  ;;  %v13511_v20 = vshll.u32 %v16662_v49, 16 }
 0xbaf   : > { %v14260_v63 = vpack.c.bf16 %v14196_v9, %v14196_v9 }
 0xbb0   : > { %v14003_v14 = vpop.f32.mrf.mxu3  ;;  %v13513_v24 = vrot.slane %v13511_v20, 1 }
 0xbb1   : > { %14324 = vst.msk [vmem:[%s20774_s9 + $0x4c] sm:$0xf] %vm7768_vm4, %v14260_v63  ;;  %v14004_v3 = vadd.f32 %v20764_v5, %v14003_v14 }
 0xbb2   : > { %v13760_v53 = vpop.f32.mrf.mxu2 }
 0xbb3   : > { %v14133_v46 = vadd.f32 %v14004_v3, %v13883_v10  ;;  %v12936_v41 = vpop.f32.mrf.mxu1  ;;  %v13509_v10 = vor.u32 %v13507_v2, %v13505_v27  ;;  %v21515_v3 = vld [vmem:[#allocation85_spill] sm:$0xff] }
 0xbb4   : > { %v13063_v31 = vadd.f32 %v12936_v41, %v12697_v62  ;;  %v12698_v40 = vadd.f32 %v21515_v3, %v20498_v50  ;;  %v21516_v50 = vld [vmem:[#allocation87_spill] sm:$0xff] }
 0xbb5   : > { %v14197_v61 = vmax.f32 %v14133_v46, 0.0  ;;  %v13514_v18 = vsel %vm1133_vm3, %v13509_v10, %v13513_v24 }
 0xbb6   : > { %16155 = vmatmul.msk.bf16.gmra.mxu1 %vm573_vm1, %v17167_v47  ;;  %v13885_v51 = vadd.f32 %v13758_v0, %v13063_v31  ;;  %v16663_v47 = vld [vmem:[#allocation2 + $0xe8] sm:$0xff]  ;;  %v13515_v31 = vshrl.u32 %v16662_v49, 16 }
 0xbb7   : > { %16317 = vmatmul.msk.bf16.gmra.mxu2 %vm573_vm1, %v13506_v26  ;;  %v14261_v38 = vpack.c.bf16 %v14197_v61, %v14197_v61 }
 0xbb8   : > { %v14005_v54 = vpop.f32.mrf.mxu3 }
 0xbb9   : > { %14325 = vst.msk [vmem:[%s20774_s9 + $0x50] sm:$0xf] %vm7768_vm4, %v14261_v38  ;;  %v14006_v36 = vadd.f32 %v20764_v5, %v14005_v54  ;;  %v17168_v38 = vld [vmem:[#allocation2 + $0xd0] sm:$0xff]   ;;  %v12699_v54 = vadd.f32 %v21516_v50, %v20506_v55  ;;  %v13523_v50 = vshrl.u32 %v16663_v47, 16 }
 0xbba   : > { %v13763_v15 = vpop.f32.mrf.mxu2 }
 0xbbb   : > { %v14134_v29 = vadd.f32 %v14006_v36, %v13884_v58  ;;  %v12938_v45 = vpop.f32.mrf.mxu1  ;;  %v21517_v36 = vld [vmem:[#allocation40_spill] sm:$0xff] }
 0xbbc   : > { %v13064_v21 = vadd.f32 %v12938_v45, %v12698_v40  ;;  %v13517_v45 = vor.u32 %v13515_v31, %v13513_v24 }
 0xbbd   : > { %16348 = vmatmul.msk.bf16.gmra.mxu3 %vm573_vm1, %v21514_v39  ;;  %v14198_v42 = vmax.f32 %v14134_v29, 0.0 }
 0xbbe   : > { %v13886_v26 = vadd.f32 %v13760_v53, %v13064_v21  ;;  %v13519_v53 = vshll.u32 %v16663_v47, 16 }
 0xbbf   : > { %v14262_v9 = vpack.c.bf16 %v14198_v42, %v14198_v42 }
 0xbc0   : > { %v14008_v63 = vpop.f32.mrf.mxu3  ;;  %v13521_v55 = vrot.slane %v13519_v53, 1 }
 0xbc1   : > { %14326 = vst.msk [vmem:[%s20774_s9 + $0x54] sm:$0xf] %vm7768_vm4, %v14262_v9  ;;  %v14009_v12 = vadd.f32 %v20764_v5, %v14008_v63  ;;  %v21518_v63 = vld [vmem:[#allocation20_spill] sm:$0xff] }
 0xbc2   : > { %v13765_v14 = vpop.f32.mrf.mxu2  ;;  %v13522_v40 = vsel %vm1133_vm3, %v13517_v45, %v13521_v55 }
 0xbc3   : > { %v14135_v32 = vadd.f32 %v14009_v12, %v13885_v51  ;;  %v12941_v0 = vpop.f32.mrf.mxu1  ;;  %v12700_v51 = vadd.f32 %v21518_v63, %v20515_v60  ;;  %v21519_v60 = vld [vmem:[#allocation13_spill] sm:$0xff] }
 0xbc4   : > { %v13065_v28 = vadd.f32 %v12941_v0, %v12699_v54  ;;  %v12701_v0 = vadd.f32 %v21519_v60, %v20523_v48 }
 0xbc5   : > { %v14199_v46 = vmax.f32 %v14135_v32, 0.0  ;;  %v17169_v32 = vld [vmem:[#allocation2 + $0xd8] sm:$0xff]  }
 0xbc6   : > { %16156 = vmatmul.msk.bf16.gmra.mxu1 %vm573_vm1, %v17168_v38  ;;  %v13887_v2 = vadd.f32 %v13763_v15, %v13065_v28 }
 0xbc7   : > { %16318 = vmatmul.msk.bf16.gmra.mxu2 %vm573_vm1, %v13514_v18  ;;  %v14263_v4 = vpack.c.bf16 %v14199_v46, %v14199_v46 }
 0xbc8   : > { %v14010_v61 = vpop.f32.mrf.mxu3 }
 0xbc9   : > { %14327 = vst.msk [vmem:[%s20774_s9 + $0x58] sm:$0xf] %vm7768_vm4, %v14263_v4  ;;  %v14011_v27 = vadd.f32 %v20764_v5, %v14010_v61  ;;  %v16664_v4 = vld [vmem:[#allocation2 + $0xf0] sm:$0xff] }
 0xbca   : > { %v13768_v41 = vpop.f32.mrf.mxu2  ;;  %v13531_v60 = vshrl.u32 %v16664_v4, 16 }
 0xbcb   : > { %v14136_v58 = vadd.f32 %v14011_v27, %v13886_v26  ;;  %v12943_v39 = vpop.f32.mrf.mxu1  ;;  %v21520_v26 = vld [vmem:[#allocation41_spill] sm:$0xff] }
 0xbcc   : > { %v13066_v10 = vadd.f32 %v12943_v39, %v12700_v51  ;;  %v21521_v39 = vld [vmem:[#allocation90_spill] sm:$0xff] }
 0xbcd   : > { %16349 = vmatmul.msk.bf16.gmra.mxu3 %vm573_vm1, %v21517_v36  ;;  %v14200_v62 = vmax.f32 %v14136_v58, 0.0  ;;  %v12702_v31 = vadd.f32 %v21521_v39, %v20532_v30  ;;  %v21522_v30 = vld [vmem:[#allocation91_spill] sm:$0xff] }
 0xbce   : > { %v13888_v46 = vadd.f32 %v13765_v14, %v13066_v10  ;;  %v13527_v14 = vshll.u32 %v16664_v4, 16 }
 0xbcf   : > { %v14264_v29 = vpack.c.bf16 %v14200_v62, %v14200_v62 }
 0xbd0   : > { %v14013_v42 = vpop.f32.mrf.mxu3  ;;  %v13529_v48 = vrot.slane %v13527_v14, 1 }
 0xbd1   : > { %14328 = vst.msk [vmem:[%s20774_s9 + $0x5c] sm:$0xf] %vm7768_vm4, %v14264_v29  ;;  %v14014_v20 = vadd.f32 %v20764_v5, %v14013_v42  ;;  %v13525_v29 = vor.u32 %v13523_v50, %v13521_v55  ;;  %v21524_v50 = vld [vmem:[#allocation22_spill] sm:$0xff] }
 0xbd2   : > { %v13770_v9 = vpop.f32.mrf.mxu2  ;;  %v12704_v14 = vadd.f32 %v21524_v50, %v20550_v25  ;;  %v21525_v25 = vld [vmem:[#allocation92_spill] sm:$0xff] }
 0xbd3   : > { %v14137_v12 = vadd.f32 %v14014_v20, %v13887_v2  ;;  %v12946_v15 = vpop.f32.mrf.mxu1  ;;  %v13530_v47 = vsel %vm1133_vm3, %v13525_v29, %v13529_v48 }
 0xbd4   : > { %v13067_v38 = vadd.f32 %v12946_v15, %v12701_v0  ;;  %v21523_v15 = vld [vmem:[#allocation42_spill] sm:$0xff] }
 0xbd5   : > { %v14201_v3 = vmax.f32 %v14137_v12, 0.0  ;;  %v17170_v12 = vld [vmem:[#allocation2 + $0xe0] sm:$0xff]  }
 0xbd6   : > { %16157 = vmatmul.msk.bf16.gmra.mxu1 %vm573_vm1, %v17169_v32  ;;  %v13889_v28 = vadd.f32 %v13768_v41, %v13067_v38 }
 0xbd7   : > { %16319 = vmatmul.msk.bf16.gmra.mxu2 %vm573_vm1, %v13522_v40  ;;  %v14265_v49 = vpack.c.bf16 %v14201_v3, %v14201_v3  ;;  %v16665_v3 = vld [vmem:[#allocation2 + $0xf8] sm:$0xff]  ;;  %v12703_v40 = vadd.f32 %v21522_v30, %v20540_v17 }
 0xbd8   : > { %v14015_v21 = vpop.f32.mrf.mxu3 }
 0xbd9   : > { %14329 = vst.msk [vmem:[%s20774_s9 + $0x60] sm:$0xf] %vm7768_vm4, %v14265_v49  ;;  %v14016_v24 = vadd.f32 %v20764_v5, %v14015_v21 }
 0xbda   : > { %v13773_v18 = vpop.f32.mrf.mxu2 }
 0xbdb   : > { %v14138_v61 = vadd.f32 %v14016_v24, %v13888_v46  ;;  %v12948_v58 = vpop.f32.mrf.mxu1 }
 0xbdc   : > { %v13068_v2 = vadd.f32 %v12948_v58, %v12702_v31 }
 0xbdd   : > { %16350 = vmatmul.msk.bf16.gmra.mxu3 %vm573_vm1, %v21520_v26  ;;  %v14202_v27 = vmax.f32 %v14138_v61, 0.0 }
 0xbde   : > { %v13890_v51 = vadd.f32 %v13770_v9, %v13068_v2  ;;  %v13535_v9 = vshll.u32 %v16665_v3, 16  ;;  %v12705_v2 = vadd.f32 %v21525_v25, %v20556_v16  ;;  %v21529_v25 = vld [vmem:[#allocation94_spill] sm:$0xff] }
 0xbdf   : > { %v14266_v54 = vpack.c.bf16 %v14202_v27, %v14202_v27  ;;  %v13533_v27 = vor.u32 %v13531_v60, %v13529_v48 }
 0xbe0   : > { %v14018_v36 = vpop.f32.mrf.mxu3  ;;  %v13537_v17 = vrot.slane %v13535_v9, 1 }
 0xbe1   : > { %14330 = vst.msk [vmem:[%s20774_s9 + $0x64] sm:$0xf] %vm7768_vm4, %v14266_v54  ;;  %v14019_v62 = vadd.f32 %v20764_v5, %v14018_v36 }
 0xbe2   : > { %v13775_v53 = vpop.f32.mrf.mxu2 }
 0xbe3   : > { %v14139_v42 = vadd.f32 %v14019_v62, %v13889_v28  ;;  %v12951_v41 = vpop.f32.mrf.mxu1  ;;  %v13538_v28 = vsel %vm1133_vm3, %v13533_v27, %v13537_v17  ;;  %v17171_v62 = vld [vmem:[#allocation2 + $0xe8] sm:$0xff]  }
 0xbe4   : > { %v13069_v32 = vadd.f32 %v12951_v41, %v12703_v40 }
 0xbe5   : > { %v14203_v20 = vmax.f32 %v14139_v42, 0.0  ;;  %v16666_v42 = vld [vmem:[#allocation2 + $0x100] sm:$0xff] }
 0xbe6   : > { %16158 = vmatmul.msk.bf16.gmra.mxu1 %vm573_vm1, %v17170_v12  ;;  %v13891_v61 = vadd.f32 %v13773_v18, %v13069_v32  ;;  %v12706_v32 = vadd.f32 %v20500_v1, %v20561_v11  ;;  %v21527_v1 = vld [vmem:[#allocation93_spill] sm:$0xff] }
 0xbe7   : > { %16320 = vmatmul.msk.bf16.gmra.mxu2 %vm573_vm1, %v13530_v47  ;;  %v14267_v45 = vpack.c.bf16 %v14203_v20, %v14203_v20  ;;  %v21526_v47 = vld [vmem:[#allocation44_spill] sm:$0xff]  ;;  %v12707_v11 = vadd.f32 %v21527_v1, %v20567_v33 }
 0xbe8   : > { %v14020_v63 = vpop.f32.mrf.mxu3  ;;  %v21532_v1 = vld [vmem:[#allocation96_spill] sm:$0xff] }
 0xbe9   : > { %14331 = vst.msk [vmem:[%s20774_s9 + $0x68] sm:$0xf] %vm7768_vm4, %v14267_v45  ;;  %v14021_v55 = vadd.f32 %v20764_v5, %v14020_v63  ;;  %v13539_v63 = vshrl.u32 %v16665_v3, 16 }
 0xbea   : > { %v13778_v10 = vpop.f32.mrf.mxu2 }
 0xbeb   : > { %v14140_v49 = vadd.f32 %v14021_v55, %v13890_v51  ;;  %v12953_v24 = vpop.f32.mrf.mxu1 }
 0xbec   : > { %v13070_v58 = vadd.f32 %v12953_v24, %v12704_v14  ;;  %v21528_v14 = vld [vmem:[#allocation45_spill] sm:$0xff] }
 0xbed   : > { %16351 = vmatmul.msk.bf16.gmra.mxu3 %vm573_vm1, %v21523_v15  ;;  %v14204_v21 = vmax.f32 %v14140_v49, 0.0  ;;  %v13541_v15 = vor.u32 %v13539_v63, %v13537_v17  ;;  %v16667_v17 = vld [vmem:[#allocation2 + $0x108] sm:$0xff]  ;;  %v17173_v63 = vld [vmem:[#allocation2 + $0xf8] sm:$0xff]  }
 0xbee   : > { %v13892_v39 = vadd.f32 %v13775_v53, %v13070_v58  ;;  %v13543_v53 = vshll.u32 %v16666_v42, 16 }
 0xbef   : > { %v14268_v46 = vpack.c.bf16 %v14204_v21, %v14204_v21 }
 0xbf0   : > { %v14023_v0 = vpop.f32.mrf.mxu3  ;;  %v13545_v16 = vrot.slane %v13543_v53, 1 }
 0xbf1   : > { %14332 = vst.msk [vmem:[%s20774_s9 + $0x6c] sm:$0xf] %vm7768_vm4, %v14268_v46  ;;  %v14024_v26 = vadd.f32 %v20764_v5, %v14023_v0 }
 0xbf2   : > { %v13780_v38 = vpop.f32.mrf.mxu2  ;;  %v13546_v3 = vsel %vm1133_vm3, %v13541_v15, %v13545_v16 }
 0xbf3   : > { %v14141_v54 = vadd.f32 %v14024_v26, %v13891_v61  ;;  %v12956_v18 = vpop.f32.mrf.mxu1  ;;  %v17172_v61 = vld [vmem:[#allocation2 + $0xf0] sm:$0xff]  }
 0xbf4   : > { %v13071_v45 = vadd.f32 %v12956_v18, %v12705_v2  ;;  %v12708_v2 = vadd.f32 %v21529_v25, %v20572_v22  ;;  %v21530_v22 = vld [vmem:[#allocation95_spill] sm:$0xff] }
 0xbf5   : > { %v14205_v36 = vmax.f32 %v14141_v54, 0.0 }
 0xbf6   : > { %16159 = vmatmul.msk.bf16.gmra.mxu1 %vm573_vm1, %v17171_v62  ;;  %v13893_v30 = vadd.f32 %v13778_v10, %v13071_v45 }
 0xbf7   : > { %16321 = vmatmul.msk.bf16.gmra.mxu2 %vm573_vm1, %v13538_v28  ;;  %v14269_v4 = vpack.c.bf16 %v14205_v36, %v14205_v36 }
 0xbf8   : > { %v14025_v29 = vpop.f32.mrf.mxu3 }
 0xbf9   : > { %14333 = vst.msk [vmem:[%s20774_s9 + $0x70] sm:$0xf] %vm7768_vm4, %v14269_v4  ;;  %v14026_v48 = vadd.f32 %v20764_v5, %v14025_v29  ;;  %v13547_v4 = vshrl.u32 %v16666_v42, 16 }
 0xbfa   : > { %v13783_v31 = vpop.f32.mrf.mxu2 }
 0xbfb   : > { %v14142_v20 = vadd.f32 %v14026_v48, %v13892_v39  ;;  %v12958_v12 = vpop.f32.mrf.mxu1  ;;  %v13549_v39 = vor.u32 %v13547_v4, %v13545_v16  ;;  %v21028_v16 = vpop.f32.mrf.mxu0  ;;  %v17174_v4 = vld [vmem:[#allocation2 + $0x100] sm:$0xff]  }
 0xbfc   : > { %v13072_v9 = vadd.f32 %v12958_v12, %v12706_v32  ;;  %v21531_v32 = vld [vmem:[#allocation46_spill] sm:$0xff] }
 0xbfd   : > { %16352 = vmatmul.msk.bf16.gmra.mxu3 %vm573_vm1, %v21526_v47  ;;  %v14206_v41 = vmax.f32 %v14142_v20, 0.0 }
 0xbfe   : > { %v13894_v0 = vadd.f32 %v13780_v38, %v13072_v9  ;;  %v13551_v38 = vshll.u32 %v16667_v17, 16  ;;  %v13555_v9 = vshrl.u32 %v16667_v17, 16 }
 0xbff   : > { %v14270_v51 = vpack.c.bf16 %v14206_v41, %v14206_v41 }
 0xc00   : > { %v14028_v55 = vpop.f32.mrf.mxu3  ;;  %v13553_v48 = vrot.slane %v13551_v38, 1 }
 0xc01   : > { %14334 = vst.msk [vmem:[%s20774_s9 + $0x74] sm:$0xf] %vm7768_vm4, %v14270_v51  ;;  %v14029_v40 = vadd.f32 %v20764_v5, %v14028_v55 }
 0xc02   : > { %v13785_v49 = vpop.f32.mrf.mxu2 }
 0xc03   : > { %v14143_v21 = vadd.f32 %v14029_v40, %v13893_v30  ;;  %v12961_v10 = vpop.f32.mrf.mxu1  ;;  %v16668_v30 = vld [vmem:[#allocation2 + $0x110] sm:$0xff]  ;;  %v12709_v40 = vadd.f32 %v21530_v22, %v20578_v7 }
 0xc04   : > { %v13073_v54 = vadd.f32 %v12961_v10, %v12707_v11  ;;  %v12710_v11 = vadd.f32 %v21532_v1, %v20583_v44 }
 0xc05   : > { %v14207_v46 = vmax.f32 %v14143_v21, 0.0 }
 0xc06   : > { %16160 = vmatmul.msk.bf16.gmra.mxu1 %vm573_vm1, %v17172_v61  ;;  %v13895_v62 = vadd.f32 %v13783_v31, %v13073_v54  ;;  %v13554_v31 = vsel %vm1133_vm3, %v13549_v39, %v13553_v48  ;;  %v13557_v61 = vor.u32 %v13555_v9, %v13553_v48  ;;  %v21533_v48 = vld [vmem:[#allocation47_spill] sm:$0xff] }
 0xc07   : > { %16322 = vmatmul.msk.bf16.gmra.mxu2 %vm573_vm1, %v13546_v3  ;;  %v14271_v24 = vpack.c.bf16 %v14207_v46, %v14207_v46  ;;  %v13559_v46 = vshll.u32 %v16668_v30, 16 }
 0xc08   : > { %v14030_v60 = vpop.f32.mrf.mxu3 }
 0xc09   : > { %14335 = vst.msk [vmem:[%s20774_s9 + $0x78] sm:$0xf] %vm7768_vm4, %v14271_v24  ;;  %v14031_v26 = vadd.f32 %v20764_v5, %v14030_v60  ;;  %v21015_v5 = vld [vmem:[%s21222_s6] ss:$0 sm:$0xff] }
 0xc0a   : > { %v13788_v27 = vpop.f32.mrf.mxu2 }
 0xc0b   : > { %v14144_v50 = vadd.f32 %v14031_v26, %v13894_v0  ;;  %v12963_v28 = vpop.f32.mrf.mxu1  ;;  %v13561_v26 = vrot.slane %v13559_v46, 1 }
 0xc0c   : > { %v13074_v42 = vadd.f32 %v12963_v28, %v12708_v2 }
 0xc0d   : > { %16353 = vmatmul.msk.bf16.gmra.mxu3 %vm573_vm1, %v21528_v14  ;;  %v14208_v58 = vmax.f32 %v14144_v50, 0.0  ;;  %v13562_v17 = vsel %vm1133_vm3, %v13557_v61, %v13561_v26 }
 0xc0e   : > { %v13896_v51 = vadd.f32 %v13785_v49, %v13074_v42 }
 0xc0f   : > { %v14272_v36 = vpack.c.bf16 %v14208_v58, %v14208_v58  ;;  %v21038_v58 = vpop.f32.mrf.mxu0 }
 0xc10   : > { %v14033_v18 = vpop.f32.mrf.mxu3 }
 0xc11   : > { %14336 = vst.msk [vmem:[%s20774_s9 + $0x7c] sm:$0xf] %vm7768_vm4, %v14272_v36  ;;  %v14034_v33 = vadd.f32 %v21015_v5, %v14033_v18 }
 0xc12   : > { %v13790_v29 = vpop.f32.mrf.mxu2 }
 0xc13   : > { %v14145_v20 = vadd.f32 %v14034_v33, %v13895_v62  ;;  %v12966_v41 = vpop.f32.mrf.mxu1  ;;  %v16669_v62 = vld [vmem:[#allocation2 + $0x118] sm:$0xff]  ;;  %v12711_v33 = vadd.f32 %v20610_v23, %v20589_v34 }
 0xc14   : > { %v13075_v21 = vadd.f32 %v12966_v41, %v12709_v40 }
 0xc15   : > { %v14209_v47 = vmax.f32 %v14145_v20, 0.0 }
 0xc16   : > { %16161 = vmatmul.msk.bf16.gmra.mxu1 %vm573_vm1, %v17173_v63  ;;  %v13897_v60 = vadd.f32 %v13788_v27, %v13075_v21  ;;  %v17175_v21 = vld [vmem:[#allocation2 + $0x108] sm:$0xff]  }
 0xc17   : > { %16323 = vmatmul.msk.bf16.gmra.mxu2 %vm573_vm1, %v13554_v31  ;;  %v14273_v45 = vpack.c.bf16 %v14209_v47, %v14209_v47  ;;  %v13563_v47 = vshrl.u32 %v16668_v30, 16  ;;  %v21049_v31 = vpop.f32.mrf.mxu0 }
 0xc18   : > { %v14035_v53 = vpop.f32.mrf.mxu3 }
 0xc19   : > { %14337 = vst.msk [vmem:[%s20774_s9 + $0x80] sm:$0xf] %vm7768_vm4, %v14273_v45  ;;  %v14036_v12 = vadd.f32 %v21015_v5, %v14035_v53  ;;  %v13565_v23 = vor.u32 %v13563_v47, %v13561_v26  ;;  %v13571_v26 = vshrl.u32 %v16669_v62, 16 }
 0xc1a   : > { %v13793_v55 = vpop.f32.mrf.mxu2 }
 0xc1b   : > { %v14146_v15 = vadd.f32 %v14036_v12, %v13896_v51  ;;  %v12968_v24 = vpop.f32.mrf.mxu1  ;;  %v21534_v51 = vld [vmem:[#allocation100_spill] sm:$0xff] }
 0xc1c   : > { %v13076_v14 = vadd.f32 %v12968_v24, %v12710_v11  ;;  %v12712_v12 = vadd.f32 %v21534_v51, %v20594_v59  ;;  %v21537_v11 = vld [vmem:[#allocation48_spill] sm:$0xff] }
 0xc1d   : > { %16354 = vmatmul.msk.bf16.gmra.mxu3 %vm573_vm1, %v21531_v32  ;;  %v14210_v49 = vmax.f32 %v14146_v15, 0.0 }
 0xc1e   : > { %v13898_v28 = vadd.f32 %v13790_v29, %v13076_v14  ;;  %v13567_v29 = vshll.u32 %v16669_v62, 16 }
 0xc1f   : > { %v14274_v3 = vpack.c.bf16 %v14210_v49, %v14210_v49  ;;  %v16670_v49 = vld [vmem:[#allocation2 + $0x120] sm:$0xff]  ;;  %v21061_v59 = vpop.f32.mrf.mxu0 }
 0xc20   : > { %v14038_v10 = vpop.f32.mrf.mxu3  ;;  %v13569_v53 = vrot.slane %v13567_v29, 1  ;;  %v13575_v1 = vshll.u32 %v16670_v49, 16  ;;  %v13579_v51 = vshrl.u32 %v16670_v49, 16  ;;  %v21541_v49 = vld [vmem:[#allocation101_spill] sm:$0xff] }
 0xc21   : > { %14338 = vst.msk [vmem:[%s20774_s9 + $0x84] sm:$0xf] %vm7768_vm4, %v14274_v3  ;;  %v14039_v0 = vadd.f32 %v21015_v5, %v14038_v10  ;;  %v21535_v10 = vld [vmem:[#allocation97_spill] sm:$0xff] }
 0xc22   : > { %v13795_v7 = vpop.f32.mrf.mxu2  ;;  %v13570_v30 = vsel %vm1133_vm3, %v13565_v23, %v13569_v53 }
 0xc23   : > { %v14147_v50 = vadd.f32 %v14039_v0, %v13897_v60  ;;  %v12971_v38 = vpop.f32.mrf.mxu1  ;;  %v21536_v60 = vld [vmem:[#allocation103_spill] sm:$0xff] }
 0xc24   : > { %v13077_v25 = vadd.f32 %v12971_v38, %v12711_v33  ;;  %v12713_v0 = vadd.f32 %v21536_v60, %v21535_v10  ;;  %v12716_v10 = vadd.f32 %v21038_v58, %v21541_v49 }
 0xc25   : > { %v14211_v54 = vmax.f32 %v14147_v50, 0.0 }
 0xc26   : > { %16162 = vmatmul.msk.bf16.gmra.mxu1 %vm573_vm1, %v17174_v4  ;;  %v13899_v41 = vadd.f32 %v13793_v55, %v13077_v25 }
 0xc27   : > { %16324 = vmatmul.msk.bf16.gmra.mxu2 %vm573_vm1, %v13562_v17  ;;  %v14275_v27 = vpack.c.bf16 %v14211_v54, %v14211_v54  ;;  %v13573_v17 = vor.u32 %v13571_v26, %v13569_v53 }
 0xc28   : > { %v14040_v36 = vpop.f32.mrf.mxu3 }
 0xc29   : > { %14339 = vst.msk [vmem:[%s20774_s9 + $0x88] sm:$0xf] %vm7768_vm4, %v14275_v27  ;;  %v14041_v18 = vadd.f32 %v21015_v5, %v14040_v36  ;;  %v13577_v27 = vrot.slane %v13575_v1, 1 }
 0xc2a   : > { %v13798_v44 = vpop.f32.mrf.mxu2 }
 0xc2b   : > { %v14148_v39 = vadd.f32 %v14041_v18, %v13898_v28  ;;  %v12973_v42 = vpop.f32.mrf.mxu1  ;;  %v21538_v18 = vld [vmem:[#allocation98_spill] sm:$0xff] }
 0xc2c   : > { %v13078_v40 = vadd.f32 %v12973_v42, %v12712_v12  ;;  %v12714_v62 = vadd.f32 %v20644_v56, %v21538_v18 }
 0xc2d   : > { %16355 = vmatmul.msk.bf16.gmra.mxu3 %vm573_vm1, %v21533_v48  ;;  %v14212_v2 = vmax.f32 %v14148_v39, 0.0  ;;  %v13578_v39 = vsel %vm1133_vm3, %v13573_v17, %v13577_v27  ;;  %v21074_v48 = vpop.f32.mrf.mxu0 }
 0xc2e   : > { %v13900_v46 = vadd.f32 %v13795_v7, %v13078_v40 }
 0xc2f   : > { %v14276_v20 = vpack.c.bf16 %v14212_v2, %v14212_v2 }
 0xc30   : > { %v14043_v45 = vpop.f32.mrf.mxu3 }
 0xc31   : > { %14340 = vst.msk [vmem:[%s20774_s9 + $0x8c] sm:$0xf] %vm7768_vm4, %v14276_v20  ;;  %v14044_v63 = vadd.f32 %v21015_v5, %v14043_v45  ;;  %v16671_v20 = vld [vmem:[#allocation2 + $0x128] sm:$0xff]  ;;  %v17176_v45 = vld [vmem:[#allocation2 + $0x110] sm:$0xff]  }
 0xc32   : > { %v13800_v34 = vpop.f32.mrf.mxu2  ;;  %v13583_v12 = vshll.u32 %v16671_v20, 16 }
 0xc33   : > { %v14149_v22 = vadd.f32 %v14044_v63, %v13899_v41  ;;  %v12976_v55 = vpop.f32.mrf.mxu1  ;;  %v21539_v63 = vld [vmem:[#allocation99_spill] sm:$0xff] }
 0xc34   : > { %v13079_v7 = vadd.f32 %v12976_v55, %v12713_v0  ;;  %v12715_v23 = vadd.f32 %v21028_v16, %v21539_v63  ;;  %v13581_v55 = vor.u32 %v13579_v51, %v13577_v27  ;;  %v12718_v63 = vadd.f32 %v21061_v59, %v20639_v52 }
 0xc35   : > { %v14213_v15 = vmax.f32 %v14149_v22, 0.0  ;;  %v21540_v22 = vld [vmem:[#allocation49_spill] sm:$0xff]  ;;  %v12719_v59 = vadd.f32 %v21074_v48, %v20649_v6 }
 0xc36   : > { %16163 = vmatmul.msk.bf16.gmra.mxu1 %vm573_vm1, %v17175_v21  ;;  %v13901_v36 = vadd.f32 %v13798_v44, %v13079_v7  ;;  %v13585_v21 = vrot.slane %v13583_v12, 1 }
 0xc37   : > { %16325 = vmatmul.msk.bf16.gmra.mxu2 %vm573_vm1, %v13570_v30  ;;  %v14277_v32 = vpack.c.bf16 %v14213_v15, %v14213_v15  ;;  %v21085_v15 = vpop.f32.mrf.mxu0 }
 0xc38   : > { %v14045_v9 = vpop.f32.mrf.mxu3  ;;  %v13586_v0 = vsel %vm1133_vm3, %v13581_v55, %v13585_v21  ;;  %v12720_v6 = vadd.f32 %v21085_v15, %v20656_v43 }
 0xc39   : > { %14341 = vst.msk [vmem:[%s20774_s9 + $0x90] sm:$0xf] %vm7768_vm4, %v14277_v32  ;;  %v14046_v3 = vadd.f32 %v21015_v5, %v14045_v9 }
 0xc3a   : > { %v13803_v24 = vpop.f32.mrf.mxu2 }
 0xc3b   : > { %v14150_v61 = vadd.f32 %v14046_v3, %v13900_v46  ;;  %v12978_v54 = vpop.f32.mrf.mxu1 }
 0xc3c   : > { %v13080_v25 = vadd.f32 %v12978_v54, %v12714_v62  ;;  %v13587_v62 = vshrl.u32 %v16671_v20, 16 }
 0xc3d   : > { %16356 = vmatmul.msk.bf16.gmra.mxu3 %vm573_vm1, %v21537_v11  ;;  %v14214_v50 = vmax.f32 %v14150_v61, 0.0  ;;  %v13169_v61 = vld [vmem:[#allocation2 + $0x130] sm:$0x1] }
 0xc3e   : > { %v13902_v47 = vadd.f32 %v13800_v34, %v13080_v25  ;;  %v13301_v11 = vunpack.c.l.b16 %v13169_v61 }
 0xc3f   : > { %v14278_v14 = vpack.c.bf16 %v14214_v50, %v14214_v50  ;;  %v17177_v50 = vld [vmem:[#allocation2 + $0x118] sm:$0xff]   ;;  %v21094_v54 = vpop.f32.mrf.mxu0 }
 0xc40   : > { %v14048_v38 = vpop.f32.mrf.mxu3  ;;  %v12721_v43 = vadd.f32 %v21094_v54, %v20662_v19 }
 0xc41   : > { %14342 = vst.msk [vmem:[%s20774_s9 + $0x94] sm:$0xf] %vm7768_vm4, %v14278_v14  ;;  %v14049_v28 = vadd.f32 %v21015_v5, %v14048_v38  ;;  %v13334_v14 = vpack.c.b16 %v13301_v11, %v13301_v11 }
 0xc42   : > { %v13805_v4 = vpop.f32.mrf.mxu2 }
 0xc43   : > { %v14151_v33 = vadd.f32 %v14049_v28, %v13901_v36  ;;  %v12981_v44 = vpop.f32.mrf.mxu1  ;;  %v21542_v36 = vld [vmem:[#allocation102_spill] sm:$0xff] }
 0xc44   : > { %v13081_v40 = vadd.f32 %v12981_v44, %v12715_v23  ;;  %v12717_v28 = vadd.f32 %v21049_v31, %v21542_v36  ;;  %v13589_v44 = vor.u32 %v13587_v62, %v13585_v21  ;;  %v17919_v21 = vld [vmem:[%s18019_s12 + $0x120] sm:$0xff]   ;;  %v21545_v62 = vld [vmem:[#allocation52_spill] sm:$0xff] }
 0xc45   : > { %v14215_v2 = vmax.f32 %v14151_v33, 0.0  ;;  %v13591_v33 = vshll.u32 %v13334_v14, 16  ;;  %v16686_v52 = vunpack.c.l.b16 %v17919_v21 }
 0xc46   : > { %16164 = vmatmul.msk.bf16.gmra.mxu1 %vm573_vm1, %v17176_v45  ;;  %v13903_v46 = vadd.f32 %v13803_v24, %v13081_v40  ;;  %v17178_v40 = vld [vmem:[#allocation2 + $0x120] sm:$0xff]  }
 0xc47   : > { %16326 = vmatmul.msk.bf16.gmra.mxu2 %vm573_vm1, %v13578_v39  ;;  %v14279_v29 = vpack.c.bf16 %v14215_v2, %v14215_v2  ;;  %v21543_v39 = vld [vmem:[#allocation50_spill] sm:$0xff]  ;;  %v12632_v20 = vpop.f32.mrf.mxu0 }
 0xc48   : > { %v14050_v42 = vpop.f32.mrf.mxu3 }
 0xc49   : > { %14343 = vst.msk [vmem:[%s20774_s9 + $0x98] sm:$0xf] %vm7768_vm4, %v14279_v29  ;;  %v14051_v41 = vadd.f32 %v21015_v5, %v14050_v42  ;;  %v13593_v42 = vrot.slane %v13591_v33, 1 }
 0xc4a   : > { %v13808_v56 = vpop.f32.mrf.mxu2 }
 0xc4b   : > { %v14152_v53 = vadd.f32 %v14051_v41, %v13902_v47  ;;  %v12983_v32 = vpop.f32.mrf.mxu1 }
 0xc4c   : > { %v13082_v26 = vadd.f32 %v12983_v32, %v12716_v10  ;;  %v13932_v10 = vpack.c.b16 %v16686_v52, %v16686_v52 }
 0xc4d   : > { %16357 = vmatmul.msk.bf16.gmra.mxu3 %vm573_vm1, %v21540_v22  ;;  %v14216_v34 = vmax.f32 %v14152_v53, 0.0  ;;  %v13594_v53 = vsel %vm1133_vm3, %v13589_v44, %v13593_v42 }
 0xc4e   : > { %v13904_v27 = vadd.f32 %v13805_v4, %v13082_v26 }
 0xc4f   : > { %v14280_v30 = vpack.c.bf16 %v14216_v34, %v14216_v34 }
 0xc50   : > { %v14053_v9 = vpop.f32.mrf.mxu3 }
 0xc51   : > { %14344 = vst.msk [vmem:[%s20774_s9 + $0x9c] sm:$0xf] %vm7768_vm4, %v14280_v30  ;;  %v14054_v16 = vadd.f32 %v21015_v5, %v14053_v9 }
 0xc52   : > { %v13810_v3 = vpop.f32.mrf.mxu2 }
 0xc53   : > { %v14153_v60 = vadd.f32 %v14054_v16, %v13903_v46  ;;  %v12986_v24 = vpop.f32.mrf.mxu1  ;;  %v12635_v46 = vpop.f32.mrf.mxu0  ;;  %v21544_v16 = vld [vmem:[#allocation51_spill] sm:$0xff] }
 0xc54   : > { %v13083_v25 = vadd.f32 %v12986_v24, %v12717_v28 }
 0xc55   : > { %v14217_v1 = vmax.f32 %v14153_v60, 0.0 }
 0xc56   : > { %16165 = vmatmul.msk.bf16.gmra.mxu1 %vm573_vm1, %v17177_v50  ;;  %v13905_v45 = vadd.f32 %v13808_v56, %v13083_v25 }
 0xc57   : > { %16327 = vmatmul.msk.bf16.gmra.mxu2 %vm573_vm1, %v13586_v0  ;;  %v14281_v7 = vpack.c.bf16 %v14217_v1, %v14217_v1 }
 0xc58   : > { %v14055_v17 = vpop.f32.mrf.mxu3 }
 0xc59   : > { %14345 = vst.msk [vmem:[%s20774_s9 + $0xa0] sm:$0xf] %vm7768_vm4, %v14281_v7  ;;  %v14056_v58 = vadd.f32 %v21015_v5, %v14055_v17  ;;  %v13934_v7 = vshll.u32 %v13932_v10, 16 }
 0xc5a   : > { %v13813_v38 = vpop.f32.mrf.mxu2 }
 0xc5b   : > { %v14154_v18 = vadd.f32 %v14056_v58, %v13904_v27  ;;  %v12988_v29 = vpop.f32.mrf.mxu1  ;;  %v13936_v14 = vrot.slane %v13934_v7, 1  ;;  %v12637_v17 = vpop.f32.mrf.mxu0 }
 0xc5c   : > { %v13084_v51 = vadd.f32 %v12988_v29, %v12718_v63 }
 0xc5d   : > { %16358 = vmatmul.msk.bf16.gmra.mxu3 %vm573_vm1, %v21543_v39  ;;  %v14218_v2 = vmax.f32 %v14154_v18, 0.0  ;;  %v13937_v33 = vsel %vm1133_vm3, %v21545_v62, %v13936_v14  ;;  %v17920_v39 = vld [vmem:[#allocation2 + $0x128] sm:$0xff]  }
 0xc5e   : > { %v13906_v30 = vadd.f32 %v13810_v3, %v13084_v51 }
 0xc5f   : > { %v14282_v4 = vpack.c.bf16 %v14218_v2, %v14218_v2 }
 0xc60   : > { %v14058_v47 = vpop.f32.mrf.mxu3 }
 0xc61   : > { %14346 = vst.msk [vmem:[%s20774_s9 + $0xa4] sm:$0xf] %vm7768_vm4, %v14282_v4  ;;  %v14059_v41 = vadd.f32 %v21015_v5, %v14058_v47 }
 0xc62   : > { %v13815_v31 = vpop.f32.mrf.mxu2 }
 0xc63   : > { %v14155_v23 = vadd.f32 %v14059_v41, %v13905_v45  ;;  %v12991_v56 = vpop.f32.mrf.mxu1  ;;  %v12640_v44 = vpop.f32.mrf.mxu0 }
 0xc64   : > { %v13085_v49 = vadd.f32 %v12991_v56, %v12719_v59 }
 0xc65   : > { %v14219_v12 = vmax.f32 %v14155_v23, 0.0 }
 0xc66   : > { %16166 = vmatmul.msk.bf16.gmra.mxu1 %vm573_vm1, %v17178_v40  ;;  %v13907_v26 = vadd.f32 %v13813_v38, %v13085_v49 }
 0xc67   : > { %16328 = vmatmul.msk.bf16.gmra.mxu2 %vm573_vm1, %v13594_v53  ;;  %v14283_v22 = vpack.c.bf16 %v14219_v12, %v14219_v12 }
 0xc68   : > { %v14060_v34 = vpop.f32.mrf.mxu3 }
 0xc69   : > { %14347 = vst.msk [vmem:[%s20774_s9 + $0xa8] sm:$0xf] %vm7768_vm4, %v14283_v22  ;;  %v14061_v32 = vadd.f32 %v21015_v5, %v14060_v34  ;;  %v12723_v34 = vadd.f32 %v12635_v46, %v20673_v8 }
 0xc6a   : > { %v13818_v55 = vpop.f32.mrf.mxu2 }
 0xc6b   : > { %v14156_v9 = vadd.f32 %v14061_v32, %v13906_v30  ;;  %v12993_v0 = vpop.f32.mrf.mxu1  ;;  %v12642_v40 = vpop.f32.mrf.mxu0 }
 0xc6c   : > { %v13086_v24 = vadd.f32 %v12993_v0, %v12720_v6 }
 0xc6d   : > { %16359 = vmatmul.msk.bf16.gmra.mxu3 %vm573_vm1, %v21544_v16  ;;  %v14220_v3 = vmax.f32 %v14156_v9, 0.0  ;;  %v12724_v16 = vadd.f32 %v12637_v17, %v20678_v13 }
 0xc6e   : > { %v13908_v28 = vadd.f32 %v13815_v31, %v13086_v24  ;;  %v12722_v31 = vadd.f32 %v12632_v20, %v20667_v57 }
 0xc6f   : > { %v14284_v60 = vpack.c.bf16 %v14220_v3, %v14220_v3 }
 0xc70   : > { %v14063_v61 = vpop.f32.mrf.mxu3 }
 0xc71   : > { %14348 = vst.msk [vmem:[%s20774_s9 + $0xac] sm:$0xf] %vm7768_vm4, %v14284_v60  ;;  %v14064_v1 = vadd.f32 %v21015_v5, %v14063_v61 }
 0xc72   : > { %v13820_v11 = vpop.f32.mrf.mxu2 }
 0xc73   : > { %v14157_v48 = vadd.f32 %v14064_v1, %v13907_v26  ;;  %v12996_v58 = vpop.f32.mrf.mxu1  ;;  %v12645_v3 = vpop.f32.mrf.mxu0 }
 0xc74   : > { %v13087_v25 = vadd.f32 %v12996_v58, %v12721_v43  ;;  %v12726_v58 = vadd.f32 %v12642_v40, %v20689_v37 }
 0xc75   : > { %v14221_v50 = vmax.f32 %v14157_v48, 0.0 }
 0xc76   : > { %16167 = vmatmul.msk.bf16.gmra.mxu1 %vm573_vm1, %v17920_v39  ;;  %v13909_v47 = vadd.f32 %v13818_v55, %v13087_v25  ;;  %v21546_v25 = vld [vmem:[#allocation31_spill] sm:$0xff] }
 0xc77   : > { %v14285_v27 = vpack.c.bf16 %v14221_v50, %v14221_v50 }
 0xc78   : > { %v14065_v36 = vpop.f32.mrf.mxu3 }
 0xc79   : > { %14349 = vst.msk [vmem:[%s20774_s9 + $0xb0] sm:$0xf] %vm7768_vm4, %v14285_v27  ;;  %v14066_v38 = vadd.f32 %v21015_v5, %v14065_v36 }
 0xc7a   : > { %v13823_v18 = vpop.f32.mrf.mxu2 }
 0xc7b   : > { %v14158_v15 = vadd.f32 %v14066_v38, %v13908_v28  ;;  %v12998_v29 = vpop.f32.mrf.mxu1  ;;  %v12647_v13 = vpop.f32.mrf.mxu0 }
 0xc7c   : > { %v13088_v19 = vadd.f32 %v12998_v29, %v12722_v31 }
 0xc7d   : > { %16360 = vmatmul.msk.bf16.gmra.mxu3 %vm573_vm1, %v13937_v33  ;;  %v14222_v2 = vmax.f32 %v14158_v15, 0.0 }
 0xc7e   : > { %v13910_v12 = vadd.f32 %v13820_v11, %v13088_v19  ;;  %v12725_v11 = vadd.f32 %v12640_v44, %v20684_v35  ;;  %v21547_v19 = vld [vmem:[#allocation34_spill] sm:$0xff] }
 0xc7f   : > { %v14286_v4 = vpack.c.bf16 %v14222_v2, %v14222_v2  ;;  %v12727_v2 = vadd.f32 %v12645_v3, %v21546_v25 }
 0xc80   : > { %v14068_v42 = vpop.f32.mrf.mxu3 }
 0xc81   : > { %14350 = vst.msk [vmem:[%s20774_s9 + $0xb4] sm:$0xf] %vm7768_vm4, %v14286_v4  ;;  %v14069_v45 = vadd.f32 %v21015_v5, %v14068_v42 }
 0xc82   : > { %v13825_v41 = vpop.f32.mrf.mxu2 }
 0xc83   : > { %v14159_v63 = vadd.f32 %v14069_v45, %v13909_v47  ;;  %v13001_v53 = vpop.f32.mrf.mxu1  ;;  %v12650_v33 = vpop.f32.mrf.mxu0 }
 0xc84   : > { %v13089_v32 = vadd.f32 %v13001_v53, %v12723_v34 }
 0xc85   : > { %v14223_v54 = vmax.f32 %v14159_v63, 0.0 }
 0xc86   : > { %v13911_v52 = vadd.f32 %v13823_v18, %v13089_v32  ;;  %v21548_v32 = vld [vmem:[#allocation15_spill] sm:$0xff] }
 0xc87   : > { %v14287_v23 = vpack.c.bf16 %v14223_v54, %v14223_v54  ;;  %v12728_v54 = vadd.f32 %v12647_v13, %v21547_v19  ;;  %v21550_v13 = vld [vmem:[#allocation54_spill] sm:$0xff] }
 0xc88   : > { %v14070_v51 = vpop.f32.mrf.mxu3 }
 0xc89   : > { %14351 = vst.msk [vmem:[%s20774_s9 + $0xb8] sm:$0xf] %vm7768_vm4, %v14287_v23  ;;  %v14071_v22 = vadd.f32 %v21015_v5, %v14070_v51 }
 0xc8a   : > { %v13828_v56 = vpop.f32.mrf.mxu2 }
 0xc8b   : > { %v14160_v30 = vadd.f32 %v14071_v22, %v13910_v12  ;;  %v13003_v20 = vpop.f32.mrf.mxu1  ;;  %v12652_v63 = vpop.f32.mrf.mxu0 }
 0xc8c   : > { %v13090_v10 = vadd.f32 %v13003_v20, %v12724_v16 }
 0xc8d   : > { %v14224_v55 = vmax.f32 %v14160_v30, 0.0 }
 0xc8e   : > { %v13912_v61 = vadd.f32 %v13825_v41, %v13090_v10 }
 0xc8f   : > { %v14288_v57 = vpack.c.bf16 %v14224_v55, %v14224_v55  ;;  %v12729_v55 = vadd.f32 %v12650_v33, %v21548_v32 }
 0xc90   : > { %v14073_v21 = vpop.f32.mrf.mxu3 }
 0xc91   : > { %14352 = vst.msk [vmem:[%s20774_s9 + $0xbc] sm:$0xf] %vm7768_vm4, %v14288_v57  ;;  %v14074_v59 = vadd.f32 %v21015_v5, %v14073_v21 }
 0xc92   : > { %v13830_v9 = vpop.f32.mrf.mxu2 }
 0xc93   : > { %v14161_v49 = vadd.f32 %v14074_v59, %v13911_v52  ;;  %v13006_v46 = vpop.f32.mrf.mxu1  ;;  %v12655_v20 = vpop.f32.mrf.mxu0 }
 0xc94   : > { %v13091_v6 = vadd.f32 %v13006_v46, %v12725_v11 }
 0xc95   : > { %v14225_v60 = vmax.f32 %v14161_v49, 0.0 }
 0xc96   : > { %v13913_v17 = vadd.f32 %v13828_v56, %v13091_v6 }
 0xc97   : > { %v14289_v8 = vpack.c.bf16 %v14225_v60, %v14225_v60  ;;  %v21549_v60 = vld [vmem:[#allocation43_spill] sm:$0xff] }
 0xc98   : > { %v14075_v0 = vpop.f32.mrf.mxu3 }
 0xc99   : > { %14353 = vst.msk [vmem:[%s20774_s9 + $0xc0] sm:$0xf] %vm7768_vm4, %v14289_v8  ;;  %v14076_v26 = vadd.f32 %v21015_v5, %v14075_v0  ;;  %v12730_v8 = vadd.f32 %v12652_v63, %v21549_v60 }
 0xc9a   : > { %v13833_v1 = vpop.f32.mrf.mxu2 }
 0xc9b   : > { %v14162_v7 = vadd.f32 %v14076_v26, %v13912_v61  ;;  %v13008_v50 = vpop.f32.mrf.mxu1  ;;  %v12657_v26 = vpop.f32.mrf.mxu0 }
 0xc9c   : > { %v13092_v38 = vadd.f32 %v13008_v50, %v12726_v58 }
 0xc9d   : > { %v14226_v48 = vmax.f32 %v14162_v7, 0.0 }
 0xc9e   : > { %v13914_v43 = vadd.f32 %v13830_v9, %v13092_v38 }
 0xc9f   : > { %v14290_v24 = vpack.c.bf16 %v14226_v48, %v14226_v48 }
 0xca0   : > { %v14078_v14 = vpop.f32.mrf.mxu3 }
 0xca1   : > { %14354 = vst.msk [vmem:[%s20774_s9 + $0xc4] sm:$0xf] %vm7768_vm4, %v14290_v24  ;;  %v14079_v27 = vadd.f32 %v21015_v5, %v14078_v14  ;;  %v12731_v24 = vadd.f32 %v12655_v20, %v21550_v13 }
 0xca2   : > { %v13835_v28 = vpop.f32.mrf.mxu2 }
 0xca3   : > { %v14163_v36 = vadd.f32 %v14079_v27, %v13913_v17  ;;  %v13011_v62 = vpop.f32.mrf.mxu1 }
 0xca4   : > { %v13093_v29 = vadd.f32 %v13011_v62, %v12727_v2  ;;  %v21551_v62 = vld [vmem:[#allocation16_spill] sm:$0xff] }
 0xca5   : > { %v14227_v18 = vmax.f32 %v14163_v36, 0.0  ;;  %v12732_v33 = vadd.f32 %v12657_v26, %v21551_v62 }
 0xca6   : > { %v13915_v41 = vadd.f32 %v13833_v1, %v13093_v29 }
 0xca7   : > { %v14291_v35 = vpack.c.bf16 %v14227_v18, %v14227_v18 }
 0xca8   : > { %v14080_v39 = vpop.f32.mrf.mxu3 }
 0xca9   : > { %14355 = vst.msk [vmem:[%s20774_s9 + $0xc8] sm:$0xf] %vm7768_vm4, %v14291_v35  ;;  %v14081_v15 = vadd.f32 %v21015_v5, %v14080_v39 }
 0xcaa   : > { %v13838_v37 = vpop.f32.mrf.mxu2 }
 0xcab   : > { %v14164_v4 = vadd.f32 %v14081_v15, %v13914_v43  ;;  %v13013_v47 = vpop.f32.mrf.mxu1 }
 0xcac   : > { %v13094_v53 = vadd.f32 %v13013_v47, %v12728_v54  ;;  %v21552_v47 = vld [vmem:[#allocation3_spill] sm:$0xff] }
 0xcad   : > { %v14228_v44 = vmax.f32 %v14164_v4, 0.0 }
 0xcae   : > { %v13916_v34 = vadd.f32 %v13835_v28, %v13094_v53  ;;  %v12660_v28 = vpop.f32.mrf.mxu0 }
 0xcaf   : > { %v14292_v42 = vpack.c.bf16 %v14228_v44, %v14228_v44 }
 0xcb0   : > { %v14083_v45 = vpop.f32.mrf.mxu3 }
 0xcb1   : > { %14356 = vst.msk [vmem:[%s20774_s9 + $0xcc] sm:$0xf] %vm7768_vm4, %v14292_v42  ;;  %v14084_v31 = vadd.f32 %v21015_v5, %v14083_v45  ;;  %v12733_v45 = vadd.f32 %v12660_v28, %v21552_v47 }
 0xcb2   : > { %v13840_v56 = vpop.f32.mrf.mxu2 }
 0xcb3   : > { %v14165_v23 = vadd.f32 %v14084_v31, %v13915_v41  ;;  %v13016_v22 = vpop.f32.mrf.mxu1 }
 0xcb4   : > { %v13095_v21 = vadd.f32 %v13016_v22, %v12729_v55 }
 0xcb5   : > { %v14229_v51 = vmax.f32 %v14165_v23, 0.0 }
 0xcb6   : > { %v13917_v49 = vadd.f32 %v13838_v37, %v13095_v21  ;;  %v12662_v42 = vpop.f32.mrf.mxu0 }
 0xcb7   : > { %v14293_v12 = vpack.c.bf16 %v14229_v51, %v14229_v51 }
 0xcb8   : > { %v14085_v40 = vpop.f32.mrf.mxu3 }
 0xcb9   : > { %14357 = vst.msk [vmem:[%s20774_s9 + $0xd0] sm:$0xf] %vm7768_vm4, %v14293_v12  ;;  %v14086_v30 = vadd.f32 %v21015_v5, %v14085_v40 }
 0xcba   : > { %v13843_v10 = vpop.f32.mrf.mxu2 }
 0xcbb   : > { %v14166_v57 = vadd.f32 %v14086_v30, %v13916_v34  ;;  %v13018_v9 = vpop.f32.mrf.mxu1 }
 0xcbc   : > { %v13096_v0 = vadd.f32 %v13018_v9, %v12730_v8  ;;  %v21554_v9 = vld [vmem:[#allocation17_spill] sm:$0xff] }
 0xcbd   : > { %v14230_v52 = vmax.f32 %v14166_v57, 0.0 }
 0xcbe   : > { %v13918_v6 = vadd.f32 %v13840_v56, %v13096_v0  ;;  %v12665_v22 = vpop.f32.mrf.mxu0  ;;  %v21553_v56 = vld [vmem:[#allocation55_spill] sm:$0xff] }
 0xcbf   : > { %v14294_v59 = vpack.c.bf16 %v14230_v52, %v14230_v52  ;;  %v12734_v40 = vadd.f32 %v12662_v42, %v21553_v56 }
 0xcc0   : > { %v14088_v16 = vpop.f32.mrf.mxu3 }
 0xcc1   : > { %14358 = vst.msk [vmem:[%s20774_s9 + $0xd4] sm:$0xf] %vm7768_vm4, %v14294_v59  ;;  %v14089_v3 = vadd.f32 %v21015_v5, %v14088_v16  ;;  %v12735_v16 = vadd.f32 %v12665_v22, %v21554_v9 }
 0xcc2   : > { %v13845_v14 = vpop.f32.mrf.mxu2 }
 0xcc3   : > { %v14167_v46 = vadd.f32 %v14089_v3, %v13917_v49  ;;  %v13021_v11 = vpop.f32.mrf.mxu1 }
 0xcc4   : > { %v13097_v17 = vadd.f32 %v13021_v11, %v12731_v24  ;;  %v21555_v11 = vld [vmem:[#allocation57_spill] sm:$0xff] }
 0xcc5   : > { %v14231_v61 = vmax.f32 %v14167_v46, 0.0 }
 0xcc6   : > { %v13919_v18 = vadd.f32 %v13843_v10, %v13097_v17  ;;  %v12667_v3 = vpop.f32.mrf.mxu0 }
 0xcc7   : > { %v14295_v1 = vpack.c.bf16 %v14231_v61, %v14231_v61 }
 0xcc8   : > { %v14090_v7 = vpop.f32.mrf.mxu3 }
 0xcc9   : > { %14359 = vst.msk [vmem:[%s20774_s9 + $0xd8] sm:$0xf] %vm7768_vm4, %v14295_v1  ;;  %v14091_v48 = vadd.f32 %v21015_v5, %v14090_v7  ;;  %v12736_v7 = vadd.f32 %v12667_v3, %v21555_v11 }
 0xcca   : > { %v13848_v43 = vpop.f32.mrf.mxu2 }
 0xccb   : > { %v14168_v50 = vadd.f32 %v14091_v48, %v13918_v6  ;;  %v13023_v36 = vpop.f32.mrf.mxu1 }
 0xccc   : > { %v13098_v15 = vadd.f32 %v13023_v36, %v12732_v33  ;;  %v21556_v36 = vld [vmem:[#allocation59_spill] sm:$0xff] }
 0xccd   : > { %v14232_v27 = vmax.f32 %v14168_v50, 0.0 }
 0xcce   : > { %v13920_v44 = vadd.f32 %v13845_v14, %v13098_v15  ;;  %v12670_v24 = vpop.f32.mrf.mxu0 }
 0xccf   : > { %v14296_v58 = vpack.c.bf16 %v14232_v27, %v14232_v27  ;;  %v12737_v28 = vadd.f32 %v12670_v24, %v21556_v36 }
 0xcd0   : > { %v14093_v38 = vpop.f32.mrf.mxu3 }
 0xcd1   : > { %14360 = vst.msk [vmem:[%s20774_s9 + $0xdc] sm:$0xf] %vm7768_vm4, %v14296_v58  ;;  %v14094_v35 = vadd.f32 %v21015_v5, %v14093_v38 }
 0xcd2   : > { %v13850_v19 = vpop.f32.mrf.mxu2 }
 0xcd3   : > { %v14169_v39 = vadd.f32 %v14094_v35, %v13919_v18  ;;  %v13026_v4 = vpop.f32.mrf.mxu1 }
 0xcd4   : > { %v13099_v31 = vadd.f32 %v13026_v4, %v12733_v45  ;;  %v21557_v4 = vld [vmem:[#allocation18_spill] sm:$0xff] }
 0xcd5   : > { %v14233_v25 = vmax.f32 %v14169_v39, 0.0 }
 0xcd6   : > { %v13921_v51 = vadd.f32 %v13848_v43, %v13099_v31  ;;  %v12672_v39 = vpop.f32.mrf.mxu0 }
 0xcd7   : > { %v14297_v2 = vpack.c.bf16 %v14233_v25, %v14233_v25 }
 0xcd8   : > { %v14095_v29 = vpop.f32.mrf.mxu3 }
 0xcd9   : > { %14361 = vst.msk [vmem:[%s20774_s9 + $0xe0] sm:$0xf] %vm7768_vm4, %v14297_v2  ;;  %v14096_v37 = vadd.f32 %v21015_v5, %v14095_v29  ;;  %v12738_v29 = vadd.f32 %v12672_v39, %v21557_v4 }
 0xcda   : > { %v13853_v20 = vpop.f32.mrf.mxu2 }
 0xcdb   : > { %v14170_v41 = vadd.f32 %v14096_v37, %v13920_v44  ;;  %v13028_v23 = vpop.f32.mrf.mxu1 }
 0xcdc   : > { %v13100_v30 = vadd.f32 %v13028_v23, %v12734_v40 }
 0xcdd   : > { %v14234_v63 = vmax.f32 %v14170_v41, 0.0 }
 0xcde   : > { %v13922_v52 = vadd.f32 %v13850_v19, %v13100_v30 }
 0xcdf   : > { %v14298_v54 = vpack.c.bf16 %v14234_v63, %v14234_v63 }
 0xce0   : > { %v14098_v53 = vpop.f32.mrf.mxu3 }
 0xce1   : > { %14362 = vst.msk [vmem:[%s20774_s9 + $0xe4] sm:$0xf] %vm7768_vm4, %v14298_v54  ;;  %v14099_v12 = vadd.f32 %v21015_v5, %v14098_v53 }
 0xce2   : > { %v13855_v1 = vpop.f32.mrf.mxu2 }
 0xce3   : > { %v14171_v34 = vadd.f32 %v14099_v12, %v13921_v51  ;;  %v13031_v57 = vpop.f32.mrf.mxu1 }
 0xce4   : > { %v13101_v10 = vadd.f32 %v13031_v57, %v12735_v16 }
 0xce5   : > { %v14235_v32 = vmax.f32 %v14171_v34, 0.0 }
 0xce6   : > { %v13923_v61 = vadd.f32 %v13853_v20, %v13101_v10 }
 0xce7   : > { %v14299_v55 = vpack.c.bf16 %v14235_v32, %v14235_v32 }
 0xce8   : > { %v14100_v21 = vpop.f32.mrf.mxu3 }
 0xce9   : > { %14363 = vst.msk [vmem:[%s20774_s9 + $0xe8] sm:$0xf] %vm7768_vm4, %v14299_v55  ;;  %v14101_v59 = vadd.f32 %v21015_v5, %v14100_v21 }
 0xcea   : > { %v13858_v18 = vpop.f32.mrf.mxu2 }
 0xceb   : > { %v14172_v49 = vadd.f32 %v14101_v59, %v13922_v52  ;;  %v13033_v46 = vpop.f32.mrf.mxu1 }
 0xcec   : > { %v13102_v48 = vadd.f32 %v13033_v46, %v12736_v7 }
 0xced   : > { %v14236_v60 = vmax.f32 %v14172_v49, 0.0 }
 0xcee   : > { %v13924_v27 = vadd.f32 %v13855_v1, %v13102_v48 }
 0xcef   : > { %v14300_v8 = vpack.c.bf16 %v14236_v60, %v14236_v60 }
 0xcf0   : > { %v14103_v0 = vpop.f32.mrf.mxu3 }
 0xcf1   : > { %14364 = vst.msk [vmem:[%s20774_s9 + $0xec] sm:$0xf] %vm7768_vm4, %v14300_v8  ;;  %v14104_v26 = vadd.f32 %v21015_v5, %v14103_v0 }
 0xcf2   : > { %v13860_v47 = vpop.f32.mrf.mxu2 }
 0xcf3   : > { %v14173_v6 = vadd.f32 %v14104_v26, %v13923_v61  ;;  %v13036_v14 = vpop.f32.mrf.mxu1 }
 0xcf4   : > { %v13103_v35 = vadd.f32 %v13036_v14, %v12737_v28 }
 0xcf5   : > { %v14237_v13 = vmax.f32 %v14173_v6, 0.0 }
 0xcf6   : > { %v13925_v15 = vadd.f32 %v13858_v18, %v13103_v35 }
 0xcf7   : > { %v14301_v50 = vpack.c.bf16 %v14237_v13, %v14237_v13 }
 0xcf8   : > { %v14105_v17 = vpop.f32.mrf.mxu3 }
 0xcf9   : > { %14365 = vst.msk [vmem:[%s20774_s9 + $0xf0] sm:$0xf] %vm7768_vm4, %v14301_v50  ;;  %v14106_v58 = vadd.f32 %v21015_v5, %v14105_v17 }
 0xcfb   : > { %v14174_v38 = vadd.f32 %v14106_v58, %v13924_v27  ;;  %v13038_v2 = vpop.f32.mrf.mxu1 }
 0xcfc   : > { %v13104_v37 = vadd.f32 %v13038_v2, %v12738_v29 }
 0xcfd   : > { %v14238_v62 = vmax.f32 %v14174_v38, 0.0 }
 0xcfe   : > { %v13926_v31 = vadd.f32 %v13860_v47, %v13104_v37 }
 0xcff   : > { %v14302_v33 = vpack.c.bf16 %v14238_v62, %v14238_v62 }
 0xd00   : > { %v14108_v43 = vpop.f32.mrf.mxu3 }
 0xd01   : > { %14366 = vst.msk [vmem:[%s20774_s9 + $0xf4] sm:$0xf] %vm7768_vm4, %v14302_v33  ;;  %v14109_v25 = vadd.f32 %v21015_v5, %v14108_v43 }
 0xd03   : > { %v14175_v44 = vadd.f32 %v14109_v25, %v13925_v15 }
 0xd05   : > { %v14239_v42 = vmax.f32 %v14175_v44, 0.0 }
 0xd07   : > { %v14303_v45 = vpack.c.bf16 %v14239_v42, %v14239_v42 }
 0xd08   : > { %v14110_v41 = vpop.f32.mrf.mxu3 }
 0xd09   : > { %14367 = vst.msk [vmem:[%s20774_s9 + $0xf8] sm:$0xf] %vm7768_vm4, %v14303_v45  ;;  %v14111_v63 = vadd.f32 %v21015_v5, %v14110_v41 }
 0xd0b   : > { %v14176_v19 = vadd.f32 %v14111_v63, %v13926_v31 }
 0xd0d   : > { %v14240_v54 = vmax.f32 %v14176_v19, 0.0 }
 0xd0f   : > { %v14304_v23 = vpack.c.bf16 %v14240_v54, %v14240_v54 }
 0xd11   : > { %14368 = vst.msk [vmem:[%s20774_s9 + $0xfc] sm:$0xf] %vm7768_vm4, %v14304_v23 }
 0xd12 PF: > { %s17_s26 = sadd.s32 1, %s17943_s26   ;;  %s21558_s24 = smov %s17939_s25 }
 0xd13   : > { %p14_p5 = scmp.ge.s32.totalorder %s17_s26, 4   ;;  %s21559_s25 = smov %s21561_s27 }
 0xd15   :  { %16 = sbr.rel (!%p14_p5) target bundleno = 2 (0x2), region = 94 }

</bundles_post_ra>
